<compile_context>
chip_gen: v6e
topology: v6e:2x2x1
jax: 0.10.0
libtpu: 0.0.40
codegen_flags: <defaults>
</compile_context>

<pallas_src>
import functools
import math

import jax
import jax.numpy as jnp
from jax.experimental import pallas as pl
from jax.experimental.pallas import tpu as pltpu

# ---------------- configuration (small shapes, consistent with ViTModel) -------
CHW = (3, 14, 14)            # (C, H, W); H, W divisible by N_PATCHES
N_PATCHES = 7
N_BLOCKS = 2
HIDDEN_D = 8
N_HEADS = 2
OUT_D = 10
BATCH = 2

PS = CHW[1] // N_PATCHES                 # patch size (2)
IN_D = CHW[0] * PS * PS                  # flattened patch dim (12)
SEQ = N_PATCHES * N_PATCHES + 1          # 50 tokens incl. [CLS]
D_HEAD = HIDDEN_D // N_HEADS             # 4
MLP_D = 4 * HIDDEN_D                     # 32
LN_EPS = 1e-5                            # PyTorch LayerNorm default
OUT_PAD = 128                            # lane-dense padded classifier width
NEG_BIG = -1e30


# ---------------- numerics helpers (used both in-kernel and in the reference) --
def _erf(x):
    # TODO(synk): nn.GELU() uses exact erf; Pallas/Mosaic has no guaranteed erf
    # primitive, so we use the Abramowitz-Stegun 7.1.26 approximation (|err|~1.5e-7).
    a1, a2, a3, a4, a5 = 0.254829592, -0.284496736, 1.421413741, -1.453152027, 1.061405429
    p = 0.3275911
    ax = jnp.abs(x)
    t = 1.0 / (1.0 + p * ax)
    poly = ((((a5 * t + a4) * t + a3) * t + a2) * t + a1) * t
    y = 1.0 - poly * jnp.exp(-ax * ax)
    return jnp.where(x >= 0, y, -y)


def _gelu(x):
    return 0.5 * x * (1.0 + _erf(x * (1.0 / math.sqrt(2.0))))


def _softmax(x):
    m = jnp.max(x, axis=-1, keepdims=True)
    e = jnp.exp(x - m)
    return e / jnp.sum(e, axis=-1, keepdims=True)


def _layernorm(x, g, b):
    mu = jnp.mean(x, axis=-1, keepdims=True)
    var = jnp.mean((x - mu) ** 2, axis=-1, keepdims=True)   # biased, like torch
    return (x - mu) * jax.lax.rsqrt(var + LN_EPS) * g + b


def _dot(a, b):          # a @ b
    return jax.lax.dot_general(a, b, (((1,), (0,)), ((), ())),
                               preferred_element_type=jnp.float32)


def _dot_t(a, b):        # a @ b.T
    return jax.lax.dot_general(a, b, (((1,), (1,)), ((), ())),
                               preferred_element_type=jnp.float32)


# ---------------- Pallas kernel -------------------------------------------------
def vit_kernel(patches_ref, embw_ref, posbias_ref, blkw_ref, blkv_ref,
               mask_ref, outwb_ref, out_ref, *, bt):
    H, DH = HIDDEN_D, D_HEAD

    # Patch embed for the whole batch at once.  posbias already contains:
    #   row b*SEQ      : cls + pos[0]                (placeholder row is zeros)
    #   row b*SEQ + i  : bmap + pos[i]   (i >= 1)
    x = _dot(patches_ref[...], embw_ref[...]) + posbias_ref[...]      # (BT*SEQ, H)

    mask = mask_ref[...]                                              # (BT*SEQ, BT*SEQ)

    for blk in range(N_BLOCKS):
        # packed per-block parameters (static slices of the slabs)
        ln1g = blkv_ref[blk, 0:1, 0:H]
        ln1b = blkv_ref[blk, 0:1, H:2 * H]
        ln2g = blkv_ref[blk, 0:1, 2 * H:3 * H]
        ln2b = blkv_ref[blk, 0:1, 3 * H:4 * H]
        qkv_b = blkv_ref[blk, 1:2, 0:3 * H]
        m1b = blkv_ref[blk, 2:3, 0:MLP_D]
        m2b = blkv_ref[blk, 3:4, 0:H]
        qkv_w = blkw_ref[blk, 0:H, 0:3 * H]
        m1w = blkw_ref[blk, H:2 * H, 0:MLP_D]
        m2w = blkw_ref[blk, 2 * H:2 * H + MLP_D, 0:H]

        # ---- multi-head self attention --------------------------------------
        xn = _layernorm(x, ln1g, ln1b)                                # (BT*SEQ, H)
        # fused block-diagonal QKV projection; 1/sqrt(DH) is folded into Q cols
        qkv = _dot(xn, qkv_w) + qkv_b                                 # (BT*SEQ, 3H)

        heads_out = []
        for hh in range(N_HEADS):
            q = qkv[:, hh * DH:(hh + 1) * DH]
            k = qkv[:, H + hh * DH:H + (hh + 1) * DH]
            v = qkv[:, 2 * H + hh * DH:2 * H + (hh + 1) * DH]
            # cross-image pairs are masked to -1e30 -> exactly zero attention
            att = _softmax(_dot_t(q, k) + mask)                       # (BT*SEQ, BT*SEQ)
            heads_out.append(_dot(att, v))                            # (BT*SEQ, DH)
        x = x + jnp.concatenate(heads_out, axis=-1)

        # ---- MLP -------------------------------------------------------------
        xn2 = _layernorm(x, ln2g, ln2b)
        h1 = _gelu(_dot(xn2, m1w) + m1b)                              # (BT*SEQ, 4H)
        x = x + _dot(h1, m2w) + m2b

    # classifier head on the CLS rows (rows 0, SEQ, 2*SEQ, ...)
    cls = jnp.concatenate([x[b * SEQ:b * SEQ + 1, :] for b in range(bt)], axis=0)
    ow = outwb_ref[0:H, :]                                            # (H, OUT_PAD)
    ob = outwb_ref[H:H + 1, :]                                        # (1, OUT_PAD); pads = -1e30
    logits = _dot(cls, ow) + ob                                       # (BT, OUT_PAD)
    out_ref[...] = _softmax(logits)                                   # pad lanes get exactly 0


# ---------------- plain-JAX glue ------------------------------------------------
def patchify(images):
    n, c, h, w = images.shape
    x = images.reshape(n, c, N_PATCHES, PS, N_PATCHES, PS)
    x = jnp.transpose(x, (0, 2, 4, 1, 3, 5))        # (n, pi, pj, c, ps, ps)
    return x.reshape(n, N_PATCHES * N_PATCHES, IN_D)


def get_positional_embeddings(seq_len, d):
    i = jnp.arange(seq_len, dtype=jnp.float32)[:, None]
    j = jnp.arange(d)[None, :]
    denom = jnp.power(10000.0, ((j // 2) * 2).astype(jnp.float32) / d)
    angle = i / denom
    return jnp.where(j % 2 == 0, jnp.sin(angle), jnp.cos(angle)).astype(jnp.float32)


def init_params(key):
    keys = iter(jax.random.split(key, 64))

    def linear(k, out_d, in_d):                     # PyTorch default Linear init
        bound = 1.0 / math.sqrt(in_d)
        kw, kb = jax.random.split(k)
        w = jax.random.uniform(kw, (out_d, in_d), jnp.float32, -bound, bound)
        b = jax.random.uniform(kb, (out_d,), jnp.float32, -bound, bound)
        return w, b

    p = {}
    p['wmap'], p['bmap'] = linear(next(keys), HIDDEN_D, IN_D)
    p['cls'] = jax.random.uniform(next(keys), (1, HIDDEN_D), jnp.float32)  # torch.rand
    p['pos'] = get_positional_embeddings(SEQ, HIDDEN_D)

    qw, qb, kw, kb, vw, vb = [], [], [], [], [], []
    ln1g, ln1b, ln2g, ln2b = [], [], [], []
    m1w, m1b, m2w, m2b = [], [], [], []
    for _ in range(N_BLOCKS):
        ln1g.append(jnp.ones((HIDDEN_D,), jnp.float32))
        ln1b.append(jnp.zeros((HIDDEN_D,), jnp.float32))
        ln2g.append(jnp.ones((HIDDEN_D,), jnp.float32))
        ln2b.append(jnp.zeros((HIDDEN_D,), jnp.float32))
        qwh, qbh, kwh, kbh, vwh, vbh = [], [], [], [], [], []
        for _ in range(N_HEADS):
            w, b = linear(next(keys), D_HEAD, D_HEAD); qwh.append(w); qbh.append(b)
            w, b = linear(next(keys), D_HEAD, D_HEAD); kwh.append(w); kbh.append(b)
            w, b = linear(next(keys), D_HEAD, D_HEAD); vwh.append(w); vbh.append(b)
        qw.append(jnp.stack(qwh)); qb.append(jnp.stack(qbh))
        kw.append(jnp.stack(kwh)); kb.append(jnp.stack(kbh))
        vw.append(jnp.stack(vwh)); vb.append(jnp.stack(vbh))
        w, b = linear(next(keys), MLP_D, HIDDEN_D); m1w.append(w); m1b.append(b)
        w, b = linear(next(keys), HIDDEN_D, MLP_D); m2w.append(w); m2b.append(b)

    for name, lst in [('qw', qw), ('qb', qb), ('kw', kw), ('kb', kb), ('vw', vw),
                      ('vb', vb), ('ln1g', ln1g), ('ln1b', ln1b), ('ln2g', ln2g),
                      ('ln2b', ln2b), ('m1w', m1w), ('m1b', m1b), ('m2w', m2w),
                      ('m2b', m2b)]:
        p[name] = jnp.stack(lst)
    p['wout'], p['bout'] = linear(next(keys), OUT_D, HIDDEN_D)
    return p


def pack_kernel_params(p, bt):
    """Pack torch-style weights into a handful of kernel operands."""
    H, DH, NB, NH = HIDDEN_D, D_HEAD, N_BLOCKS, N_HEADS
    scale = 1.0 / math.sqrt(DH)

    # patch-embed weight for right-multiplication
    emb_w = jnp.swapaxes(p['wmap'], 0, 1)                              # (IN_D, H)

    # positional + patch-embed bias slab; CLS rows carry (cls + pos[0]) and NO bmap
    posbias = p['pos'] + p['bmap'][None, :]                            # (SEQ, H)
    posbias = posbias.at[0].set(p['pos'][0] + p['cls'][0])
    posbias = jnp.tile(posbias, (bt, 1))                               # (bt*SEQ, H)

    # per-block matrix slab (rows: [qkv_w | m1w | m2w]) and vector slab
    blk_w = jnp.zeros((NB, 2 * H + MLP_D, MLP_D), jnp.float32)         # (NB, 48, 32)
    blk_v = jnp.zeros((NB, 8, MLP_D), jnp.float32)                     # (NB, 8, 32)
    for b in range(NB):
        qkv_w = jnp.zeros((H, 3 * H), jnp.float32)
        qkv_b = jnp.zeros((3 * H,), jnp.float32)
        for hh in range(NH):
            rs = slice(hh * DH, (hh + 1) * DH)
            qkv_w = qkv_w.at[rs, hh * DH:(hh + 1) * DH].set(p['qw'][b, hh].T * scale)
            qkv_w = qkv_w.at[rs, H + hh * DH:H + (hh + 1) * DH].set(p['kw'][b, hh].T)
            qkv_w = qkv_w.at[rs, 2 * H + hh * DH:2 * H + (hh + 1) * DH].set(p['vw'][b, hh].T)
            qkv_b = qkv_b.at[hh * DH:(hh + 1) * DH].set(p['qb'][b, hh] * scale)
            qkv_b = qkv_b.at[H + hh * DH:H + (hh + 1) * DH].set(p['kb'][b, hh])
            qkv_b = qkv_b.at[2 * H + hh * DH:2 * H + (hh + 1) * DH].set(p['vb'][b, hh])
        blk_w = blk_w.at[b, 0:H, 0:3 * H].set(qkv_w)
        blk_w = blk_w.at[b, H:2 * H, 0:MLP_D].set(p['m1w'][b].T)
        blk_w = blk_w.at[b, 2 * H:2 * H + MLP_D, 0:H].set(p['m2w'][b].T)
        blk_v = blk_v.at[b, 0, 0:H].set(p['ln1g'][b])
        blk_v = blk_v.at[b, 0, H:2 * H].set(p['ln1b'][b])
        blk_v = blk_v.at[b, 0, 2 * H:3 * H].set(p['ln2g'][b])
        blk_v = blk_v.at[b, 0, 3 * H:4 * H].set(p['ln2b'][b])
        blk_v = blk_v.at[b, 1, 0:3 * H].set(qkv_b)
        blk_v = blk_v.at[b, 2, 0:MLP_D].set(p['m1b'][b])
        blk_v = blk_v.at[b, 3, 0:H].set(p['m2b'][b])

    # cross-image attention mask over the flattened token axis
    ids = jnp.arange(bt * SEQ, dtype=jnp.int32) // SEQ
    mask = jnp.where(ids[:, None] == ids[None, :], 0.0, NEG_BIG).astype(jnp.float32)

    # classifier head padded to 128 lanes; pad-lane bias = -1e30 so softmax mass = 0
    out_wb = jnp.zeros((H + 8, OUT_PAD), jnp.float32)
    out_wb = out_wb.at[0:H, 0:OUT_D].set(p['wout'].T)
    out_wb = out_wb.at[H, :].set(NEG_BIG)
    out_wb = out_wb.at[H, 0:OUT_D].set(p['bout'])

    return [emb_w, posbias, blk_w, blk_v, mask, out_wb]


def _zero_index_map(i, *, nd):
    return (0,) * nd


def vit_forward_pallas(images, params):
    n = images.shape[0]
    patches = patchify(images)                                        # (n, SEQ-1, IN_D)
    patches = jnp.concatenate(
        [jnp.zeros((n, 1, IN_D), jnp.float32), patches], axis=1)      # (n, SEQ, IN_D)
    patches_flat = patches.reshape(n * SEQ, IN_D)                     # (n*SEQ, IN_D)
    weights = pack_kernel_params(params, n)

    # Whole batch in one program (BATCH=2 -> fixed prologue cost paid once).
    # For large batches, split the batch into tiles and make this a "parallel"
    # grid axis so both v7x TensorCores are used.
    in_specs = [pl.BlockSpec((n * SEQ, IN_D), functools.partial(_zero_index_map, nd=2))]
    for w in weights:
        in_specs.append(
            pl.BlockSpec(w.shape, functools.partial(_zero_index_map, nd=w.ndim)))

    out = pl.pallas_call(
        functools.partial(vit_kernel, bt=n),
        out_shape=jax.ShapeDtypeStruct((n, OUT_PAD), jnp.float32),
        grid=(1,),
        in_specs=in_specs,
        out_specs=pl.BlockSpec((n, OUT_PAD), functools.partial(_zero_index_map, nd=2)),
        compiler_params=pltpu.CompilerParams(dimension_semantics=("arbitrary",)),
    )(patches_flat, *weights)
    return out[:, :OUT_D]


# ---------------- pure-JAX reference (mirrors the PyTorch forward) --------------
def vit_reference(images, p):
    n = images.shape[0]
    patches = patchify(images)
    tokens = patches @ p['wmap'].T + p['bmap']
    cls = jnp.broadcast_to(p['cls'], (n, 1, HIDDEN_D))
    x = jnp.concatenate([cls, tokens], axis=1) + p['pos'][None]
    for blk in range(N_BLOCKS):
        xn = _layernorm(x, p['ln1g'][blk], p['ln1b'][blk])
        heads = []
        for hh in range(N_HEADS):
            seq = xn[:, :, hh * D_HEAD:(hh + 1) * D_HEAD]
            q = seq @ p['qw'][blk, hh].T + p['qb'][blk, hh]
            k = seq @ p['kw'][blk, hh].T + p['kb'][blk, hh]
            v = seq @ p['vw'][blk, hh].T + p['vb'][blk, hh]
            att = _softmax(jnp.einsum('nqd,nkd->nqk', q, k) / math.sqrt(D_HEAD))
            heads.append(jnp.einsum('nqk,nkd->nqd', att, v))
        x = x + jnp.concatenate(heads, axis=-1)
        xn2 = _layernorm(x, p['ln2g'][blk], p['ln2b'][blk])
        h1 = _gelu(xn2 @ p['m1w'][blk].T + p['m1b'][blk])
        x = x + h1 @ p['m2w'][blk].T + p['m2b'][blk]
    cls_out = x[:, 0]
    return _softmax(cls_out @ p['wout'].T + p['bout'])


# ---------------- main ----------------------------------------------------------
if __name__ == "__main__":
    key = jax.random.PRNGKey(0)
    k_img, k_par = jax.random.split(key)
    images = jax.random.normal(k_img, (BATCH,) + CHW, jnp.float32)   # NCHW, like torch
    params = init_params(k_par)

    out = vit_forward_pallas(images, params)
    out = jax.block_until_ready(out)

    ref = vit_reference(images, params)
    assert out.shape == (BATCH, OUT_D)
    assert bool(jnp.allclose(out, ref, atol=1e-4, rtol=1e-4)), (out, ref)
    assert bool(jnp.allclose(jnp.sum(out, axis=-1), 1.0, atol=1e-5))
    print("KERNEL_OK")
</pallas_src>

<mosaic_0001>
module attributes {stable_mosaic.version = 11 : i64} {
  func.func @vit_kernel(%arg0: i32, %arg1: memref<100x12xf32, #tpu.memory_space<vmem>>, %arg2: memref<12x8xf32, #tpu.memory_space<vmem>>, %arg3: memref<100x8xf32, #tpu.memory_space<vmem>>, %arg4: memref<2x48x32xf32, #tpu.memory_space<vmem>>, %arg5: memref<2x8x32xf32, #tpu.memory_space<vmem>>, %arg6: memref<100x100xf32, #tpu.memory_space<vmem>>, %arg7: memref<16x128xf32, #tpu.memory_space<vmem>>, %arg8: memref<2x128xf32, #tpu.memory_space<vmem>>) attributes {dimension_semantics = [#tpu.dimension_semantics<arbitrary>], iteration_bounds = array<i64: 1>, scalar_prefetch = 0 : i64, scratch_operands = 0 : i64, tpu.core_type = #tpu.core_type<tc>, window_params = [{pipeline_mode = #tpu.pipeline_mode<synchronous>, transform_indices = @transform_0, window_bounds = array<i64: 100, 12>}, {pipeline_mode = #tpu.pipeline_mode<synchronous>, transform_indices = @transform_1, window_bounds = array<i64: 12, 8>}, {pipeline_mode = #tpu.pipeline_mode<synchronous>, transform_indices = @transform_2, window_bounds = array<i64: 100, 8>}, {pipeline_mode = #tpu.pipeline_mode<synchronous>, transform_indices = @transform_3, window_bounds = array<i64: 2, 48, 32>}, {pipeline_mode = #tpu.pipeline_mode<synchronous>, transform_indices = @transform_4, window_bounds = array<i64: 2, 8, 32>}, {pipeline_mode = #tpu.pipeline_mode<synchronous>, transform_indices = @transform_5, window_bounds = array<i64: 100, 100>}, {pipeline_mode = #tpu.pipeline_mode<synchronous>, transform_indices = @transform_6, window_bounds = array<i64: 16, 128>}, {pipeline_mode = #tpu.pipeline_mode<synchronous>, transform_indices = @transform_7, window_bounds = array<i64: 2, 128>}]} {
    %c0 = arith.constant 0 : index
    %c0_0 = arith.constant 0 : index
    %0 = vector.load %arg1[%c0, %c0_0] : memref<100x12xf32, #tpu.memory_space<vmem>>, vector<100x12xf32>
    %c0_1 = arith.constant 0 : index
    %c0_2 = arith.constant 0 : index
    %1 = vector.load %arg2[%c0_1, %c0_2] : memref<12x8xf32, #tpu.memory_space<vmem>>, vector<12x8xf32>
    %cst = arith.constant dense<0.000000e+00> : vector<100x8xf32>
    %2 = tpu.matmul %0, %1, %cst {dimension_numbers = #tpu.dot_dimension_numbers<[1], [0], [0], [1], [0, 0, 1, 1], [], []>} : vector<100x12xf32>, vector<12x8xf32>, vector<100x8xf32> -> vector<100x8xf32>
    %c0_3 = arith.constant 0 : index
    %c0_4 = arith.constant 0 : index
    %3 = vector.load %arg3[%c0_3, %c0_4] : memref<100x8xf32, #tpu.memory_space<vmem>>, vector<100x8xf32>
    %4 = arith.addf %2, %3 : vector<100x8xf32>
    %c0_5 = arith.constant 0 : index
    %c0_6 = arith.constant 0 : index
    %5 = vector.load %arg6[%c0_5, %c0_6] : memref<100x100xf32, #tpu.memory_space<vmem>>, vector<100x100xf32>
    %c0_7 = arith.constant 0 : index
    %c0_8 = arith.constant 0 : index
    %c0_9 = arith.constant 0 : index
    %6 = vector.load %arg5[%c0_7, %c0_8, %c0_9] : memref<2x8x32xf32, #tpu.memory_space<vmem>>, vector<1x1x8xf32>
    %7 = vector.shape_cast %6 : vector<1x1x8xf32> to vector<1x8xf32>
    %c0_10 = arith.constant 0 : index
    %c0_11 = arith.constant 0 : index
    %c8 = arith.constant 8 : index
    %8 = vector.load %arg5[%c0_10, %c0_11, %c8] : memref<2x8x32xf32, #tpu.memory_space<vmem>>, vector<1x1x8xf32>
    %9 = vector.shape_cast %8 : vector<1x1x8xf32> to vector<1x8xf32>
    %c0_12 = arith.constant 0 : index
    %c0_13 = arith.constant 0 : index
    %c16 = arith.constant 16 : index
    %10 = vector.load %arg5[%c0_12, %c0_13, %c16] : memref<2x8x32xf32, #tpu.memory_space<vmem>>, vector<1x1x8xf32>
    %11 = vector.shape_cast %10 : vector<1x1x8xf32> to vector<1x8xf32>
    %c0_14 = arith.constant 0 : index
    %c0_15 = arith.constant 0 : index
    %c24 = arith.constant 24 : index
    %12 = vector.load %arg5[%c0_14, %c0_15, %c24] : memref<2x8x32xf32, #tpu.memory_space<vmem>>, vector<1x1x8xf32>
    %13 = vector.shape_cast %12 : vector<1x1x8xf32> to vector<1x8xf32>
    %c0_16 = arith.constant 0 : index
    %c1 = arith.constant 1 : index
    %c0_17 = arith.constant 0 : index
    %14 = vector.load %arg5[%c0_16, %c1, %c0_17] : memref<2x8x32xf32, #tpu.memory_space<vmem>>, vector<1x1x24xf32>
    %15 = vector.shape_cast %14 : vector<1x1x24xf32> to vector<1x24xf32>
    %c0_18 = arith.constant 0 : index
    %c2 = arith.constant 2 : index
    %c0_19 = arith.constant 0 : index
    %16 = vector.load %arg5[%c0_18, %c2, %c0_19] : memref<2x8x32xf32, #tpu.memory_space<vmem>>, vector<1x1x32xf32>
    %17 = vector.shape_cast %16 : vector<1x1x32xf32> to vector<1x32xf32>
    %c0_20 = arith.constant 0 : index
    %c3 = arith.constant 3 : index
    %c0_21 = arith.constant 0 : index
    %18 = vector.load %arg5[%c0_20, %c3, %c0_21] : memref<2x8x32xf32, #tpu.memory_space<vmem>>, vector<1x1x8xf32>
    %19 = vector.shape_cast %18 : vector<1x1x8xf32> to vector<1x8xf32>
    %c0_22 = arith.constant 0 : index
    %c0_23 = arith.constant 0 : index
    %c0_24 = arith.constant 0 : index
    %20 = vector.load %arg4[%c0_22, %c0_23, %c0_24] : memref<2x48x32xf32, #tpu.memory_space<vmem>>, vector<1x8x24xf32>
    %21 = vector.shape_cast %20 : vector<1x8x24xf32> to vector<8x24xf32>
    %c0_25 = arith.constant 0 : index
    %c8_26 = arith.constant 8 : index
    %c0_27 = arith.constant 0 : index
    %22 = vector.load %arg4[%c0_25, %c8_26, %c0_27] : memref<2x48x32xf32, #tpu.memory_space<vmem>>, vector<1x8x32xf32>
    %23 = vector.shape_cast %22 : vector<1x8x32xf32> to vector<8x32xf32>
    %c0_28 = arith.constant 0 : index
    %c16_29 = arith.constant 16 : index
    %c0_30 = arith.constant 0 : index
    %24 = vector.load %arg4[%c0_28, %c16_29, %c0_30] : memref<2x48x32xf32, #tpu.memory_space<vmem>>, vector<1x32x8xf32>
    %25 = vector.shape_cast %24 : vector<1x32x8xf32> to vector<32x8xf32>
    %cst_31 = arith.constant dense<0.000000e+00> : vector<100xf32>
    %26 = vector.multi_reduction <add>, %4, %cst_31 [1] : vector<100x8xf32> to vector<100xf32>
    %27 = vector.shape_cast %26 : vector<100xf32> to vector<100x1xf32>
    %cst_32 = arith.constant 8.000000e+00 : f32
    %28 = vector.broadcast %cst_32 : f32 to vector<100x1xf32>
    %29 = arith.divf %27, %28 : vector<100x1xf32>
    %30 = vector.broadcast %29 : vector<100x1xf32> to vector<100x8xf32>
    %31 = arith.subf %4, %30 : vector<100x8xf32>
    %32 = arith.mulf %31, %31 : vector<100x8xf32>
    %cst_33 = arith.constant dense<0.000000e+00> : vector<100xf32>
    %33 = vector.multi_reduction <add>, %32, %cst_33 [1] : vector<100x8xf32> to vector<100xf32>
    %34 = vector.shape_cast %33 : vector<100xf32> to vector<100x1xf32>
    %cst_34 = arith.constant 8.000000e+00 : f32
    %35 = vector.broadcast %cst_34 : f32 to vector<100x1xf32>
    %36 = arith.divf %34, %35 : vector<100x1xf32>
    %37 = vector.broadcast %29 : vector<100x1xf32> to vector<100x8xf32>
    %38 = arith.subf %4, %37 : vector<100x8xf32>
    %cst_35 = arith.constant 9.99999974E-6 : f32
    %39 = vector.broadcast %cst_35 : f32 to vector<100x1xf32>
    %40 = arith.addf %36, %39 : vector<100x1xf32>
    %41 = math.rsqrt %40 : vector<100x1xf32>
    %42 = vector.broadcast %41 : vector<100x1xf32> to vector<100x8xf32>
    %43 = arith.mulf %38, %42 : vector<100x8xf32>
    %44 = vector.broadcast %7 : vector<1x8xf32> to vector<100x8xf32>
    %45 = arith.mulf %43, %44 : vector<100x8xf32>
    %46 = vector.broadcast %9 : vector<1x8xf32> to vector<100x8xf32>
    %47 = arith.addf %45, %46 : vector<100x8xf32>
    %cst_36 = arith.constant dense<0.000000e+00> : vector<100x24xf32>
    %48 = tpu.matmul %47, %21, %cst_36 {dimension_numbers = #tpu.dot_dimension_numbers<[1], [0], [0], [1], [0, 0, 1, 1], [], []>} : vector<100x8xf32>, vector<8x24xf32>, vector<100x24xf32> -> vector<100x24xf32>
    %49 = vector.broadcast %15 : vector<1x24xf32> to vector<100x24xf32>
    %50 = arith.addf %48, %49 : vector<100x24xf32>
    %51 = vector.extract_strided_slice %50 {offsets = [0, 0], sizes = [100, 4], strides = [1, 1]} : vector<100x24xf32> to vector<100x4xf32>
    %52 = vector.extract_strided_slice %50 {offsets = [0, 8], sizes = [100, 4], strides = [1, 1]} : vector<100x24xf32> to vector<100x4xf32>
    %53 = vector.extract_strided_slice %50 {offsets = [0, 16], sizes = [100, 4], strides = [1, 1]} : vector<100x24xf32> to vector<100x4xf32>
    %cst_37 = arith.constant dense<0.000000e+00> : vector<100x100xf32>
    %54 = tpu.matmul %51, %52, %cst_37 {dimension_numbers = #tpu.dot_dimension_numbers<[1], [1], [0], [0], [0, 0, 1, 0], [], []>} : vector<100x4xf32>, vector<100x4xf32>, vector<100x100xf32> -> vector<100x100xf32>
    %55 = arith.addf %54, %5 : vector<100x100xf32>
    %cst_38 = arith.constant dense<0xFF800000> : vector<100xf32>
    %56 = vector.multi_reduction <maximumf>, %55, %cst_38 [1] : vector<100x100xf32> to vector<100xf32>
    %57 = vector.shape_cast %56 : vector<100xf32> to vector<100x1xf32>
    %58 = vector.broadcast %57 : vector<100x1xf32> to vector<100x100xf32>
    %59 = arith.subf %55, %58 : vector<100x100xf32>
    %60 = math.exp %59 : vector<100x100xf32>
    %cst_39 = arith.constant dense<0.000000e+00> : vector<100xf32>
    %61 = vector.multi_reduction <add>, %60, %cst_39 [1] : vector<100x100xf32> to vector<100xf32>
    %62 = vector.shape_cast %61 : vector<100xf32> to vector<100x1xf32>
    %63 = vector.broadcast %62 : vector<100x1xf32> to vector<100x100xf32>
    %64 = arith.divf %60, %63 : vector<100x100xf32>
    %cst_40 = arith.constant dense<0.000000e+00> : vector<100x4xf32>
    %65 = tpu.matmul %64, %53, %cst_40 {dimension_numbers = #tpu.dot_dimension_numbers<[1], [0], [0], [1], [0, 0, 1, 1], [], []>} : vector<100x100xf32>, vector<100x4xf32>, vector<100x4xf32> -> vector<100x4xf32>
    %66 = vector.extract_strided_slice %50 {offsets = [0, 4], sizes = [100, 4], strides = [1, 1]} : vector<100x24xf32> to vector<100x4xf32>
    %67 = vector.extract_strided_slice %50 {offsets = [0, 12], sizes = [100, 4], strides = [1, 1]} : vector<100x24xf32> to vector<100x4xf32>
    %68 = vector.extract_strided_slice %50 {offsets = [0, 20], sizes = [100, 4], strides = [1, 1]} : vector<100x24xf32> to vector<100x4xf32>
    %cst_41 = arith.constant dense<0.000000e+00> : vector<100x100xf32>
    %69 = tpu.matmul %66, %67, %cst_41 {dimension_numbers = #tpu.dot_dimension_numbers<[1], [1], [0], [0], [0, 0, 1, 0], [], []>} : vector<100x4xf32>, vector<100x4xf32>, vector<100x100xf32> -> vector<100x100xf32>
    %70 = arith.addf %69, %5 : vector<100x100xf32>
    %cst_42 = arith.constant dense<0xFF800000> : vector<100xf32>
    %71 = vector.multi_reduction <maximumf>, %70, %cst_42 [1] : vector<100x100xf32> to vector<100xf32>
    %72 = vector.shape_cast %71 : vector<100xf32> to vector<100x1xf32>
    %73 = vector.broadcast %72 : vector<100x1xf32> to vector<100x100xf32>
    %74 = arith.subf %70, %73 : vector<100x100xf32>
    %75 = math.exp %74 : vector<100x100xf32>
    %cst_43 = arith.constant dense<0.000000e+00> : vector<100xf32>
    %76 = vector.multi_reduction <add>, %75, %cst_43 [1] : vector<100x100xf32> to vector<100xf32>
    %77 = vector.shape_cast %76 : vector<100xf32> to vector<100x1xf32>
    %78 = vector.broadcast %77 : vector<100x1xf32> to vector<100x100xf32>
    %79 = arith.divf %75, %78 : vector<100x100xf32>
    %cst_44 = arith.constant dense<0.000000e+00> : vector<100x4xf32>
    %80 = tpu.matmul %79, %68, %cst_44 {dimension_numbers = #tpu.dot_dimension_numbers<[1], [0], [0], [1], [0, 0, 1, 1], [], []>} : vector<100x100xf32>, vector<100x4xf32>, vector<100x4xf32> -> vector<100x4xf32>
    %81 = tpu.concatenate %65, %80 in 1 : vector<100x4xf32>, vector<100x4xf32> -> vector<100x8xf32>
    %82 = arith.addf %4, %81 : vector<100x8xf32>
    %cst_45 = arith.constant dense<0.000000e+00> : vector<100xf32>
    %83 = vector.multi_reduction <add>, %82, %cst_45 [1] : vector<100x8xf32> to vector<100xf32>
    %84 = vector.shape_cast %83 : vector<100xf32> to vector<100x1xf32>
    %cst_46 = arith.constant 8.000000e+00 : f32
    %85 = vector.broadcast %cst_46 : f32 to vector<100x1xf32>
    %86 = arith.divf %84, %85 : vector<100x1xf32>
    %87 = vector.broadcast %86 : vector<100x1xf32> to vector<100x8xf32>
    %88 = arith.subf %82, %87 : vector<100x8xf32>
    %89 = arith.mulf %88, %88 : vector<100x8xf32>
    %cst_47 = arith.constant dense<0.000000e+00> : vector<100xf32>
    %90 = vector.multi_reduction <add>, %89, %cst_47 [1] : vector<100x8xf32> to vector<100xf32>
    %91 = vector.shape_cast %90 : vector<100xf32> to vector<100x1xf32>
    %cst_48 = arith.constant 8.000000e+00 : f32
    %92 = vector.broadcast %cst_48 : f32 to vector<100x1xf32>
    %93 = arith.divf %91, %92 : vector<100x1xf32>
    %94 = vector.broadcast %86 : vector<100x1xf32> to vector<100x8xf32>
    %95 = arith.subf %82, %94 : vector<100x8xf32>
    %cst_49 = arith.constant 9.99999974E-6 : f32
    %96 = vector.broadcast %cst_49 : f32 to vector<100x1xf32>
    %97 = arith.addf %93, %96 : vector<100x1xf32>
    %98 = math.rsqrt %97 : vector<100x1xf32>
    %99 = vector.broadcast %98 : vector<100x1xf32> to vector<100x8xf32>
    %100 = arith.mulf %95, %99 : vector<100x8xf32>
    %101 = vector.broadcast %11 : vector<1x8xf32> to vector<100x8xf32>
    %102 = arith.mulf %100, %101 : vector<100x8xf32>
    %103 = vector.broadcast %13 : vector<1x8xf32> to vector<100x8xf32>
    %104 = arith.addf %102, %103 : vector<100x8xf32>
    %cst_50 = arith.constant dense<0.000000e+00> : vector<100x32xf32>
    %105 = tpu.matmul %104, %23, %cst_50 {dimension_numbers = #tpu.dot_dimension_numbers<[1], [0], [0], [1], [0, 0, 1, 1], [], []>} : vector<100x8xf32>, vector<8x32xf32>, vector<100x32xf32> -> vector<100x32xf32>
    %106 = vector.broadcast %17 : vector<1x32xf32> to vector<100x32xf32>
    %107 = arith.addf %105, %106 : vector<100x32xf32>
    %cst_51 = arith.constant 5.000000e-01 : f32
    %108 = vector.broadcast %cst_51 : f32 to vector<100x32xf32>
    %109 = arith.mulf %108, %107 : vector<100x32xf32>
    %cst_52 = arith.constant 0.707106769 : f32
    %110 = vector.broadcast %cst_52 : f32 to vector<100x32xf32>
    %111 = arith.mulf %107, %110 : vector<100x32xf32>
    %112 = math.absf %111 : vector<100x32xf32>
    %cst_53 = arith.constant 0.327591091 : f32
    %113 = vector.broadcast %cst_53 : f32 to vector<100x32xf32>
    %114 = arith.mulf %113, %112 : vector<100x32xf32>
    %cst_54 = arith.constant 1.000000e+00 : f32
    %115 = vector.broadcast %cst_54 : f32 to vector<100x32xf32>
    %116 = arith.addf %115, %114 : vector<100x32xf32>
    %cst_55 = arith.constant 1.000000e+00 : f32
    %117 = vector.broadcast %cst_55 : f32 to vector<100x32xf32>
    %118 = arith.divf %117, %116 : vector<100x32xf32>
    %cst_56 = arith.constant 1.06140542 : f32
    %119 = vector.broadcast %cst_56 : f32 to vector<100x32xf32>
    %120 = arith.mulf %119, %118 : vector<100x32xf32>
    %cst_57 = arith.constant -1.45315206 : f32
    %121 = vector.broadcast %cst_57 : f32 to vector<100x32xf32>
    %122 = arith.addf %120, %121 : vector<100x32xf32>
    %123 = arith.mulf %122, %118 : vector<100x32xf32>
    %cst_58 = arith.constant 1.42141378 : f32
    %124 = vector.broadcast %cst_58 : f32 to vector<100x32xf32>
    %125 = arith.addf %123, %124 : vector<100x32xf32>
    %126 = arith.mulf %125, %118 : vector<100x32xf32>
    %cst_59 = arith.constant -0.284496725 : f32
    %127 = vector.broadcast %cst_59 : f32 to vector<100x32xf32>
    %128 = arith.addf %126, %127 : vector<100x32xf32>
    %129 = arith.mulf %128, %118 : vector<100x32xf32>
    %cst_60 = arith.constant 0.254829586 : f32
    %130 = vector.broadcast %cst_60 : f32 to vector<100x32xf32>
    %131 = arith.addf %129, %130 : vector<100x32xf32>
    %132 = arith.mulf %131, %118 : vector<100x32xf32>
    %cst_61 = arith.constant 0.000000e+00 : f32
    %133 = vector.broadcast %cst_61 : f32 to vector<100x32xf32>
    %134 = arith.subf %133, %112 : vector<100x32xf32>
    %135 = arith.mulf %134, %112 : vector<100x32xf32>
    %136 = math.exp %135 : vector<100x32xf32>
    %137 = arith.mulf %132, %136 : vector<100x32xf32>
    %cst_62 = arith.constant 1.000000e+00 : f32
    %138 = vector.broadcast %cst_62 : f32 to vector<100x32xf32>
    %139 = arith.subf %138, %137 : vector<100x32xf32>
    %cst_63 = arith.constant 0.000000e+00 : f32
    %140 = vector.broadcast %cst_63 : f32 to vector<100x32xf32>
    %141 = arith.cmpf oge, %111, %140 : vector<100x32xf32>
    %cst_64 = arith.constant 0.000000e+00 : f32
    %142 = vector.broadcast %cst_64 : f32 to vector<100x32xf32>
    %143 = arith.subf %142, %139 : vector<100x32xf32>
    %144 = arith.select %141, %139, %143 : vector<100x32xi1>, vector<100x32xf32>
    %cst_65 = arith.constant 1.000000e+00 : f32
    %145 = vector.broadcast %cst_65 : f32 to vector<100x32xf32>
    %146 = arith.addf %145, %144 : vector<100x32xf32>
    %147 = arith.mulf %109, %146 : vector<100x32xf32>
    %cst_66 = arith.constant dense<0.000000e+00> : vector<100x8xf32>
    %148 = tpu.matmul %147, %25, %cst_66 {dimension_numbers = #tpu.dot_dimension_numbers<[1], [0], [0], [1], [0, 0, 1, 1], [], []>} : vector<100x32xf32>, vector<32x8xf32>, vector<100x8xf32> -> vector<100x8xf32>
    %149 = arith.addf %82, %148 : vector<100x8xf32>
    %150 = vector.broadcast %19 : vector<1x8xf32> to vector<100x8xf32>
    %151 = arith.addf %149, %150 : vector<100x8xf32>
    %c1_67 = arith.constant 1 : index
    %c0_68 = arith.constant 0 : index
    %c0_69 = arith.constant 0 : index
    %152 = vector.load %arg5[%c1_67, %c0_68, %c0_69] : memref<2x8x32xf32, #tpu.memory_space<vmem>>, vector<1x1x8xf32>
    %153 = vector.shape_cast %152 : vector<1x1x8xf32> to vector<1x8xf32>
    %c1_70 = arith.constant 1 : index
    %c0_71 = arith.constant 0 : index
    %c8_72 = arith.constant 8 : index
    %154 = vector.load %arg5[%c1_70, %c0_71, %c8_72] : memref<2x8x32xf32, #tpu.memory_space<vmem>>, vector<1x1x8xf32>
    %155 = vector.shape_cast %154 : vector<1x1x8xf32> to vector<1x8xf32>
    %c1_73 = arith.constant 1 : index
    %c0_74 = arith.constant 0 : index
    %c16_75 = arith.constant 16 : index
    %156 = vector.load %arg5[%c1_73, %c0_74, %c16_75] : memref<2x8x32xf32, #tpu.memory_space<vmem>>, vector<1x1x8xf32>
    %157 = vector.shape_cast %156 : vector<1x1x8xf32> to vector<1x8xf32>
    %c1_76 = arith.constant 1 : index
    %c0_77 = arith.constant 0 : index
    %c24_78 = arith.constant 24 : index
    %158 = vector.load %arg5[%c1_76, %c0_77, %c24_78] : memref<2x8x32xf32, #tpu.memory_space<vmem>>, vector<1x1x8xf32>
    %159 = vector.shape_cast %158 : vector<1x1x8xf32> to vector<1x8xf32>
    %c1_79 = arith.constant 1 : index
    %c1_80 = arith.constant 1 : index
    %c0_81 = arith.constant 0 : index
    %160 = vector.load %arg5[%c1_79, %c1_80, %c0_81] : memref<2x8x32xf32, #tpu.memory_space<vmem>>, vector<1x1x24xf32>
    %161 = vector.shape_cast %160 : vector<1x1x24xf32> to vector<1x24xf32>
    %c1_82 = arith.constant 1 : index
    %c2_83 = arith.constant 2 : index
    %c0_84 = arith.constant 0 : index
    %162 = vector.load %arg5[%c1_82, %c2_83, %c0_84] : memref<2x8x32xf32, #tpu.memory_space<vmem>>, vector<1x1x32xf32>
    %163 = vector.shape_cast %162 : vector<1x1x32xf32> to vector<1x32xf32>
    %c1_85 = arith.constant 1 : index
    %c3_86 = arith.constant 3 : index
    %c0_87 = arith.constant 0 : index
    %164 = vector.load %arg5[%c1_85, %c3_86, %c0_87] : memref<2x8x32xf32, #tpu.memory_space<vmem>>, vector<1x1x8xf32>
    %165 = vector.shape_cast %164 : vector<1x1x8xf32> to vector<1x8xf32>
    %c1_88 = arith.constant 1 : index
    %c0_89 = arith.constant 0 : index
    %c0_90 = arith.constant 0 : index
    %166 = vector.load %arg4[%c1_88, %c0_89, %c0_90] : memref<2x48x32xf32, #tpu.memory_space<vmem>>, vector<1x8x24xf32>
    %167 = vector.shape_cast %166 : vector<1x8x24xf32> to vector<8x24xf32>
    %c1_91 = arith.constant 1 : index
    %c8_92 = arith.constant 8 : index
    %c0_93 = arith.constant 0 : index
    %168 = vector.load %arg4[%c1_91, %c8_92, %c0_93] : memref<2x48x32xf32, #tpu.memory_space<vmem>>, vector<1x8x32xf32>
    %169 = vector.shape_cast %168 : vector<1x8x32xf32> to vector<8x32xf32>
    %c1_94 = arith.constant 1 : index
    %c16_95 = arith.constant 16 : index
    %c0_96 = arith.constant 0 : index
    %170 = vector.load %arg4[%c1_94, %c16_95, %c0_96] : memref<2x48x32xf32, #tpu.memory_space<vmem>>, vector<1x32x8xf32>
    %171 = vector.shape_cast %170 : vector<1x32x8xf32> to vector<32x8xf32>
    %cst_97 = arith.constant dense<0.000000e+00> : vector<100xf32>
    %172 = vector.multi_reduction <add>, %151, %cst_97 [1] : vector<100x8xf32> to vector<100xf32>
    %173 = vector.shape_cast %172 : vector<100xf32> to vector<100x1xf32>
    %cst_98 = arith.constant 8.000000e+00 : f32
    %174 = vector.broadcast %cst_98 : f32 to vector<100x1xf32>
    %175 = arith.divf %173, %174 : vector<100x1xf32>
    %176 = vector.broadcast %175 : vector<100x1xf32> to vector<100x8xf32>
    %177 = arith.subf %151, %176 : vector<100x8xf32>
    %178 = arith.mulf %177, %177 : vector<100x8xf32>
    %cst_99 = arith.constant dense<0.000000e+00> : vector<100xf32>
    %179 = vector.multi_reduction <add>, %178, %cst_99 [1] : vector<100x8xf32> to vector<100xf32>
    %180 = vector.shape_cast %179 : vector<100xf32> to vector<100x1xf32>
    %cst_100 = arith.constant 8.000000e+00 : f32
    %181 = vector.broadcast %cst_100 : f32 to vector<100x1xf32>
    %182 = arith.divf %180, %181 : vector<100x1xf32>
    %183 = vector.broadcast %175 : vector<100x1xf32> to vector<100x8xf32>
    %184 = arith.subf %151, %183 : vector<100x8xf32>
    %cst_101 = arith.constant 9.99999974E-6 : f32
    %185 = vector.broadcast %cst_101 : f32 to vector<100x1xf32>
    %186 = arith.addf %182, %185 : vector<100x1xf32>
    %187 = math.rsqrt %186 : vector<100x1xf32>
    %188 = vector.broadcast %187 : vector<100x1xf32> to vector<100x8xf32>
    %189 = arith.mulf %184, %188 : vector<100x8xf32>
    %190 = vector.broadcast %153 : vector<1x8xf32> to vector<100x8xf32>
    %191 = arith.mulf %189, %190 : vector<100x8xf32>
    %192 = vector.broadcast %155 : vector<1x8xf32> to vector<100x8xf32>
    %193 = arith.addf %191, %192 : vector<100x8xf32>
    %cst_102 = arith.constant dense<0.000000e+00> : vector<100x24xf32>
    %194 = tpu.matmul %193, %167, %cst_102 {dimension_numbers = #tpu.dot_dimension_numbers<[1], [0], [0], [1], [0, 0, 1, 1], [], []>} : vector<100x8xf32>, vector<8x24xf32>, vector<100x24xf32> -> vector<100x24xf32>
    %195 = vector.broadcast %161 : vector<1x24xf32> to vector<100x24xf32>
    %196 = arith.addf %194, %195 : vector<100x24xf32>
    %197 = vector.extract_strided_slice %196 {offsets = [0, 0], sizes = [100, 4], strides = [1, 1]} : vector<100x24xf32> to vector<100x4xf32>
    %198 = vector.extract_strided_slice %196 {offsets = [0, 8], sizes = [100, 4], strides = [1, 1]} : vector<100x24xf32> to vector<100x4xf32>
    %199 = vector.extract_strided_slice %196 {offsets = [0, 16], sizes = [100, 4], strides = [1, 1]} : vector<100x24xf32> to vector<100x4xf32>
    %cst_103 = arith.constant dense<0.000000e+00> : vector<100x100xf32>
    %200 = tpu.matmul %197, %198, %cst_103 {dimension_numbers = #tpu.dot_dimension_numbers<[1], [1], [0], [0], [0, 0, 1, 0], [], []>} : vector<100x4xf32>, vector<100x4xf32>, vector<100x100xf32> -> vector<100x100xf32>
    %201 = arith.addf %200, %5 : vector<100x100xf32>
    %cst_104 = arith.constant dense<0xFF800000> : vector<100xf32>
    %202 = vector.multi_reduction <maximumf>, %201, %cst_104 [1] : vector<100x100xf32> to vector<100xf32>
    %203 = vector.shape_cast %202 : vector<100xf32> to vector<100x1xf32>
    %204 = vector.broadcast %203 : vector<100x1xf32> to vector<100x100xf32>
    %205 = arith.subf %201, %204 : vector<100x100xf32>
    %206 = math.exp %205 : vector<100x100xf32>
    %cst_105 = arith.constant dense<0.000000e+00> : vector<100xf32>
    %207 = vector.multi_reduction <add>, %206, %cst_105 [1] : vector<100x100xf32> to vector<100xf32>
    %208 = vector.shape_cast %207 : vector<100xf32> to vector<100x1xf32>
    %209 = vector.broadcast %208 : vector<100x1xf32> to vector<100x100xf32>
    %210 = arith.divf %206, %209 : vector<100x100xf32>
    %cst_106 = arith.constant dense<0.000000e+00> : vector<100x4xf32>
    %211 = tpu.matmul %210, %199, %cst_106 {dimension_numbers = #tpu.dot_dimension_numbers<[1], [0], [0], [1], [0, 0, 1, 1], [], []>} : vector<100x100xf32>, vector<100x4xf32>, vector<100x4xf32> -> vector<100x4xf32>
    %212 = vector.extract_strided_slice %196 {offsets = [0, 4], sizes = [100, 4], strides = [1, 1]} : vector<100x24xf32> to vector<100x4xf32>
    %213 = vector.extract_strided_slice %196 {offsets = [0, 12], sizes = [100, 4], strides = [1, 1]} : vector<100x24xf32> to vector<100x4xf32>
    %214 = vector.extract_strided_slice %196 {offsets = [0, 20], sizes = [100, 4], strides = [1, 1]} : vector<100x24xf32> to vector<100x4xf32>
    %cst_107 = arith.constant dense<0.000000e+00> : vector<100x100xf32>
    %215 = tpu.matmul %212, %213, %cst_107 {dimension_numbers = #tpu.dot_dimension_numbers<[1], [1], [0], [0], [0, 0, 1, 0], [], []>} : vector<100x4xf32>, vector<100x4xf32>, vector<100x100xf32> -> vector<100x100xf32>
    %216 = arith.addf %215, %5 : vector<100x100xf32>
    %cst_108 = arith.constant dense<0xFF800000> : vector<100xf32>
    %217 = vector.multi_reduction <maximumf>, %216, %cst_108 [1] : vector<100x100xf32> to vector<100xf32>
    %218 = vector.shape_cast %217 : vector<100xf32> to vector<100x1xf32>
    %219 = vector.broadcast %218 : vector<100x1xf32> to vector<100x100xf32>
    %220 = arith.subf %216, %219 : vector<100x100xf32>
    %221 = math.exp %220 : vector<100x100xf32>
    %cst_109 = arith.constant dense<0.000000e+00> : vector<100xf32>
    %222 = vector.multi_reduction <add>, %221, %cst_109 [1] : vector<100x100xf32> to vector<100xf32>
    %223 = vector.shape_cast %222 : vector<100xf32> to vector<100x1xf32>
    %224 = vector.broadcast %223 : vector<100x1xf32> to vector<100x100xf32>
    %225 = arith.divf %221, %224 : vector<100x100xf32>
    %cst_110 = arith.constant dense<0.000000e+00> : vector<100x4xf32>
    %226 = tpu.matmul %225, %214, %cst_110 {dimension_numbers = #tpu.dot_dimension_numbers<[1], [0], [0], [1], [0, 0, 1, 1], [], []>} : vector<100x100xf32>, vector<100x4xf32>, vector<100x4xf32> -> vector<100x4xf32>
    %227 = tpu.concatenate %211, %226 in 1 : vector<100x4xf32>, vector<100x4xf32> -> vector<100x8xf32>
    %228 = arith.addf %151, %227 : vector<100x8xf32>
    %cst_111 = arith.constant dense<0.000000e+00> : vector<100xf32>
    %229 = vector.multi_reduction <add>, %228, %cst_111 [1] : vector<100x8xf32> to vector<100xf32>
    %230 = vector.shape_cast %229 : vector<100xf32> to vector<100x1xf32>
    %cst_112 = arith.constant 8.000000e+00 : f32
    %231 = vector.broadcast %cst_112 : f32 to vector<100x1xf32>
    %232 = arith.divf %230, %231 : vector<100x1xf32>
    %233 = vector.broadcast %232 : vector<100x1xf32> to vector<100x8xf32>
    %234 = arith.subf %228, %233 : vector<100x8xf32>
    %235 = arith.mulf %234, %234 : vector<100x8xf32>
    %cst_113 = arith.constant dense<0.000000e+00> : vector<100xf32>
    %236 = vector.multi_reduction <add>, %235, %cst_113 [1] : vector<100x8xf32> to vector<100xf32>
    %237 = vector.shape_cast %236 : vector<100xf32> to vector<100x1xf32>
    %cst_114 = arith.constant 8.000000e+00 : f32
    %238 = vector.broadcast %cst_114 : f32 to vector<100x1xf32>
    %239 = arith.divf %237, %238 : vector<100x1xf32>
    %240 = vector.broadcast %232 : vector<100x1xf32> to vector<100x8xf32>
    %241 = arith.subf %228, %240 : vector<100x8xf32>
    %cst_115 = arith.constant 9.99999974E-6 : f32
    %242 = vector.broadcast %cst_115 : f32 to vector<100x1xf32>
    %243 = arith.addf %239, %242 : vector<100x1xf32>
    %244 = math.rsqrt %243 : vector<100x1xf32>
    %245 = vector.broadcast %244 : vector<100x1xf32> to vector<100x8xf32>
    %246 = arith.mulf %241, %245 : vector<100x8xf32>
    %247 = vector.broadcast %157 : vector<1x8xf32> to vector<100x8xf32>
    %248 = arith.mulf %246, %247 : vector<100x8xf32>
    %249 = vector.broadcast %159 : vector<1x8xf32> to vector<100x8xf32>
    %250 = arith.addf %248, %249 : vector<100x8xf32>
    %cst_116 = arith.constant dense<0.000000e+00> : vector<100x32xf32>
    %251 = tpu.matmul %250, %169, %cst_116 {dimension_numbers = #tpu.dot_dimension_numbers<[1], [0], [0], [1], [0, 0, 1, 1], [], []>} : vector<100x8xf32>, vector<8x32xf32>, vector<100x32xf32> -> vector<100x32xf32>
    %252 = vector.broadcast %163 : vector<1x32xf32> to vector<100x32xf32>
    %253 = arith.addf %251, %252 : vector<100x32xf32>
    %cst_117 = arith.constant 5.000000e-01 : f32
    %254 = vector.broadcast %cst_117 : f32 to vector<100x32xf32>
    %255 = arith.mulf %254, %253 : vector<100x32xf32>
    %cst_118 = arith.constant 0.707106769 : f32
    %256 = vector.broadcast %cst_118 : f32 to vector<100x32xf32>
    %257 = arith.mulf %253, %256 : vector<100x32xf32>
    %258 = math.absf %257 : vector<100x32xf32>
    %cst_119 = arith.constant 0.327591091 : f32
    %259 = vector.broadcast %cst_119 : f32 to vector<100x32xf32>
    %260 = arith.mulf %259, %258 : vector<100x32xf32>
    %cst_120 = arith.constant 1.000000e+00 : f32
    %261 = vector.broadcast %cst_120 : f32 to vector<100x32xf32>
    %262 = arith.addf %261, %260 : vector<100x32xf32>
    %cst_121 = arith.constant 1.000000e+00 : f32
    %263 = vector.broadcast %cst_121 : f32 to vector<100x32xf32>
    %264 = arith.divf %263, %262 : vector<100x32xf32>
    %cst_122 = arith.constant 1.06140542 : f32
    %265 = vector.broadcast %cst_122 : f32 to vector<100x32xf32>
    %266 = arith.mulf %265, %264 : vector<100x32xf32>
    %cst_123 = arith.constant -1.45315206 : f32
    %267 = vector.broadcast %cst_123 : f32 to vector<100x32xf32>
    %268 = arith.addf %266, %267 : vector<100x32xf32>
    %269 = arith.mulf %268, %264 : vector<100x32xf32>
    %cst_124 = arith.constant 1.42141378 : f32
    %270 = vector.broadcast %cst_124 : f32 to vector<100x32xf32>
    %271 = arith.addf %269, %270 : vector<100x32xf32>
    %272 = arith.mulf %271, %264 : vector<100x32xf32>
    %cst_125 = arith.constant -0.284496725 : f32
    %273 = vector.broadcast %cst_125 : f32 to vector<100x32xf32>
    %274 = arith.addf %272, %273 : vector<100x32xf32>
    %275 = arith.mulf %274, %264 : vector<100x32xf32>
    %cst_126 = arith.constant 0.254829586 : f32
    %276 = vector.broadcast %cst_126 : f32 to vector<100x32xf32>
    %277 = arith.addf %275, %276 : vector<100x32xf32>
    %278 = arith.mulf %277, %264 : vector<100x32xf32>
    %cst_127 = arith.constant 0.000000e+00 : f32
    %279 = vector.broadcast %cst_127 : f32 to vector<100x32xf32>
    %280 = arith.subf %279, %258 : vector<100x32xf32>
    %281 = arith.mulf %280, %258 : vector<100x32xf32>
    %282 = math.exp %281 : vector<100x32xf32>
    %283 = arith.mulf %278, %282 : vector<100x32xf32>
    %cst_128 = arith.constant 1.000000e+00 : f32
    %284 = vector.broadcast %cst_128 : f32 to vector<100x32xf32>
    %285 = arith.subf %284, %283 : vector<100x32xf32>
    %cst_129 = arith.constant 0.000000e+00 : f32
    %286 = vector.broadcast %cst_129 : f32 to vector<100x32xf32>
    %287 = arith.cmpf oge, %257, %286 : vector<100x32xf32>
    %cst_130 = arith.constant 0.000000e+00 : f32
    %288 = vector.broadcast %cst_130 : f32 to vector<100x32xf32>
    %289 = arith.subf %288, %285 : vector<100x32xf32>
    %290 = arith.select %287, %285, %289 : vector<100x32xi1>, vector<100x32xf32>
    %cst_131 = arith.constant 1.000000e+00 : f32
    %291 = vector.broadcast %cst_131 : f32 to vector<100x32xf32>
    %292 = arith.addf %291, %290 : vector<100x32xf32>
    %293 = arith.mulf %255, %292 : vector<100x32xf32>
    %cst_132 = arith.constant dense<0.000000e+00> : vector<100x8xf32>
    %294 = tpu.matmul %293, %171, %cst_132 {dimension_numbers = #tpu.dot_dimension_numbers<[1], [0], [0], [1], [0, 0, 1, 1], [], []>} : vector<100x32xf32>, vector<32x8xf32>, vector<100x8xf32> -> vector<100x8xf32>
    %295 = arith.addf %228, %294 : vector<100x8xf32>
    %296 = vector.broadcast %165 : vector<1x8xf32> to vector<100x8xf32>
    %297 = arith.addf %295, %296 : vector<100x8xf32>
    %298 = vector.extract_strided_slice %297 {offsets = [0, 0], sizes = [1, 8], strides = [1, 1]} : vector<100x8xf32> to vector<1x8xf32>
    %299 = vector.extract_strided_slice %297 {offsets = [50, 0], sizes = [1, 8], strides = [1, 1]} : vector<100x8xf32> to vector<1x8xf32>
    %300 = tpu.concatenate %298, %299 in 0 : vector<1x8xf32>, vector<1x8xf32> -> vector<2x8xf32>
    %c0_133 = arith.constant 0 : index
    %c0_134 = arith.constant 0 : index
    %301 = vector.load %arg7[%c0_133, %c0_134] : memref<16x128xf32, #tpu.memory_space<vmem>>, vector<8x128xf32>
    %c8_135 = arith.constant 8 : index
    %c0_136 = arith.constant 0 : index
    %302 = vector.load %arg7[%c8_135, %c0_136] : memref<16x128xf32, #tpu.memory_space<vmem>>, vector<1x128xf32>
    %cst_137 = arith.constant dense<0.000000e+00> : vector<2x128xf32>
    %303 = tpu.matmul %300, %301, %cst_137 {dimension_numbers = #tpu.dot_dimension_numbers<[1], [0], [0], [1], [0, 0, 1, 1], [], []>} : vector<2x8xf32>, vector<8x128xf32>, vector<2x128xf32> -> vector<2x128xf32>
    %304 = vector.broadcast %302 : vector<1x128xf32> to vector<2x128xf32>
    %305 = arith.addf %303, %304 : vector<2x128xf32>
    %cst_138 = arith.constant dense<0xFF800000> : vector<2xf32>
    %306 = vector.multi_reduction <maximumf>, %305, %cst_138 [1] : vector<2x128xf32> to vector<2xf32>
    %307 = vector.shape_cast %306 : vector<2xf32> to vector<2x1xf32>
    %308 = vector.broadcast %307 : vector<2x1xf32> to vector<2x128xf32>
    %309 = arith.subf %305, %308 : vector<2x128xf32>
    %310 = math.exp %309 : vector<2x128xf32>
    %cst_139 = arith.constant dense<0.000000e+00> : vector<2xf32>
    %311 = vector.multi_reduction <add>, %310, %cst_139 [1] : vector<2x128xf32> to vector<2xf32>
    %312 = vector.shape_cast %311 : vector<2xf32> to vector<2x1xf32>
    %313 = vector.broadcast %312 : vector<2x1xf32> to vector<2x128xf32>
    %314 = arith.divf %310, %313 : vector<2x128xf32>
    %c0_140 = arith.constant 0 : index
    %c0_141 = arith.constant 0 : index
    %315 = vector.load %arg8[%c0_140, %c0_141] : memref<2x128xf32, #tpu.memory_space<vmem>>, vector<2x128xf32>
    tpu.vector_store %arg8[%c0_140, %c0_141], %314 {strides = array<i32>} : memref<2x128xf32, #tpu.memory_space<vmem>>, vector<2x128xf32>,
    return
  }
  func.func @transform_0(%arg0: i32) -> (i32, i32) {
    %c0_i32 = arith.constant 0 : i32
    %c0_i32_0 = arith.constant 0 : i32
    %c0_i32_1 = arith.constant 0 : i32
    return %c0_i32, %c0_i32_0 : i32, i32
  }
  func.func @transform_1(%arg0: i32) -> (i32, i32) {
    %c0_i32 = arith.constant 0 : i32
    %c0_i32_0 = arith.constant 0 : i32
    %c0_i32_1 = arith.constant 0 : i32
    return %c0_i32, %c0_i32_0 : i32, i32
  }
  func.func @transform_2(%arg0: i32) -> (i32, i32) {
    %c0_i32 = arith.constant 0 : i32
    %c0_i32_0 = arith.constant 0 : i32
    %c0_i32_1 = arith.constant 0 : i32
    return %c0_i32, %c0_i32_0 : i32, i32
  }
  func.func @transform_3(%arg0: i32) -> (i32, i32, i32) {
    %c0_i32 = arith.constant 0 : i32
    %c0_i32_0 = arith.constant 0 : i32
    %c0_i32_1 = arith.constant 0 : i32
    %c0_i32_2 = arith.constant 0 : i32
    return %c0_i32, %c0_i32_0, %c0_i32_1 : i32, i32, i32
  }
  func.func @transform_4(%arg0: i32) -> (i32, i32, i32) {
    %c0_i32 = arith.constant 0 : i32
    %c0_i32_0 = arith.constant 0 : i32
    %c0_i32_1 = arith.constant 0 : i32
    %c0_i32_2 = arith.constant 0 : i32
    return %c0_i32, %c0_i32_0, %c0_i32_1 : i32, i32, i32
  }
  func.func @transform_5(%arg0: i32) -> (i32, i32) {
    %c0_i32 = arith.constant 0 : i32
    %c0_i32_0 = arith.constant 0 : i32
    %c0_i32_1 = arith.constant 0 : i32
    return %c0_i32, %c0_i32_0 : i32, i32
  }
  func.func @transform_6(%arg0: i32) -> (i32, i32) {
    %c0_i32 = arith.constant 0 : i32
    %c0_i32_0 = arith.constant 0 : i32
    %c0_i32_1 = arith.constant 0 : i32
    return %c0_i32, %c0_i32_0 : i32, i32
  }
  func.func @transform_7(%arg0: i32) -> (i32, i32) {
    %c0_i32 = arith.constant 0 : i32
    %c0_i32_0 = arith.constant 0 : i32
    %c0_i32_1 = arith.constant 0 : i32
    return %c0_i32, %c0_i32_0 : i32, i32
  }
}

</mosaic_0001>

<bundles_post_ra>
// kernel: tpu_custom_call.1
= control target key start
LH: loop header
LB: loop body
LE: loop exit
PB: predicated region body
PF: predicated region fallthrough
CT: control target
= control target key end

     0   :  { %vm95_vm0 = vcmask 1043456   ;;  %v10757_v1 = vmov 0.0   ;;  %vm7306_vm1 = vmmov 0   ;;  %vm55_vm2 = vcmask 97280   ;;  %s10749_s0 = inlined_call_operand.vmem [shape: f32[100,12], index: 0, kind: input, shape index: {}]   ;;  %s10750_s1 = inlined_call_operand.vmem [shape: f32[12,8], index: 1, kind: input, shape index: {}]   ;;  %s10751_s2 = inlined_call_operand.vmem [shape: f32[100,8], index: 2, kind: input, shape index: {}]   ;;  %s10752_s3 = inlined_call_operand.vmem [shape: f32[2,48,32], index: 3, kind: input, shape index: {}]   ;;  %s10753_s4 = inlined_call_operand.vmem [shape: f32[2,8,32], index: 4, kind: input, shape index: {}]   ;;  %s10754_s5 = inlined_call_operand.vmem [shape: f32[100,100], index: 5, kind: input, shape index: {}]   ;;  %s10755_s6 = inlined_call_operand.vmem [shape: f32[16,128], index: 6, kind: input, shape index: {}]   ;;  %s10756_s7 = inlined_call_operand.hbm [shape: f32[2,128], index: 7, kind: output, shape index: {}]  }
   0x1   :  { %v41_v0 = vld [vmem:[%s10750_s1 + $0x8] sm:$0xf]  ;;  %6010 = vmatprep.subr.mxu0 %v10757_v1  ;;  %v40_v2 = vld [vmem:[%s10750_s1] sm:$0xff]  ;;  %6014 = vmatprep.mubr.msk.f32.mxu0 %vm7306_vm1, %v10757_v1 }
   0x2   :  { %6011 = vmatpush3.msk.msra.mxu0 %vm95_vm0, %v41_v0  ;;  %v27_v3 = vld [vmem:[%s10749_s0] sm:$0xff]  ;;  %6053 = vmatprep.subr.mxu1 %v10757_v1 }
   0x3   :  { %6012 = vmatprep.subr.mxu0 %v10757_v1  ;;  %6055 = vmatprep.mubr.msk.f32.mxu1 %vm7306_vm1, %v10757_v1 }
   0x4   :  { %6013 = vmatpush3.msra.mxu0 %v40_v2 }
   0x5   :  { %6015 = vmatmul.mubr.msk.f32.vlgmr.msra.gmra.mxu0 %vm55_vm2, %v27_v3  ;;  %6159 = vmatprep.subr.mxu0 %v10757_v1 }
   0x6   :  { %12 = vsyncpa [#allocation3], 0  ;;  %6017 = vmatprep.mubr.msk.f32.mxu0 %vm7306_vm1, %v10757_v1  ;;  %v28_v4 = vld [vmem:[%s10749_s0 + $0x8] sm:$0xff]  ;;  %v29_v5 = vld [vmem:[%s10749_s0 + $0x10] sm:$0xff]  ;;  %vm252_vm3 = vcmask 64512   ;;  %vm289_vm4 = vcmask 60416  }
   0x7   :  { %v30_v6 = vld [vmem:[%s10749_s0 + $0x18] sm:$0xff]  ;;  %v31_v7 = vld [vmem:[%s10749_s0 + $0x20] sm:$0xff]  ;;  %v32_v8 = vld [vmem:[%s10749_s0 + $0x28] sm:$0xff]  ;;  %s7308_s12 = smov 116   ;;  %s7309_s13 = smov 124   ;;  %vm670_vm5 = vcmask 31744  }
   0x8   :  { %v33_v9 = vld [vmem:[%s10749_s0 + $0x30] sm:$0xff]  ;;  %v34_v10 = vld [vmem:[%s10749_s0 + $0x38] sm:$0xff]  ;;  %v35_v11 = vld [vmem:[%s10749_s0 + $0x40] sm:$0xff]  ;;  %s7310_s14 = smov 112   ;;  %s7311_s15 = smov 108   ;;  %vm853_vm6 = vcmask 818176  }
   0x9   :  { %6018 = vmatmul.mubr.msk.f32.gmra.mxu0 %vm55_vm2, %v28_v4  ;;  %v36_v12 = vld [vmem:[%s10749_s0 + $0x48] sm:$0xff]  ;;  %v37_v13 = vld [vmem:[%s10749_s0 + $0x50] sm:$0xff]  ;;  %v38_v14 = vld [vmem:[%s10749_s0 + $0x58] sm:$0xff]  ;;  %vm890_vm7 = vcmask 814080   ;;  %s7312_s21 = smov 4   ;;  %s7313_s26 = smov 104  }
   0xa   :  { %6020 = vmatprep.mubr.msk.f32.mxu0 %vm7306_vm1, %v10757_v1  ;;  %v39_v15 = vld [vmem:[%s10749_s0 + $0x60] sm:$0xf]  ;;  %v43_v20 = vld [vmem:[%s10751_s2 + $0x8] sm:$0xff]  ;;  %v44_v25 = vld [vmem:[%s10751_s2 + $0x10] sm:$0xff]  ;;  %s7307_s0 = smov 120   ;;  %vm2596_vm9 = vcmask 261120  }
   0xb   :  { %v42_v16 = vld [vmem:[%s10751_s2] sm:$0xff]  ;;  %v45_v30 = vld [vmem:[%s10751_s2 + $0x18] sm:$0xff]  ;;  %v47_v40 = vld [vmem:[%s10751_s2 + $0x28] sm:$0xff] }
   0xc   :  { %v46_v35 = vld [vmem:[%s10751_s2 + $0x20] sm:$0xff]  ;;  %v48_v45 = vld [vmem:[%s10751_s2 + $0x30] sm:$0xff]  ;;  %v49_v50 = vld [vmem:[%s10751_s2 + $0x38] sm:$0xff] }
   0xd   :  { %6021 = vmatmul.mubr.msk.f32.gmra.mxu0 %vm55_vm2, %v29_v5  ;;  %v50_v55 = vld [vmem:[%s10751_s2 + $0x40] sm:$0xff]  ;;  %v51_v60 = vld [vmem:[%s10751_s2 + $0x48] sm:$0xff]  ;;  %v52_v2 = vld [vmem:[%s10751_s2 + $0x50] sm:$0xff] }
   0xe   :  { %6023 = vmatprep.mubr.msk.f32.mxu0 %vm7306_vm1, %v10757_v1 }
  0x11   :  { %6024 = vmatmul.mubr.msk.f32.gmra.mxu0 %vm55_vm2, %v30_v6 }
  0x12   :  { %6026 = vmatprep.mubr.msk.f32.mxu0 %vm7306_vm1, %v10757_v1 }
  0x15   :  { %6027 = vmatmul.mubr.msk.f32.gmra.mxu0 %vm55_vm2, %v31_v7  ;;  %v53_v7 = vld [vmem:[%s10751_s2 + $0x58] sm:$0xff] }
  0x16   :  { %6029 = vmatprep.mubr.msk.f32.mxu0 %vm7306_vm1, %v10757_v1 }
  0x19   :  { %6030 = vmatmul.mubr.msk.f32.gmra.mxu0 %vm55_vm2, %v32_v8 }
  0x1a   :  { %6032 = vmatprep.mubr.msk.f32.mxu0 %vm7306_vm1, %v10757_v1 }
  0x1d   :  { %6033 = vmatmul.mubr.msk.f32.gmra.mxu0 %vm55_vm2, %v33_v9 }
  0x1e   :  { %6035 = vmatprep.mubr.msk.f32.mxu0 %vm7306_vm1, %v10757_v1 }
  0x21   :  { %6036 = vmatmul.mubr.msk.f32.gmra.mxu0 %vm55_vm2, %v34_v10 }
  0x22   :  { %6038 = vmatprep.mubr.msk.f32.mxu0 %vm7306_vm1, %v10757_v1 }
  0x25   :  { %6039 = vmatmul.mubr.msk.f32.gmra.mxu0 %vm55_vm2, %v35_v11 }
  0x26   :  { %6041 = vmatprep.mubr.msk.f32.mxu0 %vm7306_vm1, %v10757_v1 }
  0x29   :  { %6042 = vmatmul.mubr.msk.f32.gmra.mxu0 %vm55_vm2, %v36_v12  ;;  %v54_v12 = vld [vmem:[%s10751_s2 + $0x60] sm:$0xf] }
  0x2a   :  { %6044 = vmatprep.mubr.msk.f32.mxu0 %vm7306_vm1, %v10757_v1 }
  0x2d   :  { %6045 = vmatmul.mubr.msk.f32.gmra.mxu0 %vm55_vm2, %v37_v13 }
  0x2e   :  { %6047 = vmatprep.mubr.msk.f32.mxu0 %vm7306_vm1, %v10757_v1 }
  0x31   :  { %6048 = vmatmul.mubr.msk.f32.gmra.mxu0 %vm55_vm2, %v38_v14 }
  0x32   :  { %6050 = vmatprep.mubr.msk.f32.mxu0 %vm7306_vm1, %v10757_v1 }
  0x35   :  { %6051 = vmatmul.mubr.msk.f32.gmra.mxu0 %vm55_vm2, %v39_v15 }
  0x36   :  { %6185 = vmatprep.mubr.msk.f32.mxu0 %vm7306_vm1, %v10757_v1 }
  0xc5   :  { %v165_v17 = vpop.f32.mrf.mxu0 }
  0xc6   :  { %v7451_v18 = vadd.f32 %v165_v17, %v42_v16 }
  0xc7   :  { %v6016_v19 = vpop.f32.mrf.mxu0 }
  0xc8   :  { %v253_v21 = vsel %vm252_vm3, %v7451_v18, 0.0 }
  0xc9   :  { %254 = vadd.xlane.f32.xlu0 %v253_v21  ;;  %v170_v22 = vpop.f32.mrf.mxu0 }
  0xca   :  { %v7458_v23 = vadd.f32 %v170_v22, %v43_v20 }
  0xcb   :  { %v6019_v24 = vpop.f32.mrf.mxu0 }
  0xcc   :  { %v256_v26 = vsel %vm252_vm3, %v7458_v23, 0.0 }
  0xcd   :  { %257 = vadd.xlane.f32.xlu0 %v256_v26  ;;  %v175_v27 = vpop.f32.mrf.mxu0 }
  0xce   :  { %v7465_v28 = vadd.f32 %v175_v27, %v44_v25 }
  0xcf   :  { %v6022_v29 = vpop.f32.mrf.mxu0 }
  0xd0   :  { %v259_v31 = vsel %vm252_vm3, %v7465_v28, 0.0 }
  0xd1   :  { %260 = vadd.xlane.f32.xlu1 %v259_v31  ;;  %v180_v32 = vpop.f32.mrf.mxu0 }
  0xd2   :  { %v7472_v33 = vadd.f32 %v180_v32, %v45_v30 }
  0xd3   :  { %v6025_v34 = vpop.f32.mrf.mxu0 }
  0xd4   :  { %v262_v36 = vsel %vm252_vm3, %v7472_v33, 0.0 }
  0xd5   :  { %263 = vadd.xlane.f32.xlu1 %v262_v36  ;;  %v185_v37 = vpop.f32.mrf.mxu0 }
  0xd6   :  { %v7479_v38 = vadd.f32 %v185_v37, %v46_v35 }
  0xd7   :  { %v6028_v39 = vpop.f32.mrf.mxu0 }
  0xd8   :  { %v265_v41 = vsel %vm252_vm3, %v7479_v38, 0.0 }
  0xd9   :  { %266 = vadd.xlane.f32.xlu0 %v265_v41  ;;  %v190_v42 = vpop.f32.mrf.mxu0 }
  0xda   :  { %v7486_v43 = vadd.f32 %v190_v42, %v47_v40 }
  0xdb   :  { %v6031_v44 = vpop.f32.mrf.mxu0 }
  0xdc   :  { %v268_v46 = vsel %vm252_vm3, %v7486_v43, 0.0 }
  0xdd   :  { %269 = vadd.xlane.f32.xlu1 %v268_v46  ;;  %v195_v47 = vpop.f32.mrf.mxu0 }
  0xde   :  { %v7493_v48 = vadd.f32 %v195_v47, %v48_v45 }
  0xdf   :  { %v6034_v49 = vpop.f32.mrf.mxu0 }
  0xe0   :  { %v271_v51 = vsel %vm252_vm3, %v7493_v48, 0.0 }
  0xe1   :  { %272 = vadd.xlane.f32.xlu0 %v271_v51  ;;  %v200_v52 = vpop.f32.mrf.mxu0 }
  0xe2   :  { %v7500_v53 = vadd.f32 %v200_v52, %v49_v50 }
  0xe3   :  { %v6037_v54 = vpop.f32.mrf.mxu0 }
  0xe4   :  { %v274_v56 = vsel %vm252_vm3, %v7500_v53, 0.0 }
  0xe5   :  { %275 = vadd.xlane.f32.xlu1 %v274_v56  ;;  %v205_v57 = vpop.f32.mrf.mxu0 }
  0xe6   :  { %v7507_v58 = vadd.f32 %v205_v57, %v50_v55 }
  0xe7   :  { %v6040_v59 = vpop.f32.mrf.mxu0 }
  0xe8   :  { %v277_v61 = vsel %vm252_vm3, %v7507_v58, 0.0 }
  0xe9   :  { %278 = vadd.xlane.f32.xlu0 %v277_v61  ;;  %v210_v62 = vpop.f32.mrf.mxu0 }
  0xea   :  { %v7514_v63 = vadd.f32 %v210_v62, %v51_v60 }
  0xeb   :  { %v6043_v0 = vpop.f32.mrf.mxu0 }
  0xec   :  { %10770 = vst [vmem:[#allocation5_spill] sm:$0xff] %v7514_v63  ;;  %v280_v3 = vsel %vm252_vm3, %v7514_v63, 0.0 }
  0xed   :  { %281 = vadd.xlane.f32.xlu1 %v280_v3  ;;  %v215_v4 = vpop.f32.mrf.mxu0 }
  0xee   :  { %v7521_v5 = vadd.f32 %v215_v4, %v52_v2 }
  0xef   :  { %v6046_v6 = vpop.f32.mrf.mxu0 }
  0xf0   :  { %10771 = vst [vmem:[#allocation6_spill] sm:$0xff] %v7521_v5  ;;  %v283_v8 = vsel %vm252_vm3, %v7521_v5, 0.0 }
  0xf1   :  { %284 = vadd.xlane.f32.xlu0 %v283_v8  ;;  %v220_v9 = vpop.f32.mrf.mxu0 }
  0xf2   :  { %v7528_v10 = vadd.f32 %v220_v9, %v53_v7 }
  0xf3   :  { %v6049_v11 = vpop.f32.mrf.mxu0 }
  0xf4   :  { %10772 = vst [vmem:[#allocation7_spill] sm:$0xff] %v7528_v10  ;;  %v286_v13 = vsel %vm252_vm3, %v7528_v10, 0.0 }
  0xf5   :  { %287 = vadd.xlane.f32.xlu1 %v286_v13  ;;  %v225_v14 = vpop.f32.mrf.mxu0 }
  0xf6   :  { %v7535_v15 = vadd.f32 %v225_v14, %v54_v12 }
  0xf7   :  { %v6052_v16 = vpop.f32.mrf.mxu0 }
  0xf8   :  { %10773 = vst [vmem:[#allocation8_spill] sm:$0xff] %v7535_v15  ;;  %v290_v17 = vsel %vm289_vm4, %v7535_v15, 0.0 }
  0xf9   :  { %291 = vadd.xlane.f32.xlu0 %v290_v17 }
 0x152   :  { %v255_v19 = vpop.xlane.xlu0 %254 }
 0x153   :  { %v294_v20 = vmul.f32 0.125, %v255_v19 }
 0x155   :  { %v7540_v21 = vsub.f32 %v7451_v18, %v294_v20 }
 0x156   :  { %v258_v22 = vpop.xlane.xlu0 %257 }
 0x157   :  { %v295_v24 = vmul.f32 0.125, %v258_v22  ;;  %v320_v25 = vmul.f32 %v7540_v21, %v7540_v21 }
 0x159   :  { %v7545_v26 = vsub.f32 %v7458_v23, %v295_v24  ;;  %v333_v27 = vsel %vm252_vm3, %v320_v25, 0.0 }
 0x15a   :  { %v261_v29 = vpop.xlane.xlu1 %260  ;;  %334 = vadd.xlane.f32.xlu1 %v333_v27 }
 0x15b   :  { %v296_v30 = vmul.f32 0.125, %v261_v29  ;;  %v321_v31 = vmul.f32 %v7545_v26, %v7545_v26 }
 0x15d   :  { %v7551_v32 = vsub.f32 %v7465_v28, %v296_v30  ;;  %v336_v34 = vsel %vm252_vm3, %v321_v31, 0.0 }
 0x15e   :  { %v264_v35 = vpop.xlane.xlu1 %263  ;;  %337 = vadd.xlane.f32.xlu0 %v336_v34 }
 0x15f   :  { %v297_v36 = vmul.f32 0.125, %v264_v35  ;;  %v322_v37 = vmul.f32 %v7551_v32, %v7551_v32 }
 0x161   :  { %v7557_v39 = vsub.f32 %v7472_v33, %v297_v36  ;;  %v339_v40 = vsel %vm252_vm3, %v322_v37, 0.0  ;;  %v246_v36 = vld [vmem:[%s10752_s3] sm:$0xff] }
 0x162   :  { %v267_v41 = vpop.xlane.xlu0 %266  ;;  %340 = vadd.xlane.f32.xlu1 %v339_v40  ;;  %6054 = vmatpush3.msra.mxu1 %v246_v36 }
 0x163   :  { %v298_v42 = vmul.f32 0.125, %v267_v41  ;;  %v323_v44 = vmul.f32 %v7557_v39, %v7557_v39  ;;  %6094 = vmatprep.subr.mxu1 %v10757_v1 }
 0x165   :  { %v7563_v45 = vsub.f32 %v7479_v38, %v298_v42  ;;  %v342_v46 = vsel %vm252_vm3, %v323_v44, 0.0  ;;  %v7624_v44 = vld [vmem:[%s10753_s4] ss:$0 sm:$0xff] }
 0x166   :  { %v270_v47 = vpop.xlane.xlu1 %269  ;;  %343 = vadd.xlane.f32.xlu0 %v342_v46 }
 0x167   :  { %v299_v49 = vmul.f32 0.125, %v270_v47  ;;  %v324_v50 = vmul.f32 %v7563_v45, %v7563_v45 }
 0x169   :  { %v7569_v51 = vsub.f32 %v7486_v43, %v299_v49  ;;  %v345_v52 = vsel %vm252_vm3, %v324_v50, 0.0 }
 0x16a   :  { %v273_v54 = vpop.xlane.xlu0 %272  ;;  %346 = vadd.xlane.f32.xlu1 %v345_v52 }
 0x16b   :  { %v300_v55 = vmul.f32 0.125, %v273_v54  ;;  %v325_v56 = vmul.f32 %v7569_v51, %v7569_v51 }
 0x16d   :  { %v7575_v57 = vsub.f32 %v7493_v48, %v300_v55  ;;  %v348_v59 = vsel %vm252_vm3, %v325_v56, 0.0 }
 0x16e   :  { %v276_v60 = vpop.xlane.xlu1 %275  ;;  %349 = vadd.xlane.f32.xlu0 %v348_v59 }
 0x16f   :  { %v301_v61 = vmul.f32 0.125, %v276_v60  ;;  %v326_v62 = vmul.f32 %v7575_v57, %v7575_v57 }
 0x171   :  { %v7581_v0 = vsub.f32 %v7500_v53, %v301_v61  ;;  %v351_v2 = vsel %vm252_vm3, %v326_v62, 0.0 }
 0x172   :  { %v279_v3 = vpop.xlane.xlu0 %278  ;;  %352 = vadd.xlane.f32.xlu1 %v351_v2 }
 0x173   :  { %v302_v4 = vmul.f32 0.125, %v279_v3  ;;  %v327_v6 = vmul.f32 %v7581_v0, %v7581_v0 }
 0x175   :  { %v7587_v7 = vsub.f32 %v7507_v58, %v302_v4  ;;  %v354_v8 = vsel %vm252_vm3, %v327_v6, 0.0 }
 0x176   :  { %v282_v9 = vpop.xlane.xlu1 %281  ;;  %355 = vadd.xlane.f32.xlu0 %v354_v8 }
 0x177   :  { %v303_v11 = vmul.f32 0.125, %v282_v9  ;;  %v328_v12 = vmul.f32 %v7587_v7, %v7587_v7 }
 0x179   :  { %v7593_v13 = vsub.f32 %v7514_v63, %v303_v11  ;;  %v357_v14 = vsel %vm252_vm3, %v328_v12, 0.0 }
 0x17a   :  { %v285_v16 = vpop.xlane.xlu0 %284  ;;  %358 = vadd.xlane.f32.xlu1 %v357_v14 }
 0x17b   :  { %v304_v17 = vmul.f32 0.125, %v285_v16  ;;  %v329_v19 = vmul.f32 %v7593_v13, %v7593_v13 }
 0x17d   :  { %v7599_v20 = vsub.f32 %v7521_v5, %v304_v17  ;;  %v360_v22 = vsel %vm252_vm3, %v329_v19, 0.0 }
 0x17e   :  { %361 = vadd.xlane.f32.xlu1 %v360_v22  ;;  %v288_v24 = vpop.xlane.xlu1 %287 }
 0x17f   :  { %v305_v25 = vmul.f32 0.125, %v288_v24  ;;  %v330_v27 = vmul.f32 %v7599_v20, %v7599_v20 }
 0x181   :  { %v7605_v29 = vsub.f32 %v7528_v10, %v305_v25  ;;  %v363_v30 = vsel %vm252_vm3, %v330_v27, 0.0 }
 0x182   :  { %364 = vadd.xlane.f32.xlu1 %v363_v30  ;;  %v292_v31 = vpop.xlane.xlu0 %291 }
 0x183   :  { %v306_v34 = vmul.f32 0.125, %v292_v31  ;;  %v331_v35 = vmul.f32 %v7605_v29, %v7605_v29 }
 0x185   :  { %v7614_v37 = vsub.f32 %v7535_v15, %v306_v34  ;;  %v366_v40 = vsel %vm252_vm3, %v331_v35, 0.0 }
 0x186   :  { %367 = vadd.xlane.f32.xlu1 %v366_v40 }
 0x187   :  { %v332_v41 = vmul.f32 %v7614_v37, %v7614_v37 }
 0x189   :  { %v369_v42 = vsel %vm289_vm4, %v332_v41, 0.0 }
 0x18a   :  { %370 = vadd.xlane.f32.xlu1 %v369_v42 }
 0x18c   :  { %442 = vrot.lane.b32.xlu0 %v7624_v44, %s7307_s0 }
 0x1e3   :  { %v335_v46 = vpop.xlane.xlu1 %334 }
 0x1e4   :  { %v372_v47 = vmul.f32 0.125, %v335_v46 }
 0x1e6   :  { %v385_v50 = vadd.f32 1e-05, %v372_v47 }
 0x1e7   :  { %v338_v49 = vpop.xlane.xlu0 %337 }
 0x1e8   :  { %v373_v52 = vmul.f32 0.125, %v338_v49  ;;  %6848 = vrsqrt.f32 %v385_v50 }
 0x1ea   :  { %v386_v56 = vadd.f32 1e-05, %v373_v52 }
 0x1eb   :  { %v341_v54 = vpop.xlane.xlu1 %340 }
 0x1ec   :  { %v374_v55 = vmul.f32 0.125, %v341_v54  ;;  %6850 = vrsqrt.f32 %v386_v56 }
 0x1ee   :  { %v387_v61 = vadd.f32 1e-05, %v374_v55 }
 0x1ef   :  { %v344_v59 = vpop.xlane.xlu0 %343 }
 0x1f0   :  { %v375_v60 = vmul.f32 0.125, %v344_v59  ;;  %6852 = vrsqrt.f32 %v387_v61 }
 0x1f2   :  { %v388_v62 = vadd.f32 1e-05, %v375_v60 }
 0x1f3   :  { %v347_v2 = vpop.xlane.xlu1 %346 }
 0x1f4   :  { %v376_v3 = vmul.f32 0.125, %v347_v2  ;;  %6854 = vrsqrt.f32 %v388_v62 }
 0x1f5   :  { %v6849_v9 = vpop.eup %6848 }
 0x1f6   :  { %v389_v4 = vadd.f32 1e-05, %v376_v3  ;;  %v411_v16 = vmul.f32 %v6849_v9, %v7540_v21 }
 0x1f7   :  { %v350_v6 = vpop.xlane.xlu0 %349 }
 0x1f8   :  { %v377_v8 = vmul.f32 0.125, %v350_v6  ;;  %6856 = vrsqrt.f32 %v389_v4  ;;  %v428_v27 = vmul.f32 %v7624_v44, %v411_v16 }
 0x1f9   :  { %v6851_v17 = vpop.eup %6850 }
 0x1fa   :  { %v390_v11 = vadd.f32 1e-05, %v377_v8  ;;  %v412_v30 = vmul.f32 %v6851_v17, %v7545_v26 }
 0x1fb   :  { %v353_v12 = vpop.xlane.xlu1 %352 }
 0x1fc   :  { %v378_v14 = vmul.f32 0.125, %v353_v12  ;;  %6858 = vrsqrt.f32 %v390_v11  ;;  %v429_v42 = vmul.f32 %v7624_v44, %v412_v30 }
 0x1fd   :  { %v6853_v25 = vpop.eup %6852 }
 0x1fe   :  { %v391_v22 = vadd.f32 1e-05, %v378_v14  ;;  %v413_v21 = vmul.f32 %v6853_v25, %v7551_v32 }
 0x1ff   :  { %v356_v19 = vpop.xlane.xlu0 %355 }
 0x200   :  { %v379_v24 = vmul.f32 0.125, %v356_v19  ;;  %6860 = vrsqrt.f32 %v391_v22  ;;  %v430_v54 = vmul.f32 %v7624_v44, %v413_v21 }
 0x201   :  { %v6855_v35 = vpop.eup %6854 }
 0x202   :  { %v392_v36 = vadd.f32 1e-05, %v379_v24  ;;  %v414_v26 = vmul.f32 %v6855_v35, %v7557_v39 }
 0x203   :  { %v359_v31 = vpop.xlane.xlu1 %358  ;;  %v7631_v34 = vpop.permute.xlu0 %442 }
 0x204   :  { %v380_v40 = vmul.f32 0.125, %v359_v31  ;;  %v445_v41 = vadd.f32 %v7631_v34, %v428_v27  ;;  %6862 = vrsqrt.f32 %v392_v36  ;;  %v446_v52 = vadd.f32 %v7631_v34, %v429_v42 }
 0x205   :  { %v6857_v47 = vpop.eup %6856  ;;  %v447_v55 = vadd.f32 %v7631_v34, %v430_v54  ;;  %v431_v61 = vmul.f32 %v7624_v44, %v414_v26 }
 0x206   :  { %6056 = vmatmul.mubr.msk.f32.vlgmr.msra.gmra.mxu1 %vm252_vm3, %v445_v41  ;;  %v393_v49 = vadd.f32 1e-05, %v380_v40  ;;  %v415_v56 = vmul.f32 %v6857_v47, %v7563_v45 }
 0x207   :  { %v362_v46 = vpop.xlane.xlu1 %361  ;;  %6058 = vmatprep.mubr.msk.f32.mxu1 %vm7306_vm1, %v10757_v1  ;;  %v448_v45 = vadd.f32 %v7631_v34, %v431_v61 }
 0x208   :  { %v381_v50 = vmul.f32 0.125, %v362_v46  ;;  %6864 = vrsqrt.f32 %v393_v49  ;;  %v432_v2 = vmul.f32 %v7624_v44, %v415_v56 }
 0x209   :  { %v6859_v59 = vpop.eup %6858 }
 0x20a   :  { %6059 = vmatmul.mubr.msk.f32.gmra.mxu1 %vm252_vm3, %v446_v52  ;;  %v394_v39 = vadd.f32 1e-05, %v381_v50  ;;  %v416_v3 = vmul.f32 %v6859_v59, %v7569_v51  ;;  %v449_v11 = vadd.f32 %v7631_v34, %v432_v2 }
 0x20b   :  { %v365_v32 = vpop.xlane.xlu1 %364  ;;  %6061 = vmatprep.mubr.msk.f32.mxu1 %vm7306_vm1, %v10757_v1 }
 0x20c   :  { %v382_v60 = vmul.f32 0.125, %v365_v32  ;;  %6866 = vrsqrt.f32 %v394_v39  ;;  %v433_v12 = vmul.f32 %v7624_v44, %v416_v3 }
 0x20d   :  { %v6861_v8 = vpop.eup %6860 }
 0x20e   :  { %6062 = vmatmul.mubr.msk.f32.gmra.mxu1 %vm252_vm3, %v447_v55  ;;  %v395_v4 = vadd.f32 1e-05, %v382_v60  ;;  %v417_v51 = vmul.f32 %v6861_v8, %v7575_v57  ;;  %v450_v19 = vadd.f32 %v7631_v34, %v433_v12 }
 0x20f   :  { %v368_v62 = vpop.xlane.xlu1 %367  ;;  %6064 = vmatprep.mubr.msk.f32.mxu1 %vm7306_vm1, %v10757_v1 }
 0x210   :  { %v383_v6 = vmul.f32 0.125, %v368_v62  ;;  %6868 = vrsqrt.f32 %v395_v4  ;;  %v434_v24 = vmul.f32 %v7624_v44, %v417_v51 }
 0x211   :  { %v6863_v17 = vpop.eup %6862 }
 0x212   :  { %6065 = vmatmul.mubr.msk.f32.gmra.mxu1 %vm252_vm3, %v448_v45  ;;  %v396_v14 = vadd.f32 1e-05, %v383_v6  ;;  %v418_v25 = vmul.f32 %v6863_v17, %v7581_v0  ;;  %v451_v57 = vadd.f32 %v7631_v34, %v434_v24  ;;  %v5438_v17 = vld [vmem:[%s10753_s4 + $0x1] ss:$0 sm:$0xff] }
 0x213   :  { %v371_v9 = vpop.xlane.xlu1 %370  ;;  %6067 = vmatprep.mubr.msk.f32.mxu1 %vm7306_vm1, %v10757_v1 }
 0x214   :  { %v384_v16 = vmul.f32 0.125, %v371_v9  ;;  %6870 = vrsqrt.f32 %v396_v14  ;;  %v435_v30 = vmul.f32 %v7624_v44, %v418_v25 }
 0x215   :  { %v6865_v27 = vpop.eup %6864 }
 0x216   :  { %6068 = vmatmul.mubr.msk.f32.gmra.mxu1 %vm252_vm3, %v449_v11  ;;  %v397_v22 = vadd.f32 1e-05, %v384_v16  ;;  %v419_v31 = vmul.f32 %v6865_v27, %v7587_v7  ;;  %v452_v0 = vadd.f32 %v7631_v34, %v435_v30 }
 0x217   :  { %6070 = vmatprep.mubr.msk.f32.mxu1 %vm7306_vm1, %v10757_v1 }
 0x218   :  { %6872 = vrsqrt.f32 %v397_v22  ;;  %v436_v36 = vmul.f32 %v7624_v44, %v419_v31 }
 0x219   :  { %v6867_v35 = vpop.eup %6866 }
 0x21a   :  { %6071 = vmatmul.mubr.msk.f32.gmra.mxu1 %vm252_vm3, %v450_v19  ;;  %v420_v40 = vmul.f32 %v6867_v35, %v7593_v13  ;;  %v453_v7 = vadd.f32 %v7631_v34, %v436_v36 }
 0x21b   :  { %6073 = vmatprep.mubr.msk.f32.mxu1 %vm7306_vm1, %v10757_v1 }
 0x21c   :  { %v437_v21 = vmul.f32 %v7624_v44, %v420_v40 }
 0x21d   :  { %v6869_v41 = vpop.eup %6868 }
 0x21e   :  { %6074 = vmatmul.mubr.msk.f32.gmra.mxu1 %vm252_vm3, %v451_v57  ;;  %v421_v42 = vmul.f32 %v6869_v41, %v7599_v20  ;;  %v454_v13 = vadd.f32 %v7631_v34, %v437_v21 }
 0x21f   :  { %6076 = vmatprep.mubr.msk.f32.mxu1 %vm7306_vm1, %v10757_v1 }
 0x220   :  { %v438_v26 = vmul.f32 %v7624_v44, %v421_v42 }
 0x221   :  { %v6871_v46 = vpop.eup %6870 }
 0x222   :  { %6077 = vmatmul.mubr.msk.f32.gmra.mxu1 %vm252_vm3, %v452_v0  ;;  %v422_v47 = vmul.f32 %v6871_v46, %v7605_v29  ;;  %v455_v20 = vadd.f32 %v7631_v34, %v438_v26 }
 0x223   :  { %6079 = vmatprep.mubr.msk.f32.mxu1 %vm7306_vm1, %v10757_v1 }
 0x224   :  { %v439_v50 = vmul.f32 %v7624_v44, %v422_v47 }
 0x225   :  { %v6873_v49 = vpop.eup %6872 }
 0x226   :  { %6080 = vmatmul.mubr.msk.f32.gmra.mxu1 %vm252_vm3, %v453_v7  ;;  %v423_v52 = vmul.f32 %v6873_v49, %v7614_v37  ;;  %v456_v54 = vadd.f32 %v7631_v34, %v439_v50 }
 0x227   :  { %6082 = vmatprep.mubr.msk.f32.mxu1 %vm7306_vm1, %v10757_v1 }
 0x228   :  { %v440_v29 = vmul.f32 %v7624_v44, %v423_v52 }
 0x22a   :  { %6083 = vmatmul.mubr.msk.f32.gmra.mxu1 %vm252_vm3, %v454_v13  ;;  %v457_v32 = vadd.f32 %v7631_v34, %v440_v29 }
 0x22b   :  { %6085 = vmatprep.mubr.msk.f32.mxu1 %vm7306_vm1, %v10757_v1 }
 0x22e   :  { %6086 = vmatmul.mubr.msk.f32.gmra.mxu1 %vm252_vm3, %v455_v20 }
 0x22f   :  { %6088 = vmatprep.mubr.msk.f32.mxu1 %vm7306_vm1, %v10757_v1 }
 0x232   :  { %6089 = vmatmul.mubr.msk.f32.gmra.mxu1 %vm252_vm3, %v456_v54 }
 0x233   :  { %6091 = vmatprep.mubr.msk.f32.mxu1 %vm7306_vm1, %v10757_v1 }
 0x236   :  { %6092 = vmatmul.mubr.msk.f32.gmra.mxu1 %vm252_vm3, %v457_v32 }
 0x237   :  { %6120 = vmatprep.mubr.msk.f32.mxu1 %vm7306_vm1, %v10757_v1 }
 0x2c6   :  { %v567_v37 = vpop.f32.mrf.mxu1 }
 0x2c7   :  { %v7755_v42 = vadd.f32 %v5438_v17, %v567_v37 }
 0x2c8   :  { %v6057_v55 = vpop.f32.mrf.mxu1 }
 0x2ca   :  { %v572_v56 = vpop.f32.mrf.mxu1 }
 0x2cb   :  { %v7757_v46 = vadd.f32 %v5438_v17, %v572_v56 }
 0x2cc   :  { %v6060_v59 = vpop.f32.mrf.mxu1 }
 0x2ce   :  { %v577_v39 = vpop.f32.mrf.mxu1 }
 0x2cf   :  { %v7747_v7 = vadd.f32 %v5438_v17, %v577_v39 }
 0x2d0   :  { %v6063_v60 = vpop.f32.mrf.mxu1 }
 0x2d2   :  { %v582_v61 = vpop.f32.mrf.mxu1 }
 0x2d3   :  { %v7749_v21 = vadd.f32 %v5438_v17, %v582_v61 }
 0x2d4   :  { %v6066_v44 = vpop.f32.mrf.mxu1 }
 0x2d6   :  { %v587_v62 = vpop.f32.mrf.mxu1 }
 0x2d7   :  { %v7739_v40 = vadd.f32 %v5438_v17, %v587_v62 }
 0x2d8   :  { %v6069_v2 = vpop.f32.mrf.mxu1 }
 0x2da   :  { %v592_v3 = vpop.f32.mrf.mxu1 }
 0x2db   :  { %v7741_v41 = vadd.f32 %v5438_v17, %v592_v3 }
 0x2dc   :  { %v6072_v4 = vpop.f32.mrf.mxu1 }
 0x2de   :  { %v597_v6 = vpop.f32.mrf.mxu1 }
 0x2df   :  { %v7731_v0 = vadd.f32 %v5438_v17, %v597_v6 }
 0x2e0   :  { %v6075_v45 = vpop.f32.mrf.mxu1 }
 0x2e2   :  { %v602_v34 = vpop.f32.mrf.mxu1 }
 0x2e3   :  { %v7733_v36 = vadd.f32 %v5438_v17, %v602_v34 }
 0x2e4   :  { %v6078_v8 = vpop.f32.mrf.mxu1 }
 0x2e6   :  { %v607_v9 = vpop.f32.mrf.mxu1 }
 0x2e7   :  { %v7723_v31 = vadd.f32 %v5438_v17, %v607_v9 }
 0x2e8   :  { %v6081_v11 = vpop.f32.mrf.mxu1 }
 0x2ea   :  { %v612_v12 = vpop.f32.mrf.mxu1 }
 0x2eb   :  { %v7725_v35 = vadd.f32 %v5438_v17, %v612_v12 }
 0x2ec   :  { %v6084_v14 = vpop.f32.mrf.mxu1 }
 0x2ee   :  { %v617_v16 = vpop.f32.mrf.mxu1 }
 0x2ef   :  { %v7715_v27 = vadd.f32 %v5438_v17, %v617_v16 }
 0x2f0   :  { %v6087_v51 = vpop.f32.mrf.mxu1 }
 0x2f2   :  { %v622_v19 = vpop.f32.mrf.mxu1 }
 0x2f3   :  { %v7711_v22 = vadd.f32 %v5438_v17, %v622_v19 }
 0x2f4   :  { %v6090_v24 = vpop.f32.mrf.mxu1 }
 0x2f5   :  { %666 = vrot.lane.b32.xlu0 %v7711_v22, %s7307_s0 }
 0x2f6   :  { %v627_v25 = vpop.f32.mrf.mxu1 }
 0x2f7   :  { %v7717_v57 = vadd.f32 %v5438_v17, %v627_v25 }
 0x2f8   :  { %v6093_v30 = vpop.f32.mrf.mxu1 }
 0x2f9   :  { %664 = vrot.lane.b32.xlu0 %v7715_v27, %s7307_s0  ;;  %668 = vrot.lane.b32.xlu1 %v7717_v57, %s7307_s0 }
 0x2fd   :  { %662 = vrot.lane.b32.xlu0 %v7725_v35, %s7307_s0  ;;  %660 = vrot.lane.b32.xlu1 %v7723_v31, %s7307_s0 }
 0x301   :  { %658 = vrot.lane.b32.xlu0 %v7733_v36, %s7307_s0  ;;  %656 = vrot.lane.b32.xlu1 %v7731_v0, %s7307_s0 }
 0x305   :  { %654 = vrot.lane.b32.xlu0 %v7741_v41, %s7307_s0  ;;  %652 = vrot.lane.b32.xlu1 %v7739_v40, %s7307_s0 }
 0x309   :  { %650 = vrot.lane.b32.xlu0 %v7749_v21, %s7307_s0  ;;  %648 = vrot.lane.b32.xlu1 %v7747_v7, %s7307_s0 }
 0x30d   :  { %646 = vrot.lane.b32.xlu0 %v7757_v46, %s7307_s0  ;;  %644 = vrot.lane.b32.xlu1 %v7755_v42, %s7307_s0 }
 0x311   :  { %1257 = vrot.lane.b32.xlu0 %v7717_v57, %s7308_s12  ;;  %1255 = vrot.lane.b32.xlu1 %v7711_v22, %s7308_s12 }
 0x315   :  { %1253 = vrot.lane.b32.xlu0 %v7715_v27, %s7308_s12  ;;  %1251 = vrot.lane.b32.xlu1 %v7725_v35, %s7308_s12 }
 0x319   :  { %1249 = vrot.lane.b32.xlu0 %v7723_v31, %s7308_s12  ;;  %1247 = vrot.lane.b32.xlu1 %v7733_v36, %s7308_s12 }
 0x31d   :  { %1245 = vrot.lane.b32.xlu0 %v7731_v0, %s7308_s12  ;;  %1243 = vrot.lane.b32.xlu1 %v7741_v41, %s7308_s12 }
 0x321   :  { %1241 = vrot.lane.b32.xlu0 %v7739_v40, %s7308_s12  ;;  %1239 = vrot.lane.b32.xlu1 %v7749_v21, %s7308_s12 }
 0x325   :  { %1237 = vrot.lane.b32.xlu0 %v7747_v7, %s7308_s12  ;;  %1235 = vrot.lane.b32.xlu1 %v7757_v46, %s7308_s12 }
 0x329   :  { %1233 = vrot.lane.b32.xlu0 %v7755_v42, %s7308_s12  ;;  %1207 = vrot.lane.b32.xlu1 %v7755_v42, %s7309_s13 }
 0x32d   :  { %1209 = vrot.lane.b32.xlu0 %v7757_v46, %s7309_s13  ;;  %1211 = vrot.lane.b32.xlu1 %v7747_v7, %s7309_s13 }
 0x331   :  { %1213 = vrot.lane.b32.xlu0 %v7749_v21, %s7309_s13  ;;  %1215 = vrot.lane.b32.xlu1 %v7739_v40, %s7309_s13 }
 0x335   :  { %1217 = vrot.lane.b32.xlu0 %v7741_v41, %s7309_s13  ;;  %1219 = vrot.lane.b32.xlu1 %v7731_v0, %s7309_s13 }
 0x339   :  { %1221 = vrot.lane.b32.xlu0 %v7733_v36, %s7309_s13  ;;  %1223 = vrot.lane.b32.xlu1 %v7723_v31, %s7309_s13 }
 0x33d   :  { %1225 = vrot.lane.b32.xlu0 %v7725_v35, %s7309_s13  ;;  %1227 = vrot.lane.b32.xlu1 %v7715_v27, %s7309_s13 }
 0x341   :  { %1229 = vrot.lane.b32.xlu0 %v7711_v22, %s7309_s13  ;;  %1231 = vrot.lane.b32.xlu1 %v7717_v57, %s7309_s13 }
 0x345   :  { %1018 = vrot.lane.b32.xlu0 %v7715_v27, %s7310_s14  ;;  %1020 = vrot.lane.b32.xlu1 %v7711_v22, %s7310_s14 }
 0x349   :  { %1016 = vrot.lane.b32.xlu0 %v7725_v35, %s7310_s14  ;;  %1014 = vrot.lane.b32.xlu1 %v7723_v31, %s7310_s14 }
 0x34d   :  { %1012 = vrot.lane.b32.xlu0 %v7733_v36, %s7310_s14  ;;  %1010 = vrot.lane.b32.xlu1 %v7731_v0, %s7310_s14 }
 0x351   :  { %1008 = vrot.lane.b32.xlu0 %v7741_v41, %s7310_s14  ;;  %1004 = vrot.lane.b32.xlu1 %v7749_v21, %s7310_s14 }
 0x355   :  { %1006 = vrot.lane.b32.xlu0 %v7739_v40, %s7310_s14  ;;  %1604 = vrot.lane.b32.xlu1 %v7715_v27, %s7311_s15 }
 0x359   :  { %1002 = vrot.lane.b32.xlu0 %v7747_v7, %s7310_s14  ;;  %1598 = vrot.lane.b32.xlu1 %v7733_v36, %s7311_s15 }
 0x35d   :  { %1000 = vrot.lane.b32.xlu0 %v7757_v46, %s7310_s14  ;;  %1608 = vrot.lane.b32.xlu1 %v7717_v57, %s7311_s15 }
 0x361   :  { %998 = vrot.lane.b32.xlu0 %v7755_v42, %s7310_s14 }
 0x365   :  { %1606 = vrot.lane.b32.xlu0 %v7711_v22, %s7311_s15 }
 0x367   :  { %v667_v13 = vpop.permute.xlu0 %666 }
 0x369   :  { %1602 = vrot.lane.b32.xlu0 %v7725_v35, %s7311_s15 }
 0x36b   :  { %v665_v26 = vpop.permute.xlu0 %664  ;;  %v669_v47 = vpop.permute.xlu1 %668 }
 0x36c   :  { %6095 = vmatpush3.xpose.msk.msra.mxu1 %vm670_vm5, %v669_v47 }
 0x36d   :  { %1600 = vrot.lane.b32.xlu0 %v7723_v31, %s7311_s15  ;;  %6096 = vmatprep.subr.mxu1 %v10757_v1 }
 0x36f   :  { %v663_v49 = vpop.permute.xlu0 %662  ;;  %v661_v52 = vpop.permute.xlu1 %660 }
 0x370   :  { %6097 = vmatpush3.xpose.msk.msra.mxu1 %vm670_vm5, %v667_v13 }
 0x371   :  { %1596 = vrot.lane.b32.xlu0 %v7731_v0, %s7311_s15  ;;  %6098 = vmatprep.subr.mxu1 %v10757_v1 }
 0x373   :  { %v659_v20 = vpop.permute.xlu0 %658  ;;  %v657_v32 = vpop.permute.xlu1 %656 }
 0x374   :  { %6099 = vmatpush3.xpose.msk.msra.mxu1 %vm670_vm5, %v665_v26 }
 0x375   :  { %1594 = vrot.lane.b32.xlu0 %v7741_v41, %s7311_s15  ;;  %6100 = vmatprep.subr.mxu1 %v10757_v1 }
 0x377   :  { %v655_v50 = vpop.permute.xlu0 %654  ;;  %v653_v56 = vpop.permute.xlu1 %652 }
 0x378   :  { %6101 = vmatpush3.xpose.msk.msra.mxu1 %vm670_vm5, %v663_v49 }
 0x379   :  { %1022 = vrot.lane.b32.xlu0 %v7717_v57, %s7310_s14  ;;  %6102 = vmatprep.subr.mxu1 %v10757_v1 }
 0x37b   :  { %v651_v54 = vpop.permute.xlu0 %650  ;;  %v649_v60 = vpop.permute.xlu1 %648 }
 0x37c   :  { %6103 = vmatpush3.xpose.msk.msra.mxu1 %vm670_vm5, %v661_v52 }
 0x37d   :  { %6104 = vmatprep.subr.mxu1 %v10757_v1 }
 0x37f   :  { %v647_v29 = vpop.permute.xlu0 %646  ;;  %v645_v44 = vpop.permute.xlu1 %644 }
 0x380   :  { %6105 = vmatpush3.xpose.msk.msra.mxu1 %vm670_vm5, %v659_v20 }
 0x381   :  { %6106 = vmatprep.subr.mxu1 %v10757_v1 }
 0x383   :  { %v1258_v37 = vpop.permute.xlu0 %1257  ;;  %v1256_v3 = vpop.permute.xlu1 %1255 }
 0x384   :  { %6107 = vmatpush3.xpose.msk.msra.mxu1 %vm670_vm5, %v657_v32 }
 0x385   :  { %6108 = vmatprep.subr.mxu1 %v10757_v1 }
 0x387   :  { %v1254_v55 = vpop.permute.xlu0 %1253  ;;  %v1252_v6 = vpop.permute.xlu1 %1251 }
 0x388   :  { %6109 = vmatpush3.xpose.msk.msra.mxu1 %vm670_vm5, %v655_v50 }
 0x389   :  { %6110 = vmatprep.subr.mxu1 %v10757_v1 }
 0x38b   :  { %v1250_v59 = vpop.permute.xlu0 %1249  ;;  %v1248_v8 = vpop.permute.xlu1 %1247 }
 0x38c   :  { %6111 = vmatpush3.xpose.msk.msra.mxu1 %vm670_vm5, %v653_v56  ;;  %v8075_v56 = vld [vmem:[%s10754_s5] sm:$0xff] }
 0x38d   :  { %6112 = vmatprep.subr.mxu1 %v10757_v1 }
 0x38f   :  { %v1246_v39 = vpop.permute.xlu0 %1245  ;;  %v1244_v11 = vpop.permute.xlu1 %1243 }
 0x390   :  { %6113 = vmatpush3.xpose.msk.msra.mxu1 %vm670_vm5, %v651_v54 }
 0x391   :  { %6114 = vmatprep.subr.mxu1 %v10757_v1 }
 0x393   :  { %v1242_v61 = vpop.permute.xlu0 %1241  ;;  %v1240_v16 = vpop.permute.xlu1 %1239 }
 0x394   :  { %6115 = vmatpush3.xpose.msk.msra.mxu1 %vm670_vm5, %v649_v60 }
 0x395   :  { %6116 = vmatprep.subr.mxu1 %v10757_v1 }
 0x397   :  { %v7879_v62 = vpop.permute.xlu0 %1237  ;;  %v1236_v17 = vpop.permute.xlu1 %1235 }
 0x398   :  { %6117 = vmatpush3.xpose.msk.msra.mxu1 %vm670_vm5, %v647_v29 }
 0x399   :  { %6118 = vmatprep.subr.mxu1 %v10757_v1 }
 0x39b   :  { %v7883_v2 = vpop.permute.xlu0 %1233  ;;  %v1208_v25 = vpop.permute.xlu1 %1207 }
 0x39c   :  { %6119 = vmatpush3.xpose.msk.msra.mxu1 %vm670_vm5, %v645_v44 }
 0x39d   :  { %6224 = vmatprep.subr.mxu1 %v10757_v1 }
 0x39f   :  { %v7887_v4 = vpop.permute.xlu0 %1209  ;;  %6121 = vmatmul.mubr.msk.f32.vlgmr.msra.gmra.mxu1 %vm670_vm5, %v7755_v42 }
 0x3a0   :  { %6225 = vmatpush3.xpose.msk.msra.mxu1 %vm670_vm5, %v1258_v37  ;;  %6123 = vmatprep.mubr.msk.f32.mxu1 %vm7306_vm1, %v10757_v1 }
 0x3a1   :  { %6226 = vmatprep.subr.mxu1 %v10757_v1 }
 0x3a3   :  { %v7895_v45 = vpop.permute.xlu0 %1213  ;;  %6124 = vmatmul.mubr.msk.f32.gmra.mxu1 %vm670_vm5, %v7757_v46 }
 0x3a4   :  { %6227 = vmatpush3.xpose.msk.msra.mxu1 %vm670_vm5, %v1256_v3  ;;  %6126 = vmatprep.mubr.msk.f32.mxu1 %vm7306_vm1, %v10757_v1 }
 0x3a5   :  { %6228 = vmatprep.subr.mxu1 %v10757_v1 }
 0x3a7   :  { %v7903_v34 = vpop.permute.xlu0 %1217  ;;  %6127 = vmatmul.mubr.msk.f32.gmra.mxu1 %vm670_vm5, %v7747_v7 }
 0x3a8   :  { %6229 = vmatpush3.xpose.msk.msra.mxu1 %vm670_vm5, %v1254_v55  ;;  %6129 = vmatprep.mubr.msk.f32.mxu1 %vm7306_vm1, %v10757_v1 }
 0x3a9   :  { %6230 = vmatprep.subr.mxu1 %v10757_v1 }
 0x3ab   :  { %v7911_v9 = vpop.permute.xlu0 %1221  ;;  %6130 = vmatmul.mubr.msk.f32.gmra.mxu1 %vm670_vm5, %v7749_v21 }
 0x3ac   :  { %6231 = vmatpush3.xpose.msk.msra.mxu1 %vm670_vm5, %v1252_v6  ;;  %6132 = vmatprep.mubr.msk.f32.mxu1 %vm7306_vm1, %v10757_v1 }
 0x3ad   :  { %6232 = vmatprep.subr.mxu1 %v10757_v1 }
 0x3af   :  { %v7919_v12 = vpop.permute.xlu0 %1225  ;;  %6133 = vmatmul.mubr.msk.f32.gmra.mxu1 %vm670_vm5, %v7739_v40 }
 0x3b0   :  { %6233 = vmatpush3.xpose.msk.msra.mxu1 %vm670_vm5, %v1250_v59  ;;  %6135 = vmatprep.mubr.msk.f32.mxu1 %vm7306_vm1, %v10757_v1 }
 0x3b1   :  { %6234 = vmatprep.subr.mxu1 %v10757_v1 }
 0x3b3   :  { %v7927_v14 = vpop.permute.xlu0 %1229  ;;  %6136 = vmatmul.mubr.msk.f32.gmra.mxu1 %vm670_vm5, %v7741_v41 }
 0x3b4   :  { %6235 = vmatpush3.xpose.msk.msra.mxu1 %vm670_vm5, %v1248_v8  ;;  %6138 = vmatprep.mubr.msk.f32.mxu1 %vm7306_vm1, %v10757_v1 }
 0x3b5   :  { %6236 = vmatprep.subr.mxu1 %v10757_v1 }
 0x3b7   :  { %v7935_v51 = vpop.permute.xlu0 %1018  ;;  %6139 = vmatmul.mubr.msk.f32.gmra.mxu1 %vm670_vm5, %v7731_v0 }
 0x3b8   :  { %6237 = vmatpush3.xpose.msk.msra.mxu1 %vm670_vm5, %v1246_v39  ;;  %6141 = vmatprep.mubr.msk.f32.mxu1 %vm7306_vm1, %v10757_v1 }
 0x3b9   :  { %6238 = vmatprep.subr.mxu1 %v10757_v1 }
 0x3bb   :  { %v7943_v19 = vpop.permute.xlu0 %1016  ;;  %6142 = vmatmul.mubr.msk.f32.gmra.mxu1 %vm670_vm5, %v7733_v36 }
 0x3bc   :  { %6239 = vmatpush3.xpose.msk.msra.mxu1 %vm670_vm5, %v1244_v11  ;;  %6144 = vmatprep.mubr.msk.f32.mxu1 %vm7306_vm1, %v10757_v1 }
 0x3bd   :  { %6240 = vmatprep.subr.mxu1 %v10757_v1 }
 0x3bf   :  { %v7951_v24 = vpop.permute.xlu0 %1012  ;;  %6145 = vmatmul.mubr.msk.f32.gmra.mxu1 %vm670_vm5, %v7723_v31  ;;  %v1212_v31 = vpop.permute.xlu1 %1211 }
 0x3c0   :  { %6241 = vmatpush3.xpose.msk.msra.mxu1 %vm670_vm5, %v1242_v61  ;;  %6147 = vmatprep.mubr.msk.f32.mxu1 %vm7306_vm1, %v10757_v1  ;;  %v8083_v61 = vld [vmem:[%s10754_s5 + $0x8] sm:$0xff] }
 0x3c1   :  { %6242 = vmatprep.subr.mxu1 %v10757_v1 }
 0x3c3   :  { %v7959_v30 = vpop.permute.xlu0 %1008  ;;  %6148 = vmatmul.mubr.msk.f32.gmra.mxu1 %vm670_vm5, %v7725_v35  ;;  %v1216_v36 = vpop.permute.xlu1 %1215 }
 0x3c4   :  { %6243 = vmatpush3.xpose.msk.msra.mxu1 %vm670_vm5, %v1240_v16  ;;  %6150 = vmatprep.mubr.msk.f32.mxu1 %vm7306_vm1, %v10757_v1 }
 0x3c5   :  { %6244 = vmatprep.subr.mxu1 %v10757_v1 }
 0x3c7   :  { %v7967_v0 = vpop.permute.xlu0 %1006  ;;  %6151 = vmatmul.mubr.msk.f32.gmra.mxu1 %vm670_vm5, %v7715_v27 }
 0x3c8   :  { %6245 = vmatpush3.xpose.msk.msra.mxu1 %vm670_vm5, %v7879_v62  ;;  %6153 = vmatprep.mubr.msk.f32.mxu1 %vm7306_vm1, %v10757_v1 }
 0x3c9   :  { %6246 = vmatprep.subr.mxu1 %v10757_v1 }
 0x3cb   :  { %v7976_v35 = vpop.permute.xlu0 %1002  ;;  %6154 = vmatmul.mubr.msk.f32.gmra.mxu1 %vm670_vm5, %v7711_v22  ;;  %v1220_v22 = vpop.permute.xlu1 %1219 }
 0x3cc   :  { %6247 = vmatpush3.xpose.msk.msra.mxu1 %vm670_vm5, %v1236_v17  ;;  %6156 = vmatprep.mubr.msk.f32.mxu1 %vm7306_vm1, %v10757_v1 }
 0x3cd   :  { %6248 = vmatprep.subr.mxu1 %v10757_v1 }
 0x3cf   :  { %v7984_v27 = vpop.permute.xlu0 %1000  ;;  %6157 = vmatmul.mubr.msk.f32.gmra.mxu1 %vm670_vm5, %v7717_v57  ;;  %v1224_v57 = vpop.permute.xlu1 %1223 }
 0x3d0   :  { %6249 = vmatpush3.xpose.msk.msra.mxu1 %vm670_vm5, %v7883_v2  ;;  %6250 = vmatprep.mubr.msk.f32.mxu1 %vm7306_vm1, %v10757_v1 }
 0x3d1   :  { %6836 = vmatprep.subr.mxu1 %v10757_v1 }
 0x3d3   :  { %v7993_v41 = vpop.permute.xlu0 %998  ;;  %6251 = vmatmul.mubr.msk.f32.vlgmr.msra.gmra.mxu1 %vm670_vm5, %v1208_v25  ;;  %v1228_v47 = vpop.permute.xlu1 %1227 }
 0x3d4   :  { %6253 = vmatprep.mubr.msk.f32.mxu1 %vm7306_vm1, %v10757_v1 }
 0x3d7   :  { %v7998_v13 = vpop.permute.xlu0 %1606  ;;  %6254 = vmatmul.mubr.msk.f32.gmra.mxu1 %vm670_vm5, %v7887_v4  ;;  %v1232_v50 = vpop.permute.xlu1 %1231  ;;  %v8093_v4 = vld [vmem:[%s10754_s5 + $0x10] sm:$0xff] }
 0x3d8   :  { %6256 = vmatprep.mubr.msk.f32.mxu1 %vm7306_vm1, %v10757_v1 }
 0x3db   :  { %v8004_v26 = vpop.permute.xlu0 %1602  ;;  %6257 = vmatmul.mubr.msk.f32.gmra.mxu1 %vm670_vm5, %v1212_v31  ;;  %v1021_v54 = vpop.permute.xlu1 %1020 }
 0x3dc   :  { %6259 = vmatprep.mubr.msk.f32.mxu1 %vm7306_vm1, %v10757_v1 }
 0x3df   :  { %v8009_v49 = vpop.permute.xlu0 %1600  ;;  %6260 = vmatmul.mubr.msk.f32.gmra.mxu1 %vm670_vm5, %v7895_v45  ;;  %v1015_v32 = vpop.permute.xlu1 %1014 }
 0x3e0   :  { %6262 = vmatprep.mubr.msk.f32.mxu1 %vm7306_vm1, %v10757_v1 }
 0x3e3   :  { %v8015_v20 = vpop.permute.xlu0 %1596  ;;  %6263 = vmatmul.mubr.msk.f32.gmra.mxu1 %vm670_vm5, %v1216_v36  ;;  %v1011_v37 = vpop.permute.xlu1 %1010 }
 0x3e4   :  { %6265 = vmatprep.mubr.msk.f32.mxu1 %vm7306_vm1, %v10757_v1 }
 0x3e7   :  { %v8020_v52 = vpop.permute.xlu0 %1594  ;;  %6266 = vmatmul.mubr.msk.f32.gmra.mxu1 %vm670_vm5, %v7903_v34  ;;  %v1005_v55 = vpop.permute.xlu1 %1004 }
 0x3e8   :  { %6268 = vmatprep.mubr.msk.f32.mxu1 %vm7306_vm1, %v10757_v1 }
 0x3eb   :  { %v1023_v29 = vpop.permute.xlu0 %1022  ;;  %6269 = vmatmul.mubr.msk.f32.gmra.mxu1 %vm670_vm5, %v1220_v22 }
 0x3ec   :  { %6160 = vmatpush3.msk.msra.mxu0 %vm95_vm0, %v1023_v29  ;;  %6271 = vmatprep.mubr.msk.f32.mxu1 %vm7306_vm1, %v10757_v1 }
 0x3ed   :  { %6161 = vmatprep.subr.mxu0 %v10757_v1 }
 0x3ee   :  { %6162 = vmatpush3.msra.mxu0 %v1021_v54 }
 0x3ef   :  { %6163 = vmatprep.subr.mxu0 %v10757_v1  ;;  %6272 = vmatmul.mubr.msk.f32.gmra.mxu1 %vm670_vm5, %v7911_v9  ;;  %v8103_v9 = vld [vmem:[%s10754_s5 + $0x18] sm:$0xff] }
 0x3f0   :  { %6164 = vmatpush3.msra.mxu0 %v7935_v51  ;;  %6274 = vmatprep.mubr.msk.f32.mxu1 %vm7306_vm1, %v10757_v1  ;;  %v8113_v51 = vld [vmem:[%s10754_s5 + $0x20] sm:$0xff] }
 0x3f1   :  { %6165 = vmatprep.subr.mxu0 %v10757_v1 }
 0x3f2   :  { %6166 = vmatpush3.msra.mxu0 %v7943_v19 }
 0x3f3   :  { %6167 = vmatprep.subr.mxu0 %v10757_v1  ;;  %6275 = vmatmul.mubr.msk.f32.gmra.mxu1 %vm670_vm5, %v1224_v57 }
 0x3f4   :  { %6168 = vmatpush3.msra.mxu0 %v1015_v32  ;;  %6277 = vmatprep.mubr.msk.f32.mxu1 %vm7306_vm1, %v10757_v1 }
 0x3f5   :  { %6169 = vmatprep.subr.mxu0 %v10757_v1 }
 0x3f6   :  { %6170 = vmatpush3.msra.mxu0 %v7951_v24 }
 0x3f7   :  { %6171 = vmatprep.subr.mxu0 %v10757_v1  ;;  %6278 = vmatmul.mubr.msk.f32.gmra.mxu1 %vm670_vm5, %v7919_v12 }
 0x3f8   :  { %6172 = vmatpush3.msra.mxu0 %v1011_v37  ;;  %6280 = vmatprep.mubr.msk.f32.mxu1 %vm7306_vm1, %v10757_v1 }
 0x3f9   :  { %6173 = vmatprep.subr.mxu0 %v10757_v1 }
 0x3fa   :  { %6174 = vmatpush3.msra.mxu0 %v7959_v30  ;;  %v8123_v30 = vld [vmem:[%s10754_s5 + $0x28] sm:$0xff] }
 0x3fb   :  { %6175 = vmatprep.subr.mxu0 %v10757_v1  ;;  %6281 = vmatmul.mubr.msk.f32.gmra.mxu1 %vm670_vm5, %v1228_v47 }
 0x3fc   :  { %6176 = vmatpush3.msra.mxu0 %v7967_v0  ;;  %6283 = vmatprep.mubr.msk.f32.mxu1 %vm7306_vm1, %v10757_v1 }
 0x3fd   :  { %6177 = vmatprep.subr.mxu0 %v10757_v1 }
 0x3fe   :  { %6178 = vmatpush3.msra.mxu0 %v1005_v55  ;;  %v8153_v55 = vld [vmem:[%s10754_s5 + $0x40] sm:$0xff] }
 0x3ff   :  { %6179 = vmatprep.subr.mxu0 %v10757_v1  ;;  %6284 = vmatmul.mubr.msk.f32.gmra.mxu1 %vm670_vm5, %v7927_v14 }
 0x400   :  { %6180 = vmatpush3.msra.mxu0 %v7976_v35  ;;  %6286 = vmatprep.mubr.msk.f32.mxu1 %vm7306_vm1, %v10757_v1 }
 0x401   :  { %6181 = vmatprep.subr.mxu0 %v10757_v1 }
 0x402   :  { %6182 = vmatpush3.msra.mxu0 %v7984_v27  ;;  %v8133_v27 = vld [vmem:[%s10754_s5 + $0x30] sm:$0xff] }
 0x403   :  { %6183 = vmatprep.subr.mxu0 %v10757_v1  ;;  %6287 = vmatmul.mubr.msk.f32.gmra.mxu1 %vm670_vm5, %v1232_v50  ;;  %v8143_v50 = vld [vmem:[%s10754_s5 + $0x38] sm:$0xff] }
 0x404   :  { %6184 = vmatpush3.msra.mxu0 %v7993_v41  ;;  %6371 = vmatprep.mubr.msk.f32.mxu1 %vm7306_vm1, %v10757_v1 }
 0x405   :  { %6289 = vmatprep.subr.mxu0 %v10757_v1 }
 0x45f   :  { %v789_v59 = vpop.f32.mrf.mxu1 }
 0x460   :  { %v8078_v39 = vadd.f32 %v789_v59, %v8075_v56 }
 0x461   :  { %v6122_v60 = vpop.f32.mrf.mxu1 }
 0x462   :  { %v854_v44 = vsel %vm853_vm6, %v8078_v39, -inf }
 0x463   :  { %855 = vmax.xlane.f32.xlu0 %v854_v44  ;;  %v794_v62 = vpop.f32.mrf.mxu1 }
 0x464   :  { %v8088_v2 = vadd.f32 %v794_v62, %v8083_v61 }
 0x465   :  { %v6125_v3 = vpop.f32.mrf.mxu1 }
 0x466   :  { %v857_v6 = vsel %vm853_vm6, %v8088_v2, -inf  ;;  %v8163_v3 = vld [vmem:[%s10754_s5 + $0x48] sm:$0xff] }
 0x467   :  { %858 = vmax.xlane.f32.xlu1 %v857_v6  ;;  %v799_v45 = vpop.f32.mrf.mxu1 }
 0x468   :  { %v8098_v34 = vadd.f32 %v799_v45, %v8093_v4 }
 0x469   :  { %v6128_v8 = vpop.f32.mrf.mxu1 }
 0x46a   :  { %v860_v11 = vsel %vm853_vm6, %v8098_v34, -inf }
 0x46b   :  { %861 = vmax.xlane.f32.xlu0 %v860_v11  ;;  %v804_v12 = vpop.f32.mrf.mxu1 }
 0x46c   :  { %v8108_v14 = vadd.f32 %v804_v12, %v8103_v9  ;;  %v8173_v12 = vld [vmem:[%s10754_s5 + $0x50] sm:$0xff] }
 0x46d   :  { %v6131_v16 = vpop.f32.mrf.mxu1 }
 0x46e   :  { %v863_v17 = vsel %vm853_vm6, %v8108_v14, -inf }
 0x46f   :  { %864 = vmax.xlane.f32.xlu0 %v863_v17  ;;  %v809_v19 = vpop.f32.mrf.mxu1 }
 0x470   :  { %v8118_v24 = vadd.f32 %v809_v19, %v8113_v51 }
 0x471   :  { %v6134_v25 = vpop.f32.mrf.mxu1 }
 0x472   :  { %v866_v31 = vsel %vm853_vm6, %v8118_v24, -inf }
 0x473   :  { %867 = vmax.xlane.f32.xlu0 %v866_v31  ;;  %v814_v0 = vpop.f32.mrf.mxu1  ;;  %v8183_v31 = vld [vmem:[%s10754_s5 + $0x58] sm:$0xff] }
 0x474   :  { %v8128_v35 = vadd.f32 %v814_v0, %v8123_v30 }
 0x475   :  { %v6137_v36 = vpop.f32.mrf.mxu1 }
 0x476   :  { %v869_v22 = vsel %vm853_vm6, %v8128_v35, -inf }
 0x477   :  { %870 = vmax.xlane.f32.xlu1 %v869_v22  ;;  %v819_v41 = vpop.f32.mrf.mxu1 }
 0x478   :  { %v8138_v57 = vadd.f32 %v819_v41, %v8133_v27 }
 0x479   :  { %v6140_v47 = vpop.f32.mrf.mxu1 }
 0x47a   :  { %v872_v54 = vsel %vm853_vm6, %v8138_v57, -inf  ;;  %v8193_v47 = vld [vmem:[%s10754_s5 + $0x60] sm:$0xf] }
 0x47b   :  { %873 = vmax.xlane.f32.xlu0 %v872_v54  ;;  %v824_v29 = vpop.f32.mrf.mxu1 }
 0x47c   :  { %v8148_v32 = vadd.f32 %v824_v29, %v8143_v50 }
 0x47d   :  { %v6143_v37 = vpop.f32.mrf.mxu1 }
 0x47e   :  { %v875_v59 = vsel %vm853_vm6, %v8148_v32, -inf }
 0x47f   :  { %876 = vmax.xlane.f32.xlu1 %v875_v59  ;;  %v829_v60 = vpop.f32.mrf.mxu1 }
 0x480   :  { %v8158_v44 = vadd.f32 %v829_v60, %v8153_v55 }
 0x481   :  { %v6146_v62 = vpop.f32.mrf.mxu1 }
 0x482   :  { %v878_v6 = vsel %vm853_vm6, %v8158_v44, -inf }
 0x483   :  { %879 = vmax.xlane.f32.xlu0 %v878_v6  ;;  %v834_v45 = vpop.f32.mrf.mxu1 }
 0x484   :  { %v8168_v8 = vadd.f32 %v834_v45, %v8163_v3 }
 0x485   :  { %v6149_v11 = vpop.f32.mrf.mxu1 }
 0x486   :  { %v881_v16 = vsel %vm853_vm6, %v8168_v8, -inf }
 0x487   :  { %882 = vmax.xlane.f32.xlu1 %v881_v16  ;;  %v839_v17 = vpop.f32.mrf.mxu1 }
 0x488   :  { %v8178_v19 = vadd.f32 %v839_v17, %v8173_v12 }
 0x489   :  { %v6152_v25 = vpop.f32.mrf.mxu1 }
 0x48a   :  { %v884_v0 = vsel %vm853_vm6, %v8178_v19, -inf }
 0x48b   :  { %885 = vmax.xlane.f32.xlu0 %v884_v0  ;;  %v844_v36 = vpop.f32.mrf.mxu1 }
 0x48c   :  { %v8188_v22 = vadd.f32 %v844_v36, %v8183_v31 }
 0x48d   :  { %v6155_v41 = vpop.f32.mrf.mxu1 }
 0x48e   :  { %v887_v54 = vsel %vm853_vm6, %v8188_v22, -inf }
 0x48f   :  { %888 = vmax.xlane.f32.xlu1 %v887_v54  ;;  %v849_v29 = vpop.f32.mrf.mxu1 }
 0x490   :  { %v8198_v37 = vadd.f32 %v849_v29, %v8193_v47 }
 0x491   :  { %v6158_v59 = vpop.f32.mrf.mxu1 }
 0x492   :  { %v891_v60 = vsel %vm890_vm7, %v8198_v37, -inf }
 0x493   :  { %892 = vmax.xlane.f32.xlu0 %v891_v60  ;;  %v1377_v62 = vpop.f32.mrf.mxu1 }
 0x494   :  { %v8203_v6 = vadd.f32 %v1377_v62, %v8075_v56 }
 0x495   :  { %v6252_v45 = vpop.f32.mrf.mxu1 }
 0x496   :  { %v1441_v11 = vsel %vm853_vm6, %v8203_v6, -inf }
 0x497   :  { %1442 = vmax.xlane.f32.xlu1 %v1441_v11  ;;  %v1382_v16 = vpop.f32.mrf.mxu1 }
 0x498   :  { %v8208_v17 = vadd.f32 %v1382_v16, %v8083_v61 }
 0x499   :  { %v6255_v25 = vpop.f32.mrf.mxu1 }
 0x49a   :  { %v1444_v0 = vsel %vm853_vm6, %v8208_v17, -inf }
 0x49b   :  { %1445 = vmax.xlane.f32.xlu0 %v1444_v0  ;;  %v1387_v36 = vpop.f32.mrf.mxu1 }
 0x49c   :  { %v8213_v41 = vadd.f32 %v1387_v36, %v8093_v4 }
 0x49d   :  { %v6258_v56 = vpop.f32.mrf.mxu1 }
 0x49e   :  { %v1447_v54 = vsel %vm853_vm6, %v8213_v41, -inf }
 0x49f   :  { %1448 = vmax.xlane.f32.xlu1 %v1447_v54  ;;  %v1392_v29 = vpop.f32.mrf.mxu1 }
 0x4a0   :  { %v8218_v59 = vadd.f32 %v1392_v29, %v8103_v9 }
 0x4a1   :  { %v6261_v61 = vpop.f32.mrf.mxu1 }
 0x4a2   :  { %v1450_v60 = vsel %vm853_vm6, %v8218_v59, -inf }
 0x4a3   :  { %1451 = vmax.xlane.f32.xlu0 %v1450_v60  ;;  %v1397_v62 = vpop.f32.mrf.mxu1 }
 0x4a4   :  { %v8229_v15 = vadd.f32 %v1397_v62, %v8113_v51 }
 0x4a5   :  { %v6264_v45 = vpop.f32.mrf.mxu1 }
 0x4a7   :  { %v1402_v11 = vpop.f32.mrf.mxu1 }
 0x4a9   :  { %v6267_v16 = vpop.f32.mrf.mxu1 }
 0x4ab   :  { %v1407_v4 = vpop.f32.mrf.mxu1 }
 0x4ad   :  { %v6270_v25 = vpop.f32.mrf.mxu1 }
 0x4af   :  { %v1412_v0 = vpop.f32.mrf.mxu1 }
 0x4b0   :  { %1590 = vrot.lane.b32.xlu1 %v7749_v21, %s7311_s15  ;;  %v8232_v21 = vadd.f32 %v1402_v11, %v8123_v30  ;;  %v8261_v11 = vpop.permute.xlu1 %1604 }
 0x4b1   :  { %v6273_v36 = vpop.f32.mrf.mxu1 }
 0x4b2   :  { %v8238_v36 = vadd.f32 %v1412_v0, %v8143_v50 }
 0x4b3   :  { %v1417_v56 = vpop.f32.mrf.mxu1 }
 0x4b4   :  { %1588 = vrot.lane.b32.xlu1 %v7747_v7, %s7311_s15  ;;  %v8235_v7 = vadd.f32 %v1407_v4, %v8133_v27  ;;  %v1462_v27 = vsel %vm853_vm6, %v8238_v36, -inf  ;;  %v8268_v0 = vpop.permute.xlu1 %1598 }
 0x4b5   :  { %v6276_v9 = vpop.f32.mrf.mxu1 }
 0x4b6   :  { %v1456_v9 = vsel %vm853_vm6, %v8232_v21, -inf  ;;  %v1459_v30 = vsel %vm853_vm6, %v8235_v7, -inf }
 0x4b7   :  { %v1422_v54 = vpop.f32.mrf.mxu1 }
 0x4b8   :  { %v8248_v51 = vadd.f32 %v1422_v54, %v8163_v3 }
 0x4b9   :  { %1592 = vrot.lane.b32.xlu0 %v7739_v40, %s7311_s15  ;;  %v6279_v29 = vpop.f32.mrf.mxu1  ;;  %v1453_v40 = vsel %vm853_vm6, %v8229_v15, -inf }
 0x4ba   :  { %v8277_v29 = vpop.permute.xlu1 %1608 }
 0x4bb   :  { %v1427_v61 = vpop.f32.mrf.mxu1 }
 0x4bc   :  { %v8255_v50 = vadd.f32 %v1427_v61, %v8173_v12 }
 0x4bd   :  { %v6282_v60 = vpop.f32.mrf.mxu1 }
 0x4be   :  { %v1471_v4 = vsel %vm853_vm6, %v8255_v50, -inf }
 0x4bf   :  { %v1432_v45 = vpop.f32.mrf.mxu1 }
 0x4c0   :  { %v8264_v3 = vadd.f32 %v1432_v45, %v8183_v31 }
 0x4c1   :  { %v6285_v16 = vpop.f32.mrf.mxu1 }
 0x4c3   :  { %v1437_v25 = vpop.f32.mrf.mxu1 }
 0x4c4   :  { %v8271_v12 = vadd.f32 %v1437_v25, %v8193_v47 }
 0x4c5   :  { %v6288_v1 = vpop.f32.mrf.mxu1 }
 0x4c6   :  { %v8245_v1 = vadd.f32 %v1417_v56, %v8153_v55  ;;  %v1468_v55 = vsel %vm853_vm6, %v8248_v51, -inf  ;;  %v1474_v56 = vsel %vm853_vm6, %v8264_v3, -inf  ;;  %v1477_v54 = vsel %vm890_vm7, %v8271_v12, -inf }
 0x4c8   :  { %v1465_v62 = vsel %vm853_vm6, %v8245_v1, -inf }
 0x4d8   :  { %1454 = vmax.xlane.f32.xlu1 %v1453_v40  ;;  %1457 = vmax.xlane.f32.xlu0 %v1456_v9 }
 0x4dc   :  { %1460 = vmax.xlane.f32.xlu1 %v1459_v30  ;;  %1463 = vmax.xlane.f32.xlu0 %v1462_v27 }
 0x4e0   :  { %1466 = vmax.xlane.f32.xlu1 %v1465_v62  ;;  %1469 = vmax.xlane.f32.xlu0 %v1468_v55 }
 0x4e4   :  { %1472 = vmax.xlane.f32.xlu1 %v1471_v4 }
 0x4e8   :  { %1475 = vmax.xlane.f32.xlu1 %v1474_v56 }
 0x4ec   :  { %v856_v31 = vpop.xlane.xlu0 %855  ;;  %1478 = vmax.xlane.f32.xlu1 %v1477_v54 }
 0x4ed   :  { %v894_v61 = vsub.f32 %v8078_v39, %v856_v31 }
 0x4ef   :  { %v907_v60 = vmul.f32 1.442695, %v894_v61 }
 0x4f0   :  { %v859_v45 = vpop.xlane.xlu1 %858 }
 0x4f1   :  { %6874 = vpow2.f32 %v907_v60  ;;  %v895_v16 = vsub.f32 %v8088_v2, %v859_v45 }
 0x4f3   :  { %v909_v47 = vmul.f32 1.442695, %v895_v16 }
 0x4f4   :  { %v862_v25 = vpop.xlane.xlu0 %861 }
 0x4f5   :  { %6876 = vpow2.f32 %v909_v47  ;;  %v896_v40 = vsub.f32 %v8098_v34, %v862_v25 }
 0x4f7   :  { %v911_v9 = vmul.f32 1.442695, %v896_v40 }
 0x4f8   :  { %v865_v30 = vpop.xlane.xlu0 %864 }
 0x4f9   :  { %6878 = vpow2.f32 %v911_v9  ;;  %v897_v27 = vsub.f32 %v8108_v14, %v865_v30 }
 0x4fb   :  { %v913_v62 = vmul.f32 1.442695, %v897_v27 }
 0x4fc   :  { %v868_v55 = vpop.xlane.xlu0 %867 }
 0x4fd   :  { %6880 = vpow2.f32 %v913_v62  ;;  %v898_v39 = vsub.f32 %v8118_v24, %v868_v55 }
 0x4fe   :  { %v8284_v4 = vpop.eup %6874 }
 0x4ff   :  { %v915_v56 = vmul.f32 1.442695, %v898_v39  ;;  %v933_v2 = vsel %vm853_vm6, %v8284_v4, 0.0 }
 0x500   :  { %v871_v54 = vpop.xlane.xlu1 %870  ;;  %934 = vadd.xlane.f32.xlu1 %v933_v2 }
 0x501   :  { %6882 = vpow2.f32 %v915_v56  ;;  %v899_v34 = vsub.f32 %v8128_v35, %v871_v54 }
 0x502   :  { %v8289_v31 = vpop.eup %6876 }
 0x503   :  { %v917_v61 = vmul.f32 1.442695, %v899_v34  ;;  %v936_v14 = vsel %vm853_vm6, %v8289_v31, 0.0 }
 0x504   :  { %v874_v60 = vpop.xlane.xlu0 %873  ;;  %937 = vadd.xlane.f32.xlu1 %v936_v14 }
 0x505   :  { %6884 = vpow2.f32 %v917_v61  ;;  %v900_v24 = vsub.f32 %v8138_v57, %v874_v60 }
 0x506   :  { %v8294_v45 = vpop.eup %6878 }
 0x507   :  { %v919_v16 = vmul.f32 1.442695, %v900_v24  ;;  %v939_v47 = vsel %vm853_vm6, %v8294_v45, 0.0 }
 0x508   :  { %v877_v25 = vpop.xlane.xlu1 %876  ;;  %940 = vadd.xlane.f32.xlu0 %v939_v47 }
 0x509   :  { %6886 = vpow2.f32 %v919_v16  ;;  %v901_v35 = vsub.f32 %v8148_v32, %v877_v25 }
 0x50a   :  { %v8299_v40 = vpop.eup %6880 }
 0x50b   :  { %v921_v9 = vmul.f32 1.442695, %v901_v35  ;;  %v942_v30 = vsel %vm853_vm6, %v8299_v40, 0.0 }
 0x50c   :  { %v880_v27 = vpop.xlane.xlu0 %879  ;;  %943 = vadd.xlane.f32.xlu0 %v942_v30 }
 0x50d   :  { %6888 = vpow2.f32 %v921_v9  ;;  %v902_v57 = vsub.f32 %v8158_v44, %v880_v27 }
 0x50e   :  { %v8304_v62 = vpop.eup %6882 }
 0x50f   :  { %v923_v55 = vmul.f32 1.442695, %v902_v57  ;;  %v945_v39 = vsel %vm853_vm6, %v8304_v62, 0.0 }
 0x510   :  { %v883_v56 = vpop.xlane.xlu1 %882  ;;  %946 = vadd.xlane.f32.xlu1 %v945_v39 }
 0x511   :  { %6890 = vpow2.f32 %v923_v55  ;;  %v903_v32 = vsub.f32 %v8168_v8, %v883_v56 }
 0x512   :  { %v8309_v2 = vpop.eup %6884 }
 0x513   :  { %v925_v54 = vmul.f32 1.442695, %v903_v32  ;;  %v948_v34 = vsel %vm853_vm6, %v8309_v2, 0.0 }
 0x514   :  { %v886_v61 = vpop.xlane.xlu0 %885  ;;  %949 = vadd.xlane.f32.xlu0 %v948_v34 }
 0x515   :  { %6892 = vpow2.f32 %v925_v54  ;;  %v904_v44 = vsub.f32 %v8178_v19, %v886_v61 }
 0x516   :  { %v8314_v14 = vpop.eup %6886 }
 0x517   :  { %v927_v60 = vmul.f32 1.442695, %v904_v44  ;;  %v951_v24 = vsel %vm853_vm6, %v8314_v14, 0.0 }
 0x518   :  { %v889_v16 = vpop.xlane.xlu1 %888  ;;  %952 = vadd.xlane.f32.xlu1 %v951_v24 }
 0x519   :  { %6894 = vpow2.f32 %v927_v60  ;;  %v905_v8 = vsub.f32 %v8188_v22, %v889_v16 }
 0x51a   :  { %v8319_v47 = vpop.eup %6888 }
 0x51b   :  { %v929_v25 = vmul.f32 1.442695, %v905_v8  ;;  %v954_v35 = vsel %vm853_vm6, %v8319_v47, 0.0 }
 0x51c   :  { %v893_v9 = vpop.xlane.xlu0 %892  ;;  %955 = vadd.xlane.f32.xlu0 %v954_v35 }
 0x51d   :  { %6896 = vpow2.f32 %v929_v25  ;;  %v906_v19 = vsub.f32 %v8198_v37, %v893_v9 }
 0x51e   :  { %v8324_v30 = vpop.eup %6890 }
 0x51f   :  { %v931_v27 = vmul.f32 1.442695, %v906_v19  ;;  %v957_v57 = vsel %vm853_vm6, %v8324_v30, 0.0 }
 0x520   :  { %v1443_v55 = vpop.xlane.xlu1 %1442  ;;  %958 = vadd.xlane.f32.xlu1 %v957_v57 }
 0x521   :  { %6898 = vpow2.f32 %v931_v27  ;;  %v1480_v22 = vsub.f32 %v8203_v6, %v1443_v55 }
 0x522   :  { %v8329_v39 = vpop.eup %6892 }
 0x523   :  { %v1493_v56 = vmul.f32 1.442695, %v1480_v22  ;;  %v960_v32 = vsel %vm853_vm6, %v8329_v39, 0.0 }
 0x524   :  { %v1446_v54 = vpop.xlane.xlu0 %1445  ;;  %961 = vadd.xlane.f32.xlu1 %v960_v32 }
 0x525   :  { %6900 = vpow2.f32 %v1493_v56  ;;  %v1481_v37 = vsub.f32 %v8208_v17, %v1446_v54 }
 0x526   :  { %v8334_v34 = vpop.eup %6894 }
 0x527   :  { %v1495_v61 = vmul.f32 1.442695, %v1481_v37  ;;  %v963_v44 = vsel %vm853_vm6, %v8334_v34, 0.0 }
 0x528   :  { %v1449_v60 = vpop.xlane.xlu1 %1448  ;;  %964 = vadd.xlane.f32.xlu1 %v963_v44 }
 0x529   :  { %6902 = vpow2.f32 %v1495_v61  ;;  %v1482_v6 = vsub.f32 %v8213_v41, %v1449_v60 }
 0x52a   :  { %v8339_v24 = vpop.eup %6896 }
 0x52b   :  { %v1497_v16 = vmul.f32 1.442695, %v1482_v6  ;;  %v966_v8 = vsel %vm853_vm6, %v8339_v24, 0.0 }
 0x52c   :  { %v1452_v25 = vpop.xlane.xlu0 %1451  ;;  %967 = vadd.xlane.f32.xlu0 %v966_v8  ;;  %v8364_v54 = vpop.permute.xlu1 %1590 }
 0x52d   :  { %6904 = vpow2.f32 %v1497_v16  ;;  %v1483_v17 = vsub.f32 %v8218_v59, %v1452_v25 }
 0x52e   :  { %v8344_v35 = vpop.eup %6898 }
 0x52f   :  { %v1499_v9 = vmul.f32 1.442695, %v1483_v17  ;;  %v969_v19 = vsel %vm890_vm7, %v8344_v35, 0.0 }
 0x530   :  { %970 = vadd.xlane.f32.xlu1 %v969_v19  ;;  %v8366_v37 = vpop.permute.xlu1 %1588  ;;  %v8368_v61 = vpop.permute.xlu0 %1592 }
 0x531   :  { %6906 = vpow2.f32 %v1499_v9 }
 0x532   :  { %v8348_v41 = vpop.eup %6900 }
 0x533   :  { %v1519_v27 = vsel %vm853_vm6, %v8348_v41, 0.0 }
 0x534   :  { %1520 = vadd.xlane.f32.xlu0 %v1519_v27 }
 0x536   :  { %v8352_v57 = vpop.eup %6902 }
 0x537   :  { %v1522_v55 = vsel %vm853_vm6, %v8352_v57, 0.0 }
 0x538   :  { %1523 = vadd.xlane.f32.xlu0 %v1522_v55 }
 0x53a   :  { %v8356_v59 = vpop.eup %6904 }
 0x53b   :  { %v1525_v22 = vsel %vm853_vm6, %v8356_v59, 0.0 }
 0x53c   :  { %1526 = vadd.xlane.f32.xlu1 %v1525_v22 }
 0x53e   :  { %v8360_v56 = vpop.eup %6906 }
 0x53f   :  { %v1528_v32 = vsel %vm853_vm6, %v8360_v56, 0.0 }
 0x540   :  { %1529 = vadd.xlane.f32.xlu0 %v1528_v32 }
 0x561   :  { %v1455_v44 = vpop.xlane.xlu1 %1454  ;;  %v1458_v60 = vpop.xlane.xlu0 %1457 }
 0x562   :  { %v1484_v6 = vsub.f32 %v8229_v15, %v1455_v44  ;;  %v1485_v16 = vsub.f32 %v8232_v21, %v1458_v60 }
 0x564   :  { %v1501_v8 = vmul.f32 1.442695, %v1484_v6  ;;  %v1503_v25 = vmul.f32 1.442695, %v1485_v16 }
 0x565   :  { %v1461_v17 = vpop.xlane.xlu1 %1460  ;;  %v1464_v16 = vpop.xlane.xlu0 %1463 }
 0x566   :  { %6908 = vpow2.f32 %v1501_v8  ;;  %v1486_v9 = vsub.f32 %v8235_v7, %v1461_v17 }
 0x567   :  { %6910 = vpow2.f32 %v1503_v25 }
 0x568   :  { %v1505_v19 = vmul.f32 1.442695, %v1486_v9  ;;  %v1487_v9 = vsub.f32 %v8238_v36, %v1464_v16 }
 0x569   :  { %v1467_v55 = vpop.xlane.xlu1 %1466  ;;  %v1470_v25 = vpop.xlane.xlu0 %1469 }
 0x56a   :  { %6912 = vpow2.f32 %v1505_v19 }
 0x56d   :  { %v1473_v44 = vpop.xlane.xlu1 %1472 }
 0x56e   :  { %v1490_v63 = vsub.f32 %v8255_v50, %v1473_v44 }
 0x571   :  { %v1476_v60 = vpop.xlane.xlu1 %1475 }
 0x572   :  { %v1491_v50 = vsub.f32 %v8264_v3, %v1476_v60 }
 0x573   :  { %v8373_v27 = vpop.eup %6908 }
 0x574   :  { %v8375_v22 = vpop.eup %6910  ;;  %v1531_v32 = vsel %vm853_vm6, %v8373_v27, 0.0 }
 0x575   :  { %v1534_v15 = vsel %vm853_vm6, %v8375_v22, 0.0  ;;  %1532 = vadd.xlane.f32.xlu1 %v1531_v32  ;;  %v1479_v6 = vpop.xlane.xlu1 %1478  ;;  %v1488_v32 = vsub.f32 %v8245_v1, %v1467_v55  ;;  %v10774_v1 = vmov 0.0  }
 0x576   :  { %1535 = vadd.xlane.f32.xlu0 %v1534_v15  ;;  %v1507_v15 = vmul.f32 1.442695, %v1487_v9 }
 0x577   :  { %v8381_v21 = vpop.eup %6912  ;;  %v1509_v5 = vmul.f32 1.442695, %v1488_v32 }
 0x578   :  { %v1537_v7 = vsel %vm853_vm6, %v8381_v21, 0.0 }
 0x57a   :  { %1538 = vadd.xlane.f32.xlu0 %v1537_v7  ;;  %v1489_v7 = vsub.f32 %v8248_v51, %v1470_v25  ;;  %v1513_v51 = vmul.f32 1.442695, %v1490_v63 }
 0x586   :  { %1586 = vrot.lane.b32.xlu1 %v7757_v46, %s7311_s15 }
 0x589   :  { %v935_v8 = vpop.xlane.xlu1 %934 }
 0x58a   :  { %6914 = vrcp.f32 %v935_v8 }
 0x58d   :  { %v938_v17 = vpop.xlane.xlu1 %937 }
 0x58e   :  { %6916 = vrcp.f32 %v938_v17  ;;  %v1511_v17 = vmul.f32 1.442695, %v1489_v7 }
 0x590   :  { %1584 = vrot.lane.b32.xlu0 %v7755_v42, %s7311_s15 }
 0x591   :  { %v941_v19 = vpop.xlane.xlu0 %940 }
 0x592   :  { %6918 = vrcp.f32 %v941_v19 }
 0x595   :  { %v944_v10 = vpop.xlane.xlu0 %943 }
 0x596   :  { %6920 = vrcp.f32 %v944_v10 }
 0x597   :  { %v6915_v46 = vpop.eup %6914  ;;  %6922 = vpow2.f32 %v1507_v15 }
 0x598   :  { %v973_v8 = vmul.f32 %v6915_v46, %v8284_v4 }
 0x599   :  { %v947_v42 = vpop.xlane.xlu1 %946 }
 0x59a   :  { %6924 = vrcp.f32 %v947_v42  ;;  %6186 = vmatmul.mubr.msk.f32.vlgmr.msra.gmra.mxu0 %vm853_vm6, %v973_v8 }
 0x59b   :  { %v6917_v36 = vpop.eup %6916  ;;  %6290 = vmatpush3.msk.msra.mxu0 %vm95_vm0, %v8277_v29  ;;  %6188 = vmatprep.mubr.msk.f32.mxu0 %vm7306_vm1, %v10774_v1  ;;  %6926 = vpow2.f32 %v1509_v5  ;;  %v1515_v5 = vmul.f32 1.442695, %v1491_v50 }
 0x59c   :  { %6291 = vmatprep.subr.mxu0 %v10774_v1  ;;  %v975_v10 = vmul.f32 %v6917_v36, %v8289_v31  ;;  %6928 = vpow2.f32 %v1511_v17 }
 0x59d   :  { %6292 = vmatpush3.msra.mxu0 %v7998_v13  ;;  %v950_v4 = vpop.xlane.xlu0 %949  ;;  %v1492_v13 = vsub.f32 %v8271_v12, %v1479_v6 }
 0x59e   :  { %6930 = vrcp.f32 %v950_v4  ;;  %6293 = vmatprep.subr.mxu0 %v10774_v1  ;;  %6189 = vmatmul.mubr.msk.f32.gmra.mxu0 %vm853_vm6, %v975_v10 }
 0x59f   :  { %v6919_v29 = vpop.eup %6918  ;;  %6294 = vmatpush3.msra.mxu0 %v8261_v11  ;;  %6191 = vmatprep.mubr.msk.f32.mxu0 %vm7306_vm1, %v10774_v1  ;;  %6932 = vpow2.f32 %v1513_v51  ;;  %v1517_v12 = vmul.f32 1.442695, %v1492_v13 }
 0x5a0   :  { %6295 = vmatprep.subr.mxu0 %v10774_v1  ;;  %v977_v63 = vmul.f32 %v6919_v29, %v8294_v45 }
 0x5a1   :  { %6296 = vmatpush3.msra.mxu0 %v8004_v26  ;;  %v953_v3 = vpop.xlane.xlu1 %952 }
 0x5a2   :  { %6297 = vmatprep.subr.mxu0 %v10774_v1  ;;  %6934 = vrcp.f32 %v953_v3  ;;  %6192 = vmatmul.mubr.msk.f32.gmra.mxu0 %vm853_vm6, %v977_v63 }
 0x5a3   :  { %v6921_v11 = vpop.eup %6920  ;;  %6298 = vmatpush3.msra.mxu0 %v8009_v49  ;;  %6194 = vmatprep.mubr.msk.f32.mxu0 %vm7306_vm1, %v10774_v1  ;;  %6936 = vpow2.f32 %v1515_v5 }
 0x5a4   :  { %6299 = vmatprep.subr.mxu0 %v10774_v1  ;;  %v979_v31 = vmul.f32 %v6921_v11, %v8299_v40  ;;  %v8420_v45 = vpop.eup %6922 }
 0x5a5   :  { %6300 = vmatpush3.msra.mxu0 %v8268_v0  ;;  %v956_v26 = vpop.xlane.xlu0 %955  ;;  %v1540_v44 = vsel %vm853_vm6, %v8420_v45, 0.0 }
 0x5a6   :  { %6938 = vrcp.f32 %v956_v26  ;;  %6301 = vmatprep.subr.mxu0 %v10774_v1  ;;  %6195 = vmatmul.mubr.msk.f32.gmra.mxu0 %vm853_vm6, %v979_v31 }
 0x5a7   :  { %v6925_v49 = vpop.eup %6924  ;;  %6302 = vmatpush3.msra.mxu0 %v8015_v20  ;;  %6197 = vmatprep.mubr.msk.f32.mxu0 %vm7306_vm1, %v10774_v1  ;;  %6940 = vpow2.f32 %v1517_v12 }
 0x5a8   :  { %6303 = vmatprep.subr.mxu0 %v10774_v1  ;;  %v981_v40 = vmul.f32 %v6925_v49, %v8304_v62  ;;  %v8429_v55 = vpop.eup %6926 }
 0x5a9   :  { %6304 = vmatpush3.msra.mxu0 %v8020_v52  ;;  %v959_v0 = vpop.xlane.xlu1 %958  ;;  %v8434_v60 = vpop.eup %6928  ;;  %v1543_v25 = vsel %vm853_vm6, %v8429_v55, 0.0 }
 0x5aa   :  { %6305 = vmatprep.subr.mxu0 %v10774_v1  ;;  %6942 = vrcp.f32 %v959_v0  ;;  %1541 = vadd.xlane.f32.xlu1 %v1540_v44  ;;  %v1546_v6 = vsel %vm853_vm6, %v8434_v60, 0.0 }
 0x5ab   :  { %v6931_v20 = vpop.eup %6930  ;;  %6198 = vmatmul.mubr.msk.f32.gmra.mxu0 %vm853_vm6, %v981_v40 }
 0x5ac   :  { %6306 = vmatpush3.msra.mxu0 %v8368_v61  ;;  %6200 = vmatprep.mubr.msk.f32.mxu0 %vm7306_vm1, %v10774_v1  ;;  %v983_v52 = vmul.f32 %v6931_v20, %v8309_v2  ;;  %v8445_v16 = vpop.eup %6932 }
 0x5ad   :  { %6307 = vmatprep.subr.mxu0 %v10774_v1  ;;  %v962_v62 = vpop.xlane.xlu1 %961 }
 0x5ae   :  { %6308 = vmatpush3.msra.mxu0 %v8364_v54  ;;  %6944 = vrcp.f32 %v962_v62  ;;  %1547 = vadd.xlane.f32.xlu1 %v1546_v6  ;;  %v1549_v54 = vsel %vm853_vm6, %v8445_v16, 0.0 }
 0x5af   :  { %v6935_v61 = vpop.eup %6934  ;;  %6309 = vmatprep.subr.mxu0 %v10774_v1  ;;  %1544 = vadd.xlane.f32.xlu0 %v1543_v25 }
 0x5b0   :  { %6201 = vmatmul.mubr.msk.f32.gmra.mxu0 %vm853_vm6, %v983_v52  ;;  %v985_v2 = vmul.f32 %v6935_v61, %v8314_v14  ;;  %v8458_v19 = vpop.eup %6936 }
 0x5b1   :  { %6310 = vmatpush3.msra.mxu0 %v8366_v37  ;;  %6203 = vmatprep.mubr.msk.f32.mxu0 %vm7306_vm1, %v10774_v1  ;;  %v965_v9 = vpop.xlane.xlu1 %964  ;;  %v1552_v37 = vsel %vm853_vm6, %v8458_v19, 0.0 }
 0x5b2   :  { %6946 = vrcp.f32 %v965_v9  ;;  %1550 = vadd.xlane.f32.xlu1 %v1549_v54  ;;  %6311 = vmatprep.subr.mxu0 %v10774_v1 }
 0x5b3   :  { %v6939_v32 = vpop.eup %6938 }
 0x5b4   :  { %6204 = vmatmul.mubr.msk.f32.gmra.mxu0 %vm853_vm6, %v985_v2  ;;  %v987_v14 = vmul.f32 %v6939_v32, %v8319_v47  ;;  %v8467_v7 = vpop.eup %6940 }
 0x5b5   :  { %v968_v15 = vpop.xlane.xlu0 %967  ;;  %6206 = vmatprep.mubr.msk.f32.mxu0 %vm7306_vm1, %v10774_v1  ;;  %v1555_v17 = vsel %vm890_vm7, %v8467_v7, 0.0 }
 0x5b6   :  { %6948 = vrcp.f32 %v968_v15  ;;  %1553 = vadd.xlane.f32.xlu1 %v1552_v37 }
 0x5b7   :  { %v6943_v46 = vpop.eup %6942 }
 0x5b8   :  { %6207 = vmatmul.mubr.msk.f32.gmra.mxu0 %vm853_vm6, %v987_v14  ;;  %v989_v8 = vmul.f32 %v6943_v46, %v8324_v30 }
 0x5b9   :  { %6209 = vmatprep.mubr.msk.f32.mxu0 %vm7306_vm1, %v10774_v1  ;;  %v971_v47 = vpop.xlane.xlu1 %970 }
 0x5ba   :  { %6950 = vrcp.f32 %v971_v47  ;;  %1556 = vadd.xlane.f32.xlu1 %v1555_v17 }
 0x5bb   :  { %v6945_v42 = vpop.eup %6944 }
 0x5bc   :  { %6210 = vmatmul.mubr.msk.f32.gmra.mxu0 %vm853_vm6, %v989_v8  ;;  %v991_v36 = vmul.f32 %v6945_v42, %v8329_v39 }
 0x5bd   :  { %6212 = vmatprep.mubr.msk.f32.mxu0 %vm7306_vm1, %v10774_v1 }
 0x5bf   :  { %v6947_v10 = vpop.eup %6946 }
 0x5c0   :  { %6213 = vmatmul.mubr.msk.f32.gmra.mxu0 %vm853_vm6, %v991_v36  ;;  %v993_v30 = vmul.f32 %v6947_v10, %v8334_v34  ;;  %v1521_v34 = vpop.xlane.xlu0 %1520 }
 0x5c1   :  { %6215 = vmatprep.mubr.msk.f32.mxu0 %vm7306_vm1, %v10774_v1  ;;  %6952 = vrcp.f32 %v1521_v34 }
 0x5c3   :  { %v6949_v51 = vpop.eup %6948 }
 0x5c4   :  { %6216 = vmatmul.mubr.msk.f32.gmra.mxu0 %vm853_vm6, %v993_v30  ;;  %v995_v50 = vmul.f32 %v6949_v51, %v8339_v24  ;;  %v1524_v29 = vpop.xlane.xlu0 %1523 }
 0x5c5   :  { %6218 = vmatprep.mubr.msk.f32.mxu0 %vm7306_vm1, %v10774_v1  ;;  %v1527_v24 = vpop.xlane.xlu1 %1526  ;;  %6954 = vrcp.f32 %v1524_v29 }
 0x5c6   :  { %6956 = vrcp.f32 %v1527_v24 }
 0x5c7   :  { %v6951_v39 = vpop.eup %6950 }
 0x5c8   :  { %6219 = vmatmul.mubr.msk.f32.gmra.mxu0 %vm853_vm6, %v995_v50  ;;  %v997_v4 = vmul.f32 %v6951_v39, %v8344_v35 }
 0x5c9   :  { %6221 = vmatprep.mubr.msk.f32.mxu0 %vm7306_vm1, %v10774_v1  ;;  %v1530_v63 = vpop.xlane.xlu0 %1529 }
 0x5ca   :  { %6958 = vrcp.f32 %v1530_v63 }
 0x5cc   :  { %6222 = vmatmul.mubr.msk.f32.gmra.mxu0 %vm853_vm6, %v997_v4 }
 0x5cd   :  { %6315 = vmatprep.mubr.msk.f32.mxu0 %vm7306_vm1, %v10774_v1 }
 0x5ce   :  { %v6953_v11 = vpop.eup %6952 }
 0x5cf   :  { %v1559_v31 = vmul.f32 %v6953_v11, %v8348_v41 }
 0x5d2   :  { %v6955_v26 = vpop.eup %6954 }
 0x5d3   :  { %v1561_v49 = vmul.f32 %v6955_v26, %v8352_v57  ;;  %v6957_v40 = vpop.eup %6956 }
 0x5d4   :  { %v1563_v41 = vmul.f32 %v6957_v40, %v8356_v59 }
 0x5d7   :  { %v6959_v0 = vpop.eup %6958 }
 0x5d8   :  { %v1565_v44 = vmul.f32 %v6959_v0, %v8360_v56 }
 0x5fe   :  { %v1533_v5 = vpop.xlane.xlu1 %1532 }
 0x5ff   :  { %v1536_v13 = vpop.xlane.xlu0 %1535  ;;  %6960 = vrcp.f32 %v1533_v5 }
 0x600   :  { %6962 = vrcp.f32 %v1536_v13 }
 0x602   :  { %v1587_v3 = vpop.permute.xlu1 %1586 }
 0x603   :  { %v1539_v35 = vpop.xlane.xlu0 %1538  ;;  %6312 = vmatpush3.msra.mxu0 %v1587_v3 }
 0x604   :  { %6313 = vmatprep.subr.mxu0 %v10774_v1  ;;  %6964 = vrcp.f32 %v1539_v35 }
 0x607   :  { %v1585_v12 = vpop.permute.xlu0 %1584 }
 0x608   :  { %6314 = vmatpush3.msra.mxu0 %v1585_v12 }
 0x609   :  { %6316 = vmatmul.mubr.msk.f32.vlgmr.msra.gmra.mxu0 %vm853_vm6, %v1559_v31  ;;  %6354 = vmatprep.subr.mxu0 %v10774_v1 }
 0x60a   :  { %6318 = vmatprep.mubr.msk.f32.mxu0 %vm7306_vm1, %v10774_v1 }
 0x60c   :  { %v6961_v20 = vpop.eup %6960 }
 0x60d   :  { %6319 = vmatmul.mubr.msk.f32.gmra.mxu0 %vm853_vm6, %v1561_v49  ;;  %v1567_v57 = vmul.f32 %v6961_v20, %v8373_v27  ;;  %v6963_v52 = vpop.eup %6962 }
 0x60e   :  { %6321 = vmatprep.mubr.msk.f32.mxu0 %vm7306_vm1, %v10774_v1  ;;  %v1569_v59 = vmul.f32 %v6963_v52, %v8375_v22 }
 0x611   :  { %6322 = vmatmul.mubr.msk.f32.gmra.mxu0 %vm853_vm6, %v1563_v41  ;;  %v6965_v62 = vpop.eup %6964 }
 0x612   :  { %6324 = vmatprep.mubr.msk.f32.mxu0 %vm7306_vm1, %v10774_v1  ;;  %v1571_v56 = vmul.f32 %v6965_v62, %v8381_v21 }
 0x615   :  { %6325 = vmatmul.mubr.msk.f32.gmra.mxu0 %vm853_vm6, %v1565_v44 }
 0x616   :  { %6327 = vmatprep.mubr.msk.f32.mxu0 %vm7306_vm1, %v10774_v1 }
 0x619   :  { %6328 = vmatmul.mubr.msk.f32.gmra.mxu0 %vm853_vm6, %v1567_v57 }
 0x61a   :  { %6330 = vmatprep.mubr.msk.f32.mxu0 %vm7306_vm1, %v10774_v1 }
 0x61d   :  { %6331 = vmatmul.mubr.msk.f32.gmra.mxu0 %vm853_vm6, %v1569_v59 }
 0x61e   :  { %6333 = vmatprep.mubr.msk.f32.mxu0 %vm7306_vm1, %v10774_v1 }
 0x621   :  { %6334 = vmatmul.mubr.msk.f32.gmra.mxu0 %vm853_vm6, %v1571_v56 }
 0x622   :  { %6336 = vmatprep.mubr.msk.f32.mxu0 %vm7306_vm1, %v10774_v1 }
 0x633   :  { %v1542_v27 = vpop.xlane.xlu1 %1541 }
 0x634   :  { %6966 = vrcp.f32 %v1542_v27 }
 0x637   :  { %v1548_v6 = vpop.xlane.xlu1 %1547 }
 0x638   :  { %v1545_v25 = vpop.xlane.xlu0 %1544 }
 0x639   :  { %6968 = vrcp.f32 %v1545_v25 }
 0x63a   :  { %6970 = vrcp.f32 %v1548_v6 }
 0x63b   :  { %v1551_v22 = vpop.xlane.xlu1 %1550 }
 0x63c   :  { %6972 = vrcp.f32 %v1551_v22 }
 0x63f   :  { %v1554_v61 = vpop.xlane.xlu1 %1553 }
 0x640   :  { %6974 = vrcp.f32 %v1554_v61 }
 0x641   :  { %v6967_v2 = vpop.eup %6966 }
 0x642   :  { %v1573_v9 = vmul.f32 %v6967_v2, %v8420_v45 }
 0x643   :  { %v1557_v54 = vpop.xlane.xlu1 %1556 }
 0x644   :  { %6337 = vmatmul.mubr.msk.f32.gmra.mxu0 %vm853_vm6, %v1573_v9  ;;  %6976 = vrcp.f32 %v1557_v54 }
 0x645   :  { %6339 = vmatprep.mubr.msk.f32.mxu0 %vm7306_vm1, %v10774_v1 }
 0x646   :  { %v6969_v21 = vpop.eup %6968 }
 0x647   :  { %v1575_v32 = vmul.f32 %v6969_v21, %v8429_v55  ;;  %v6971_v14 = vpop.eup %6970 }
 0x648   :  { %v1577_v15 = vmul.f32 %v6971_v14, %v8434_v60 }
 0x649   :  { %6340 = vmatmul.mubr.msk.f32.gmra.mxu0 %vm853_vm6, %v1575_v32  ;;  %v6973_v45 = vpop.eup %6972 }
 0x64a   :  { %6342 = vmatprep.mubr.msk.f32.mxu0 %vm7306_vm1, %v10774_v1  ;;  %v1579_v37 = vmul.f32 %v6973_v45, %v8445_v16 }
 0x64d   :  { %6343 = vmatmul.mubr.msk.f32.gmra.mxu0 %vm853_vm6, %v1577_v15  ;;  %v6975_v46 = vpop.eup %6974 }
 0x64e   :  { %6345 = vmatprep.mubr.msk.f32.mxu0 %vm7306_vm1, %v10774_v1  ;;  %v1581_v55 = vmul.f32 %v6975_v46, %v8458_v19 }
 0x651   :  { %6346 = vmatmul.mubr.msk.f32.gmra.mxu0 %vm853_vm6, %v1579_v37  ;;  %v6977_v8 = vpop.eup %6976 }
 0x652   :  { %6348 = vmatprep.mubr.msk.f32.mxu0 %vm7306_vm1, %v10774_v1  ;;  %v1583_v60 = vmul.f32 %v6977_v8, %v8467_v7 }
 0x655   :  { %6349 = vmatmul.mubr.msk.f32.gmra.mxu0 %vm853_vm6, %v1581_v55 }
 0x656   :  { %6351 = vmatprep.mubr.msk.f32.mxu0 %vm7306_vm1, %v10774_v1 }
 0x659   :  { %6352 = vmatmul.mubr.msk.f32.gmra.mxu0 %vm853_vm6, %v1583_v60 }
 0x65a   :  { %v8546_v47 = vpop.f32.mrf.mxu0  ;;  %6356 = vmatprep.mubr.msk.f32.mxu0 %vm7306_vm1, %v10774_v1 }
 0x65c   :  { %v6187_v16 = vpop.f32.mrf.mxu0 }
 0x65e   :  { %v8550_v17 = vpop.f32.mrf.mxu0 }
 0x660   :  { %v6190_v42 = vpop.f32.mrf.mxu0 }
 0x662   :  { %v8552_v19 = vpop.f32.mrf.mxu0 }
 0x664   :  { %v6193_v36 = vpop.f32.mrf.mxu0 }
 0x666   :  { %v8554_v10 = vpop.f32.mrf.mxu0 }
 0x668   :  { %v6196_v30 = vpop.f32.mrf.mxu0 }
 0x66b   :  { %v8556_v51 = vpop.f32.mrf.mxu0 }
 0x66d   :  { %v6199_v7 = vpop.f32.mrf.mxu0 }
 0x670   :  { %v8558_v50 = vpop.f32.mrf.mxu0 }
 0x672   :  { %v6202_v39 = vpop.f32.mrf.mxu0 }
 0x674   :  { %v8560_v4 = vpop.f32.mrf.mxu0 }
 0x676   :  { %v6205_v34 = vpop.f32.mrf.mxu0 }
 0x678   :  { %v8562_v29 = vpop.f32.mrf.mxu0 }
 0x67a   :  { %v6208_v24 = vpop.f32.mrf.mxu0 }
 0x67c   :  { %v8564_v63 = vpop.f32.mrf.mxu0 }
 0x67e   :  { %v6211_v5 = vpop.f32.mrf.mxu0 }
 0x680   :  { %v8566_v13 = vpop.f32.mrf.mxu0 }
 0x682   :  { %v6214_v3 = vpop.f32.mrf.mxu0 }
 0x684   :  { %v8568_v35 = vpop.f32.mrf.mxu0 }
 0x686   :  { %v6217_v11 = vpop.f32.mrf.mxu0 }
 0x688   :  { %v8570_v31 = vpop.f32.mrf.mxu0 }
 0x68a   :  { %v6220_v12 = vpop.f32.mrf.mxu0 }
 0x68c   :  { %v8572_v26 = vpop.f32.mrf.mxu0 }
 0x68e   :  { %v6223_v49 = vpop.f32.mrf.mxu0 }
 0x6c9   :  { %v1729_v40 = vpop.f32.mrf.mxu0 }
 0x6ca   :  { %1806 = vrot.lane.b32.xlu0 %v1729_v40, %s7312_s21 }
 0x6cb   :  { %v6317_v41 = vpop.f32.mrf.mxu0 }
 0x6cd   :  { %v1734_v0 = vpop.f32.mrf.mxu0 }
 0x6ce   :  { %1808 = vrot.lane.b32.xlu1 %v1734_v0, %s7312_s21 }
 0x6cf   :  { %v6320_v44 = vpop.f32.mrf.mxu0 }
 0x6d1   :  { %v1739_v20 = vpop.f32.mrf.mxu0 }
 0x6d2   :  { %1810 = vrot.lane.b32.xlu1 %v1739_v20, %s7312_s21 }
 0x6d3   :  { %v6323_v57 = vpop.f32.mrf.mxu0 }
 0x6d5   :  { %v1744_v52 = vpop.f32.mrf.mxu0 }
 0x6d6   :  { %1812 = vrot.lane.b32.xlu1 %v1744_v52, %s7312_s21 }
 0x6d7   :  { %v6326_v59 = vpop.f32.mrf.mxu0 }
 0x6d9   :  { %v1749_v62 = vpop.f32.mrf.mxu0 }
 0x6da   :  { %1814 = vrot.lane.b32.xlu0 %v1749_v62, %s7312_s21 }
 0x6db   :  { %v6329_v56 = vpop.f32.mrf.mxu0 }
 0x6dd   :  { %v1754_v27 = vpop.f32.mrf.mxu0 }
 0x6de   :  { %1816 = vrot.lane.b32.xlu1 %v1754_v27, %s7312_s21 }
 0x6df   :  { %v6332_v6 = vpop.f32.mrf.mxu0 }
 0x6e1   :  { %v1759_v25 = vpop.f32.mrf.mxu0 }
 0x6e2   :  { %1818 = vrot.lane.b32.xlu0 %v1759_v25, %s7312_s21 }
 0x6e3   :  { %v6335_v22 = vpop.f32.mrf.mxu0 }
 0x704   :  { %v1764_v61 = vpop.f32.mrf.mxu0 }
 0x705   :  { %1820 = vrot.lane.b32.xlu1 %v1764_v61, %s7312_s21  ;;  %v10778_v61 = vld [vmem:[#allocation7_spill] sm:$0xff] }
 0x706   :  { %v6338_v2 = vpop.f32.mrf.mxu0 }
 0x709   :  { %v1769_v9 = vpop.f32.mrf.mxu0 }
 0x70a   :  { %1822 = vrot.lane.b32.xlu0 %v1769_v9, %s7312_s21 }
 0x70b   :  { %v6341_v54 = vpop.f32.mrf.mxu0 }
 0x70d   :  { %v1774_v21 = vpop.f32.mrf.mxu0 }
 0x70e   :  { %1824 = vrot.lane.b32.xlu1 %v1774_v21, %s7312_s21  ;;  %v10780_v21 = vld [vmem:[#allocation8_spill] sm:$0xff] }
 0x70f   :  { %v6344_v32 = vpop.f32.mrf.mxu0 }
 0x711   :  { %v1779_v14 = vpop.f32.mrf.mxu0 }
 0x712   :  { %1826 = vrot.lane.b32.xlu0 %v1779_v14, %s7312_s21 }
 0x713   :  { %v6347_v15 = vpop.f32.mrf.mxu0 }
 0x715   :  { %v1784_v45 = vpop.f32.mrf.mxu0 }
 0x716   :  { %1828 = vrot.lane.b32.xlu1 %v1784_v45, %s7312_s21 }
 0x717   :  { %v6350_v37 = vpop.f32.mrf.mxu0 }
 0x719   :  { %v1789_v46 = vpop.f32.mrf.mxu0 }
 0x71a   :  { %1830 = vrot.lane.b32.xlu0 %v1789_v46, %s7312_s21 }
 0x71b   :  { %v6353_v55 = vpop.f32.mrf.mxu0 }
 0x73c   :  { %v1807_v8 = vpop.permute.xlu0 %1806 }
 0x73d   :  { %v1845_v60 = vsel %vm670_vm5, %v8546_v47, %v1807_v8 }
 0x73e   :  { %v8590_v16 = vadd.f32 %v1845_v60, %v7451_v18 }
 0x740   :  { %v1809_v42 = vpop.permute.xlu1 %1808  ;;  %v1871_v36 = vsel %vm252_vm3, %v8590_v16, 0.0 }
 0x741   :  { %v1846_v30 = vsel %vm670_vm5, %v8550_v17, %v1809_v42  ;;  %1872 = vadd.xlane.f32.xlu1 %v1871_v36 }
 0x742   :  { %v8597_v7 = vadd.f32 %v1846_v30, %v7458_v23 }
 0x744   :  { %v1811_v39 = vpop.permute.xlu1 %1810  ;;  %v1874_v34 = vsel %vm252_vm3, %v8597_v7, 0.0 }
 0x745   :  { %v1847_v47 = vsel %vm670_vm5, %v8552_v19, %v1811_v39  ;;  %1875 = vadd.xlane.f32.xlu0 %v1874_v34 }
 0x746   :  { %v8604_v18 = vadd.f32 %v1847_v47, %v7465_v28 }
 0x748   :  { %v1813_v24 = vpop.permute.xlu1 %1812  ;;  %v1877_v5 = vsel %vm252_vm3, %v8604_v18, 0.0 }
 0x749   :  { %v1848_v17 = vsel %vm670_vm5, %v8554_v10, %v1813_v24  ;;  %1878 = vadd.xlane.f32.xlu0 %v1877_v5 }
 0x74a   :  { %v8611_v23 = vadd.f32 %v1848_v17, %v7472_v33 }
 0x74c   :  { %v1815_v3 = vpop.permute.xlu0 %1814  ;;  %v1880_v11 = vsel %vm252_vm3, %v8611_v23, 0.0 }
 0x74d   :  { %v1849_v19 = vsel %vm670_vm5, %v8556_v51, %v1815_v3  ;;  %1881 = vadd.xlane.f32.xlu0 %v1880_v11 }
 0x74e   :  { %v8618_v28 = vadd.f32 %v1849_v19, %v7479_v38 }
 0x750   :  { %v1817_v12 = vpop.permute.xlu1 %1816  ;;  %v1883_v49 = vsel %vm252_vm3, %v8618_v28, 0.0 }
 0x751   :  { %v1850_v10 = vsel %vm670_vm5, %v8558_v50, %v1817_v12  ;;  %1884 = vadd.xlane.f32.xlu1 %v1883_v49 }
 0x752   :  { %v8625_v33 = vadd.f32 %v1850_v10, %v7486_v43 }
 0x754   :  { %v1819_v40 = vpop.permute.xlu0 %1818  ;;  %v1886_v41 = vsel %vm252_vm3, %v8625_v33, 0.0 }
 0x755   :  { %v1851_v51 = vsel %vm670_vm5, %v8560_v4, %v1819_v40  ;;  %1887 = vadd.xlane.f32.xlu0 %v1886_v41 }
 0x756   :  { %v8632_v38 = vadd.f32 %v1851_v51, %v7493_v48 }
 0x758   :  { %v1889_v0 = vsel %vm252_vm3, %v8632_v38, 0.0 }
 0x759   :  { %1890 = vadd.xlane.f32.xlu1 %v1889_v0 }
 0x777   :  { %v1821_v50 = vpop.permute.xlu1 %1820 }
 0x778   :  { %v1852_v43 = vsel %vm670_vm5, %v8562_v29, %v1821_v50 }
 0x779   :  { %v8639_v44 = vadd.f32 %v1852_v43, %v7500_v53  ;;  %v10775_v53 = vld [vmem:[#allocation5_spill] sm:$0xff] }
 0x77b   :  { %v1892_v20 = vsel %vm252_vm3, %v8639_v44, 0.0 }
 0x77c   :  { %v1823_v57 = vpop.permute.xlu0 %1822  ;;  %1893 = vadd.xlane.f32.xlu0 %v1892_v20 }
 0x77d   :  { %v1853_v48 = vsel %vm670_vm5, %v8564_v63, %v1823_v57 }
 0x77e   :  { %v8646_v4 = vadd.f32 %v1853_v48, %v7507_v58  ;;  %v10776_v58 = vld [vmem:[#allocation6_spill] sm:$0xff] }
 0x780   :  { %v1825_v52 = vpop.permute.xlu1 %1824  ;;  %v1895_v59 = vsel %vm252_vm3, %v8646_v4, 0.0 }
 0x781   :  { %v1854_v29 = vsel %vm670_vm5, %v8566_v13, %v1825_v52  ;;  %1896 = vadd.xlane.f32.xlu1 %v1895_v59 }
 0x782   :  { %v8653_v62 = vadd.f32 %v1854_v29, %v10775_v53  ;;  %v247_v29 = vld [vmem:[%s10752_s3 + $0x8] sm:$0xff] }
 0x783   :  { %6355 = vmatpush3.msra.mxu0 %v247_v29  ;;  %6837 = vmatpush3.msra.mxu1 %v247_v29 }
 0x784   :  { %v1827_v56 = vpop.permute.xlu0 %1826  ;;  %v1898_v27 = vsel %vm252_vm3, %v8653_v62, 0.0  ;;  %6395 = vmatprep.subr.mxu0 %v10774_v1  ;;  %6442 = vmatprep.subr.mxu1 %v10774_v1 }
 0x785   :  { %v1855_v63 = vsel %vm670_vm5, %v8568_v35, %v1827_v56  ;;  %1899 = vadd.xlane.f32.xlu0 %v1898_v27 }
 0x786   :  { %v8660_v6 = vadd.f32 %v1855_v63, %v10776_v58 }
 0x788   :  { %10777 = vst [vmem:[#allocation5_spill] sm:$0xff] %v8660_v6  ;;  %v1829_v25 = vpop.permute.xlu1 %1828  ;;  %v1901_v22 = vsel %vm252_vm3, %v8660_v6, 0.0 }
 0x789   :  { %v1856_v13 = vsel %vm670_vm5, %v8570_v31, %v1829_v25  ;;  %1902 = vadd.xlane.f32.xlu1 %v1901_v22 }
 0x78a   :  { %v8667_v2 = vadd.f32 %v1856_v13, %v10778_v61 }
 0x78c   :  { %10779 = vst [vmem:[#allocation6_spill] sm:$0xff] %v8667_v2  ;;  %v1831_v9 = vpop.permute.xlu0 %1830  ;;  %v1904_v54 = vsel %vm252_vm3, %v8667_v2, 0.0 }
 0x78d   :  { %v1857_v35 = vsel %vm670_vm5, %v8572_v26, %v1831_v9  ;;  %1905 = vadd.xlane.f32.xlu0 %v1904_v54  ;;  %v7268_v54 = vld [vmem:[%s10753_s4] ss:$0 sm:$0xff] }
 0x78e   :  { %v8674_v32 = vadd.f32 %v1857_v35, %v10780_v21 }
 0x790   :  { %10781 = vst [vmem:[#allocation7_spill] sm:$0xff] %v8674_v32  ;;  %v1907_v14 = vsel %vm289_vm4, %v8674_v32, 0.0 }
 0x791   :  { %1908 = vadd.xlane.f32.xlu1 %v1907_v14 }
 0x7ca   :  { %v1873_v31 = vpop.xlane.xlu1 %1872 }
 0x7cb   :  { %v1910_v15 = vmul.f32 0.125, %v1873_v31 }
 0x7cd   :  { %v8679_v45 = vsub.f32 %v8590_v16, %v1910_v15 }
 0x7ce   :  { %v1876_v37 = vpop.xlane.xlu0 %1875 }
 0x7cf   :  { %v1911_v46 = vmul.f32 0.125, %v1876_v37  ;;  %v1936_v55 = vmul.f32 %v8679_v45, %v8679_v45 }
 0x7d1   :  { %v8684_v26 = vsub.f32 %v8597_v7, %v1911_v46  ;;  %v1949_v8 = vsel %vm252_vm3, %v1936_v55, 0.0 }
 0x7d2   :  { %1950 = vadd.xlane.f32.xlu0 %v1949_v8  ;;  %v1879_v60 = vpop.xlane.xlu0 %1878 }
 0x7d3   :  { %v1912_v42 = vmul.f32 0.125, %v1879_v60  ;;  %v1937_v36 = vmul.f32 %v8684_v26, %v8684_v26 }
 0x7d5   :  { %v8690_v30 = vsub.f32 %v8604_v18, %v1912_v42  ;;  %v1952_v39 = vsel %vm252_vm3, %v1937_v36, 0.0 }
 0x7d6   :  { %1953 = vadd.xlane.f32.xlu1 %v1952_v39  ;;  %v1882_v34 = vpop.xlane.xlu0 %1881 }
 0x7d7   :  { %v1913_v47 = vmul.f32 0.125, %v1882_v34  ;;  %v1938_v24 = vmul.f32 %v8690_v30, %v8690_v30 }
 0x7d9   :  { %v8696_v5 = vsub.f32 %v8611_v23, %v1913_v47  ;;  %v1955_v17 = vsel %vm252_vm3, %v1938_v24, 0.0 }
 0x7da   :  { %v1885_v3 = vpop.xlane.xlu1 %1884  ;;  %1956 = vadd.xlane.f32.xlu0 %v1955_v17 }
 0x7db   :  { %v1914_v11 = vmul.f32 0.125, %v1885_v3  ;;  %v1939_v19 = vmul.f32 %v8696_v5, %v8696_v5 }
 0x7dd   :  { %v8702_v12 = vsub.f32 %v8618_v28, %v1914_v11  ;;  %v1958_v49 = vsel %vm252_vm3, %v1939_v19, 0.0 }
 0x7de   :  { %1959 = vadd.xlane.f32.xlu1 %v1958_v49  ;;  %v1888_v10 = vpop.xlane.xlu0 %1887 }
 0x7df   :  { %v1915_v40 = vmul.f32 0.125, %v1888_v10  ;;  %v1940_v41 = vmul.f32 %v8702_v12, %v8702_v12 }
 0x7e1   :  { %v8708_v51 = vsub.f32 %v8625_v33, %v1915_v40  ;;  %v1961_v0 = vsel %vm252_vm3, %v1940_v41, 0.0 }
 0x7e2   :  { %v1891_v50 = vpop.xlane.xlu1 %1890  ;;  %1962 = vadd.xlane.f32.xlu0 %v1961_v0 }
 0x7e3   :  { %v1916_v43 = vmul.f32 0.125, %v1891_v50  ;;  %v1941_v20 = vmul.f32 %v8708_v51, %v8708_v51 }
 0x7e5   :  { %v8714_v57 = vsub.f32 %v8632_v38, %v1916_v43  ;;  %v1964_v48 = vsel %vm252_vm3, %v1941_v20, 0.0 }
 0x7e6   :  { %1965 = vadd.xlane.f32.xlu1 %v1964_v48 }
 0x7e7   :  { %v1942_v52 = vmul.f32 %v8714_v57, %v8714_v57 }
 0x7e9   :  { %v1967_v59 = vsel %vm252_vm3, %v1942_v52, 0.0 }
 0x7ea   :  { %1968 = vadd.xlane.f32.xlu0 %v1967_v59 }
 0x805   :  { %v1894_v53 = vpop.xlane.xlu0 %1893 }
 0x806   :  { %v1917_v56 = vmul.f32 0.125, %v1894_v53 }
 0x808   :  { %v8726_v27 = vsub.f32 %v8639_v44, %v1917_v56 }
 0x80a   :  { %v1897_v63 = vpop.xlane.xlu1 %1896  ;;  %v1943_v58 = vmul.f32 %v8726_v27, %v8726_v27 }
 0x80b   :  { %v1918_v25 = vmul.f32 0.125, %v1897_v63 }
 0x80c   :  { %v1970_v22 = vsel %vm252_vm3, %v1943_v58, 0.0 }
 0x80d   :  { %v8732_v13 = vsub.f32 %v8646_v4, %v1918_v25  ;;  %1971 = vadd.xlane.f32.xlu1 %v1970_v22 }
 0x80e   :  { %v1900_v35 = vpop.xlane.xlu0 %1899 }
 0x80f   :  { %v1944_v61 = vmul.f32 %v8732_v13, %v8732_v13  ;;  %v1919_v21 = vmul.f32 0.125, %v1900_v35 }
 0x811   :  { %v1973_v9 = vsel %vm252_vm3, %v1944_v61, 0.0  ;;  %v8743_v15 = vsub.f32 %v8653_v62, %v1919_v21 }
 0x812   :  { %1974 = vadd.xlane.f32.xlu0 %v1973_v9  ;;  %v1903_v31 = vpop.xlane.xlu1 %1902 }
 0x813   :  { %v1920_v46 = vmul.f32 0.125, %v1903_v31  ;;  %v1945_v60 = vmul.f32 %v8743_v15, %v8743_v15 }
 0x815   :  { %v8751_v42 = vsub.f32 %v8660_v6, %v1920_v46  ;;  %v1976_v39 = vsel %vm252_vm3, %v1945_v60, 0.0 }
 0x816   :  { %v1906_v14 = vpop.xlane.xlu0 %1905 }
 0x817   :  { %v1921_v37 = vmul.f32 0.125, %v1906_v14  ;;  %v1946_v24 = vmul.f32 %v8751_v42, %v8751_v42 }
 0x819   :  { %v8746_v8 = vsub.f32 %v8667_v2, %v1921_v37  ;;  %v1979_v3 = vsel %vm252_vm3, %v1946_v24, 0.0 }
 0x81a   :  { %v1909_v55 = vpop.xlane.xlu1 %1908 }
 0x81b   :  { %v1922_v36 = vmul.f32 0.125, %v1909_v55  ;;  %v1947_v34 = vmul.f32 %v8746_v8, %v8746_v8 }
 0x81d   :  { %v8757_v47 = vsub.f32 %v8674_v32, %v1922_v36  ;;  %v1982_v17 = vsel %vm252_vm3, %v1947_v34, 0.0 }
 0x81e   :  { %2040 = vrot.lane.b32.xlu1 %v7268_v54, %s7310_s14 }
 0x81f   :  { %v1948_v11 = vmul.f32 %v8757_v47, %v8757_v47 }
 0x821   :  { %v1985_v19 = vsel %vm289_vm4, %v1948_v11, 0.0 }
 0x828   :  { %2056 = vrot.lane.b32.xlu0 %v7268_v54, %s7313_s26 }
 0x842   :  { %1977 = vadd.xlane.f32.xlu1 %v1976_v39 }
 0x846   :  { %1983 = vadd.xlane.f32.xlu1 %v1982_v17 }
 0x847   :  { %1980 = vadd.xlane.f32.xlu0 %v1979_v3 }
 0x84b   :  { %1986 = vadd.xlane.f32.xlu0 %v1985_v19 }
 0x85b   :  { %v1951_v49 = vpop.xlane.xlu0 %1950 }
 0x85c   :  { %v1988_v43 = vmul.f32 0.125, %v1951_v49 }
 0x85e   :  { %v2001_v52 = vadd.f32 1e-05, %v1988_v43 }
 0x85f   :  { %v1954_v10 = vpop.xlane.xlu1 %1953 }
 0x860   :  { %v1989_v59 = vmul.f32 0.125, %v1954_v10  ;;  %6978 = vrsqrt.f32 %v2001_v52 }
 0x862   :  { %v2002_v56 = vadd.f32 1e-05, %v1989_v59 }
 0x863   :  { %v1957_v40 = vpop.xlane.xlu0 %1956 }
 0x864   :  { %v1990_v63 = vmul.f32 0.125, %v1957_v40 }
 0x866   :  { %v2003_v25 = vadd.f32 1e-05, %v1990_v63 }
 0x867   :  { %v1960_v41 = vpop.xlane.xlu1 %1959 }
 0x868   :  { %v1991_v22 = vmul.f32 0.125, %v1960_v41 }
 0x86a   :  { %v2004_v61 = vadd.f32 1e-05, %v1991_v22 }
 0x86b   :  { %v1963_v0 = vpop.xlane.xlu0 %1962 }
 0x86c   :  { %v1992_v9 = vmul.f32 0.125, %v1963_v0 }
 0x86d   :  { %v6979_v21 = vpop.eup %6978 }
 0x86e   :  { %v2005_v14 = vadd.f32 1e-05, %v1992_v9  ;;  %v2027_v36 = vmul.f32 %v6979_v21, %v8679_v45 }
 0x86f   :  { %v1966_v50 = vpop.xlane.xlu1 %1965 }
 0x870   :  { %v1993_v20 = vmul.f32 0.125, %v1966_v50 }
 0x872   :  { %v2006_v29 = vadd.f32 1e-05, %v1993_v20 }
 0x873   :  { %v1969_v48 = vpop.xlane.xlu0 %1968 }
 0x874   :  { %v1994_v53 = vmul.f32 0.125, %v1969_v48  ;;  %6980 = vrsqrt.f32 %v2006_v29 }
 0x875   :  { %6982 = vrsqrt.f32 %v2002_v56 }
 0x876   :  { %v2007_v58 = vadd.f32 1e-05, %v1994_v53 }
 0x878   :  { %6984 = vrsqrt.f32 %v2007_v58 }
 0x879   :  { %6986 = vrsqrt.f32 %v2003_v25 }
 0x87a   :  { %6988 = vrsqrt.f32 %v2004_v61 }
 0x881   :  { %v6981_v31 = vpop.eup %6980 }
 0x882   :  { %v6983_v60 = vpop.eup %6982  ;;  %v2032_v39 = vmul.f32 %v6981_v31, %v8708_v51 }
 0x883   :  { %v2028_v49 = vmul.f32 %v6983_v60, %v8684_v26 }
 0x885   :  { %v6985_v24 = vpop.eup %6984 }
 0x886   :  { %v2033_v45 = vmul.f32 %v6985_v24, %v8714_v57  ;;  %v6987_v41 = vpop.eup %6986 }
 0x887   :  { %v2029_v57 = vmul.f32 %v6987_v41, %v8690_v30  ;;  %v6989_v43 = vpop.eup %6988 }
 0x888   :  { %v2030_v59 = vmul.f32 %v6989_v43, %v8696_v5  ;;  %v8867_v43 = vld [vmem:[%s10753_s4 + $0x2] ss:$0 sm:$0xff] }
 0x896   :  { %v1972_v54 = vpop.xlane.xlu1 %1971 }
 0x897   :  { %v1995_v35 = vmul.f32 0.125, %v1972_v54 }
 0x899   :  { %v2008_v37 = vadd.f32 1e-05, %v1995_v35 }
 0x89a   :  { %v8766_v46 = vpop.permute.xlu1 %2040 }
 0x89b   :  { %6990 = vrsqrt.f32 %v2008_v37  ;;  %v1975_v55 = vpop.xlane.xlu0 %1974  ;;  %v2043_v3 = vmul.f32 %v8766_v46, %v2027_v36  ;;  %v2048_v11 = vmul.f32 %v8766_v46, %v2032_v39  ;;  %v2044_v51 = vmul.f32 %v8766_v46, %v2028_v49 }
 0x89c   :  { %6992 = vrsqrt.f32 %v2005_v14  ;;  %v1996_v34 = vmul.f32 0.125, %v1975_v55  ;;  %v2049_v0 = vmul.f32 %v8766_v46, %v2033_v45  ;;  %v2045_v20 = vmul.f32 %v8766_v46, %v2029_v57  ;;  %v248_v57 = vld [vmem:[%s10752_s3 + $0x10] sm:$0xff] }
 0x89d   :  { %v2046_v53 = vmul.f32 %v8766_v46, %v2030_v59 }
 0x89e   :  { %v2009_v17 = vadd.f32 1e-05, %v1996_v34 }
 0x89f   :  { %v8772_v19 = vpop.permute.xlu0 %2056 }
 0x8a0   :  { %6994 = vrsqrt.f32 %v2009_v17  ;;  %v2059_v10 = vadd.f32 %v8772_v19, %v2043_v3  ;;  %v2064_v40 = vadd.f32 %v8772_v19, %v2048_v11  ;;  %v2060_v26 = vadd.f32 %v8772_v19, %v2044_v51 }
 0x8a1   :  { %v2065_v50 = vadd.f32 %v8772_v19, %v2049_v0  ;;  %v2061_v52 = vadd.f32 %v8772_v19, %v2045_v20  ;;  %v2062_v63 = vadd.f32 %v8772_v19, %v2046_v53 }
 0x8a2   :  { %6357 = vmatmul.mubr.msk.f32.vlgmr.msra.gmra.mxu0 %vm252_vm3, %v2059_v10  ;;  %6372 = vmatmul.mubr.msk.f32.vlgmr.msra.gmra.mxu1 %vm252_vm3, %v2064_v40 }
 0x8a3   :  { %6359 = vmatprep.mubr.msk.f32.mxu0 %vm7306_vm1, %v10774_v1  ;;  %6374 = vmatprep.mubr.msk.f32.mxu1 %vm7306_vm1, %v10774_v1 }
 0x8a6   :  { %6360 = vmatmul.mubr.msk.f32.gmra.mxu0 %vm252_vm3, %v2060_v26  ;;  %6375 = vmatmul.mubr.msk.f32.gmra.mxu1 %vm252_vm3, %v2065_v50 }
 0x8a7   :  { %6362 = vmatprep.mubr.msk.f32.mxu0 %vm7306_vm1, %v10774_v1  ;;  %6377 = vmatprep.mubr.msk.f32.mxu1 %vm7306_vm1, %v10774_v1 }
 0x8a8   :  { %v6991_v48 = vpop.eup %6990 }
 0x8a9   :  { %v6993_v29 = vpop.eup %6992  ;;  %v2034_v30 = vmul.f32 %v6991_v48, %v8726_v27 }
 0x8aa   :  { %6363 = vmatmul.mubr.msk.f32.gmra.mxu0 %vm252_vm3, %v2061_v52  ;;  %v2031_v58 = vmul.f32 %v6993_v29, %v8702_v12 }
 0x8ab   :  { %6365 = vmatprep.mubr.msk.f32.mxu0 %vm7306_vm1, %v10774_v1  ;;  %v2050_v56 = vmul.f32 %v8766_v46, %v2034_v30 }
 0x8ac   :  { %v2047_v5 = vmul.f32 %v8766_v46, %v2031_v58 }
 0x8ad   :  { %v6995_v25 = vpop.eup %6994  ;;  %v2066_v22 = vadd.f32 %v8772_v19, %v2050_v56 }
 0x8ae   :  { %6366 = vmatmul.mubr.msk.f32.gmra.mxu0 %vm252_vm3, %v2062_v63  ;;  %v2035_v27 = vmul.f32 %v6995_v25, %v8732_v13  ;;  %v2063_v61 = vadd.f32 %v8772_v19, %v2047_v5 }
 0x8af   :  { %6378 = vmatmul.mubr.msk.f32.gmra.mxu1 %vm252_vm3, %v2066_v22  ;;  %6368 = vmatprep.mubr.msk.f32.mxu0 %vm7306_vm1, %v10774_v1 }
 0x8b0   :  { %6380 = vmatprep.mubr.msk.f32.mxu1 %vm7306_vm1, %v10774_v1  ;;  %v2051_v12 = vmul.f32 %v8766_v46, %v2035_v27 }
 0x8b2   :  { %6369 = vmatmul.mubr.msk.f32.gmra.mxu0 %vm252_vm3, %v2063_v61  ;;  %v2067_v9 = vadd.f32 %v8772_v19, %v2051_v12 }
 0x8b3   :  { %6403 = vmatprep.mubr.msk.f32.mxu0 %vm7306_vm1, %v10774_v1 }
 0x8b4   :  { %6381 = vmatmul.mubr.msk.f32.gmra.mxu1 %vm252_vm3, %v2067_v9 }
 0x8b5   :  { %6383 = vmatprep.mubr.msk.f32.mxu1 %vm7306_vm1, %v10774_v1 }
 0x8cb   :  { %v1978_v13 = vpop.xlane.xlu1 %1977 }
 0x8cc   :  { %v1997_v54 = vmul.f32 0.125, %v1978_v13 }
 0x8ce   :  { %v2010_v35 = vadd.f32 1e-05, %v1997_v54 }
 0x8cf   :  { %v1984_v21 = vpop.xlane.xlu1 %1983 }
 0x8d0   :  { %6996 = vrsqrt.f32 %v2010_v35  ;;  %v1999_v14 = vmul.f32 0.125, %v1984_v21  ;;  %v1981_v31 = vpop.xlane.xlu0 %1980 }
 0x8d1   :  { %v1998_v37 = vmul.f32 0.125, %v1981_v31 }
 0x8d2   :  { %v2012_v55 = vadd.f32 1e-05, %v1999_v14 }
 0x8d3   :  { %v2011_v60 = vadd.f32 1e-05, %v1998_v37 }
 0x8d4   :  { %6998 = vrsqrt.f32 %v2012_v55  ;;  %v1987_v36 = vpop.xlane.xlu0 %1986 }
 0x8d5   :  { %7000 = vrsqrt.f32 %v2011_v60  ;;  %v2000_v39 = vmul.f32 0.125, %v1987_v36 }
 0x8d7   :  { %v2013_v34 = vadd.f32 1e-05, %v2000_v39 }
 0x8d9   :  { %7002 = vrsqrt.f32 %v2013_v34 }
 0x8dd   :  { %v6997_v24 = vpop.eup %6996 }
 0x8de   :  { %v2036_v17 = vmul.f32 %v6997_v24, %v8743_v15 }
 0x8e0   :  { %v2052_v3 = vmul.f32 %v8766_v46, %v2036_v17 }
 0x8e1   :  { %v6999_v11 = vpop.eup %6998 }
 0x8e2   :  { %v7001_v49 = vpop.eup %7000  ;;  %v2068_v10 = vadd.f32 %v8772_v19, %v2052_v3  ;;  %v2038_v45 = vmul.f32 %v6999_v11, %v8746_v8 }
 0x8e3   :  { %v2037_v40 = vmul.f32 %v7001_v49, %v8751_v42 }
 0x8e4   :  { %6384 = vmatmul.mubr.msk.f32.gmra.mxu1 %vm252_vm3, %v2068_v10  ;;  %v2054_v0 = vmul.f32 %v8766_v46, %v2038_v45 }
 0x8e5   :  { %6386 = vmatprep.mubr.msk.f32.mxu1 %vm7306_vm1, %v10774_v1  ;;  %v2053_v41 = vmul.f32 %v8766_v46, %v2037_v40 }
 0x8e6   :  { %v7003_v51 = vpop.eup %7002  ;;  %v2070_v8 = vadd.f32 %v8772_v19, %v2054_v0 }
 0x8e7   :  { %v2069_v15 = vadd.f32 %v8772_v19, %v2053_v41  ;;  %v2039_v26 = vmul.f32 %v7003_v51, %v8757_v47  ;;  %v251_v47 = vld [vmem:[%s10752_s3 + $0x28] sm:$0xff] }
 0x8e8   :  { %6396 = vmatpush3.msra.mxu0 %v251_v47 }
 0x8e9   :  { %6387 = vmatmul.mubr.msk.f32.gmra.mxu1 %vm252_vm3, %v2069_v15  ;;  %v2055_v42 = vmul.f32 %v8766_v46, %v2039_v26  ;;  %6397 = vmatprep.subr.mxu0 %v10774_v1  ;;  %v250_v46 = vld [vmem:[%s10752_s3 + $0x20] sm:$0xff] }
 0x8ea   :  { %6389 = vmatprep.mubr.msk.f32.mxu1 %vm7306_vm1, %v10774_v1  ;;  %6398 = vmatpush3.msra.mxu0 %v250_v46 }
 0x8eb   :  { %v2071_v50 = vadd.f32 %v8772_v19, %v2055_v42  ;;  %6399 = vmatprep.subr.mxu0 %v10774_v1  ;;  %v249_v19 = vld [vmem:[%s10752_s3 + $0x18] sm:$0xff] }
 0x8ec   :  { %6400 = vmatpush3.msra.mxu0 %v249_v19 }
 0x8ed   :  { %6390 = vmatmul.mubr.msk.f32.gmra.mxu1 %vm252_vm3, %v2070_v8  ;;  %6401 = vmatprep.subr.mxu0 %v10774_v1 }
 0x8ee   :  { %6392 = vmatprep.mubr.msk.f32.mxu1 %vm7306_vm1, %v10774_v1  ;;  %6402 = vmatpush3.msra.mxu0 %v248_v57 }
 0x8ef   :  { %6483 = vmatprep.subr.mxu0 %v10774_v1 }
 0x8f1   :  { %6393 = vmatmul.mubr.msk.f32.gmra.mxu1 %vm252_vm3, %v2071_v50 }
 0x8f2   :  { %6444 = vmatprep.mubr.msk.f32.mxu1 %vm7306_vm1, %v10774_v1 }
 0x962   :  { %v2181_v20 = vpop.f32.mrf.mxu0  ;;  %v2206_v48 = vpop.f32.mrf.mxu1 }
 0x963   :  { %v8870_v52 = vadd.f32 %v8867_v43, %v2181_v20  ;;  %v8873_v59 = vadd.f32 %v8867_v43, %v2206_v48 }
 0x964   :  { %v6358_v29 = vpop.f32.mrf.mxu0  ;;  %v6373_v30 = vpop.f32.mrf.mxu1 }
 0x965   :  { %v8876_v53 = vmul.f32 0.70710677, %v8870_v52  ;;  %v8879_v56 = vmul.f32 0.70710677, %v8873_v59 }
 0x966   :  { %v2186_v63 = vpop.f32.mrf.mxu0  ;;  %v2211_v58 = vpop.f32.mrf.mxu1 }
 0x967   :  { %v2271_v25 = vand.u32 2147483647, %v8876_v53  ;;  %v8883_v22 = vand.u32 2147483647, %v8879_v56  ;;  %v8886_v5 = vadd.f32 %v8867_v43, %v2186_v63  ;;  %v8889_v27 = vadd.f32 %v8867_v43, %v2211_v58 }
 0x968   :  { %v6361_v61 = vpop.f32.mrf.mxu0  ;;  %v6376_v12 = vpop.f32.mrf.mxu1  ;;  %vm2531_vm8 = vcmp.ge.f32.partialorder %v8876_v53, 0.0  ;;  %vm2536_vm13 = vcmp.ge.f32.partialorder %v8879_v56, 0.0 }
 0x969   :  { %v2284_v9 = vmul.f32 0.3275911, %v2271_v25  ;;  %v2289_v13 = vmul.f32 0.3275911, %v8883_v22  ;;  %v8893_v54 = vmul.f32 0.70710677, %v8886_v5 }
 0x96a   :  { %v8896_v35 = vmul.f32 0.70710677, %v8889_v27  ;;  %v2191_v21 = vpop.f32.mrf.mxu0  ;;  %v2453_v39 = vsub.f32 0.0, %v2271_v25  ;;  %v2458_v12 = vsub.f32 0.0, %v8883_v22 }
 0x96b   :  { %v2297_v14 = vadd.f32 1.0, %v2284_v9  ;;  %v2302_v31 = vadd.f32 1.0, %v2289_v13  ;;  %v2272_v37 = vand.u32 2147483647, %v8893_v54  ;;  %v8903_v36 = vadd.f32 %v8867_v43, %v2191_v21 }
 0x96c   :  { %v8900_v55 = vand.u32 2147483647, %v8896_v35  ;;  %v6364_v60 = vpop.f32.mrf.mxu0  ;;  %v2466_v15 = vmul.f32 %v2453_v39, %v2271_v25  ;;  %vm2532_vm10 = vcmp.ge.f32.partialorder %v8893_v54, 0.0  ;;  %vm2537_vm15 = vcmp.ge.f32.partialorder %v8896_v35, 0.0 }
 0x96d   :  { %7004 = vrcp.f32 %v2297_v14  ;;  %v2285_v34 = vmul.f32 0.3275911, %v2272_v37  ;;  %v8907_v3 = vmul.f32 0.70710677, %v8903_v36  ;;  %v2454_v20 = vsub.f32 0.0, %v2272_v37 }
 0x96e   :  { %7006 = vrcp.f32 %v2302_v31  ;;  %v2290_v24 = vmul.f32 0.3275911, %v8900_v55  ;;  %v2196_v17 = vpop.f32.mrf.mxu0  ;;  %v2479_v57 = vmul.f32 1.442695, %v2466_v15 }
 0x96f   :  { %v2216_v11 = vpop.f32.mrf.mxu1  ;;  %v2298_v49 = vadd.f32 1.0, %v2285_v34  ;;  %v2273_v45 = vand.u32 2147483647, %v8907_v3  ;;  %v8911_v41 = vadd.f32 %v8867_v43, %v2196_v17  ;;  %v2467_v21 = vmul.f32 %v2454_v20, %v2272_v37 }
 0x970   :  { %v2303_v10 = vadd.f32 1.0, %v2290_v24  ;;  %v6367_v40 = vpop.f32.mrf.mxu0  ;;  %v8914_v0 = vadd.f32 %v8867_v43, %v2216_v11  ;;  %v2471_v37 = vmul.f32 %v2458_v12, %v8883_v22  ;;  %vm2533_vm11 = vcmp.ge.f32.partialorder %v8907_v3, 0.0 }
 0x971   :  { %v6379_v51 = vpop.f32.mrf.mxu1  ;;  %7008 = vrcp.f32 %v2298_v49  ;;  %v2286_v8 = vmul.f32 0.3275911, %v2273_v45  ;;  %v8917_v42 = vmul.f32 0.70710677, %v8911_v41  ;;  %v2455_v34 = vsub.f32 0.0, %v2273_v45 }
 0x972   :  { %v2201_v26 = vpop.f32.mrf.mxu0  ;;  %7010 = vrcp.f32 %v2303_v10  ;;  %v8920_v19 = vmul.f32 0.70710677, %v8914_v0  ;;  %v2459_v51 = vsub.f32 0.0, %v8900_v55  ;;  %v2247_v3 = vmul.f32 0.5, %v8903_v36 }
 0x973   :  { %v2299_v46 = vadd.f32 1.0, %v2286_v8  ;;  %v2274_v48 = vand.u32 2147483647, %v8917_v42  ;;  %v8924_v29 = vadd.f32 %v8867_v43, %v2201_v26  ;;  %vm2534_vm12 = vcmp.ge.f32.partialorder %v8917_v42, 0.0 }
 0x974   :  { %v6370_v50 = vpop.f32.mrf.mxu0  ;;  %v2221_v47 = vpop.f32.mrf.mxu1  ;;  %v2278_v63 = vand.u32 2147483647, %v8920_v19  ;;  %vm2538_vm2 = vcmp.ge.f32.partialorder %v8920_v19, 0.0 }
 0x975   :  { %7012 = vrcp.f32 %v2299_v46  ;;  %v8928_v58 = vadd.f32 %v8867_v43, %v2221_v47  ;;  %v2287_v25 = vmul.f32 0.3275911, %v2274_v48  ;;  %v8931_v61 = vmul.f32 0.70710677, %v8924_v29 }
 0x976   :  { %v6382_v30 = vpop.f32.mrf.mxu1  ;;  %v2291_v9 = vmul.f32 0.3275911, %v2278_v63  ;;  %7014 = vpow2.f32 %v2479_v57  ;;  %v2481_v47 = vmul.f32 1.442695, %v2467_v21  ;;  %v2468_v46 = vmul.f32 %v2455_v34, %v2273_v45 }
 0x977   :  { %v2300_v14 = vadd.f32 1.0, %v2287_v25  ;;  %v8937_v31 = vand.u32 2147483647, %v8931_v61  ;;  %v8943_v17 = vmul.f32 0.70710677, %v8928_v58  ;;  %v2456_v57 = vsub.f32 0.0, %v2274_v48 }
 0x978   :  { %v2304_v24 = vadd.f32 1.0, %v2291_v9  ;;  %v2489_v21 = vmul.f32 1.442695, %v2471_v37  ;;  %vm2535_vm14 = vcmp.ge.f32.partialorder %v8931_v61, 0.0 }
 0x979   :  { %7016 = vrcp.f32 %v2300_v14  ;;  %v2288_v49 = vmul.f32 0.3275911, %v8937_v31  ;;  %v8950_v26 = vand.u32 2147483647, %v8943_v17 }
 0x97a   :  { %v8934_v13 = vpop.eup %7004  ;;  %7018 = vrcp.f32 %v2304_v24  ;;  %v2472_v24 = vmul.f32 %v2459_v51, %v8900_v55  ;;  %v8970_v51 = vmul.f32 0.5, %v8870_v52 }
 0x97b   :  { %v8939_v60 = vpop.eup %7006  ;;  %v2336_v39 = vmul.f32 1.0614054, %v8934_v13  ;;  %v2301_v15 = vadd.f32 1.0, %v2288_v49  ;;  %v2292_v25 = vmul.f32 0.3275911, %v8950_v26 }
 0x97c   :  { %v2341_v11 = vmul.f32 1.0614054, %v8939_v60 }
 0x97d   :  { %v2349_v10 = vadd.f32 -1.4531521, %v2336_v39  ;;  %7020 = vrcp.f32 %v2301_v15  ;;  %v2469_v15 = vmul.f32 %v2456_v57, %v2274_v48  ;;  %v2305_v32 = vadd.f32 1.0, %v2292_v25 }
 0x97e   :  { %v2354_v40 = vadd.f32 -1.4531521, %v2341_v11  ;;  %v8952_v8 = vpop.eup %7008  ;;  %v2460_v11 = vsub.f32 0.0, %v2278_v63  ;;  %7022 = vpow2.f32 %v2481_v47  ;;  %v2491_v47 = vmul.f32 1.442695, %v2472_v24 }
 0x97f   :  { %v2362_v50 = vmul.f32 %v8934_v13, %v2349_v10  ;;  %v8955_v20 = vpop.eup %7010  ;;  %v2337_v22 = vmul.f32 1.0614054, %v8952_v8  ;;  %7024 = vpow2.f32 %v2489_v21  ;;  %v2485_v25 = vmul.f32 1.442695, %v2469_v15 }
 0x980   :  { %v2367_v30 = vmul.f32 %v8939_v60, %v2354_v40  ;;  %v2342_v9 = vmul.f32 1.0614054, %v8955_v20  ;;  %v2483_v40 = vmul.f32 1.442695, %v2468_v46  ;;  %7026 = vrcp.f32 %v2305_v32 }
 0x981   :  { %v2375_v12 = vadd.f32 1.4214138, %v2362_v50  ;;  %v2350_v39 = vadd.f32 -1.4531521, %v2337_v22  ;;  %v2473_v22 = vmul.f32 %v2460_v11, %v2278_v63 }
 0x982   :  { %v2380_v14 = vadd.f32 1.4214138, %v2367_v30  ;;  %v2355_v34 = vadd.f32 -1.4531521, %v2342_v9  ;;  %v8963_v49 = vpop.eup %7012  ;;  %7028 = vpow2.f32 %v2483_v40 }
 0x983   :  { %v2388_v45 = vmul.f32 %v8934_v13, %v2375_v12  ;;  %v2363_v10 = vmul.f32 %v8952_v8, %v2350_v39  ;;  %v2338_v55 = vmul.f32 1.0614054, %v8963_v49  ;;  %v7015_v12 = vpop.eup %7014  ;;  %7030 = vpow2.f32 %v2491_v47 }
 0x984   :  { %v2393_v2 = vmul.f32 %v8939_v60, %v2380_v14  ;;  %v2368_v30 = vmul.f32 %v8955_v20, %v2355_v34  ;;  %v2457_v14 = vsub.f32 0.0, %v8937_v31  ;;  %v2493_v21 = vmul.f32 1.442695, %v2473_v22 }
 0x985   :  { %v2401_v50 = vadd.f32 -0.28449672, %v2388_v45  ;;  %v2376_v37 = vadd.f32 1.4214138, %v2363_v10  ;;  %v2351_v48 = vadd.f32 -1.4531521, %v2338_v55  ;;  %7032 = vpow2.f32 %v2485_v25 }
 0x986   :  { %v2381_v46 = vadd.f32 1.4214138, %v2368_v30  ;;  %v8975_v39 = vpop.eup %7016  ;;  %v2406_v52 = vadd.f32 -0.28449672, %v2393_v2  ;;  %v2470_v40 = vmul.f32 %v2457_v14, %v8937_v31 }
 0x987   :  { %v2414_v9 = vmul.f32 %v8934_v13, %v2401_v50  ;;  %v2389_v57 = vmul.f32 %v8952_v8, %v2376_v37  ;;  %v2364_v34 = vmul.f32 %v8963_v49, %v2351_v48  ;;  %v8978_v63 = vpop.eup %7018  ;;  %v2339_v11 = vmul.f32 1.0614054, %v8975_v39 }
 0x988   :  { %v2394_v32 = vmul.f32 %v8955_v20, %v2381_v46  ;;  %v2343_v50 = vmul.f32 1.0614054, %v8978_v63  ;;  %v2419_v47 = vmul.f32 %v8939_v60, %v2406_v52 }
 0x989   :  { %v2427_v45 = vadd.f32 0.2548296, %v2414_v9  ;;  %v2402_v24 = vadd.f32 -0.28449672, %v2389_v57  ;;  %v2377_v15 = vadd.f32 1.4214138, %v2364_v34 }
 0x98a   :  { %v2352_v30 = vadd.f32 -1.4531521, %v2339_v11  ;;  %v8987_v55 = vpop.eup %7020  ;;  %v2356_v9 = vadd.f32 -1.4531521, %v2343_v50  ;;  %v2461_v57 = vsub.f32 0.0, %v8950_v26 }
 0x98b   :  { %v2440_v10 = vmul.f32 %v8934_v13, %v2427_v45  ;;  %v2415_v2 = vmul.f32 %v8952_v8, %v2402_v24  ;;  %v2390_v22 = vmul.f32 %v8963_v49, %v2377_v15  ;;  %v2340_v48 = vmul.f32 1.0614054, %v8987_v55  ;;  %v7023_v14 = vpop.eup %7022 }
 0x98c   :  { %v2365_v46 = vmul.f32 %v8975_v39, %v2352_v30  ;;  %v2407_v31 = vadd.f32 -0.28449672, %v2394_v32  ;;  %v2487_v11 = vmul.f32 1.442695, %v2470_v40  ;;  %v2432_v15 = vadd.f32 0.2548296, %v2419_v47 }
 0x98d   :  { %v2505_v37 = vmul.f32 %v7015_v12, %v2440_v10  ;;  %v2428_v13 = vadd.f32 0.2548296, %v2415_v2  ;;  %v2403_v25 = vadd.f32 -0.28449672, %v2390_v22  ;;  %v2369_v12 = vmul.f32 %v8978_v63, %v2356_v9 }
 0x98e   :  { %v2378_v34 = vadd.f32 1.4214138, %v2365_v46  ;;  %v2353_v24 = vadd.f32 -1.4531521, %v2340_v48  ;;  %v2474_v32 = vmul.f32 %v2461_v57, %v8950_v26  ;;  %7034 = vpow2.f32 %v2487_v11 }
 0x98f   :  { %v2518_v45 = vsub.f32 1.0, %v2505_v37  ;;  %v2441_v52 = vmul.f32 %v8952_v8, %v2428_v13  ;;  %v2416_v50 = vmul.f32 %v8963_v49, %v2403_v25  ;;  %v2382_v2 = vadd.f32 1.4214138, %v2369_v12  ;;  %v7025_v13 = vpop.eup %7024 }
 0x990   :  { %v2391_v37 = vmul.f32 %v8975_v39, %v2378_v34  ;;  %v2366_v6 = vmul.f32 %v8987_v55, %v2353_v24  ;;  %v2420_v8 = vmul.f32 %v8955_v20, %v2407_v31  ;;  %v9005_v25 = vpop.eup %7026  ;;  %v2445_v12 = vmul.f32 %v8939_v60, %v2432_v15 }
 0x991   :  { %v2544_v10 = vsub.f32 0.0, %v2518_v45  ;;  %v2506_v30 = vmul.f32 %v7023_v14, %v2441_v52  ;;  %v2429_v9 = vadd.f32 0.2548296, %v2416_v50  ;;  %v2395_v40 = vmul.f32 %v8978_v63, %v2382_v2  ;;  %v7029_v53 = vpop.eup %7028 }
 0x992   :  { %v2404_v48 = vadd.f32 -0.28449672, %v2391_v37  ;;  %7036 = vpow2.f32 %v2493_v21  ;;  %v2379_v52 = vadd.f32 1.4214138, %v2366_v6  ;;  %v7031_v34 = vpop.eup %7030  ;;  %v2433_v24 = vadd.f32 0.2548296, %v2420_v8 }
 0x993   :  { %v2557_v22 = vsel %vm2531_vm8, %v2518_v45, %v2544_v10  ;;  %v2519_v46 = vsub.f32 1.0, %v2506_v30  ;;  %v2442_v14 = vmul.f32 %v8963_v49, %v2429_v9  ;;  %v2408_v26 = vadd.f32 -0.28449672, %v2395_v40 }
 0x994   :  { %v2570_v47 = vadd.f32 1.0, %v2557_v22  ;;  %v2417_v31 = vmul.f32 %v8975_v39, %v2404_v48  ;;  %v2495_v50 = vmul.f32 1.442695, %v2474_v32  ;;  %v2392_v49 = vmul.f32 %v8987_v55, %v2379_v52 }
 0x995   :  { %v2545_v45 = vsub.f32 0.0, %v2519_v46  ;;  %v2507_v10 = vmul.f32 %v7029_v53, %v2442_v14  ;;  %v2421_v11 = vmul.f32 %v8978_v63, %v2408_v26  ;;  %v2344_v21 = vmul.f32 1.0614054, %v9005_v25 }
 0x996   :  { %v2583_v57 = vmul.f32 %v2570_v47, %v8970_v51  ;;  %v2430_v15 = vadd.f32 0.2548296, %v2417_v31  ;;  %v7033_v51 = vpop.eup %7032  ;;  %v2246_v2 = vmul.f32 0.5, %v8886_v5  ;;  %v2510_v37 = vmul.f32 %v7025_v13, %v2445_v12 }
 0x997   :  { %v2558_v60 = vsel %vm2532_vm10, %v2519_v46, %v2545_v45  ;;  %v2520_v30 = vsub.f32 1.0, %v2507_v10  ;;  %v2405_v32 = vadd.f32 -0.28449672, %v2392_v49  ;;  %v2357_v22 = vadd.f32 -1.4531521, %v2344_v21 }
 0x998   :  { %6404 = vmatmul.mubr.msk.f32.vlgmr.msra.gmra.mxu0 %vm2596_vm9, %v2583_v57  ;;  %v2571_v6 = vadd.f32 1.0, %v2558_v60  ;;  %v2443_v54 = vmul.f32 %v8975_v39, %v2430_v15  ;;  %v2446_v9 = vmul.f32 %v8955_v20, %v2433_v24  ;;  %v2434_v47 = vadd.f32 0.2548296, %v2421_v11 }
 0x999   :  { %6406 = vmatprep.mubr.msk.f32.mxu0 %vm7306_vm1, %v10774_v1  ;;  %v2546_v40 = vsub.f32 0.0, %v2520_v30  ;;  %v2418_v5 = vmul.f32 %v8987_v55, %v2405_v32  ;;  %v2370_v48 = vmul.f32 %v9005_v25, %v2357_v22  ;;  %7038 = vpow2.f32 %v2495_v50 }
 0x99a   :  { %v2584_v8 = vmul.f32 %v2571_v6, %v2246_v2  ;;  %v2508_v46 = vmul.f32 %v7033_v51, %v2443_v54  ;;  %v2523_v20 = vsub.f32 1.0, %v2510_v37  ;;  %v2511_v53 = vmul.f32 %v7031_v34, %v2446_v9 }
 0x99b   :  { %v2559_v14 = vsel %vm2533_vm11, %v2520_v30, %v2546_v40  ;;  %v2431_v12 = vadd.f32 0.2548296, %v2418_v5  ;;  %v2383_v26 = vadd.f32 1.4214138, %v2370_v48  ;;  %v2447_v57 = vmul.f32 %v8978_v63, %v2434_v47  ;;  %v7035_v24 = vpop.eup %7034 }
 0x99c   :  { %6407 = vmatmul.mubr.msk.f32.gmra.mxu0 %vm2596_vm9, %v2584_v8  ;;  %v2572_v13 = vadd.f32 1.0, %v2559_v14  ;;  %v2521_v39 = vsub.f32 1.0, %v2508_v46  ;;  %v2549_v15 = vsub.f32 0.0, %v2523_v20  ;;  %v2248_v34 = vmul.f32 0.5, %v8911_v41 }
 0x99d   :  { %6409 = vmatprep.mubr.msk.f32.mxu0 %vm7306_vm1, %v10774_v1  ;;  %v2444_v52 = vmul.f32 %v8987_v55, %v2431_v12  ;;  %v2396_v36 = vmul.f32 %v9005_v25, %v2383_v26  ;;  %v2524_v63 = vsub.f32 1.0, %v2511_v53  ;;  %v2249_v47 = vmul.f32 0.5, %v8924_v29 }
 0x99e   :  { %v2585_v45 = vmul.f32 %v2572_v13, %v2247_v3  ;;  %v2547_v31 = vsub.f32 0.0, %v2521_v39  ;;  %v2562_v41 = vsel %vm2536_vm13, %v2523_v20, %v2549_v15  ;;  %v2250_v29 = vmul.f32 0.5, %v8873_v59 }
 0x99f   :  { %v7037_v10 = vpop.eup %7036  ;;  %v2509_v50 = vmul.f32 %v7035_v24, %v2444_v52  ;;  %v2409_v60 = vadd.f32 -0.28449672, %v2396_v36  ;;  %v2550_v22 = vsub.f32 0.0, %v2524_v63  ;;  %v2575_v14 = vadd.f32 1.0, %v2562_v41 }
 0x9a0   :  { %v2560_v11 = vsel %vm2534_vm12, %v2521_v39, %v2547_v31  ;;  %6410 = vmatmul.mubr.msk.f32.gmra.mxu0 %vm2596_vm9, %v2585_v45  ;;  %v2512_v55 = vmul.f32 %v7037_v10, %v2447_v57  ;;  %vm2539_vm8 = vcmp.ge.f32.partialorder %v8943_v17, 0.0 }
 0x9a1   :  { %v2573_v49 = vadd.f32 1.0, %v2560_v11  ;;  %6412 = vmatprep.mubr.msk.f32.mxu0 %vm7306_vm1, %v10774_v1  ;;  %v2522_v21 = vsub.f32 1.0, %v2509_v50  ;;  %v2422_v51 = vmul.f32 %v9005_v25, %v2409_v60  ;;  %v2563_v12 = vsel %vm2537_vm15, %v2524_v63, %v2550_v22 }
 0x9a2   :  { %v2525_v8 = vsub.f32 1.0, %v2512_v55  ;;  %v2588_v52 = vmul.f32 %v2575_v14, %v2250_v29  ;;  %v2576_v36 = vadd.f32 1.0, %v2563_v12  ;;  %v2251_v50 = vmul.f32 0.5, %v8889_v27 }
 0x9a3   :  { %v2586_v42 = vmul.f32 %v2573_v49, %v2248_v34  ;;  %v2548_v30 = vsub.f32 0.0, %v2522_v21  ;;  %v2435_v37 = vadd.f32 0.2548296, %v2422_v51  ;;  %v2253_v22 = vmul.f32 0.5, %v8928_v58 }
 0x9a4   :  { %v2226_v2 = vpop.f32.mrf.mxu1  ;;  %v2551_v26 = vsub.f32 0.0, %v2525_v8  ;;  %v2589_v19 = vmul.f32 %v2576_v36, %v2251_v50 }
 0x9a5   :  { %v9039_v6 = vadd.f32 %v8867_v43, %v2226_v2  ;;  %6413 = vmatmul.mubr.msk.f32.gmra.mxu0 %vm2596_vm9, %v2586_v42  ;;  %v2561_v9 = vsel %vm2535_vm14, %v2522_v21, %v2548_v30  ;;  %v2448_v40 = vmul.f32 %v9005_v25, %v2435_v37  ;;  %v2252_v2 = vmul.f32 0.5, %v8914_v0 }
 0x9a6   :  { %v6385_v54 = vpop.f32.mrf.mxu1  ;;  %6415 = vmatprep.mubr.msk.f32.mxu0 %vm7306_vm1, %v10774_v1  ;;  %v7039_v56 = vpop.eup %7038  ;;  %v2574_v46 = vadd.f32 1.0, %v2561_v9  ;;  %v2564_v10 = vsel %vm2538_vm2, %v2525_v8, %v2551_v26 }
 0x9a7   :  { %v9045_v32 = vmul.f32 0.70710677, %v9039_v6  ;;  %v2513_v48 = vmul.f32 %v7039_v56, %v2448_v40  ;;  %v2577_v63 = vadd.f32 1.0, %v2564_v10 }
 0x9a8   :  { %v2587_v13 = vmul.f32 %v2574_v46, %v2249_v47 }
 0x9a9   :  { %v2280_v5 = vand.u32 2147483647, %v9045_v32  ;;  %v2231_v61 = vpop.f32.mrf.mxu1  ;;  %v2526_v20 = vsub.f32 1.0, %v2513_v48  ;;  %v2590_v17 = vmul.f32 %v2577_v63, %v2252_v2  ;;  %vm2540_vm10 = vcmp.ge.f32.partialorder %v9045_v32, 0.0 }
 0x9aa   :  { %v9053_v3 = vadd.f32 %v8867_v43, %v2231_v61  ;;  %6416 = vmatmul.mubr.msk.f32.gmra.mxu0 %vm2596_vm9, %v2587_v13 }
 0x9ab   :  { %v2293_v39 = vmul.f32 0.3275911, %v2280_v5  ;;  %v6388_v25 = vpop.f32.mrf.mxu1  ;;  %6418 = vmatprep.mubr.msk.f32.mxu0 %vm7306_vm1, %v10774_v1  ;;  %v2552_v59 = vsub.f32 0.0, %v2526_v20  ;;  %v2462_v42 = vsub.f32 0.0, %v2280_v5 }
 0x9ac   :  { %v9057_v53 = vmul.f32 0.70710677, %v9053_v3 }
 0x9ad   :  { %v2306_v57 = vadd.f32 1.0, %v2293_v39  ;;  %v2236_v45 = vpop.f32.mrf.mxu1  ;;  %v2565_v21 = vsel %vm2539_vm8, %v2526_v20, %v2552_v59  ;;  %v2475_v8 = vmul.f32 %v2462_v42, %v2280_v5 }
 0x9ae   :  { %v2281_v31 = vand.u32 2147483647, %v9057_v53  ;;  %v9065_v35 = vadd.f32 %v8867_v43, %v2236_v45  ;;  %6419 = vmatmul.mubr.msk.f32.gmra.mxu0 %vm2596_vm9, %v2588_v52  ;;  %v2578_v37 = vadd.f32 1.0, %v2565_v21  ;;  %vm2541_vm11 = vcmp.ge.f32.partialorder %v9057_v53, 0.0 }
 0x9af   :  { %7040 = vrcp.f32 %v2306_v57  ;;  %v6391_v24 = vpop.f32.mrf.mxu1  ;;  %6421 = vmatprep.mubr.msk.f32.mxu0 %vm7306_vm1, %v10774_v1  ;;  %v2497_v46 = vmul.f32 1.442695, %v2475_v8 }
 0x9b0   :  { %v2294_v11 = vmul.f32 0.3275911, %v2281_v31  ;;  %v9071_v60 = vmul.f32 0.70710677, %v9065_v35  ;;  %v2463_v0 = vsub.f32 0.0, %v2281_v31  ;;  %v2591_v40 = vmul.f32 %v2578_v37, %v2253_v22 }
 0x9b1   :  { %v2241_v15 = vpop.f32.mrf.mxu1 }
 0x9b2   :  { %v2307_v34 = vadd.f32 1.0, %v2294_v11  ;;  %v9076_v49 = vadd.f32 %v8867_v43, %v2241_v15  ;;  %v2282_v55 = vand.u32 2147483647, %v9071_v60  ;;  %6422 = vmatmul.mubr.msk.f32.gmra.mxu0 %vm2596_vm9, %v2589_v19  ;;  %v2476_v61 = vmul.f32 %v2463_v0, %v2281_v31 }
 0x9b3   :  { %v6394_v27 = vpop.f32.mrf.mxu1  ;;  %6424 = vmatprep.mubr.msk.f32.mxu0 %vm7306_vm1, %v10774_v1  ;;  %vm2542_vm12 = vcmp.ge.f32.partialorder %v9071_v60, 0.0 }
 0x9b4   :  { %7042 = vrcp.f32 %v2307_v34  ;;  %v9081_v51 = vmul.f32 0.70710677, %v9076_v49  ;;  %v2295_v30 = vmul.f32 0.3275911, %v2282_v55  ;;  %v2464_v5 = vsub.f32 0.0, %v2282_v55 }
 0x9b5   :  { %v2499_v39 = vmul.f32 1.442695, %v2476_v61 }
 0x9b6   :  { %v2283_v43 = vand.u32 2147483647, %v9081_v51  ;;  %v2308_v54 = vadd.f32 1.0, %v2295_v30  ;;  %6425 = vmatmul.mubr.msk.f32.gmra.mxu0 %vm2596_vm9, %v2590_v17  ;;  %v2477_v26 = vmul.f32 %v2464_v5, %v2282_v55  ;;  %vm2543_vm13 = vcmp.ge.f32.partialorder %v9081_v51, 0.0 }
 0x9b7   :  { %6427 = vmatprep.mubr.msk.f32.mxu0 %vm7306_vm1, %v10774_v1 }
 0x9b8   :  { %v2296_v41 = vmul.f32 0.3275911, %v2283_v43  ;;  %7044 = vrcp.f32 %v2308_v54  ;;  %v2465_v25 = vsub.f32 0.0, %v2283_v43  ;;  %v2501_v24 = vmul.f32 1.442695, %v2477_v26 }
 0x9ba   :  { %v2309_v9 = vadd.f32 1.0, %v2296_v41  ;;  %6428 = vmatmul.mubr.msk.f32.gmra.mxu0 %vm2596_vm9, %v2591_v40  ;;  %v2478_v52 = vmul.f32 %v2465_v25, %v2283_v43 }
 0x9bb   :  { %6430 = vmatprep.mubr.msk.f32.mxu0 %vm7306_vm1, %v10774_v1 }
 0x9bc   :  { %v7041_v56 = vpop.eup %7040  ;;  %7046 = vrcp.f32 %v2309_v9  ;;  %v2503_v19 = vmul.f32 1.442695, %v2478_v52 }
 0x9bd   :  { %v2345_v47 = vmul.f32 1.0614054, %v7041_v56  ;;  %7048 = vpow2.f32 %v2497_v46 }
 0x9be   :  { %7050 = vpow2.f32 %v2499_v39 }
 0x9bf   :  { %v2358_v58 = vadd.f32 -1.4531521, %v2345_v47  ;;  %7052 = vpow2.f32 %v2501_v24  ;;  %v2255_v24 = vmul.f32 0.5, %v9053_v3 }
 0x9c0   :  { %7054 = vpow2.f32 %v2503_v19 }
 0x9c1   :  { %v7043_v48 = vpop.eup %7042  ;;  %v2371_v14 = vmul.f32 %v7041_v56, %v2358_v58 }
 0x9c2   :  { %v2346_v13 = vmul.f32 1.0614054, %v7043_v48 }
 0x9c3   :  { %v2384_v12 = vadd.f32 1.4214138, %v2371_v14 }
 0x9c4   :  { %v2359_v20 = vadd.f32 -1.4531521, %v2346_v13  ;;  %v2254_v13 = vmul.f32 0.5, %v9039_v6 }
 0x9c5   :  { %v2397_v29 = vmul.f32 %v7041_v56, %v2384_v12  ;;  %v7045_v57 = vpop.eup %7044 }
 0x9c6   :  { %v2372_v45 = vmul.f32 %v7043_v48, %v2359_v20  ;;  %v2347_v36 = vmul.f32 1.0614054, %v7045_v57 }
 0x9c7   :  { %v2410_v31 = vadd.f32 -0.28449672, %v2397_v29 }
 0x9c8   :  { %v2385_v10 = vadd.f32 1.4214138, %v2372_v45  ;;  %v2360_v50 = vadd.f32 -1.4531521, %v2347_v36 }
 0x9c9   :  { %v7047_v59 = vpop.eup %7046  ;;  %v2423_v11 = vmul.f32 %v7041_v56, %v2410_v31 }
 0x9ca   :  { %v2398_v15 = vmul.f32 %v7043_v48, %v2385_v10  ;;  %v2348_v34 = vmul.f32 1.0614054, %v7047_v59  ;;  %v2373_v27 = vmul.f32 %v7045_v57, %v2360_v50  ;;  %v7049_v30 = vpop.eup %7048 }
 0x9cb   :  { %v2436_v63 = vadd.f32 0.2548296, %v2423_v11  ;;  %v7051_v47 = vpop.eup %7050 }
 0x9cc   :  { %v2411_v55 = vadd.f32 -0.28449672, %v2398_v15  ;;  %v2361_v21 = vadd.f32 -1.4531521, %v2348_v34  ;;  %v2386_v42 = vadd.f32 1.4214138, %v2373_v27  ;;  %v7053_v20 = vpop.eup %7052 }
 0x9cd   :  { %v2449_v2 = vmul.f32 %v7041_v56, %v2436_v63  ;;  %v7055_v32 = vpop.eup %7054  ;;  %v2257_v27 = vmul.f32 0.5, %v9076_v49 }
 0x9ce   :  { %v2424_v17 = vmul.f32 %v7043_v48, %v2411_v55  ;;  %v2374_v43 = vmul.f32 %v7047_v59, %v2361_v21  ;;  %v2399_v54 = vmul.f32 %v7045_v57, %v2386_v42 }
 0x9cf   :  { %v2514_v37 = vmul.f32 %v7049_v30, %v2449_v2 }
 0x9d0   :  { %v2437_v41 = vadd.f32 0.2548296, %v2424_v17  ;;  %v2387_v22 = vadd.f32 1.4214138, %v2374_v43  ;;  %v2412_v0 = vadd.f32 -0.28449672, %v2399_v54 }
 0x9d1   :  { %v2527_v8 = vsub.f32 1.0, %v2514_v37 }
 0x9d2   :  { %v2450_v9 = vmul.f32 %v7043_v48, %v2437_v41  ;;  %v2400_v40 = vmul.f32 %v7047_v59, %v2387_v22  ;;  %v2425_v61 = vmul.f32 %v7045_v57, %v2412_v0 }
 0x9d3   :  { %v2553_v46 = vsub.f32 0.0, %v2527_v8 }
 0x9d4   :  { %v2515_v58 = vmul.f32 %v7051_v47, %v2450_v9  ;;  %v2413_v56 = vadd.f32 -0.28449672, %v2400_v40  ;;  %v2438_v14 = vadd.f32 0.2548296, %v2425_v61 }
 0x9d5   :  { %v2566_v5 = vsel %vm2540_vm10, %v2527_v8, %v2553_v46 }
 0x9d6   :  { %v2579_v39 = vadd.f32 1.0, %v2566_v5  ;;  %v2528_v25 = vsub.f32 1.0, %v2515_v58  ;;  %v2426_v12 = vmul.f32 %v7047_v59, %v2413_v56  ;;  %v2451_v26 = vmul.f32 %v7045_v57, %v2438_v14 }
 0x9d8   :  { %v2592_v29 = vmul.f32 %v2579_v39, %v2254_v13  ;;  %v2554_v45 = vsub.f32 0.0, %v2528_v25  ;;  %v2439_v48 = vadd.f32 0.2548296, %v2426_v12  ;;  %v2516_v52 = vmul.f32 %v7053_v20, %v2451_v26 }
 0x9da   :  { %v2567_v31 = vsel %vm2541_vm11, %v2528_v25, %v2554_v45  ;;  %v2452_v36 = vmul.f32 %v7047_v59, %v2439_v48  ;;  %6431 = vmatmul.mubr.msk.f32.gmra.mxu0 %vm2596_vm9, %v2592_v29  ;;  %v2529_v6 = vsub.f32 1.0, %v2516_v52  ;;  %v2256_v59 = vmul.f32 0.5, %v9065_v35  ;;  %v9118_v35 = vld [vmem:[%s10753_s4 + $0x3] ss:$0 sm:$0xff] }
 0x9db   :  { %v2580_v10 = vadd.f32 1.0, %v2567_v31  ;;  %6433 = vmatprep.mubr.msk.f32.mxu0 %vm7306_vm1, %v10774_v1  ;;  %vm5396_vm11 = vcmask 1041408  }
 0x9dc   :  { %v2517_v57 = vmul.f32 %v7055_v32, %v2452_v36  ;;  %v2555_v50 = vsub.f32 0.0, %v2529_v6 }
 0x9dd   :  { %v2593_v11 = vmul.f32 %v2580_v10, %v2255_v24 }
 0x9de   :  { %v2530_v15 = vsub.f32 1.0, %v2517_v57  ;;  %v2568_v53 = vsel %vm2542_vm12, %v2529_v6, %v2555_v50 }
 0x9df   :  { %6434 = vmatmul.mubr.msk.f32.gmra.mxu0 %vm2596_vm9, %v2593_v11  ;;  %v2581_v34 = vadd.f32 1.0, %v2568_v53 }
 0x9e0   :  { %v2556_v19 = vsub.f32 0.0, %v2530_v15  ;;  %6436 = vmatprep.mubr.msk.f32.mxu0 %vm7306_vm1, %v10774_v1 }
 0x9e1   :  { %v2594_v3 = vmul.f32 %v2581_v34, %v2256_v59 }
 0x9e2   :  { %v2569_v63 = vsel %vm2543_vm13, %v2530_v15, %v2556_v19  ;;  %v10783_v15 = vld [vmem:[#allocation5_spill] sm:$0xff] }
 0x9e3   :  { %v2582_v55 = vadd.f32 1.0, %v2569_v63  ;;  %6437 = vmatmul.mubr.msk.f32.gmra.mxu0 %vm2596_vm9, %v2594_v3 }
 0x9e4   :  { %6439 = vmatprep.mubr.msk.f32.mxu0 %vm7306_vm1, %v10774_v1 }
 0x9e5   :  { %v2595_v60 = vmul.f32 %v2582_v55, %v2257_v27 }
 0x9e7   :  { %6440 = vmatmul.mubr.msk.f32.gmra.mxu0 %vm2596_vm9, %v2595_v60 }
 0x9e8   :  { %6509 = vmatprep.mubr.msk.f32.mxu0 %vm7306_vm1, %v10774_v1 }
 0xa58   :  { %v2702_v51 = vpop.f32.mrf.mxu0 }
 0xa59   :  { %v2766_v49 = vadd.f32 %v2702_v51, %v8590_v16  ;;  %v10787_v51 = vld [vmem:[#allocation7_spill] sm:$0xff] }
 0xa5a   :  { %v6405_v21 = vpop.f32.mrf.mxu0 }
 0xa5b   :  { %v9122_v2 = vadd.f32 %v9118_v35, %v2766_v49 }
 0xa5c   :  { %v2707_v42 = vpop.f32.mrf.mxu0 }
 0xa5d   :  { %v2808_v30 = vsel %vm252_vm3, %v9122_v2, 0.0  ;;  %v2767_v17 = vadd.f32 %v2707_v42, %v8597_v7 }
 0xa5e   :  { %2809 = vadd.xlane.f32.xlu1 %v2808_v30  ;;  %v6408_v43 = vpop.f32.mrf.mxu0 }
 0xa5f   :  { %v9128_v37 = vadd.f32 %v9118_v35, %v2767_v17 }
 0xa60   :  { %v2712_v54 = vpop.f32.mrf.mxu0 }
 0xa61   :  { %v2811_v41 = vsel %vm252_vm3, %v9128_v37, 0.0  ;;  %v2768_v16 = vadd.f32 %v2712_v54, %v8604_v18 }
 0xa62   :  { %2812 = vadd.xlane.f32.xlu0 %v2811_v41  ;;  %v6411_v22 = vpop.f32.mrf.mxu0 }
 0xa63   :  { %v9134_v8 = vadd.f32 %v9118_v35, %v2768_v16 }
 0xa65   :  { %v2717_v0 = vpop.f32.mrf.mxu0  ;;  %v2814_v7 = vsel %vm252_vm3, %v9134_v8, 0.0 }
 0xa66   :  { %v2769_v9 = vadd.f32 %v2717_v0, %v8611_v23  ;;  %2815 = vadd.xlane.f32.xlu1 %v2814_v7 }
 0xa67   :  { %v6414_v40 = vpop.f32.mrf.mxu0 }
 0xa68   :  { %v9140_v47 = vadd.f32 %v9118_v35, %v2769_v9 }
 0xa6a   :  { %v2817_v46 = vsel %vm252_vm3, %v9140_v47, 0.0  ;;  %v2722_v18 = vpop.f32.mrf.mxu0 }
 0xa6b   :  { %2818 = vadd.xlane.f32.xlu0 %v2817_v46  ;;  %v2770_v61 = vadd.f32 %v2722_v18, %v8618_v28 }
 0xa6c   :  { %v6417_v58 = vpop.f32.mrf.mxu0 }
 0xa6d   :  { %v9146_v56 = vadd.f32 %v9118_v35, %v2770_v61 }
 0xa6e   :  { %v2727_v5 = vpop.f32.mrf.mxu0 }
 0xa6f   :  { %v2771_v14 = vadd.f32 %v2727_v5, %v8625_v33  ;;  %v2820_v23 = vsel %vm252_vm3, %v9146_v56, 0.0 }
 0xa70   :  { %2821 = vadd.xlane.f32.xlu1 %v2820_v23  ;;  %v6420_v13 = vpop.f32.mrf.mxu0 }
 0xa71   :  { %v9152_v39 = vadd.f32 %v9118_v35, %v2771_v14 }
 0xa72   :  { %v2732_v25 = vpop.f32.mrf.mxu0 }
 0xa73   :  { %v2772_v12 = vadd.f32 %v2732_v25, %v8632_v38  ;;  %v2823_v28 = vsel %vm252_vm3, %v9152_v39, 0.0 }
 0xa74   :  { %2824 = vadd.xlane.f32.xlu0 %v2823_v28  ;;  %v6423_v26 = vpop.f32.mrf.mxu0 }
 0xa75   :  { %v9158_v20 = vadd.f32 %v9118_v35, %v2772_v12 }
 0xa76   :  { %v2737_v33 = vpop.f32.mrf.mxu0 }
 0xa77   :  { %v2773_v29 = vadd.f32 %v2737_v33, %v8639_v44  ;;  %v2826_v45 = vsel %vm252_vm3, %v9158_v20, 0.0 }
 0xa78   :  { %2827 = vadd.xlane.f32.xlu1 %v2826_v45  ;;  %v6426_v48 = vpop.f32.mrf.mxu0 }
 0xa79   :  { %v9164_v52 = vadd.f32 %v9118_v35, %v2773_v29 }
 0xa7a   :  { %v2742_v38 = vpop.f32.mrf.mxu0 }
 0xa7b   :  { %v2774_v31 = vadd.f32 %v2742_v38, %v8646_v4  ;;  %v2829_v36 = vsel %vm252_vm3, %v9164_v52, 0.0 }
 0xa7c   :  { %2830 = vadd.xlane.f32.xlu0 %v2829_v36  ;;  %v6429_v32 = vpop.f32.mrf.mxu0 }
 0xa7d   :  { %v9170_v24 = vadd.f32 %v9118_v35, %v2774_v31 }
 0xa7f   :  { %v2832_v44 = vsel %vm252_vm3, %v9170_v24, 0.0 }
 0xa80   :  { %2833 = vadd.xlane.f32.xlu1 %v2832_v44 }
 0xa9a   :  { %v2747_v10 = vpop.f32.mrf.mxu0 }
 0xa9b   :  { %v2775_v6 = vadd.f32 %v2747_v10, %v8653_v62  ;;  %v10785_v62 = vld [vmem:[#allocation6_spill] sm:$0xff] }
 0xa9c   :  { %v6432_v57 = vpop.f32.mrf.mxu0 }
 0xa9d   :  { %v9176_v11 = vadd.f32 %v9118_v35, %v2775_v6 }
 0xa9f   :  { %10782 = vst [vmem:[#allocation8_spill] sm:$0xff] %v9176_v11  ;;  %v2752_v4 = vpop.f32.mrf.mxu0  ;;  %v2835_v50 = vsel %vm252_vm3, %v9176_v11, 0.0 }
 0xaa0   :  { %v2776_v53 = vadd.f32 %v2752_v4, %v10783_v15  ;;  %2836 = vadd.xlane.f32.xlu0 %v2835_v50 }
 0xaa1   :  { %v6435_v59 = vpop.f32.mrf.mxu0 }
 0xaa2   :  { %v9182_v34 = vadd.f32 %v9118_v35, %v2776_v53 }
 0xaa3   :  { %v2757_v19 = vpop.f32.mrf.mxu0 }
 0xaa4   :  { %10784 = vst [vmem:[#allocation5_spill] sm:$0xff] %v9182_v34  ;;  %v2838_v3 = vsel %vm252_vm3, %v9182_v34, 0.0  ;;  %v2777_v63 = vadd.f32 %v2757_v19, %v10785_v62 }
 0xaa5   :  { %2839 = vadd.xlane.f32.xlu1 %v2838_v3  ;;  %v6438_v27 = vpop.f32.mrf.mxu0 }
 0xaa6   :  { %v9188_v55 = vadd.f32 %v9118_v35, %v2777_v63 }
 0xaa7   :  { %v2762_v60 = vpop.f32.mrf.mxu0 }
 0xaa8   :  { %10786 = vst [vmem:[#allocation6_spill] sm:$0xff] %v9188_v55  ;;  %v2778_v49 = vadd.f32 %v2762_v60, %v10787_v51  ;;  %v2841_v21 = vsel %vm252_vm3, %v9188_v55, 0.0  ;;  %v5564_v51 = vld [vmem:[%s10752_s3 + $0x30] sm:$0xff] }
 0xaa9   :  { %2842 = vadd.xlane.f32.xlu0 %v2841_v21  ;;  %v6441_v42 = vpop.f32.mrf.mxu0  ;;  %6443 = vmatpush3.msra.mxu1 %v5564_v51 }
 0xaaa   :  { %v9194_v30 = vadd.f32 %v9118_v35, %v2778_v49  ;;  %6548 = vmatprep.subr.mxu1 %v10774_v1  ;;  %v9259_v49 = vld [vmem:[%s10753_s4 + $0x8] ss:$0 sm:$0xff] }
 0xaac   :  { %10788 = vst [vmem:[#allocation7_spill] sm:$0xff] %v9194_v30  ;;  %v2844_v17 = vsel %vm289_vm4, %v9194_v30, 0.0 }
 0xaad   :  { %2845 = vadd.xlane.f32.xlu1 %v2844_v17 }
 0xae7   :  { %v2810_v43 = vpop.xlane.xlu1 %2809 }
 0xae8   :  { %v2847_v54 = vmul.f32 0.125, %v2810_v43 }
 0xaea   :  { %v9199_v41 = vsub.f32 %v9122_v2, %v2847_v54 }
 0xaeb   :  { %v2813_v16 = vpop.xlane.xlu0 %2812 }
 0xaec   :  { %v2873_v22 = vmul.f32 %v9199_v41, %v9199_v41  ;;  %v2848_v0 = vmul.f32 0.125, %v2813_v16 }
 0xaee   :  { %v2886_v7 = vsel %vm252_vm3, %v2873_v22, 0.0  ;;  %v9205_v9 = vsub.f32 %v9128_v37, %v2848_v0 }
 0xaef   :  { %2887 = vadd.xlane.f32.xlu0 %v2886_v7  ;;  %v2816_v35 = vpop.xlane.xlu1 %2815 }
 0xaf0   :  { %v2874_v40 = vmul.f32 %v9205_v9, %v9205_v9  ;;  %v2849_v46 = vmul.f32 0.125, %v2816_v35 }
 0xaf2   :  { %v2889_v18 = vsel %vm252_vm3, %v2874_v40, 0.0  ;;  %v9211_v61 = vsub.f32 %v9134_v8, %v2849_v46 }
 0xaf3   :  { %2890 = vadd.xlane.f32.xlu1 %v2889_v18 }
 0xaf4   :  { %v2819_v58 = vpop.xlane.xlu0 %2818  ;;  %v2875_v5 = vmul.f32 %v9211_v61, %v9211_v61 }
 0xaf5   :  { %v2850_v14 = vmul.f32 0.125, %v2819_v58 }
 0xaf6   :  { %v2892_v23 = vsel %vm252_vm3, %v2875_v5, 0.0 }
 0xaf7   :  { %v9217_v13 = vsub.f32 %v9140_v47, %v2850_v14  ;;  %2893 = vadd.xlane.f32.xlu0 %v2892_v23 }
 0xaf9   :  { %v2876_v25 = vmul.f32 %v9217_v13, %v9217_v13  ;;  %v2822_v12 = vpop.xlane.xlu1 %2821 }
 0xafa   :  { %v2851_v28 = vmul.f32 0.125, %v2822_v12 }
 0xafb   :  { %v2895_v26 = vsel %vm252_vm3, %v2876_v25, 0.0 }
 0xafc   :  { %2896 = vadd.xlane.f32.xlu1 %v2895_v26  ;;  %v9223_v33 = vsub.f32 %v9146_v56, %v2851_v28 }
 0xafd   :  { %v2825_v29 = vpop.xlane.xlu0 %2824 }
 0xafe   :  { %v2852_v45 = vmul.f32 0.125, %v2825_v29  ;;  %v2877_v48 = vmul.f32 %v9223_v33, %v9223_v33 }
 0xb00   :  { %v9228_v38 = vsub.f32 %v9152_v39, %v2852_v45  ;;  %v2898_v31 = vsel %vm252_vm3, %v2877_v48, 0.0 }
 0xb01   :  { %v2828_v36 = vpop.xlane.xlu1 %2827  ;;  %2899 = vadd.xlane.f32.xlu0 %v2898_v31 }
 0xb02   :  { %v2853_v32 = vmul.f32 0.125, %v2828_v36  ;;  %v2878_v44 = vmul.f32 %v9228_v38, %v9228_v38 }
 0xb04   :  { %v9234_v10 = vsub.f32 %v9158_v20, %v2853_v32  ;;  %v2901_v6 = vsel %vm252_vm3, %v2878_v44, 0.0 }
 0xb05   :  { %v2831_v57 = vpop.xlane.xlu0 %2830  ;;  %2902 = vadd.xlane.f32.xlu1 %v2901_v6 }
 0xb06   :  { %v2854_v4 = vmul.f32 0.125, %v2831_v57  ;;  %v2879_v50 = vmul.f32 %v9234_v10, %v9234_v10 }
 0xb08   :  { %v9240_v15 = vsub.f32 %v9164_v52, %v2854_v4  ;;  %v2904_v53 = vsel %vm252_vm3, %v2879_v50, 0.0 }
 0xb09   :  { %v2834_v59 = vpop.xlane.xlu1 %2833  ;;  %2905 = vadd.xlane.f32.xlu0 %v2904_v53 }
 0xb0a   :  { %v2855_v19 = vmul.f32 0.125, %v2834_v59  ;;  %v2880_v3 = vmul.f32 %v9240_v15, %v9240_v15 }
 0xb0c   :  { %v9246_v62 = vsub.f32 %v9170_v24, %v2855_v19  ;;  %v2907_v63 = vsel %vm252_vm3, %v2880_v3, 0.0 }
 0xb0d   :  { %2908 = vadd.xlane.f32.xlu1 %v2907_v63 }
 0xb0e   :  { %v2881_v27 = vmul.f32 %v9246_v62, %v9246_v62 }
 0xb10   :  { %v2910_v60 = vsel %vm252_vm3, %v2881_v27, 0.0 }
 0xb11   :  { %2911 = vadd.xlane.f32.xlu0 %v2910_v60 }
 0xb1e   :  { %2995 = vrot.lane.b32.xlu1 %v9259_v49, %s7307_s0 }
 0xb29   :  { %v2837_v21 = vpop.xlane.xlu0 %2836 }
 0xb2a   :  { %v2856_v42 = vmul.f32 0.125, %v2837_v21 }
 0xb2c   :  { %v9264_v17 = vsub.f32 %v9176_v11, %v2856_v42 }
 0xb2e   :  { %v2840_v43 = vpop.xlane.xlu1 %2839  ;;  %v2882_v54 = vmul.f32 %v9264_v17, %v9264_v17 }
 0xb2f   :  { %v2857_v16 = vmul.f32 0.125, %v2840_v43 }
 0xb30   :  { %v2913_v22 = vsel %vm252_vm3, %v2882_v54, 0.0 }
 0xb31   :  { %v9270_v0 = vsub.f32 %v9182_v34, %v2857_v16  ;;  %2914 = vadd.xlane.f32.xlu0 %v2913_v22 }
 0xb32   :  { %v2843_v7 = vpop.xlane.xlu0 %2842 }
 0xb33   :  { %v2883_v35 = vmul.f32 %v9270_v0, %v9270_v0  ;;  %v2858_v40 = vmul.f32 0.125, %v2843_v7 }
 0xb35   :  { %v2916_v46 = vsel %vm252_vm3, %v2883_v35, 0.0  ;;  %v9276_v18 = vsub.f32 %v9188_v55, %v2858_v40 }
 0xb36   :  { %2917 = vadd.xlane.f32.xlu0 %v2916_v46  ;;  %v2846_v58 = vpop.xlane.xlu1 %2845 }
 0xb37   :  { %v2859_v5 = vmul.f32 0.125, %v2846_v58  ;;  %v2884_v14 = vmul.f32 %v9276_v18, %v9276_v18 }
 0xb39   :  { %v9281_v23 = vsub.f32 %v9194_v30, %v2859_v5  ;;  %v2919_v25 = vsel %vm252_vm3, %v2884_v14, 0.0 }
 0xb3a   :  { %2920 = vadd.xlane.f32.xlu0 %v2919_v25 }
 0xb3b   :  { %v2885_v12 = vmul.f32 %v9281_v23, %v9281_v23 }
 0xb3d   :  { %v2922_v28 = vsel %vm289_vm4, %v2885_v12, 0.0 }
 0xb3e   :  { %2923 = vadd.xlane.f32.xlu0 %v2922_v28 }
 0xb78   :  { %v2888_v26 = vpop.xlane.xlu0 %2887 }
 0xb79   :  { %v2925_v29 = vmul.f32 0.125, %v2888_v26 }
 0xb7b   :  { %v2938_v48 = vadd.f32 1e-05, %v2925_v29 }
 0xb7c   :  { %v2891_v45 = vpop.xlane.xlu1 %2890 }
 0xb7d   :  { %v2926_v31 = vmul.f32 0.125, %v2891_v45  ;;  %7056 = vrsqrt.f32 %v2938_v48 }
 0xb7f   :  { %v2939_v44 = vadd.f32 1e-05, %v2926_v31 }
 0xb80   :  { %v2894_v36 = vpop.xlane.xlu0 %2893 }
 0xb81   :  { %v2927_v6 = vmul.f32 0.125, %v2894_v36  ;;  %7058 = vrsqrt.f32 %v2939_v44 }
 0xb83   :  { %v2940_v4 = vadd.f32 1e-05, %v2927_v6 }
 0xb85   :  { %v2897_v32 = vpop.xlane.xlu1 %2896  ;;  %7060 = vrsqrt.f32 %v2940_v4 }
 0xb86   :  { %v2928_v57 = vmul.f32 0.125, %v2897_v32 }
 0xb88   :  { %v2941_v53 = vadd.f32 1e-05, %v2928_v57 }
 0xb8a   :  { %v2900_v50 = vpop.xlane.xlu0 %2899  ;;  %7062 = vrsqrt.f32 %v2941_v53  ;;  %v7057_v27 = vpop.eup %7056 }
 0xb8b   :  { %v2929_v59 = vmul.f32 0.125, %v2900_v50  ;;  %v2964_v42 = vmul.f32 %v7057_v27, %v9199_v41 }
 0xb8d   :  { %v2942_v3 = vadd.f32 1e-05, %v2929_v59  ;;  %v2981_v7 = vmul.f32 %v9259_v49, %v2964_v42 }
 0xb8e   :  { %v2903_v19 = vpop.xlane.xlu1 %2902  ;;  %v7059_v43 = vpop.eup %7058 }
 0xb8f   :  { %v2930_v63 = vmul.f32 0.125, %v2903_v19  ;;  %7064 = vrsqrt.f32 %v2942_v3  ;;  %v2965_v35 = vmul.f32 %v7059_v43, %v9205_v9 }
 0xb91   :  { %v2943_v51 = vadd.f32 1e-05, %v2930_v63  ;;  %v2982_v41 = vmul.f32 %v9259_v49, %v2965_v35 }
 0xb92   :  { %v2906_v60 = vpop.xlane.xlu0 %2905  ;;  %v7061_v40 = vpop.eup %7060 }
 0xb93   :  { %v2931_v21 = vmul.f32 0.125, %v2906_v60  ;;  %7066 = vrsqrt.f32 %v2943_v51  ;;  %v2966_v28 = vmul.f32 %v7061_v40, %v9211_v61 }
 0xb95   :  { %v2944_v16 = vadd.f32 1e-05, %v2931_v21  ;;  %v2983_v48 = vmul.f32 %v9259_v49, %v2966_v28 }
 0xb96   :  { %v2909_v54 = vpop.xlane.xlu1 %2908 }
 0xb97   :  { %v2932_v22 = vmul.f32 0.125, %v2909_v54  ;;  %7068 = vrsqrt.f32 %v2944_v16  ;;  %v7063_v12 = vpop.eup %7062 }
 0xb98   :  { %v2967_v29 = vmul.f32 %v7063_v12, %v9217_v13 }
 0xb99   :  { %v2945_v5 = vadd.f32 1e-05, %v2932_v22 }
 0xb9a   :  { %v2912_v46 = vpop.xlane.xlu0 %2911  ;;  %v9290_v58 = vpop.permute.xlu1 %2995  ;;  %v2984_v31 = vmul.f32 %v9259_v49, %v2967_v29 }
 0xb9b   :  { %v2933_v14 = vmul.f32 0.125, %v2912_v46  ;;  %v2998_v25 = vadd.f32 %v9290_v58, %v2981_v7  ;;  %7070 = vrsqrt.f32 %v2945_v5  ;;  %v2999_v26 = vadd.f32 %v9290_v58, %v2982_v41 }
 0xb9c   :  { %v7065_v45 = vpop.eup %7064  ;;  %v3000_v61 = vadd.f32 %v9290_v58, %v2983_v48  ;;  %v3001_v13 = vadd.f32 %v9290_v58, %v2984_v31 }
 0xb9d   :  { %6445 = vmatmul.mubr.msk.f32.vlgmr.msra.gmra.mxu1 %vm252_vm3, %v2998_v25  ;;  %v2946_v9 = vadd.f32 1e-05, %v2933_v14  ;;  %v2968_v36 = vmul.f32 %v7065_v45, %v9223_v33 }
 0xb9e   :  { %6447 = vmatprep.mubr.msk.f32.mxu1 %vm7306_vm1, %v10774_v1 }
 0xb9f   :  { %7072 = vrsqrt.f32 %v2946_v9  ;;  %v2985_v44 = vmul.f32 %v9259_v49, %v2968_v36 }
 0xba0   :  { %v7067_v32 = vpop.eup %7066 }
 0xba1   :  { %6448 = vmatmul.mubr.msk.f32.gmra.mxu1 %vm252_vm3, %v2999_v26  ;;  %v2969_v6 = vmul.f32 %v7067_v32, %v9228_v38  ;;  %v3002_v33 = vadd.f32 %v9290_v58, %v2985_v44 }
 0xba2   :  { %6450 = vmatprep.mubr.msk.f32.mxu1 %vm7306_vm1, %v10774_v1 }
 0xba3   :  { %v2986_v4 = vmul.f32 %v9259_v49, %v2969_v6 }
 0xba4   :  { %v7069_v57 = vpop.eup %7068 }
 0xba5   :  { %6451 = vmatmul.mubr.msk.f32.gmra.mxu1 %vm252_vm3, %v3000_v61  ;;  %v2970_v50 = vmul.f32 %v7069_v57, %v9234_v10  ;;  %v3003_v38 = vadd.f32 %v9290_v58, %v2986_v4 }
 0xba6   :  { %6453 = vmatprep.mubr.msk.f32.mxu1 %vm7306_vm1, %v10774_v1 }
 0xba7   :  { %v2987_v59 = vmul.f32 %v9259_v49, %v2970_v50 }
 0xba8   :  { %v7071_v53 = vpop.eup %7070 }
 0xba9   :  { %6454 = vmatmul.mubr.msk.f32.gmra.mxu1 %vm252_vm3, %v3001_v13  ;;  %v2971_v19 = vmul.f32 %v7071_v53, %v9240_v15  ;;  %v3004_v10 = vadd.f32 %v9290_v58, %v2987_v59 }
 0xbaa   :  { %6456 = vmatprep.mubr.msk.f32.mxu1 %vm7306_vm1, %v10774_v1 }
 0xbab   :  { %v2988_v63 = vmul.f32 %v9259_v49, %v2971_v19 }
 0xbac   :  { %v7073_v3 = vpop.eup %7072 }
 0xbad   :  { %6457 = vmatmul.mubr.msk.f32.gmra.mxu1 %vm252_vm3, %v3002_v33  ;;  %v2972_v27 = vmul.f32 %v7073_v3, %v9246_v62  ;;  %v3005_v60 = vadd.f32 %v9290_v58, %v2988_v63 }
 0xbae   :  { %6459 = vmatprep.mubr.msk.f32.mxu1 %vm7306_vm1, %v10774_v1 }
 0xbaf   :  { %v2989_v51 = vmul.f32 %v9259_v49, %v2972_v27 }
 0xbb1   :  { %6460 = vmatmul.mubr.msk.f32.gmra.mxu1 %vm252_vm3, %v3003_v38  ;;  %v3006_v43 = vadd.f32 %v9290_v58, %v2989_v51 }
 0xbb2   :  { %6462 = vmatprep.mubr.msk.f32.mxu1 %vm7306_vm1, %v10774_v1 }
 0xbb5   :  { %6463 = vmatmul.mubr.msk.f32.gmra.mxu1 %vm252_vm3, %v3004_v10 }
 0xbb6   :  { %6465 = vmatprep.mubr.msk.f32.mxu1 %vm7306_vm1, %v10774_v1 }
 0xbb9   :  { %6466 = vmatmul.mubr.msk.f32.gmra.mxu1 %vm252_vm3, %v3005_v60 }
 0xbba   :  { %v2915_v15 = vpop.xlane.xlu0 %2914  ;;  %6468 = vmatprep.mubr.msk.f32.mxu1 %vm7306_vm1, %v10774_v1 }
 0xbbb   :  { %v2934_v21 = vmul.f32 0.125, %v2915_v15 }
 0xbbd   :  { %v2947_v42 = vadd.f32 1e-05, %v2934_v21  ;;  %6469 = vmatmul.mubr.msk.f32.gmra.mxu1 %vm252_vm3, %v3006_v43  ;;  %v5571_v21 = vld [vmem:[%s10753_s4 + $0x9] ss:$0 sm:$0xff] }
 0xbbe   :  { %6471 = vmatprep.mubr.msk.f32.mxu1 %vm7306_vm1, %v10774_v1 }
 0xbbf   :  { %7074 = vrsqrt.f32 %v2947_v42  ;;  %v2918_v62 = vpop.xlane.xlu0 %2917 }
 0xbc0   :  { %v2935_v54 = vmul.f32 0.125, %v2918_v62 }
 0xbc2   :  { %v2948_v16 = vadd.f32 1e-05, %v2935_v54 }
 0xbc3   :  { %v2921_v22 = vpop.xlane.xlu0 %2920 }
 0xbc4   :  { %7076 = vrsqrt.f32 %v2948_v16  ;;  %v2936_v7 = vmul.f32 0.125, %v2921_v22 }
 0xbc6   :  { %v2949_v35 = vadd.f32 1e-05, %v2936_v7 }
 0xbc7   :  { %v2924_v40 = vpop.xlane.xlu0 %2923 }
 0xbc8   :  { %7078 = vrsqrt.f32 %v2949_v35  ;;  %v2937_v46 = vmul.f32 0.125, %v2924_v40 }
 0xbca   :  { %v2950_v5 = vadd.f32 1e-05, %v2937_v46 }
 0xbcc   :  { %v7075_v14 = vpop.eup %7074  ;;  %7080 = vrsqrt.f32 %v2950_v5 }
 0xbcd   :  { %v2973_v25 = vmul.f32 %v7075_v14, %v9264_v17 }
 0xbcf   :  { %v2990_v12 = vmul.f32 %v9259_v49, %v2973_v25 }
 0xbd1   :  { %v7077_v41 = vpop.eup %7076  ;;  %v3007_v28 = vadd.f32 %v9290_v58, %v2990_v12 }
 0xbd2   :  { %v2974_v9 = vmul.f32 %v7077_v41, %v9270_v0 }
 0xbd3   :  { %6472 = vmatmul.mubr.msk.f32.gmra.mxu1 %vm252_vm3, %v3007_v28 }
 0xbd4   :  { %6474 = vmatprep.mubr.msk.f32.mxu1 %vm7306_vm1, %v10774_v1  ;;  %v2991_v26 = vmul.f32 %v9259_v49, %v2974_v9 }
 0xbd5   :  { %v7079_v29 = vpop.eup %7078 }
 0xbd6   :  { %v3008_v45 = vadd.f32 %v9290_v58, %v2991_v26  ;;  %v2975_v48 = vmul.f32 %v7079_v29, %v9276_v18 }
 0xbd8   :  { %6475 = vmatmul.mubr.msk.f32.gmra.mxu1 %vm252_vm3, %v3008_v45  ;;  %v2992_v17 = vmul.f32 %v9259_v49, %v2975_v48 }
 0xbd9   :  { %6477 = vmatprep.mubr.msk.f32.mxu1 %vm7306_vm1, %v10774_v1  ;;  %v7081_v0 = vpop.eup %7080 }
 0xbda   :  { %v3009_v61 = vadd.f32 %v9290_v58, %v2992_v17  ;;  %v2976_v31 = vmul.f32 %v7081_v0, %v9281_v23 }
 0xbdc   :  { %6478 = vmatmul.mubr.msk.f32.gmra.mxu1 %vm252_vm3, %v3009_v61  ;;  %v2993_v36 = vmul.f32 %v9259_v49, %v2976_v31 }
 0xbdd   :  { %6480 = vmatprep.mubr.msk.f32.mxu1 %vm7306_vm1, %v10774_v1 }
 0xbde   :  { %v3010_v18 = vadd.f32 %v9290_v58, %v2993_v36 }
 0xbe0   :  { %6481 = vmatmul.mubr.msk.f32.gmra.mxu1 %vm252_vm3, %v3010_v18 }
 0xbe1   :  { %6574 = vmatprep.mubr.msk.f32.mxu1 %vm7306_vm1, %v10774_v1 }
 0xc5d   :  { %v3120_v32 = vpop.f32.mrf.mxu1 }
 0xc5e   :  { %v9390_v46 = vadd.f32 %v5571_v21, %v3120_v32 }
 0xc5f   :  { %v6446_v13 = vpop.f32.mrf.mxu1 }
 0xc61   :  { %v3125_v44 = vpop.f32.mrf.mxu1 }
 0xc62   :  { %v9428_v9 = vadd.f32 %v5571_v21, %v3125_v44 }
 0xc63   :  { %v6449_v6 = vpop.f32.mrf.mxu1 }
 0xc65   :  { %v3130_v57 = vpop.f32.mrf.mxu1 }
 0xc66   :  { %v9382_v35 = vadd.f32 %v5571_v21, %v3130_v57 }
 0xc67   :  { %v6452_v23 = vpop.f32.mrf.mxu1 }
 0xc69   :  { %v3135_v33 = vpop.f32.mrf.mxu1 }
 0xc6a   :  { %v9422_v28 = vadd.f32 %v5571_v21, %v3135_v33 }
 0xc6b   :  { %v6455_v4 = vpop.f32.mrf.mxu1 }
 0xc6d   :  { %v3140_v50 = vpop.f32.mrf.mxu1 }
 0xc6e   :  { %v9374_v16 = vadd.f32 %v5571_v21, %v3140_v50 }
 0xc6f   :  { %v6458_v49 = vpop.f32.mrf.mxu1 }
 0xc71   :  { %v3145_v53 = vpop.f32.mrf.mxu1 }
 0xc72   :  { %v9416_v41 = vadd.f32 %v5571_v21, %v3145_v53 }
 0xc73   :  { %v6461_v38 = vpop.f32.mrf.mxu1 }
 0xc75   :  { %v3150_v59 = vpop.f32.mrf.mxu1 }
 0xc76   :  { %v9410_v12 = vadd.f32 %v5571_v21, %v3150_v59 }
 0xc77   :  { %v6464_v19 = vpop.f32.mrf.mxu1 }
 0xc79   :  { %v3155_v58 = vpop.f32.mrf.mxu1 }
 0xc7a   :  { %v9404_v25 = vadd.f32 %v5571_v21, %v3155_v58 }
 0xc7b   :  { %v6467_v3 = vpop.f32.mrf.mxu1 }
 0xc7d   :  { %v3160_v10 = vpop.f32.mrf.mxu1 }
 0xc7e   :  { %v9398_v14 = vadd.f32 %v5571_v21, %v3160_v10 }
 0xc7f   :  { %v6470_v63 = vpop.f32.mrf.mxu1 }
 0xc93   :  { %v3165_v27 = vpop.f32.mrf.mxu1 }
 0xc94   :  { %v9392_v5 = vadd.f32 %v5571_v21, %v3165_v27 }
 0xc95   :  { %v6473_v60 = vpop.f32.mrf.mxu1 }
 0xc98   :  { %v3170_v15 = vpop.f32.mrf.mxu1 }
 0xc99   :  { %v9384_v40 = vadd.f32 %v5571_v21, %v3170_v15 }
 0xc9a   :  { %v6476_v51 = vpop.f32.mrf.mxu1 }
 0xc9c   :  { %v3175_v42 = vpop.f32.mrf.mxu1 }
 0xc9d   :  { %v9370_v43 = vadd.f32 %v5571_v21, %v3175_v42 }
 0xc9e   :  { %v6479_v62 = vpop.f32.mrf.mxu1 }
 0xc9f   :  { %3219 = vrot.lane.b32.xlu0 %v9370_v43, %s7307_s0 }
 0xca0   :  { %v3180_v54 = vpop.f32.mrf.mxu1 }
 0xca1   :  { %v9376_v22 = vadd.f32 %v5571_v21, %v3180_v54 }
 0xca2   :  { %v6482_v7 = vpop.f32.mrf.mxu1 }
 0xca3   :  { %3205 = vrot.lane.b32.xlu0 %v9374_v16, %s7307_s0  ;;  %3221 = vrot.lane.b32.xlu1 %v9376_v22, %s7307_s0 }
 0xca7   :  { %3201 = vrot.lane.b32.xlu0 %v9382_v35, %s7307_s0  ;;  %3217 = vrot.lane.b32.xlu1 %v9384_v40, %s7307_s0 }
 0xcab   :  { %3197 = vrot.lane.b32.xlu0 %v9390_v46, %s7307_s0  ;;  %3215 = vrot.lane.b32.xlu1 %v9392_v5, %s7307_s0 }
 0xcaf   :  { %3805 = vrot.lane.b32.xlu0 %v9370_v43, %s7308_s12  ;;  %3213 = vrot.lane.b32.xlu1 %v9398_v14, %s7307_s0 }
 0xcb3   :  { %3801 = vrot.lane.b32.xlu0 %v9392_v5, %s7308_s12  ;;  %3211 = vrot.lane.b32.xlu1 %v9404_v25, %s7307_s0 }
 0xcb7   :  { %3797 = vrot.lane.b32.xlu0 %v9404_v25, %s7308_s12  ;;  %3209 = vrot.lane.b32.xlu1 %v9410_v12, %s7307_s0 }
 0xcbb   :  { %3793 = vrot.lane.b32.xlu0 %v9416_v41, %s7308_s12  ;;  %3207 = vrot.lane.b32.xlu1 %v9416_v41, %s7307_s0 }
 0xcbf   :  { %3789 = vrot.lane.b32.xlu0 %v9422_v28, %s7308_s12  ;;  %3203 = vrot.lane.b32.xlu1 %v9422_v28, %s7307_s0 }
 0xcc3   :  { %3785 = vrot.lane.b32.xlu0 %v9428_v9, %s7308_s12  ;;  %3199 = vrot.lane.b32.xlu1 %v9428_v9, %s7307_s0 }
 0xcc7   :  { %3757 = vrot.lane.b32.xlu0 %v9390_v46, %s7309_s13  ;;  %3807 = vrot.lane.b32.xlu1 %v9376_v22, %s7308_s12 }
 0xccb   :  { %3761 = vrot.lane.b32.xlu0 %v9382_v35, %s7309_s13  ;;  %3803 = vrot.lane.b32.xlu1 %v9384_v40, %s7308_s12 }
 0xccf   :  { %3765 = vrot.lane.b32.xlu0 %v9374_v16, %s7309_s13  ;;  %3799 = vrot.lane.b32.xlu1 %v9398_v14, %s7308_s12 }
 0xcd3   :  { %3769 = vrot.lane.b32.xlu0 %v9410_v12, %s7309_s13  ;;  %3795 = vrot.lane.b32.xlu1 %v9410_v12, %s7308_s12 }
 0xcd7   :  { %3562 = vrot.lane.b32.xlu0 %v9404_v25, %s7310_s14  ;;  %3791 = vrot.lane.b32.xlu1 %v9374_v16, %s7308_s12 }
 0xcdb   :  { %3554 = vrot.lane.b32.xlu0 %v9422_v28, %s7310_s14  ;;  %3787 = vrot.lane.b32.xlu1 %v9382_v35, %s7308_s12 }
 0xcdf   :  { %3552 = vrot.lane.b32.xlu0 %v9382_v35, %s7310_s14  ;;  %3783 = vrot.lane.b32.xlu1 %v9390_v46, %s7308_s12 }
 0xce3   :  { %3550 = vrot.lane.b32.xlu0 %v9428_v9, %s7310_s14  ;;  %3759 = vrot.lane.b32.xlu1 %v9428_v9, %s7309_s13 }
 0xce7   :  { %4148 = vrot.lane.b32.xlu0 %v9404_v25, %s7311_s15  ;;  %3763 = vrot.lane.b32.xlu1 %v9422_v28, %s7309_s13 }
 0xceb   :  { %3572 = vrot.lane.b32.xlu0 %v9376_v22, %s7310_s14  ;;  %3767 = vrot.lane.b32.xlu1 %v9416_v41, %s7309_s13 }
 0xcef   :  { %4158 = vrot.lane.b32.xlu0 %v9376_v22, %s7311_s15  ;;  %3570 = vrot.lane.b32.xlu1 %v9370_v43, %s7310_s14 }
 0xcf3   :  { %3568 = vrot.lane.b32.xlu1 %v9384_v40, %s7310_s14 }
 0xcf7   :  { %3566 = vrot.lane.b32.xlu1 %v9392_v5, %s7310_s14 }
 0xcfb   :  { %3564 = vrot.lane.b32.xlu1 %v9398_v14, %s7310_s14 }
 0xcff   :  { %3560 = vrot.lane.b32.xlu1 %v9410_v12, %s7310_s14 }
 0xd03   :  { %3558 = vrot.lane.b32.xlu1 %v9416_v41, %s7310_s14 }
 0xd07   :  { %3556 = vrot.lane.b32.xlu1 %v9374_v16, %s7310_s14 }
 0xd0b   :  { %3548 = vrot.lane.b32.xlu1 %v9390_v46, %s7310_s14 }
 0xd0f   :  { %4156 = vrot.lane.b32.xlu1 %v9370_v43, %s7311_s15 }
 0xd11   :  { %v3220_v26 = vpop.permute.xlu0 %3219 }
 0xd13   :  { %4154 = vrot.lane.b32.xlu1 %v9384_v40, %s7311_s15 }
 0xd15   :  { %v3206_v29 = vpop.permute.xlu0 %3205  ;;  %v3222_v45 = vpop.permute.xlu1 %3221 }
 0xd16   :  { %6484 = vmatpush3.xpose.msk.msra.mxu0 %vm670_vm5, %v3222_v45 }
 0xd17   :  { %4152 = vrot.lane.b32.xlu1 %v9392_v5, %s7311_s15  ;;  %6485 = vmatprep.subr.mxu0 %v10774_v1 }
 0xd19   :  { %v3202_v48 = vpop.permute.xlu0 %3201  ;;  %v3218_v17 = vpop.permute.xlu1 %3217 }
 0xd1a   :  { %6486 = vmatpush3.xpose.msk.msra.mxu0 %vm670_vm5, %v3220_v26 }
 0xd1b   :  { %4150 = vrot.lane.b32.xlu1 %v9398_v14, %s7311_s15  ;;  %6487 = vmatprep.subr.mxu0 %v10774_v1 }
 0xd1d   :  { %v3198_v0 = vpop.permute.xlu0 %3197  ;;  %v3216_v61 = vpop.permute.xlu1 %3215 }
 0xd1e   :  { %6488 = vmatpush3.xpose.msk.msra.mxu0 %vm670_vm5, %v3218_v17 }
 0xd1f   :  { %4146 = vrot.lane.b32.xlu1 %v9410_v12, %s7311_s15  ;;  %6489 = vmatprep.subr.mxu0 %v10774_v1 }
 0xd21   :  { %v3806_v31 = vpop.permute.xlu0 %3805  ;;  %v3214_v36 = vpop.permute.xlu1 %3213 }
 0xd22   :  { %6490 = vmatpush3.xpose.msk.msra.mxu0 %vm670_vm5, %v3216_v61 }
 0xd23   :  { %4144 = vrot.lane.b32.xlu1 %v9416_v41, %s7311_s15  ;;  %6491 = vmatprep.subr.mxu0 %v10774_v1 }
 0xd25   :  { %v3802_v18 = vpop.permute.xlu0 %3801  ;;  %v3212_v32 = vpop.permute.xlu1 %3211 }
 0xd26   :  { %6492 = vmatpush3.xpose.msk.msra.mxu0 %vm670_vm5, %v3214_v36 }
 0xd27   :  { %6493 = vmatprep.subr.mxu0 %v10774_v1 }
 0xd29   :  { %v9514_v13 = vpop.permute.xlu0 %3797  ;;  %v3210_v44 = vpop.permute.xlu1 %3209 }
 0xd2a   :  { %6494 = vmatpush3.xpose.msk.msra.mxu0 %vm670_vm5, %v3212_v32 }
 0xd2b   :  { %6495 = vmatprep.subr.mxu0 %v10774_v1 }
 0xd2d   :  { %v9518_v6 = vpop.permute.xlu0 %3793  ;;  %v3208_v57 = vpop.permute.xlu1 %3207 }
 0xd2e   :  { %6496 = vmatpush3.xpose.msk.msra.mxu0 %vm670_vm5, %v3210_v44 }
 0xd2f   :  { %6497 = vmatprep.subr.mxu0 %v10774_v1 }
 0xd31   :  { %v9522_v23 = vpop.permute.xlu0 %3789  ;;  %v3204_v33 = vpop.permute.xlu1 %3203 }
 0xd32   :  { %6498 = vmatpush3.xpose.msk.msra.mxu0 %vm670_vm5, %v3208_v57  ;;  %v9709_v57 = vld [vmem:[%s10754_s5 + $0x8] sm:$0xff] }
 0xd33   :  { %6499 = vmatprep.subr.mxu0 %v10774_v1 }
 0xd35   :  { %v9526_v4 = vpop.permute.xlu0 %3785  ;;  %v3200_v50 = vpop.permute.xlu1 %3199 }
 0xd36   :  { %6500 = vmatpush3.xpose.msk.msra.mxu0 %vm670_vm5, %v3206_v29 }
 0xd37   :  { %6501 = vmatprep.subr.mxu0 %v10774_v1 }
 0xd39   :  { %v9530_v49 = vpop.permute.xlu0 %3757  ;;  %v3808_v53 = vpop.permute.xlu1 %3807 }
 0xd3a   :  { %6502 = vmatpush3.xpose.msk.msra.mxu0 %vm670_vm5, %v3204_v33 }
 0xd3b   :  { %6503 = vmatprep.subr.mxu0 %v10774_v1 }
 0xd3d   :  { %v9534_v38 = vpop.permute.xlu0 %3761  ;;  %v3804_v59 = vpop.permute.xlu1 %3803 }
 0xd3e   :  { %6504 = vmatpush3.xpose.msk.msra.mxu0 %vm670_vm5, %v3202_v48 }
 0xd3f   :  { %6505 = vmatprep.subr.mxu0 %v10774_v1 }
 0xd41   :  { %v9538_v19 = vpop.permute.xlu0 %3765  ;;  %v3800_v58 = vpop.permute.xlu1 %3799 }
 0xd42   :  { %6506 = vmatpush3.xpose.msk.msra.mxu0 %vm670_vm5, %v3200_v50 }
 0xd43   :  { %6507 = vmatprep.subr.mxu0 %v10774_v1 }
 0xd45   :  { %v9542_v3 = vpop.permute.xlu0 %3769  ;;  %v3796_v10 = vpop.permute.xlu1 %3795 }
 0xd46   :  { %6508 = vmatpush3.xpose.msk.msra.mxu0 %vm670_vm5, %v3198_v0 }
 0xd47   :  { %6613 = vmatprep.subr.mxu0 %v10774_v1 }
 0xd49   :  { %v9546_v63 = vpop.permute.xlu0 %3562  ;;  %6510 = vmatmul.mubr.msk.f32.vlgmr.msra.gmra.mxu0 %vm670_vm5, %v9390_v46  ;;  %v3792_v27 = vpop.permute.xlu1 %3791 }
 0xd4a   :  { %6614 = vmatpush3.xpose.msk.msra.mxu0 %vm670_vm5, %v3808_v53  ;;  %6512 = vmatprep.mubr.msk.f32.mxu0 %vm7306_vm1, %v10774_v1 }
 0xd4b   :  { %6615 = vmatprep.subr.mxu0 %v10774_v1 }
 0xd4d   :  { %v9554_v60 = vpop.permute.xlu0 %3554  ;;  %6513 = vmatmul.mubr.msk.f32.gmra.mxu0 %vm670_vm5, %v9428_v9  ;;  %v9558_v15 = vpop.permute.xlu1 %3787 }
 0xd4e   :  { %6616 = vmatpush3.xpose.msk.msra.mxu0 %vm670_vm5, %v3806_v31  ;;  %6515 = vmatprep.mubr.msk.f32.mxu0 %vm7306_vm1, %v10774_v1 }
 0xd4f   :  { %6617 = vmatprep.subr.mxu0 %v10774_v1 }
 0xd51   :  { %v9564_v51 = vpop.permute.xlu0 %3552  ;;  %6516 = vmatmul.mubr.msk.f32.gmra.mxu0 %vm670_vm5, %v9382_v35  ;;  %v9568_v21 = vpop.permute.xlu1 %3783 }
 0xd52   :  { %6618 = vmatpush3.xpose.msk.msra.mxu0 %vm670_vm5, %v3804_v59  ;;  %6518 = vmatprep.mubr.msk.f32.mxu0 %vm7306_vm1, %v10774_v1 }
 0xd53   :  { %6619 = vmatprep.subr.mxu0 %v10774_v1 }
 0xd55   :  { %v9574_v42 = vpop.permute.xlu0 %3550  ;;  %6519 = vmatmul.mubr.msk.f32.gmra.mxu0 %vm670_vm5, %v9422_v28  ;;  %v9578_v62 = vpop.permute.xlu1 %3759 }
 0xd56   :  { %6620 = vmatpush3.xpose.msk.msra.mxu0 %vm670_vm5, %v3802_v18  ;;  %6521 = vmatprep.mubr.msk.f32.mxu0 %vm7306_vm1, %v10774_v1  ;;  %v9699_v18 = vld [vmem:[%s10754_s5] sm:$0xff] }
 0xd57   :  { %6621 = vmatprep.subr.mxu0 %v10774_v1 }
 0xd59   :  { %v9584_v54 = vpop.permute.xlu0 %4148  ;;  %6522 = vmatmul.mubr.msk.f32.gmra.mxu0 %vm670_vm5, %v9374_v16  ;;  %v9588_v7 = vpop.permute.xlu1 %3763 }
 0xd5a   :  { %6622 = vmatpush3.xpose.msk.msra.mxu0 %vm670_vm5, %v3800_v58  ;;  %6524 = vmatprep.mubr.msk.f32.mxu0 %vm7306_vm1, %v10774_v1  ;;  %v9729_v58 = vld [vmem:[%s10754_s5 + $0x18] sm:$0xff] }
 0xd5b   :  { %6623 = vmatprep.subr.mxu0 %v10774_v1 }
 0xd5d   :  { %v3573_v26 = vpop.permute.xlu0 %3572  ;;  %6525 = vmatmul.mubr.msk.f32.gmra.mxu0 %vm670_vm5, %v9416_v41  ;;  %v9596_v29 = vpop.permute.xlu1 %3767 }
 0xd5e   :  { %6549 = vmatpush3.msk.msra.mxu1 %vm95_vm0, %v3573_v26  ;;  %6624 = vmatpush3.xpose.msk.msra.mxu0 %vm670_vm5, %v9514_v13 }
 0xd5f   :  { %6527 = vmatprep.mubr.msk.f32.mxu0 %vm7306_vm1, %v10774_v1  ;;  %6550 = vmatprep.subr.mxu1 %v10774_v1 }
 0xd60   :  { %6625 = vmatprep.subr.mxu0 %v10774_v1 }
 0xd61   :  { %6528 = vmatmul.mubr.msk.f32.gmra.mxu0 %vm670_vm5, %v9410_v12  ;;  %v3571_v45 = vpop.permute.xlu1 %3570 }
 0xd62   :  { %6551 = vmatpush3.msra.mxu1 %v3571_v45  ;;  %6626 = vmatpush3.xpose.msk.msra.mxu0 %vm670_vm5, %v3796_v10 }
 0xd63   :  { %6530 = vmatprep.mubr.msk.f32.mxu0 %vm7306_vm1, %v10774_v1  ;;  %6552 = vmatprep.subr.mxu1 %v10774_v1 }
 0xd64   :  { %6627 = vmatprep.subr.mxu0 %v10774_v1 }
 0xd65   :  { %6531 = vmatmul.mubr.msk.f32.gmra.mxu0 %vm670_vm5, %v9404_v25  ;;  %v3569_v41 = vpop.permute.xlu1 %3568 }
 0xd66   :  { %6553 = vmatpush3.msra.mxu1 %v3569_v41  ;;  %6628 = vmatpush3.xpose.msk.msra.mxu0 %vm670_vm5, %v9518_v6  ;;  %v9759_v41 = vld [vmem:[%s10754_s5 + $0x30] sm:$0xff] }
 0xd67   :  { %6533 = vmatprep.mubr.msk.f32.mxu0 %vm7306_vm1, %v10774_v1  ;;  %6554 = vmatprep.subr.mxu1 %v10774_v1 }
 0xd68   :  { %6629 = vmatprep.subr.mxu0 %v10774_v1 }
 0xd69   :  { %6534 = vmatmul.mubr.msk.f32.gmra.mxu0 %vm670_vm5, %v9398_v14  ;;  %v3567_v12 = vpop.permute.xlu1 %3566 }
 0xd6a   :  { %6555 = vmatpush3.msra.mxu1 %v3567_v12  ;;  %6630 = vmatpush3.xpose.msk.msra.mxu0 %vm670_vm5, %v3792_v27 }
 0xd6b   :  { %6536 = vmatprep.mubr.msk.f32.mxu0 %vm7306_vm1, %v10774_v1  ;;  %6556 = vmatprep.subr.mxu1 %v10774_v1 }
 0xd6c   :  { %6631 = vmatprep.subr.mxu0 %v10774_v1 }
 0xd6d   :  { %6537 = vmatmul.mubr.msk.f32.gmra.mxu0 %vm670_vm5, %v9392_v5  ;;  %v3565_v48 = vpop.permute.xlu1 %3564 }
 0xd6e   :  { %6557 = vmatpush3.msra.mxu1 %v3565_v48  ;;  %6632 = vmatpush3.xpose.msk.msra.mxu0 %vm670_vm5, %v9522_v23 }
 0xd6f   :  { %6558 = vmatprep.subr.mxu1 %v10774_v1  ;;  %6539 = vmatprep.mubr.msk.f32.mxu0 %vm7306_vm1, %v10774_v1 }
 0xd70   :  { %6559 = vmatpush3.msra.mxu1 %v9546_v63  ;;  %6633 = vmatprep.subr.mxu0 %v10774_v1 }
 0xd71   :  { %6540 = vmatmul.mubr.msk.f32.gmra.mxu0 %vm670_vm5, %v9384_v40  ;;  %6560 = vmatprep.subr.mxu1 %v10774_v1  ;;  %v3561_v17 = vpop.permute.xlu1 %3560 }
 0xd72   :  { %6561 = vmatpush3.msra.mxu1 %v3561_v17  ;;  %6634 = vmatpush3.xpose.msk.msra.mxu0 %vm670_vm5, %v9558_v15 }
 0xd73   :  { %6542 = vmatprep.mubr.msk.f32.mxu0 %vm7306_vm1, %v10774_v1  ;;  %6562 = vmatprep.subr.mxu1 %v10774_v1 }
 0xd74   :  { %6635 = vmatprep.subr.mxu0 %v10774_v1 }
 0xd75   :  { %6543 = vmatmul.mubr.msk.f32.gmra.mxu0 %vm670_vm5, %v9370_v43  ;;  %v3559_v0 = vpop.permute.xlu1 %3558 }
 0xd76   :  { %6563 = vmatpush3.msra.mxu1 %v3559_v0  ;;  %6636 = vmatpush3.xpose.msk.msra.mxu0 %vm670_vm5, %v9526_v4 }
 0xd77   :  { %6545 = vmatprep.mubr.msk.f32.mxu0 %vm7306_vm1, %v10774_v1  ;;  %6564 = vmatprep.subr.mxu1 %v10774_v1 }
 0xd78   :  { %6637 = vmatprep.subr.mxu0 %v10774_v1 }
 0xd79   :  { %6546 = vmatmul.mubr.msk.f32.gmra.mxu0 %vm670_vm5, %v9376_v22  ;;  %v3557_v61 = vpop.permute.xlu1 %3556 }
 0xd7a   :  { %6565 = vmatpush3.msra.mxu1 %v3557_v61  ;;  %6638 = vmatpush3.xpose.msk.msra.mxu0 %vm670_vm5, %v9568_v21  ;;  %v9769_v61 = vld [vmem:[%s10754_s5 + $0x38] sm:$0xff] }
 0xd7b   :  { %6566 = vmatprep.subr.mxu1 %v10774_v1  ;;  %6639 = vmatprep.mubr.msk.f32.mxu0 %vm7306_vm1, %v10774_v1 }
 0xd7c   :  { %6567 = vmatpush3.msra.mxu1 %v9554_v60  ;;  %6743 = vmatprep.subr.mxu0 %v10774_v1  ;;  %v9739_v60 = vld [vmem:[%s10754_s5 + $0x20] sm:$0xff] }
 0xd7d   :  { %6568 = vmatprep.subr.mxu1 %v10774_v1  ;;  %6640 = vmatmul.mubr.msk.f32.vlgmr.msra.gmra.mxu0 %vm670_vm5, %v9530_v49  ;;  %v3549_v31 = vpop.permute.xlu1 %3548  ;;  %v9719_v49 = vld [vmem:[%s10754_s5 + $0x10] sm:$0xff] }
 0xd7e   :  { %6569 = vmatpush3.msra.mxu1 %v9564_v51  ;;  %6642 = vmatprep.mubr.msk.f32.mxu0 %vm7306_vm1, %v10774_v1 }
 0xd7f   :  { %6570 = vmatprep.subr.mxu1 %v10774_v1 }
 0xd80   :  { %6571 = vmatpush3.msra.mxu1 %v9574_v42 }
 0xd81   :  { %6572 = vmatprep.subr.mxu1 %v10774_v1  ;;  %6643 = vmatmul.mubr.msk.f32.gmra.mxu0 %vm670_vm5, %v9578_v62  ;;  %v9749_v62 = vld [vmem:[%s10754_s5 + $0x28] sm:$0xff] }
 0xd82   :  { %6573 = vmatpush3.msra.mxu1 %v3549_v31  ;;  %6645 = vmatprep.mubr.msk.f32.mxu0 %vm7306_vm1, %v10774_v1 }
 0xd83   :  { %6678 = vmatprep.subr.mxu1 %v10774_v1 }
 0xd85   :  { %6646 = vmatmul.mubr.msk.f32.gmra.mxu0 %vm670_vm5, %v9534_v38 }
 0xd86   :  { %6648 = vmatprep.mubr.msk.f32.mxu0 %vm7306_vm1, %v10774_v1 }
 0xd89   :  { %6649 = vmatmul.mubr.msk.f32.gmra.mxu0 %vm670_vm5, %v9588_v7 }
 0xd8a   :  { %6651 = vmatprep.mubr.msk.f32.mxu0 %vm7306_vm1, %v10774_v1 }
 0xd8d   :  { %6652 = vmatmul.mubr.msk.f32.gmra.mxu0 %vm670_vm5, %v9538_v19 }
 0xd8e   :  { %6654 = vmatprep.mubr.msk.f32.mxu0 %vm7306_vm1, %v10774_v1 }
 0xd91   :  { %6655 = vmatmul.mubr.msk.f32.gmra.mxu0 %vm670_vm5, %v9596_v29 }
 0xd92   :  { %6657 = vmatprep.mubr.msk.f32.mxu0 %vm7306_vm1, %v10774_v1 }
 0xd95   :  { %6658 = vmatmul.mubr.msk.f32.gmra.mxu0 %vm670_vm5, %v9542_v3 }
 0xd96   :  { %6660 = vmatprep.mubr.msk.f32.mxu0 %vm7306_vm1, %v10774_v1 }
 0xe09   :  { %v3341_v36 = vpop.f32.mrf.mxu0 }
 0xe0a   :  { %v9702_v32 = vadd.f32 %v9699_v18, %v3341_v36 }
 0xe0b   :  { %v6511_v13 = vpop.f32.mrf.mxu0 }
 0xe0c   :  { %v3405_v44 = vsel %vm853_vm6, %v9702_v32, -inf }
 0xe0d   :  { %3406 = vmax.xlane.f32.xlu1 %v3405_v44  ;;  %v3346_v6 = vpop.f32.mrf.mxu0 }
 0xe0e   :  { %v9712_v23 = vadd.f32 %v9709_v57, %v3346_v6  ;;  %v9779_v6 = vld [vmem:[%s10754_s5 + $0x40] sm:$0xff] }
 0xe0f   :  { %v6514_v33 = vpop.f32.mrf.mxu0 }
 0xe10   :  { %v3408_v4 = vsel %vm853_vm6, %v9712_v23, -inf }
 0xe11   :  { %3409 = vmax.xlane.f32.xlu0 %v3408_v4  ;;  %v3351_v50 = vpop.f32.mrf.mxu0 }
 0xe12   :  { %v9722_v53 = vadd.f32 %v9719_v49, %v3351_v50 }
 0xe13   :  { %v6517_v38 = vpop.f32.mrf.mxu0 }
 0xe14   :  { %v3411_v59 = vsel %vm853_vm6, %v9722_v53, -inf }
 0xe15   :  { %3412 = vmax.xlane.f32.xlu0 %v3411_v59  ;;  %v3356_v19 = vpop.f32.mrf.mxu0  ;;  %v9789_v59 = vld [vmem:[%s10754_s5 + $0x48] sm:$0xff] }
 0xe16   :  { %v9732_v3 = vadd.f32 %v9729_v58, %v3356_v19 }
 0xe17   :  { %v6520_v10 = vpop.f32.mrf.mxu0 }
 0xe18   :  { %v3414_v63 = vsel %vm853_vm6, %v9732_v3, -inf }
 0xe19   :  { %3415 = vmax.xlane.f32.xlu0 %v3414_v63  ;;  %v3361_v27 = vpop.f32.mrf.mxu0 }
 0xe1a   :  { %v9742_v15 = vadd.f32 %v9739_v60, %v3361_v27 }
 0xe1b   :  { %v6523_v51 = vpop.f32.mrf.mxu0 }
 0xe1c   :  { %v3417_v21 = vsel %vm853_vm6, %v9742_v15, -inf  ;;  %v9799_v51 = vld [vmem:[%s10754_s5 + $0x50] sm:$0xff] }
 0xe1d   :  { %3418 = vmax.xlane.f32.xlu1 %v3417_v21  ;;  %v3366_v42 = vpop.f32.mrf.mxu0 }
 0xe1e   :  { %v9752_v7 = vadd.f32 %v9749_v62, %v3366_v42 }
 0xe1f   :  { %v6526_v26 = vpop.f32.mrf.mxu0 }
 0xe20   :  { %v3420_v29 = vsel %vm853_vm6, %v9752_v7, -inf }
 0xe21   :  { %3421 = vmax.xlane.f32.xlu0 %v3420_v29  ;;  %v3371_v45 = vpop.f32.mrf.mxu0 }
 0xe22   :  { %v9762_v12 = vadd.f32 %v9759_v41, %v3371_v45  ;;  %v9809_v45 = vld [vmem:[%s10754_s5 + $0x58] sm:$0xff] }
 0xe23   :  { %v6529_v48 = vpop.f32.mrf.mxu0 }
 0xe24   :  { %v3423_v17 = vsel %vm853_vm6, %v9762_v12, -inf }
 0xe25   :  { %3424 = vmax.xlane.f32.xlu1 %v3423_v17  ;;  %v3376_v0 = vpop.f32.mrf.mxu0 }
 0xe26   :  { %v9772_v31 = vadd.f32 %v9769_v61, %v3376_v0 }
 0xe27   :  { %v6532_v36 = vpop.f32.mrf.mxu0 }
 0xe28   :  { %v3426_v13 = vsel %vm853_vm6, %v9772_v31, -inf }
 0xe29   :  { %3427 = vmax.xlane.f32.xlu0 %v3426_v13  ;;  %v3381_v44 = vpop.f32.mrf.mxu0  ;;  %v9819_v13 = vld [vmem:[%s10754_s5 + $0x60] sm:$0xf] }
 0xe2a   :  { %v9782_v33 = vadd.f32 %v9779_v6, %v3381_v44 }
 0xe2b   :  { %v6535_v4 = vpop.f32.mrf.mxu0 }
 0xe2c   :  { %v3429_v50 = vsel %vm853_vm6, %v9782_v33, -inf }
 0xe2d   :  { %3430 = vmax.xlane.f32.xlu1 %v3429_v50  ;;  %v3386_v38 = vpop.f32.mrf.mxu0 }
 0xe2e   :  { %v9792_v19 = vadd.f32 %v9789_v59, %v3386_v38 }
 0xe2f   :  { %v6538_v10 = vpop.f32.mrf.mxu0 }
 0xe30   :  { %v3432_v63 = vsel %vm853_vm6, %v9792_v19, -inf }
 0xe31   :  { %3433 = vmax.xlane.f32.xlu0 %v3432_v63  ;;  %v3391_v27 = vpop.f32.mrf.mxu0 }
 0xe32   :  { %v9802_v21 = vadd.f32 %v9799_v51, %v3391_v27 }
 0xe33   :  { %v6541_v42 = vpop.f32.mrf.mxu0 }
 0xe34   :  { %v3435_v26 = vsel %vm853_vm6, %v9802_v21, -inf }
 0xe35   :  { %3436 = vmax.xlane.f32.xlu1 %v3435_v26  ;;  %v3396_v29 = vpop.f32.mrf.mxu0 }
 0xe36   :  { %v9812_v48 = vadd.f32 %v9809_v45, %v3396_v29 }
 0xe37   :  { %v6544_v17 = vpop.f32.mrf.mxu0 }
 0xe38   :  { %v3438_v0 = vsel %vm853_vm6, %v9812_v48, -inf }
 0xe39   :  { %3439 = vmax.xlane.f32.xlu0 %v3438_v0  ;;  %v3401_v36 = vpop.f32.mrf.mxu0 }
 0xe3a   :  { %v9822_v44 = vadd.f32 %v9819_v13, %v3401_v36 }
 0xe3b   :  { %v6547_v4 = vpop.f32.mrf.mxu0 }
 0xe3c   :  { %v3441_v50 = vsel %vm890_vm7, %v9822_v44, -inf }
 0xe3d   :  { %3442 = vmax.xlane.f32.xlu1 %v3441_v50  ;;  %v3927_v38 = vpop.f32.mrf.mxu0 }
 0xe3e   :  { %v9827_v10 = vadd.f32 %v9699_v18, %v3927_v38 }
 0xe3f   :  { %v6641_v63 = vpop.f32.mrf.mxu0 }
 0xe40   :  { %v3991_v27 = vsel %vm853_vm6, %v9827_v10, -inf }
 0xe41   :  { %3992 = vmax.xlane.f32.xlu0 %v3991_v27  ;;  %v3932_v42 = vpop.f32.mrf.mxu0 }
 0xe42   :  { %v9832_v26 = vadd.f32 %v9709_v57, %v3932_v42 }
 0xe43   :  { %v6644_v29 = vpop.f32.mrf.mxu0 }
 0xe44   :  { %v3994_v17 = vsel %vm853_vm6, %v9832_v26, -inf }
 0xe45   :  { %3995 = vmax.xlane.f32.xlu1 %v3994_v17  ;;  %v3937_v0 = vpop.f32.mrf.mxu0 }
 0xe46   :  { %v9837_v36 = vadd.f32 %v9719_v49, %v3937_v0 }
 0xe47   :  { %v6647_v18 = vpop.f32.mrf.mxu0 }
 0xe48   :  { %v3997_v4 = vsel %vm853_vm6, %v9837_v36, -inf }
 0xe49   :  { %3998 = vmax.xlane.f32.xlu0 %v3997_v4  ;;  %v3942_v50 = vpop.f32.mrf.mxu0 }
 0xe4a   :  { %v9842_v38 = vadd.f32 %v9729_v58, %v3942_v50  ;;  %v9854_v58 = vpop.permute.xlu1 %4156 }
 0xe4b   :  { %v6650_v57 = vpop.f32.mrf.mxu0 }
 0xe4c   :  { %v4000_v63 = vsel %vm853_vm6, %v9842_v38, -inf }
 0xe4d   :  { %4001 = vmax.xlane.f32.xlu1 %v4000_v63  ;;  %v3947_v27 = vpop.f32.mrf.mxu0 }
 0xe4e   :  { %v9856_v18 = vpop.permute.xlu1 %4154 }
 0xe4f   :  { %v6653_v42 = vpop.f32.mrf.mxu0 }
 0xe51   :  { %v3952_v29 = vpop.f32.mrf.mxu0 }
 0xe52   :  { %v9859_v4 = vadd.f32 %v9749_v62, %v3952_v29  ;;  %v9861_v50 = vpop.permute.xlu1 %4152 }
 0xe53   :  { %v6656_v17 = vpop.f32.mrf.mxu0 }
 0xe55   :  { %v3957_v49 = vpop.f32.mrf.mxu0 }
 0xe56   :  { %v9873_v57 = vpop.permute.xlu1 %4150 }
 0xe57   :  { %v6659_v0 = vpop.f32.mrf.mxu0 }
 0xe5a   :  { %v9877_v63 = vpop.permute.xlu1 %4146 }
 0xe5e   :  { %4142 = vrot.lane.b32.xlu1 %v9374_v16, %s7311_s15  ;;  %v9864_v16 = vadd.f32 %v9739_v60, %v3947_v27  ;;  %v9879_v60 = vpop.permute.xlu1 %4144  ;;  %v9881_v27 = vpop.permute.xlu0 %4158 }
 0xe5f   :  { %4140 = vrot.lane.b32.xlu0 %v9422_v28, %s7311_s15  ;;  %v4006_v28 = vsel %vm853_vm6, %v9859_v4, -inf }
 0xe63   :  { %4138 = vrot.lane.b32.xlu0 %v9382_v35, %s7311_s15  ;;  %v9869_v35 = vadd.f32 %v9759_v41, %v3957_v49 }
 0xe65   :  { %v4009_v62 = vsel %vm853_vm6, %v9869_v35, -inf }
 0xe67   :  { %4136 = vrot.lane.b32.xlu0 %v9428_v9, %s7311_s15  ;;  %v4003_v9 = vsel %vm853_vm6, %v9864_v16, -inf }
 0xe82   :  { %4007 = vmax.xlane.f32.xlu1 %v4006_v28 }
 0xe86   :  { %4004 = vmax.xlane.f32.xlu0 %v4003_v9 }
 0xe8a   :  { %4010 = vmax.xlane.f32.xlu0 %v4009_v62 }
 0xe96   :  { %v3407_v42 = vpop.xlane.xlu1 %3406 }
 0xe97   :  { %v3444_v41 = vsub.f32 %v9702_v32, %v3407_v42 }
 0xe99   :  { %v3457_v29 = vmul.f32 1.442695, %v3444_v41 }
 0xe9a   :  { %v3410_v17 = vpop.xlane.xlu0 %3409 }
 0xe9b   :  { %7082 = vpow2.f32 %v3457_v29  ;;  %v3445_v49 = vsub.f32 %v9712_v23, %v3410_v17 }
 0xe9d   :  { %v3459_v0 = vmul.f32 1.442695, %v3445_v49 }
 0xe9e   :  { %v3413_v28 = vpop.xlane.xlu0 %3412 }
 0xe9f   :  { %7084 = vpow2.f32 %v3459_v0  ;;  %v3446_v9 = vsub.f32 %v9722_v53, %v3413_v28 }
 0xea1   :  { %v3461_v62 = vmul.f32 1.442695, %v3446_v9 }
 0xea2   :  { %v3416_v30 = vpop.xlane.xlu0 %3415 }
 0xea3   :  { %7086 = vpow2.f32 %v3461_v62  ;;  %v3447_v55 = vsub.f32 %v9732_v3, %v3416_v30 }
 0xea5   :  { %v3463_v34 = vmul.f32 1.442695, %v3447_v55 }
 0xea6   :  { %v3419_v11 = vpop.xlane.xlu1 %3418 }
 0xea7   :  { %7088 = vpow2.f32 %v3463_v34  ;;  %v3448_v32 = vsub.f32 %v9742_v15, %v3419_v11 }
 0xea8   :  { %v9888_v42 = vpop.eup %7082 }
 0xea9   :  { %v3465_v41 = vmul.f32 1.442695, %v3448_v32  ;;  %v3483_v23 = vsel %vm853_vm6, %v9888_v42, 0.0 }
 0xeaa   :  { %v3422_v29 = vpop.xlane.xlu0 %3421  ;;  %3484 = vadd.xlane.f32.xlu1 %v3483_v23 }
 0xeab   :  { %7090 = vpow2.f32 %v3465_v41  ;;  %v3449_v53 = vsub.f32 %v9752_v7, %v3422_v29 }
 0xeac   :  { %v9893_v17 = vpop.eup %7084 }
 0xead   :  { %v3467_v49 = vmul.f32 1.442695, %v3449_v53  ;;  %v3486_v55 = vsel %vm853_vm6, %v9893_v17, 0.0 }
 0xeae   :  { %v3425_v34 = vpop.xlane.xlu1 %3424  ;;  %3487 = vadd.xlane.f32.xlu1 %v3486_v55 }
 0xeaf   :  { %7092 = vpow2.f32 %v3467_v49  ;;  %v3450_v11 = vsub.f32 %v9762_v12, %v3425_v34 }
 0xeb0   :  { %v9898_v30 = vpop.eup %7086 }
 0xeb1   :  { %v3469_v3 = vmul.f32 1.442695, %v3450_v11  ;;  %v3489_v15 = vsel %vm853_vm6, %v9898_v30, 0.0 }
 0xeb2   :  { %v3428_v0 = vpop.xlane.xlu0 %3427  ;;  %3490 = vadd.xlane.f32.xlu0 %v3489_v15 }
 0xeb3   :  { %7094 = vpow2.f32 %v3469_v3  ;;  %v3451_v7 = vsub.f32 %v9772_v31, %v3428_v0 }
 0xeb4   :  { %v9903_v28 = vpop.eup %7088 }
 0xeb5   :  { %v3471_v9 = vmul.f32 1.442695, %v3451_v7  ;;  %v3492_v62 = vsel %vm853_vm6, %v9903_v28, 0.0 }
 0xeb6   :  { %v3431_v32 = vpop.xlane.xlu1 %3430  ;;  %3493 = vadd.xlane.f32.xlu1 %v3492_v62 }
 0xeb7   :  { %7096 = vpow2.f32 %v3471_v9  ;;  %v3452_v12 = vsub.f32 %v9782_v33, %v3431_v32 }
 0xeb8   :  { %v9908_v41 = vpop.eup %7090 }
 0xeb9   :  { %v3473_v23 = vmul.f32 1.442695, %v3452_v12  ;;  %v3495_v29 = vsel %vm853_vm6, %v9908_v41, 0.0 }
 0xeba   :  { %v3434_v53 = vpop.xlane.xlu0 %3433  ;;  %3496 = vadd.xlane.f32.xlu0 %v3495_v29 }
 0xebb   :  { %7098 = vpow2.f32 %v3473_v23  ;;  %v3453_v31 = vsub.f32 %v9792_v19, %v3434_v53 }
 0xebc   :  { %v9913_v49 = vpop.eup %7092 }
 0xebd   :  { %v3475_v55 = vmul.f32 1.442695, %v3453_v31  ;;  %v3498_v34 = vsel %vm853_vm6, %v9913_v49, 0.0 }
 0xebe   :  { %v3437_v11 = vpop.xlane.xlu1 %3436  ;;  %3499 = vadd.xlane.f32.xlu1 %v3498_v34 }
 0xebf   :  { %7100 = vpow2.f32 %v3475_v55  ;;  %v3454_v33 = vsub.f32 %v9802_v21, %v3437_v11 }
 0xec0   :  { %v9918_v3 = vpop.eup %7094 }
 0xec1   :  { %v3477_v15 = vmul.f32 1.442695, %v3454_v33  ;;  %v3501_v0 = vsel %vm853_vm6, %v9918_v3, 0.0 }
 0xec2   :  { %v3440_v7 = vpop.xlane.xlu0 %3439  ;;  %3502 = vadd.xlane.f32.xlu1 %v3501_v0 }
 0xec3   :  { %7102 = vpow2.f32 %v3477_v15  ;;  %v3455_v19 = vsub.f32 %v9812_v48, %v3440_v7 }
 0xec4   :  { %v9923_v9 = vpop.eup %7096 }
 0xec5   :  { %v3479_v62 = vmul.f32 1.442695, %v3455_v19  ;;  %v3504_v32 = vsel %vm853_vm6, %v9923_v9, 0.0 }
 0xec6   :  { %v3443_v12 = vpop.xlane.xlu1 %3442  ;;  %3505 = vadd.xlane.f32.xlu0 %v3504_v32 }
 0xec7   :  { %7104 = vpow2.f32 %v3479_v62  ;;  %v3456_v21 = vsub.f32 %v9822_v44, %v3443_v12 }
 0xec8   :  { %v9928_v23 = vpop.eup %7098 }
 0xec9   :  { %v3481_v29 = vmul.f32 1.442695, %v3456_v21  ;;  %v3507_v53 = vsel %vm853_vm6, %v9928_v23, 0.0 }
 0xeca   :  { %v3993_v31 = vpop.xlane.xlu0 %3992  ;;  %3508 = vadd.xlane.f32.xlu1 %v3507_v53 }
 0xecb   :  { %7106 = vpow2.f32 %v3481_v29  ;;  %v4030_v48 = vsub.f32 %v9827_v10, %v3993_v31 }
 0xecc   :  { %v9933_v55 = vpop.eup %7100 }
 0xecd   :  { %v4043_v34 = vmul.f32 1.442695, %v4030_v48  ;;  %v3510_v11 = vsel %vm853_vm6, %v9933_v55, 0.0 }
 0xece   :  { %v3996_v33 = vpop.xlane.xlu1 %3995  ;;  %3511 = vadd.xlane.f32.xlu0 %v3510_v11 }
 0xecf   :  { %7108 = vpow2.f32 %v4043_v34  ;;  %v4031_v44 = vsub.f32 %v9832_v26, %v3996_v33 }
 0xed0   :  { %v9938_v15 = vpop.eup %7102 }
 0xed1   :  { %v4045_v0 = vmul.f32 1.442695, %v4031_v44  ;;  %v3513_v7 = vsel %vm853_vm6, %v9938_v15, 0.0 }
 0xed2   :  { %3514 = vadd.xlane.f32.xlu0 %v3513_v7  ;;  %v3999_v53 = vpop.xlane.xlu0 %3998 }
 0xed3   :  { %7110 = vpow2.f32 %v4045_v0  ;;  %v4032_v31 = vsub.f32 %v9837_v36, %v3999_v53 }
 0xed4   :  { %v9942_v10 = vpop.eup %7104 }
 0xed5   :  { %v3516_v19 = vsel %vm853_vm6, %v9942_v10, 0.0  ;;  %v4047_v34 = vmul.f32 1.442695, %v4032_v31 }
 0xed6   :  { %3517 = vadd.xlane.f32.xlu0 %v3516_v19  ;;  %v4002_v48 = vpop.xlane.xlu1 %4001  ;;  %v9964_v33 = vpop.permute.xlu0 %4140 }
 0xed7   :  { %v4033_v11 = vsub.f32 %v9842_v38, %v4002_v48  ;;  %7112 = vpow2.f32 %v4047_v34 }
 0xed8   :  { %v9946_v62 = vpop.eup %7106 }
 0xed9   :  { %v3519_v32 = vsel %vm890_vm7, %v9946_v62, 0.0  ;;  %v4049_v44 = vmul.f32 1.442695, %v4033_v11 }
 0xeda   :  { %3520 = vadd.xlane.f32.xlu0 %v3519_v32  ;;  %v9966_v0 = vpop.permute.xlu0 %4138  ;;  %v9968_v7 = vpop.permute.xlu1 %4142 }
 0xedb   :  { %7114 = vpow2.f32 %v4049_v44 }
 0xedc   :  { %v9950_v26 = vpop.eup %7108 }
 0xedd   :  { %v4069_v12 = vsel %vm853_vm6, %v9950_v26, 0.0 }
 0xede   :  { %4070 = vadd.xlane.f32.xlu0 %v4069_v12 }
 0xee0   :  { %v9954_v21 = vpop.eup %7110 }
 0xee1   :  { %v4072_v29 = vsel %vm853_vm6, %v9954_v21, 0.0 }
 0xee2   :  { %4073 = vadd.xlane.f32.xlu1 %v4072_v29 }
 0xee4   :  { %v9973_v36 = vpop.eup %7112 }
 0xee5   :  { %v4075_v38 = vsel %vm853_vm6, %v9973_v36, 0.0 }
 0xee8   :  { %v9977_v29 = vpop.eup %7114 }
 0xee9   :  { %v4078_v34 = vsel %vm853_vm6, %v9977_v29, 0.0 }
 0xef3   :  { %4134 = vrot.lane.b32.xlu1 %v9390_v46, %s7311_s15  ;;  %v9970_v46 = vpop.permute.xlu0 %4136 }
 0xef4   :  { %3771 = vrot.lane.b32.xlu0 %v9404_v25, %s7309_s13 }
 0xf0b   :  { %v4008_v19 = vpop.xlane.xlu1 %4007 }
 0xf0c   :  { %v4035_v25 = vsub.f32 %v9859_v4, %v4008_v19 }
 0xf0e   :  { %v4053_v32 = vmul.f32 1.442695, %v4035_v25 }
 0xf0f   :  { %v4005_v12 = vpop.xlane.xlu0 %4004 }
 0xf10   :  { %7116 = vpow2.f32 %v4053_v32 }
 0xf13   :  { %4076 = vadd.xlane.f32.xlu0 %v4075_v38  ;;  %v4011_v53 = vpop.xlane.xlu0 %4010 }
 0xf14   :  { %v4036_v31 = vsub.f32 %v9869_v35, %v4011_v53  ;;  %v4034_v35 = vsub.f32 %v9864_v16, %v4005_v12 }
 0xf16   :  { %v4055_v48 = vmul.f32 1.442695, %v4036_v31  ;;  %v4051_v25 = vmul.f32 1.442695, %v4034_v35 }
 0xf17   :  { %4079 = vadd.xlane.f32.xlu1 %v4078_v34 }
 0xf18   :  { %7118 = vpow2.f32 %v4055_v48 }
 0xf1d   :  { %v9982_v4 = vpop.eup %7116 }
 0xf1e   :  { %v4084_v11 = vsel %vm853_vm6, %v9982_v4, 0.0 }
 0xf1f   :  { %4085 = vadd.xlane.f32.xlu1 %v4084_v11 }
 0xf25   :  { %v9986_v44 = vpop.eup %7118 }
 0xf26   :  { %v4087_v19 = vsel %vm853_vm6, %v9986_v44, 0.0 }
 0xf27   :  { %4088 = vadd.xlane.f32.xlu1 %v4087_v19 }
 0xf29   :  { %3773 = vrot.lane.b32.xlu0 %v9398_v14, %s7309_s13 }
 0xf33   :  { %v3485_v32 = vpop.xlane.xlu1 %3484 }
 0xf34   :  { %7120 = vrcp.f32 %v3485_v32 }
 0xf35   :  { %7122 = vpow2.f32 %v4051_v25 }
 0xf37   :  { %v3488_v38 = vpop.xlane.xlu1 %3487 }
 0xf38   :  { %7124 = vrcp.f32 %v3488_v38  ;;  %3779 = vrot.lane.b32.xlu1 %v9370_v43, %s7309_s13 }
 0xf3b   :  { %v3491_v53 = vpop.xlane.xlu0 %3490 }
 0xf3c   :  { %7126 = vrcp.f32 %v3491_v53 }
 0xf3f   :  { %v3494_v31 = vpop.xlane.xlu1 %3493 }
 0xf40   :  { %7128 = vrcp.f32 %v3494_v31 }
 0xf41   :  { %v7121_v48 = vpop.eup %7120 }
 0xf42   :  { %v3523_v34 = vmul.f32 %v7121_v48, %v9888_v42  ;;  %v9996_v14 = vpop.eup %7122 }
 0xf43   :  { %v3497_v11 = vpop.xlane.xlu0 %3496  ;;  %v4081_v12 = vsel %vm853_vm6, %v9996_v14, 0.0 }
 0xf44   :  { %7130 = vrcp.f32 %v3497_v11  ;;  %6575 = vmatmul.mubr.msk.f32.vlgmr.msra.gmra.mxu1 %vm853_vm6, %v3523_v34 }
 0xf45   :  { %v7125_v16 = vpop.eup %7124  ;;  %6679 = vmatpush3.msk.msra.mxu1 %vm95_vm0, %v9881_v27  ;;  %6577 = vmatprep.mubr.msk.f32.mxu1 %vm7306_vm1, %v10774_v1 }
 0xf46   :  { %6680 = vmatprep.subr.mxu1 %v10774_v1  ;;  %v3525_v43 = vmul.f32 %v7125_v16, %v9893_v17 }
 0xf47   :  { %6681 = vmatpush3.msra.mxu1 %v9854_v58  ;;  %v3500_v42 = vpop.xlane.xlu1 %3499 }
 0xf48   :  { %6682 = vmatprep.subr.mxu1 %v10774_v1  ;;  %7132 = vrcp.f32 %v3500_v42  ;;  %6578 = vmatmul.mubr.msk.f32.gmra.mxu1 %vm853_vm6, %v3525_v43 }
 0xf49   :  { %v7127_v19 = vpop.eup %7126  ;;  %6683 = vmatpush3.msra.mxu1 %v9856_v18  ;;  %4082 = vadd.xlane.f32.xlu0 %v4081_v12 }
 0xf4a   :  { %6684 = vmatprep.subr.mxu1 %v10774_v1  ;;  %6580 = vmatprep.mubr.msk.f32.mxu1 %vm7306_vm1, %v10774_v1  ;;  %v3527_v58 = vmul.f32 %v7127_v19, %v9898_v30 }
 0xf4b   :  { %6685 = vmatpush3.msra.mxu1 %v9861_v50  ;;  %v3503_v27 = vpop.xlane.xlu1 %3502 }
 0xf4c   :  { %6686 = vmatprep.subr.mxu1 %v10774_v1  ;;  %7134 = vrcp.f32 %v3503_v27  ;;  %6581 = vmatmul.mubr.msk.f32.gmra.mxu1 %vm853_vm6, %v3527_v58 }
 0xf4d   :  { %v7129_v17 = vpop.eup %7128  ;;  %6687 = vmatpush3.msra.mxu1 %v9873_v57  ;;  %6583 = vmatprep.mubr.msk.f32.mxu1 %vm7306_vm1, %v10774_v1 }
 0xf4e   :  { %6688 = vmatprep.subr.mxu1 %v10774_v1  ;;  %v3529_v18 = vmul.f32 %v7129_v17, %v9903_v28 }
 0xf4f   :  { %6689 = vmatpush3.msra.mxu1 %v9584_v54  ;;  %v3506_v30 = vpop.xlane.xlu0 %3505 }
 0xf50   :  { %6690 = vmatprep.subr.mxu1 %v10774_v1  ;;  %7136 = vrcp.f32 %v3506_v30  ;;  %6584 = vmatmul.mubr.msk.f32.gmra.mxu1 %vm853_vm6, %v3529_v18 }
 0xf51   :  { %v7131_v50 = vpop.eup %7130  ;;  %6691 = vmatpush3.msra.mxu1 %v9877_v63  ;;  %6586 = vmatprep.mubr.msk.f32.mxu1 %vm7306_vm1, %v10774_v1 }
 0xf52   :  { %6692 = vmatprep.subr.mxu1 %v10774_v1  ;;  %v3531_v57 = vmul.f32 %v7131_v50, %v9908_v41 }
 0xf53   :  { %6693 = vmatpush3.msra.mxu1 %v9879_v60  ;;  %v3509_v28 = vpop.xlane.xlu1 %3508 }
 0xf54   :  { %6694 = vmatprep.subr.mxu1 %v10774_v1  ;;  %7138 = vrcp.f32 %v3509_v28  ;;  %6587 = vmatmul.mubr.msk.f32.gmra.mxu1 %vm853_vm6, %v3531_v57 }
 0xf55   :  { %v7133_v54 = vpop.eup %7132  ;;  %6695 = vmatpush3.msra.mxu1 %v9968_v7  ;;  %6589 = vmatprep.mubr.msk.f32.mxu1 %vm7306_vm1, %v10774_v1 }
 0xf56   :  { %6696 = vmatprep.subr.mxu1 %v10774_v1  ;;  %v3533_v63 = vmul.f32 %v7133_v54, %v9913_v49 }
 0xf57   :  { %6697 = vmatpush3.msra.mxu1 %v9964_v33  ;;  %v3512_v41 = vpop.xlane.xlu0 %3511 }
 0xf58   :  { %6698 = vmatprep.subr.mxu1 %v10774_v1  ;;  %7140 = vrcp.f32 %v3512_v41  ;;  %6590 = vmatmul.mubr.msk.f32.gmra.mxu1 %vm853_vm6, %v3533_v63 }
 0xf59   :  { %v7135_v60 = vpop.eup %7134  ;;  %6699 = vmatpush3.msra.mxu1 %v9966_v0  ;;  %6592 = vmatprep.mubr.msk.f32.mxu1 %vm7306_vm1, %v10774_v1 }
 0xf5a   :  { %6700 = vmatprep.subr.mxu1 %v10774_v1  ;;  %v3535_v7 = vmul.f32 %v7135_v60, %v9918_v3 }
 0xf5b   :  { %6701 = vmatpush3.msra.mxu1 %v9970_v46  ;;  %v3515_v49 = vpop.xlane.xlu0 %3514 }
 0xf5c   :  { %7142 = vrcp.f32 %v3515_v49  ;;  %6593 = vmatmul.mubr.msk.f32.gmra.mxu1 %vm853_vm6, %v3535_v7  ;;  %6702 = vmatprep.subr.mxu1 %v10774_v1 }
 0xf5d   :  { %v7137_v33 = vpop.eup %7136  ;;  %6595 = vmatprep.mubr.msk.f32.mxu1 %vm7306_vm1, %v10774_v1 }
 0xf5e   :  { %v3537_v0 = vmul.f32 %v7137_v33, %v9923_v9 }
 0xf5f   :  { %3775 = vrot.lane.b32.xlu0 %v9392_v5, %s7309_s13  ;;  %v3518_v35 = vpop.xlane.xlu0 %3517 }
 0xf60   :  { %7144 = vrcp.f32 %v3518_v35  ;;  %6596 = vmatmul.mubr.msk.f32.gmra.mxu1 %vm853_vm6, %v3537_v0 }
 0xf61   :  { %v7139_v3 = vpop.eup %7138  ;;  %6598 = vmatprep.mubr.msk.f32.mxu1 %vm7306_vm1, %v10774_v1 }
 0xf62   :  { %v3539_v46 = vmul.f32 %v7139_v3, %v9928_v23 }
 0xf63   :  { %3777 = vrot.lane.b32.xlu0 %v9384_v40, %s7309_s13  ;;  %v3521_v25 = vpop.xlane.xlu0 %3520 }
 0xf64   :  { %7146 = vrcp.f32 %v3521_v25  ;;  %6599 = vmatmul.mubr.msk.f32.gmra.mxu1 %vm853_vm6, %v3539_v46 }
 0xf65   :  { %v7141_v9 = vpop.eup %7140  ;;  %6601 = vmatprep.mubr.msk.f32.mxu1 %vm7306_vm1, %v10774_v1 }
 0xf66   :  { %v3541_v5 = vmul.f32 %v7141_v9, %v9933_v55 }
 0xf67   :  { %3781 = vrot.lane.b32.xlu0 %v9376_v22, %s7309_s13  ;;  %v4071_v32 = vpop.xlane.xlu0 %4070 }
 0xf68   :  { %7148 = vrcp.f32 %v4071_v32  ;;  %6602 = vmatmul.mubr.msk.f32.gmra.mxu1 %vm853_vm6, %v3541_v5 }
 0xf69   :  { %v7143_v23 = vpop.eup %7142  ;;  %6604 = vmatprep.mubr.msk.f32.mxu1 %vm7306_vm1, %v10774_v1 }
 0xf6a   :  { %v3543_v40 = vmul.f32 %v7143_v23, %v9938_v15 }
 0xf6b   :  { %v4074_v38 = vpop.xlane.xlu1 %4073  ;;  %v3772_v53 = vpop.permute.xlu0 %3771 }
 0xf6c   :  { %7150 = vrcp.f32 %v4074_v38  ;;  %6605 = vmatmul.mubr.msk.f32.gmra.mxu1 %vm853_vm6, %v3543_v40  ;;  %6661 = vmatmul.mubr.msk.f32.gmra.mxu0 %vm670_vm5, %v3772_v53 }
 0xf6d   :  { %v7145_v55 = vpop.eup %7144  ;;  %6607 = vmatprep.mubr.msk.f32.mxu1 %vm7306_vm1, %v10774_v1  ;;  %6663 = vmatprep.mubr.msk.f32.mxu0 %vm7306_vm1, %v10774_v1 }
 0xf6e   :  { %v3545_v22 = vmul.f32 %v7145_v55, %v9942_v10 }
 0xf6f   :  { %v4135_v31 = vpop.permute.xlu1 %4134 }
 0xf70   :  { %6608 = vmatmul.mubr.msk.f32.gmra.mxu1 %vm853_vm6, %v3545_v22 }
 0xf71   :  { %v7147_v15 = vpop.eup %7146  ;;  %6703 = vmatpush3.msra.mxu1 %v4135_v31  ;;  %6610 = vmatprep.mubr.msk.f32.mxu1 %vm7306_vm1, %v10774_v1 }
 0xf72   :  { %v3547_v48 = vmul.f32 %v7147_v15, %v9946_v62  ;;  %6784 = vmatprep.subr.mxu1 %v10774_v1 }
 0xf74   :  { %6611 = vmatmul.mubr.msk.f32.gmra.mxu1 %vm853_vm6, %v3547_v48 }
 0xf75   :  { %v7149_v34 = vpop.eup %7148  ;;  %6704 = vmatprep.mubr.msk.f32.mxu1 %vm7306_vm1, %v10774_v1 }
 0xf76   :  { %v4109_v10 = vmul.f32 %v7149_v34, %v9950_v26 }
 0xf78   :  { %6705 = vmatmul.mubr.msk.f32.vlgmr.msra.gmra.mxu1 %vm853_vm6, %v4109_v10 }
 0xf79   :  { %v7151_v11 = vpop.eup %7150  ;;  %6707 = vmatprep.mubr.msk.f32.mxu1 %vm7306_vm1, %v10774_v1 }
 0xf7a   :  { %v4111_v16 = vmul.f32 %v7151_v11, %v9954_v21 }
 0xf7c   :  { %6708 = vmatmul.mubr.msk.f32.gmra.mxu1 %vm853_vm6, %v4111_v16 }
 0xf7d   :  { %6710 = vmatprep.mubr.msk.f32.mxu1 %vm7306_vm1, %v10774_v1 }
 0xf9c   :  { %v4077_v62 = vpop.xlane.xlu0 %4076 }
 0xf9d   :  { %7152 = vrcp.f32 %v4077_v62 }
 0xfa0   :  { %v4080_v43 = vpop.xlane.xlu1 %4079  ;;  %v3774_v42 = vpop.permute.xlu0 %3773 }
 0xfa1   :  { %7154 = vrcp.f32 %v4080_v43  ;;  %6664 = vmatmul.mubr.msk.f32.gmra.mxu0 %vm670_vm5, %v3774_v42 }
 0xfa2   :  { %6666 = vmatprep.mubr.msk.f32.mxu0 %vm7306_vm1, %v10774_v1 }
 0xfa8   :  { %v4086_v58 = vpop.xlane.xlu1 %4085 }
 0xfaa   :  { %v7153_v26 = vpop.eup %7152 }
 0xfab   :  { %v4113_v12 = vmul.f32 %v7153_v26, %v9973_v36 }
 0xfad   :  { %6711 = vmatmul.mubr.msk.f32.gmra.mxu1 %vm853_vm6, %v4113_v12 }
 0xfae   :  { %v7155_v21 = vpop.eup %7154  ;;  %6713 = vmatprep.mubr.msk.f32.mxu1 %vm7306_vm1, %v10774_v1 }
 0xfaf   :  { %v4115_v19 = vmul.f32 %v7155_v21, %v9977_v29 }
 0xfb0   :  { %v4089_v17 = vpop.xlane.xlu1 %4088 }
 0xfb1   :  { %6714 = vmatmul.mubr.msk.f32.gmra.mxu1 %vm853_vm6, %v4115_v19 }
 0xfb2   :  { %6716 = vmatprep.mubr.msk.f32.mxu1 %vm7306_vm1, %v10774_v1 }
 0xfb4   :  { %v3780_v29 = vpop.permute.xlu1 %3779 }
 0xfd2   :  { %v4083_v27 = vpop.xlane.xlu0 %4082 }
 0xfd3   :  { %7156 = vrcp.f32 %v4083_v27 }
 0xfd4   :  { %7158 = vrcp.f32 %v4086_v58 }
 0xfd5   :  { %7160 = vrcp.f32 %v4089_v17 }
 0xfd6   :  { %v3776_v18 = vpop.permute.xlu0 %3775 }
 0xfd7   :  { %6667 = vmatmul.mubr.msk.f32.gmra.mxu0 %vm670_vm5, %v3776_v18 }
 0xfd8   :  { %6669 = vmatprep.mubr.msk.f32.mxu0 %vm7306_vm1, %v10774_v1 }
 0xfda   :  { %v3778_v36 = vpop.permute.xlu0 %3777 }
 0xfdb   :  { %6670 = vmatmul.mubr.msk.f32.gmra.mxu0 %vm670_vm5, %v3778_v36 }
 0xfdc   :  { %6672 = vmatprep.mubr.msk.f32.mxu0 %vm7306_vm1, %v10774_v1 }
 0xfde   :  { %v3782_v28 = vpop.permute.xlu0 %3781 }
 0xfdf   :  { %6673 = vmatmul.mubr.msk.f32.gmra.mxu0 %vm670_vm5, %v3780_v29 }
 0xfe0   :  { %v7157_v30 = vpop.eup %7156  ;;  %6675 = vmatprep.mubr.msk.f32.mxu0 %vm7306_vm1, %v10774_v1 }
 0xfe1   :  { %v4117_v50 = vmul.f32 %v7157_v30, %v9996_v14  ;;  %v7159_v57 = vpop.eup %7158 }
 0xfe2   :  { %v4119_v54 = vmul.f32 %v7159_v57, %v9982_v4  ;;  %v7161_v63 = vpop.eup %7160 }
 0xfe3   :  { %6676 = vmatmul.mubr.msk.f32.gmra.mxu0 %vm670_vm5, %v3782_v28  ;;  %6717 = vmatmul.mubr.msk.f32.gmra.mxu1 %vm853_vm6, %v4117_v50  ;;  %v4121_v14 = vmul.f32 %v7161_v63, %v9986_v44 }
 0xfe4   :  { %6719 = vmatprep.mubr.msk.f32.mxu1 %vm7306_vm1, %v10774_v1  ;;  %6745 = vmatprep.mubr.msk.f32.mxu0 %vm7306_vm1, %v10774_v1 }
 0xfe7   :  { %6720 = vmatmul.mubr.msk.f32.gmra.mxu1 %vm853_vm6, %v4119_v54 }
 0xfe8   :  { %6722 = vmatprep.mubr.msk.f32.mxu1 %vm7306_vm1, %v10774_v1 }
 0xfeb   :  { %6723 = vmatmul.mubr.msk.f32.gmra.mxu1 %vm853_vm6, %v4121_v14 }
 0xfec   :  { %6725 = vmatprep.mubr.msk.f32.mxu1 %vm7306_vm1, %v10774_v1 }
0x1004   :  { %v10129_v41 = vpop.f32.mrf.mxu1 }
0x1006   :  { %v6576_v60 = vpop.f32.mrf.mxu1 }
0x1008   :  { %v10131_v7 = vpop.f32.mrf.mxu1 }
0x100a   :  { %v6579_v49 = vpop.f32.mrf.mxu1 }
0x100c   :  { %v10133_v4 = vpop.f32.mrf.mxu1 }
0x100e   :  { %v6582_v33 = vpop.f32.mrf.mxu1 }
0x1010   :  { %v10135_v0 = vpop.f32.mrf.mxu1 }
0x1012   :  { %v6585_v35 = vpop.f32.mrf.mxu1 }
0x1014   :  { %v10137_v3 = vpop.f32.mrf.mxu1 }
0x1016   :  { %v6588_v44 = vpop.f32.mrf.mxu1 }
0x1018   :  { %v10139_v46 = vpop.f32.mrf.mxu1 }
0x101a   :  { %v6591_v25 = vpop.f32.mrf.mxu1 }
0x101c   :  { %v10141_v9 = vpop.f32.mrf.mxu1 }
0x101e   :  { %v6594_v5 = vpop.f32.mrf.mxu1 }
0x1020   :  { %v10143_v32 = vpop.f32.mrf.mxu1 }
0x1022   :  { %v6597_v23 = vpop.f32.mrf.mxu1 }
0x1024   :  { %v10145_v40 = vpop.f32.mrf.mxu1 }
0x1026   :  { %v6600_v38 = vpop.f32.mrf.mxu1 }
0x1028   :  { %v10147_v53 = vpop.f32.mrf.mxu1 }
0x102a   :  { %v6603_v55 = vpop.f32.mrf.mxu1 }
0x102c   :  { %v10149_v22 = vpop.f32.mrf.mxu1  ;;  %v3962_v31 = vpop.f32.mrf.mxu0 }
0x102d   :  { %v10152_v15 = vadd.f32 %v9769_v61, %v3962_v31 }
0x102e   :  { %v6606_v48 = vpop.f32.mrf.mxu1  ;;  %v6662_v34 = vpop.f32.mrf.mxu0 }
0x102f   :  { %v4012_v10 = vsel %vm853_vm6, %v10152_v15, -inf }
0x1030   :  { %v10156_v11 = vpop.f32.mrf.mxu1  ;;  %4013 = vmax.xlane.f32.xlu1 %v4012_v10 }
0x1032   :  { %v6609_v16 = vpop.f32.mrf.mxu1 }
0x1034   :  { %v10158_v62 = vpop.f32.mrf.mxu1 }
0x1036   :  { %v6612_v43 = vpop.f32.mrf.mxu1 }
0x1038   :  { %v4279_v42 = vpop.f32.mrf.mxu1 }
0x103a   :  { %v6706_v26 = vpop.f32.mrf.mxu1 }
0x103c   :  { %v4284_v12 = vpop.f32.mrf.mxu1 }
0x103e   :  { %v6709_v21 = vpop.f32.mrf.mxu1 }
0x1041   :  { %4356 = vrot.lane.b32.xlu1 %v4279_v42, %s7312_s21 }
0x1061   :  { %v3967_v61 = vpop.f32.mrf.mxu0 }
0x1062   :  { %v10162_v19 = vadd.f32 %v9779_v6, %v3967_v61 }
0x1063   :  { %v6665_v58 = vpop.f32.mrf.mxu0 }
0x1064   :  { %v4015_v27 = vsel %vm853_vm6, %v10162_v19, -inf }
0x1065   :  { %4016 = vmax.xlane.f32.xlu0 %v4015_v27 }
0x106d   :  { %v4289_v17 = vpop.f32.mrf.mxu1 }
0x106f   :  { %v6712_v18 = vpop.f32.mrf.mxu1 }
0x1071   :  { %v4294_v36 = vpop.f32.mrf.mxu1 }
0x1073   :  { %v6715_v29 = vpop.f32.mrf.mxu1 }
0x107b   :  { %4358 = vrot.lane.b32.xlu0 %v4284_v12, %s7312_s21 }
0x107f   :  { %4362 = vrot.lane.b32.xlu0 %v4294_v36, %s7312_s21 }
0x1097   :  { %v3972_v30 = vpop.f32.mrf.mxu0 }
0x1098   :  { %v3973_v50 = vadd.f32 %v9789_v59, %v3972_v30 }
0x1099   :  { %v6668_v57 = vpop.f32.mrf.mxu0 }
0x109a   :  { %v4018_v6 = vsel %vm853_vm6, %v3973_v50, -inf }
0x109b   :  { %4019 = vmax.xlane.f32.xlu1 %v4018_v6  ;;  %v3977_v28 = vpop.f32.mrf.mxu0 }
0x109d   :  { %v6671_v54 = vpop.f32.mrf.mxu0 }
0x109f   :  { %v3982_v63 = vpop.f32.mrf.mxu0 }
0x10a0   :  { %v10175_v38 = vadd.f32 %v9809_v45, %v3982_v63 }
0x10a1   :  { %v6674_v14 = vpop.f32.mrf.mxu0 }
0x10a2   :  { %v4024_v48 = vsel %vm853_vm6, %v10175_v38, -inf }
0x10a3   :  { %v3987_v60 = vpop.f32.mrf.mxu0  ;;  %v4299_v49 = vpop.f32.mrf.mxu1 }
0x10a4   :  { %4364 = vrot.lane.b32.xlu0 %v4299_v49, %s7312_s21  ;;  %v10178_v31 = vadd.f32 %v9819_v13, %v3987_v60  ;;  %v10192_v13 = vadd.f32 %v9799_v51, %v3977_v28 }
0x10a5   :  { %v6677_v33 = vpop.f32.mrf.mxu0  ;;  %v6718_v35 = vpop.f32.mrf.mxu1 }
0x10a6   :  { %v4027_v16 = vsel %vm890_vm7, %v10178_v31, -inf  ;;  %v4021_v43 = vsel %vm853_vm6, %v10192_v13, -inf }
0x10a7   :  { %v4304_v44 = vpop.f32.mrf.mxu1 }
0x10a8   :  { %4366 = vrot.lane.b32.xlu0 %v4304_v44, %s7312_s21 }
0x10a9   :  { %v6721_v25 = vpop.f32.mrf.mxu1 }
0x10ab   :  { %v4309_v5 = vpop.f32.mrf.mxu1 }
0x10ac   :  { %4360 = vrot.lane.b32.xlu1 %v4289_v17, %s7312_s21 }
0x10ad   :  { %v6724_v59 = vpop.f32.mrf.mxu1 }
0x10b0   :  { %4368 = vrot.lane.b32.xlu1 %v4309_v5, %s7312_s21 }
0x10b9   :  { %v4014_v23 = vpop.xlane.xlu1 %4013 }
0x10bd   :  { %v4357_v55 = vpop.permute.xlu1 %4356 }
0x10be   :  { %v4395_v34 = vsel %vm670_vm5, %v10129_v41, %v4357_v55 }
0x10bf   :  { %v10185_v10 = vadd.f32 %v4395_v34, %v9122_v2 }
0x10c1   :  { %v4421_v45 = vsel %vm252_vm3, %v10185_v10, 0.0 }
0x10c7   :  { %4025 = vmax.xlane.f32.xlu0 %v4024_v48 }
0x10cb   :  { %4028 = vmax.xlane.f32.xlu0 %v4027_v16 }
0x10cf   :  { %4422 = vadd.xlane.f32.xlu0 %v4421_v45 }
0x10d4   :  { %4022 = vmax.xlane.f32.xlu1 %v4021_v43 }
0x10ee   :  { %v4017_v41 = vpop.xlane.xlu0 %4016 }
0x10ef   :  { %v4038_v29 = vsub.f32 %v10162_v19, %v4017_v41 }
0x10f1   :  { %v4059_v30 = vmul.f32 1.442695, %v4038_v29 }
0x10f2   :  { %v4359_v42 = vpop.permute.xlu0 %4358 }
0x10f3   :  { %v4396_v2 = vsel %vm670_vm5, %v10131_v7, %v4359_v42  ;;  %v4037_v7 = vsub.f32 %v10152_v15, %v4014_v23 }
0x10f4   :  { %v10199_v26 = vadd.f32 %v4396_v2, %v9128_v37 }
0x10f5   :  { %v4057_v27 = vmul.f32 1.442695, %v4037_v7 }
0x10f6   :  { %v4363_v12 = vpop.permute.xlu0 %4362  ;;  %v4424_v21 = vsel %vm252_vm3, %v10199_v26, 0.0 }
0x10f7   :  { %v4398_v51 = vsel %vm670_vm5, %v10135_v0, %v4363_v12  ;;  %4425 = vadd.xlane.f32.xlu1 %v4424_v21  ;;  %7162 = vpow2.f32 %v4057_v27 }
0x10f8   :  { %v10206_v61 = vadd.f32 %v4398_v51, %v9140_v47  ;;  %7164 = vpow2.f32 %v4059_v30 }
0x10fa   :  { %v4430_v58 = vsel %vm252_vm3, %v10206_v61, 0.0 }
0x10fb   :  { %4431 = vadd.xlane.f32.xlu1 %v4430_v58 }
0x1104   :  { %v10218_v0 = vpop.eup %7162 }
0x1105   :  { %v4090_v15 = vsel %vm853_vm6, %v10218_v0, 0.0 }
0x1116   :  { %v4365_v37 = vpop.permute.xlu0 %4364 }
0x111a   :  { %v4367_v17 = vpop.permute.xlu0 %4366 }
0x111b   :  { %v4400_v18 = vsel %vm670_vm5, %v10139_v46, %v4367_v17 }
0x111c   :  { %v10214_v36 = vadd.f32 %v4400_v18, %v9152_v39  ;;  %v4399_v39 = vsel %vm670_vm5, %v10137_v3, %v4365_v37 }
0x111d   :  { %v10231_v19 = vadd.f32 %v4399_v39, %v9146_v56  ;;  %v10244_v56 = vpop.eup %7164 }
0x111e   :  { %v4436_v47 = vsel %vm252_vm3, %v10214_v36, 0.0 }
0x111f   :  { %4437 = vadd.xlane.f32.xlu1 %v4436_v47 }
0x1123   :  { %4091 = vadd.xlane.f32.xlu1 %v4090_v15 }
0x1124   :  { %v4020_v57 = vpop.xlane.xlu1 %4019 }
0x1125   :  { %v4039_v6 = vsub.f32 %v3973_v50, %v4020_v57 }
0x1127   :  { %v4061_v28 = vmul.f32 1.442695, %v4039_v6 }
0x1128   :  { %v4361_v46 = vpop.permute.xlu1 %4360 }
0x1129   :  { %7166 = vpow2.f32 %v4061_v28  ;;  %v4397_v54 = vsel %vm670_vm5, %v10133_v4, %v4361_v46  ;;  %v4433_v4 = vsel %vm252_vm3, %v10231_v19, 0.0 }
0x112a   :  { %v10228_v63 = vadd.f32 %v4397_v54, %v9134_v8 }
0x112c   :  { %v4369_v14 = vpop.permute.xlu1 %4368  ;;  %v4427_v50 = vsel %vm252_vm3, %v10228_v63, 0.0 }
0x112d   :  { %v4401_v60 = vsel %vm670_vm5, %v10141_v9, %v4369_v14  ;;  %4428 = vadd.xlane.f32.xlu0 %v4427_v50 }
0x112e   :  { %v10238_v3 = vadd.f32 %v4401_v60, %v9158_v20  ;;  %v4093_v20 = vsel %vm853_vm6, %v10244_v56, 0.0 }
0x1130   :  { %v4439_v8 = vsel %vm252_vm3, %v10238_v3, 0.0 }
0x1131   :  { %4434 = vadd.xlane.f32.xlu0 %v4433_v4 }
0x1135   :  { %4440 = vadd.xlane.f32.xlu0 %v4439_v8 }
0x1136   :  { %v10246_v49 = vpop.eup %7166 }
0x1137   :  { %v4096_v33 = vsel %vm853_vm6, %v10246_v49, 0.0 }
0x1138   :  { %4097 = vadd.xlane.f32.xlu1 %v4096_v33 }
0x1139   :  { %4094 = vadd.xlane.f32.xlu0 %v4093_v20 }
0x1150   :  { %v4026_v9 = vpop.xlane.xlu0 %4025 }
0x1151   :  { %v4041_v35 = vsub.f32 %v10175_v38, %v4026_v9 }
0x1153   :  { %v4065_v44 = vmul.f32 1.442695, %v4041_v35 }
0x1154   :  { %v4029_v25 = vpop.xlane.xlu0 %4028 }
0x1155   :  { %7168 = vpow2.f32 %v4065_v44  ;;  %v4042_v23 = vsub.f32 %v10178_v31, %v4029_v25 }
0x1157   :  { %v4067_v16 = vmul.f32 1.442695, %v4042_v23 }
0x1158   :  { %v4423_v5 = vpop.xlane.xlu0 %4422 }
0x1159   :  { %v4460_v59 = vmul.f32 0.125, %v4423_v5  ;;  %v7282_v5 = vld [vmem:[%s10753_s4 + $0x8] ss:$0 sm:$0xff] }
0x115b   :  { %v10256_v34 = vsub.f32 %v10185_v10, %v4460_v59 }
0x115d   :  { %v4023_v55 = vpop.xlane.xlu1 %4022  ;;  %v4486_v41 = vmul.f32 %v10256_v34, %v10256_v34 }
0x115e   :  { %v4040_v48 = vsub.f32 %v10192_v13, %v4023_v55 }
0x115f   :  { %v4499_v31 = vsel %vm252_vm3, %v4486_v41, 0.0 }
0x1160   :  { %v4063_v45 = vmul.f32 1.442695, %v4040_v48 }
0x1162   :  { %v10258_v43 = vpop.eup %7168  ;;  %7170 = vpow2.f32 %v4063_v45 }
0x1163   :  { %v4102_v38 = vsel %vm853_vm6, %v10258_v43, 0.0  ;;  %7172 = vpow2.f32 %v4067_v16  ;;  %v5565_v16 = vld [vmem:[%s10752_s3 + $0x38] sm:$0xff] }
0x1164   :  { %4103 = vadd.xlane.f32.xlu1 %v4102_v38  ;;  %6744 = vmatpush3.msra.mxu0 %v5565_v16 }
0x1165   :  { %6831 = vmatprep.subr.mxu0 %v10774_v1 }
0x1168   :  { %4500 = vadd.xlane.f32.xlu1 %v4499_v31 }
0x116f   :  { %v10265_v13 = vpop.eup %7170 }
0x1170   :  { %v4099_v42 = vsel %vm853_vm6, %v10265_v13, 0.0  ;;  %v10269_v2 = vpop.eup %7172 }
0x1171   :  { %4100 = vadd.xlane.f32.xlu0 %v4099_v42  ;;  %v4105_v12 = vsel %vm890_vm7, %v10269_v2, 0.0 }
0x1175   :  { %4106 = vadd.xlane.f32.xlu0 %v4105_v12 }
0x1180   :  { %v4426_v21 = vpop.xlane.xlu1 %4425 }
0x1181   :  { %v4461_v51 = vmul.f32 0.125, %v4426_v21 }
0x1183   :  { %v10274_v58 = vsub.f32 %v10199_v26, %v4461_v51 }
0x1184   :  { %v4432_v7 = vpop.xlane.xlu1 %4431 }
0x1185   :  { %v4463_v27 = vmul.f32 0.125, %v4432_v7  ;;  %v4487_v37 = vmul.f32 %v10274_v58, %v10274_v58 }
0x1187   :  { %v10279_v17 = vsub.f32 %v10206_v61, %v4463_v27  ;;  %v4502_v18 = vsel %vm252_vm3, %v4487_v37, 0.0 }
0x1188   :  { %4503 = vadd.xlane.f32.xlu0 %v4502_v18 }
0x1189   :  { %v4489_v47 = vmul.f32 %v10279_v17, %v10279_v17 }
0x118b   :  { %v4508_v29 = vsel %vm252_vm3, %v4489_v47, 0.0 }
0x118c   :  { %4509 = vadd.xlane.f32.xlu0 %v4508_v29 }
0x11a8   :  { %v4438_v15 = vpop.xlane.xlu1 %4437 }
0x11a9   :  { %v4465_v26 = vmul.f32 0.125, %v4438_v15 }
0x11ab   :  { %v10286_v30 = vsub.f32 %v10214_v36, %v4465_v26 }
0x11ac   :  { %v4092_v57 = vpop.xlane.xlu1 %4091 }
0x11ad   :  { %7174 = vrcp.f32 %v4092_v57  ;;  %v4491_v61 = vmul.f32 %v10286_v30, %v10286_v30 }
0x11af   :  { %v4514_v6 = vsel %vm252_vm3, %v4491_v61, 0.0 }
0x11b0   :  { %4515 = vadd.xlane.f32.xlu0 %v4514_v6 }
0x11b6   :  { %v4429_v28 = vpop.xlane.xlu0 %4428 }
0x11b7   :  { %v4462_v46 = vmul.f32 0.125, %v4429_v28 }
0x11b9   :  { %v10292_v39 = vsub.f32 %v10228_v63, %v4462_v46 }
0x11ba   :  { %v7175_v54 = vpop.eup %7174  ;;  %v4435_v14 = vpop.xlane.xlu0 %4434 }
0x11bb   :  { %v4464_v50 = vmul.f32 0.125, %v4435_v14  ;;  %v4123_v60 = vmul.f32 %v7175_v54, %v10218_v0  ;;  %v4488_v36 = vmul.f32 %v10292_v39, %v10292_v39 }
0x11bd   :  { %v10298_v4 = vsub.f32 %v10231_v19, %v4464_v50  ;;  %6726 = vmatmul.mubr.msk.f32.gmra.mxu1 %vm853_vm6, %v4123_v60  ;;  %v4505_v8 = vsel %vm252_vm3, %v4488_v36, 0.0 }
0x11be   :  { %4506 = vadd.xlane.f32.xlu1 %v4505_v8  ;;  %v4441_v33 = vpop.xlane.xlu0 %4440  ;;  %6728 = vmatprep.mubr.msk.f32.mxu1 %vm7306_vm1, %v10774_v1 }
0x11bf   :  { %v4466_v63 = vmul.f32 0.125, %v4441_v33  ;;  %v4490_v20 = vmul.f32 %v10298_v4, %v10298_v4 }
0x11c1   :  { %v10307_v0 = vsub.f32 %v10238_v3, %v4466_v63  ;;  %v4511_v9 = vsel %vm252_vm3, %v4490_v20, 0.0  ;;  %v4098_v19 = vpop.xlane.xlu1 %4097 }
0x11c2   :  { %4512 = vadd.xlane.f32.xlu1 %v4511_v9  ;;  %v4095_v35 = vpop.xlane.xlu0 %4094 }
0x11c3   :  { %7176 = vrcp.f32 %v4095_v35  ;;  %v4492_v44 = vmul.f32 %v10307_v0, %v10307_v0 }
0x11c4   :  { %7178 = vrcp.f32 %v4098_v19 }
0x11c5   :  { %v4517_v25 = vsel %vm252_vm3, %v4492_v44, 0.0 }
0x11c6   :  { %4518 = vadd.xlane.f32.xlu1 %v4517_v25  ;;  %4590 = vrot.lane.b32.xlu0 %v7282_v5, %s7310_s14 }
0x11d0   :  { %v7177_v59 = vpop.eup %7176 }
0x11d1   :  { %v4125_v23 = vmul.f32 %v7177_v59, %v10244_v56  ;;  %v7179_v55 = vpop.eup %7178 }
0x11d2   :  { %v4127_v48 = vmul.f32 %v7179_v55, %v10246_v49 }
0x11d3   :  { %6729 = vmatmul.mubr.msk.f32.gmra.mxu1 %vm853_vm6, %v4125_v23 }
0x11d4   :  { %6731 = vmatprep.mubr.msk.f32.mxu1 %vm7306_vm1, %v10774_v1 }
0x11d7   :  { %6732 = vmatmul.mubr.msk.f32.gmra.mxu1 %vm853_vm6, %v4127_v48  ;;  %4606 = vrot.lane.b32.xlu1 %v7282_v5, %s7313_s26 }
0x11d8   :  { %6734 = vmatprep.mubr.msk.f32.mxu1 %vm7306_vm1, %v10774_v1 }
0x11ed   :  { %v4104_v56 = vpop.xlane.xlu1 %4103 }
0x11fa   :  { %v4101_v45 = vpop.xlane.xlu0 %4100 }
0x11fb   :  { %7180 = vrcp.f32 %v4101_v45 }
0x11fc   :  { %7182 = vrcp.f32 %v4104_v56 }
0x11fe   :  { %v4107_v38 = vpop.xlane.xlu0 %4106 }
0x11ff   :  { %7184 = vrcp.f32 %v4107_v38 }
0x1208   :  { %v7181_v49 = vpop.eup %7180 }
0x1209   :  { %v4129_v41 = vmul.f32 %v7181_v49, %v10265_v13  ;;  %v7183_v31 = vpop.eup %7182  ;;  %v4501_v13 = vpop.xlane.xlu1 %4500 }
0x120a   :  { %v4131_v42 = vmul.f32 %v7183_v31, %v10258_v43  ;;  %v4538_v51 = vmul.f32 0.125, %v4501_v13 }
0x120b   :  { %6735 = vmatmul.mubr.msk.f32.gmra.mxu1 %vm853_vm6, %v4129_v41 }
0x120c   :  { %6737 = vmatprep.mubr.msk.f32.mxu1 %vm7306_vm1, %v10774_v1  ;;  %v7185_v12 = vpop.eup %7184  ;;  %v4551_v27 = vadd.f32 1e-05, %v4538_v51 }
0x120d   :  { %v4133_v21 = vmul.f32 %v7185_v12, %v10269_v2 }
0x120e   :  { %7186 = vrsqrt.f32 %v4551_v27 }
0x120f   :  { %6738 = vmatmul.mubr.msk.f32.gmra.mxu1 %vm853_vm6, %v4131_v42 }
0x1210   :  { %6740 = vmatprep.mubr.msk.f32.mxu1 %vm7306_vm1, %v10774_v1 }
0x1211   :  { %v4504_v7 = vpop.xlane.xlu0 %4503 }
0x1212   :  { %v4539_v37 = vmul.f32 0.125, %v4504_v7 }
0x1213   :  { %6741 = vmatmul.mubr.msk.f32.gmra.mxu1 %vm853_vm6, %v4133_v21 }
0x1214   :  { %6792 = vmatprep.mubr.msk.f32.mxu1 %vm7306_vm1, %v10774_v1  ;;  %v4552_v43 = vadd.f32 1e-05, %v4539_v37 }
0x1215   :  { %v4510_v18 = vpop.xlane.xlu0 %4509 }
0x1216   :  { %7188 = vrsqrt.f32 %v4552_v43  ;;  %v4541_v47 = vmul.f32 0.125, %v4510_v18  ;;  %v5569_v18 = vld [vmem:[%s10752_s3 + $0x58] sm:$0xff] }
0x1217   :  { %6785 = vmatpush3.msra.mxu1 %v5569_v18 }
0x1218   :  { %v4554_v57 = vadd.f32 1e-05, %v4541_v47  ;;  %6786 = vmatprep.subr.mxu1 %v10774_v1 }
0x121b   :  { %v7187_v46 = vpop.eup %7186 }
0x121c   :  { %v4577_v60 = vmul.f32 %v7187_v46, %v10256_v34 }
0x1223   :  { %v7189_v33 = vpop.eup %7188 }
0x1224   :  { %v4578_v19 = vmul.f32 %v7189_v33, %v10274_v58 }
0x1239   :  { %v4516_v26 = vpop.xlane.xlu0 %4515 }
0x123a   :  { %v4543_v6 = vmul.f32 0.125, %v4516_v26  ;;  %v5567_v26 = vld [vmem:[%s10752_s3 + $0x48] sm:$0xff] }
0x123c   :  { %v4556_v36 = vadd.f32 1e-05, %v4543_v6 }
0x123d   :  { %v10342_v14 = vpop.permute.xlu0 %4590 }
0x123e   :  { %v4593_v20 = vmul.f32 %v10342_v14, %v4577_v60  ;;  %v4594_v44 = vmul.f32 %v10342_v14, %v4578_v19 }
0x1247   :  { %v4507_v29 = vpop.xlane.xlu1 %4506 }
0x1248   :  { %v4540_v15 = vmul.f32 0.125, %v4507_v29  ;;  %v5568_v29 = vld [vmem:[%s10752_s3 + $0x50] sm:$0xff] }
0x1249   :  { %6787 = vmatpush3.msra.mxu1 %v5568_v29 }
0x124a   :  { %v4553_v2 = vadd.f32 1e-05, %v4540_v15  ;;  %6788 = vmatprep.subr.mxu1 %v10774_v1 }
0x124b   :  { %v4513_v61 = vpop.xlane.xlu1 %4512  ;;  %6789 = vmatpush3.msra.mxu1 %v5567_v26 }
0x124c   :  { %7190 = vrsqrt.f32 %v4553_v2  ;;  %v4542_v28 = vmul.f32 0.125, %v4513_v61  ;;  %6790 = vmatprep.subr.mxu1 %v10774_v1  ;;  %v5566_v2 = vld [vmem:[%s10752_s3 + $0x40] sm:$0xff] }
0x124d   :  { %7192 = vrsqrt.f32 %v4554_v57  ;;  %6791 = vmatpush3.msra.mxu1 %v5566_v2 }
0x124e   :  { %v4555_v54 = vadd.f32 1e-05, %v4542_v28 }
0x124f   :  { %v4519_v50 = vpop.xlane.xlu1 %4518 }
0x1250   :  { %7194 = vrsqrt.f32 %v4555_v54  ;;  %v4544_v8 = vmul.f32 0.125, %v4519_v50 }
0x1251   :  { %7196 = vrsqrt.f32 %v4556_v36 }
0x1252   :  { %v4557_v63 = vadd.f32 1e-05, %v4544_v8 }
0x1253   :  { %v10346_v9 = vpop.permute.xlu1 %4606 }
0x1254   :  { %v4609_v35 = vadd.f32 %v10346_v9, %v4593_v20  ;;  %7198 = vrsqrt.f32 %v4557_v63  ;;  %v4610_v34 = vadd.f32 %v10346_v9, %v4594_v44 }
0x1256   :  { %6746 = vmatmul.mubr.msk.f32.vlgmr.msra.gmra.mxu0 %vm252_vm3, %v4609_v35 }
0x1257   :  { %6748 = vmatprep.mubr.msk.f32.mxu0 %vm7306_vm1, %v10774_v1 }
0x1259   :  { %v7191_v25 = vpop.eup %7190 }
0x125a   :  { %v4579_v5 = vmul.f32 %v7191_v25, %v10292_v39  ;;  %6749 = vmatmul.mubr.msk.f32.gmra.mxu0 %vm252_vm3, %v4610_v34  ;;  %v7193_v59 = vpop.eup %7192 }
0x125b   :  { %6751 = vmatprep.mubr.msk.f32.mxu0 %vm7306_vm1, %v10774_v1  ;;  %v4580_v55 = vmul.f32 %v7193_v59, %v10279_v17 }
0x125c   :  { %v4595_v58 = vmul.f32 %v10342_v14, %v4579_v5 }
0x125d   :  { %v7195_v23 = vpop.eup %7194  ;;  %v4596_v56 = vmul.f32 %v10342_v14, %v4580_v55 }
0x125e   :  { %v4581_v48 = vmul.f32 %v7195_v23, %v10298_v4  ;;  %v4611_v16 = vadd.f32 %v10346_v9, %v4595_v58  ;;  %v7197_v39 = vpop.eup %7196 }
0x125f   :  { %v4612_v45 = vadd.f32 %v10346_v9, %v4596_v56  ;;  %v4582_v41 = vmul.f32 %v7197_v39, %v10286_v30 }
0x1260   :  { %6752 = vmatmul.mubr.msk.f32.gmra.mxu0 %vm252_vm3, %v4611_v16  ;;  %v4597_v38 = vmul.f32 %v10342_v14, %v4581_v48 }
0x1261   :  { %6754 = vmatprep.mubr.msk.f32.mxu0 %vm7306_vm1, %v10774_v1  ;;  %v7199_v49 = vpop.eup %7198  ;;  %v4598_v31 = vmul.f32 %v10342_v14, %v4582_v41 }
0x1262   :  { %v4583_v17 = vmul.f32 %v7199_v49, %v10307_v0  ;;  %v4613_v4 = vadd.f32 %v10346_v9, %v4597_v38 }
0x1263   :  { %v4614_v42 = vadd.f32 %v10346_v9, %v4598_v31 }
0x1264   :  { %6755 = vmatmul.mubr.msk.f32.gmra.mxu0 %vm252_vm3, %v4612_v45  ;;  %v4599_v30 = vmul.f32 %v10342_v14, %v4583_v17 }
0x1265   :  { %6757 = vmatprep.mubr.msk.f32.mxu0 %vm7306_vm1, %v10774_v1 }
0x1266   :  { %v4615_v0 = vadd.f32 %v10346_v9, %v4599_v30 }
0x1268   :  { %6758 = vmatmul.mubr.msk.f32.gmra.mxu0 %vm252_vm3, %v4613_v4 }
0x1269   :  { %6760 = vmatprep.mubr.msk.f32.mxu0 %vm7306_vm1, %v10774_v1 }
0x126c   :  { %6761 = vmatmul.mubr.msk.f32.gmra.mxu0 %vm252_vm3, %v4614_v42 }
0x126d   :  { %6763 = vmatprep.mubr.msk.f32.mxu0 %vm7306_vm1, %v10774_v1 }
0x1270   :  { %6764 = vmatmul.mubr.msk.f32.gmra.mxu0 %vm252_vm3, %v4615_v0 }
0x1271   :  { %6766 = vmatprep.mubr.msk.f32.mxu0 %vm7306_vm1, %v10774_v1 }
0x127d   :  { %v4314_v12 = vpop.f32.mrf.mxu1 }
0x127e   :  { %4370 = vrot.lane.b32.xlu1 %v4314_v12, %s7312_s21 }
0x127f   :  { %v6727_v21 = vpop.f32.mrf.mxu1 }
0x1293   :  { %v4319_v13 = vpop.f32.mrf.mxu1 }
0x1294   :  { %4372 = vrot.lane.b32.xlu1 %v4319_v13, %s7312_s21 }
0x1295   :  { %v6730_v51 = vpop.f32.mrf.mxu1 }
0x1297   :  { %v4324_v7 = vpop.f32.mrf.mxu1 }
0x1298   :  { %4374 = vrot.lane.b32.xlu0 %v4324_v7, %s7312_s21 }
0x1299   :  { %v6733_v27 = vpop.f32.mrf.mxu1 }
0x12cb   :  { %v4329_v37 = vpop.f32.mrf.mxu1 }
0x12cc   :  { %4376 = vrot.lane.b32.xlu1 %v4329_v37, %s7312_s21 }
0x12cd   :  { %v6736_v43 = vpop.f32.mrf.mxu1 }
0x12cf   :  { %v4334_v47 = vpop.f32.mrf.mxu1 }
0x12d0   :  { %4378 = vrot.lane.b32.xlu0 %v4334_v47, %s7312_s21 }
0x12d1   :  { %v6739_v15 = vpop.f32.mrf.mxu1 }
0x12d3   :  { %v4339_v57 = vpop.f32.mrf.mxu1 }
0x12d4   :  { %4380 = vrot.lane.b32.xlu1 %v4339_v57, %s7312_s21 }
0x12d5   :  { %v6742_v61 = vpop.f32.mrf.mxu1 }
0x12f0   :  { %v4371_v6 = vpop.permute.xlu1 %4370 }
0x12f1   :  { %v4402_v28 = vsel %vm670_vm5, %v10143_v32, %v4371_v6 }
0x12f2   :  { %v10412_v46 = vadd.f32 %v4402_v28, %v9164_v52  ;;  %v10789_v52 = vld [vmem:[#allocation8_spill] sm:$0xff] }
0x12f4   :  { %v4442_v54 = vsel %vm252_vm3, %v10412_v46, 0.0 }
0x12f5   :  { %4443 = vadd.xlane.f32.xlu0 %v4442_v54 }
0x1306   :  { %v4373_v50 = vpop.permute.xlu1 %4372 }
0x1307   :  { %v4403_v60 = vsel %vm670_vm5, %v10145_v40, %v4373_v50 }
0x1308   :  { %v10419_v36 = vadd.f32 %v4403_v60, %v9170_v24  ;;  %v10433_v24 = vld [vmem:[%s10753_s4 + $0xa] ss:$0 sm:$0xff] }
0x130a   :  { %v4375_v8 = vpop.permute.xlu0 %4374  ;;  %v4445_v33 = vsel %vm252_vm3, %v10419_v36, 0.0 }
0x130b   :  { %v4404_v32 = vsel %vm670_vm5, %v10147_v53, %v4375_v8  ;;  %4446 = vadd.xlane.f32.xlu1 %v4445_v33 }
0x130c   :  { %v10426_v63 = vadd.f32 %v4404_v32, %v10789_v52 }
0x130e   :  { %v4448_v20 = vsel %vm252_vm3, %v10426_v63, 0.0 }
0x130f   :  { %4449 = vadd.xlane.f32.xlu0 %v4448_v20 }
0x1316   :  { %v4731_v40 = vpop.f32.mrf.mxu0 }
0x1317   :  { %v10436_v19 = vadd.f32 %v10433_v24, %v4731_v40 }
0x1318   :  { %v6747_v35 = vpop.f32.mrf.mxu0 }
0x1319   :  { %v10439_v53 = vmul.f32 0.70710677, %v10436_v19 }
0x131a   :  { %v4736_v44 = vpop.f32.mrf.mxu0 }
0x131b   :  { %v4821_v34 = vand.u32 2147483647, %v10439_v53  ;;  %v10443_v25 = vadd.f32 %v10433_v24, %v4736_v44  ;;  %vm5081_vm0 = vcmp.ge.f32.partialorder %v10439_v53, 0.0 }
0x131c   :  { %v6750_v5 = vpop.f32.mrf.mxu0 }
0x131d   :  { %v4834_v59 = vmul.f32 0.3275911, %v4821_v34  ;;  %v10446_v58 = vmul.f32 0.70710677, %v10443_v25  ;;  %v5003_v17 = vsub.f32 0.0, %v4821_v34 }
0x131f   :  { %v4847_v23 = vadd.f32 1.0, %v4834_v59  ;;  %v4822_v55 = vand.u32 2147483647, %v10446_v58  ;;  %v5016_v13 = vmul.f32 %v5003_v17, %v4821_v34  ;;  %vm5082_vm6 = vcmp.ge.f32.partialorder %v10446_v58, 0.0 }
0x1320   :  { %v4741_v48 = vpop.f32.mrf.mxu0 }
0x1321   :  { %7200 = vrcp.f32 %v4847_v23  ;;  %v4835_v16 = vmul.f32 0.3275911, %v4822_v55  ;;  %v10450_v56 = vadd.f32 %v10433_v24, %v4741_v48  ;;  %v5004_v27 = vsub.f32 0.0, %v4822_v55 }
0x1322   :  { %v6753_v39 = vpop.f32.mrf.mxu0  ;;  %v5029_v26 = vmul.f32 1.442695, %v5016_v13 }
0x1323   :  { %v4848_v45 = vadd.f32 1.0, %v4835_v16  ;;  %v10453_v38 = vmul.f32 0.70710677, %v10450_v56  ;;  %v5017_v6 = vmul.f32 %v5004_v27, %v4822_v55 }
0x1324   :  { %v4746_v49 = vpop.f32.mrf.mxu0 }
0x1325   :  { %7202 = vrcp.f32 %v4848_v45  ;;  %v10456_v41 = vadd.f32 %v10433_v24, %v4746_v49  ;;  %v4823_v4 = vand.u32 2147483647, %v10453_v38  ;;  %v5031_v34 = vmul.f32 1.442695, %v5017_v6 }
0x1326   :  { %v6756_v31 = vpop.f32.mrf.mxu0  ;;  %v10504_v6 = vmul.f32 0.5, %v10443_v25 }
0x1327   :  { %v10460_v42 = vmul.f32 0.70710677, %v10456_v41  ;;  %v4836_v30 = vmul.f32 0.3275911, %v4823_v4  ;;  %v5005_v52 = vsub.f32 0.0, %v4823_v4 }
0x1328   :  { %v4751_v0 = vpop.f32.mrf.mxu0 }
0x1329   :  { %v4824_v12 = vand.u32 2147483647, %v10460_v42  ;;  %v10464_v21 = vadd.f32 %v10433_v24, %v4751_v0  ;;  %v4849_v51 = vadd.f32 1.0, %v4836_v30  ;;  %v5018_v16 = vmul.f32 %v5005_v52, %v4823_v4 }
0x132a   :  { %v6759_v7 = vpop.f32.mrf.mxu0  ;;  %vm5084_vm7 = vcmp.ge.f32.partialorder %v10460_v42, 0.0 }
0x132b   :  { %v4837_v37 = vmul.f32 0.3275911, %v4824_v12  ;;  %v10467_v43 = vmul.f32 0.70710677, %v10464_v21  ;;  %7204 = vrcp.f32 %v4849_v51  ;;  %v5006_v5 = vsub.f32 0.0, %v4824_v12 }
0x132c   :  { %v4756_v18 = vpop.f32.mrf.mxu0  ;;  %v5033_v4 = vmul.f32 1.442695, %v5018_v16 }
0x132d   :  { %v4850_v47 = vadd.f32 1.0, %v4837_v37  ;;  %v4825_v29 = vand.u32 2147483647, %v10467_v43  ;;  %v10473_v57 = vadd.f32 %v10433_v24, %v4756_v18  ;;  %v5019_v30 = vmul.f32 %v5006_v5, %v4824_v12 }
0x132e   :  { %v10470_v15 = vpop.eup %7200  ;;  %v6762_v2 = vpop.f32.mrf.mxu0  ;;  %vm5085_vm14 = vcmp.ge.f32.partialorder %v10467_v43, 0.0 }
0x132f   :  { %v4886_v61 = vmul.f32 1.0614054, %v10470_v15  ;;  %7206 = vrcp.f32 %v4850_v47  ;;  %v4838_v28 = vmul.f32 0.3275911, %v4825_v29  ;;  %v10477_v54 = vmul.f32 0.70710677, %v10473_v57 }
0x1330   :  { %v4761_v50 = vpop.f32.mrf.mxu0  ;;  %7208 = vpow2.f32 %v5029_v26  ;;  %v5007_v39 = vsub.f32 0.0, %v4825_v29  ;;  %v10497_v47 = vmul.f32 0.5, %v10436_v19 }
0x1331   :  { %v4899_v60 = vadd.f32 -1.4531521, %v4886_v61  ;;  %v4851_v8 = vadd.f32 1.0, %v4838_v28  ;;  %v10480_v33 = vadd.f32 %v10433_v24, %v4761_v50  ;;  %v4826_v20 = vand.u32 2147483647, %v10477_v54 }
0x1332   :  { %v10482_v32 = vpop.eup %7202  ;;  %v6765_v40 = vpop.f32.mrf.mxu0  ;;  %v5020_v18 = vmul.f32 %v5007_v39, %v4825_v29  ;;  %v5035_v50 = vmul.f32 1.442695, %v5019_v30  ;;  %v10790_v39 = vld [vmem:[#allocation5_spill] sm:$0xff]  ;;  %vm5086_vm15 = vcmp.ge.f32.partialorder %v10477_v54, 0.0 }
0x1333   :  { %v4912_v35 = vmul.f32 %v10470_v15, %v4899_v60  ;;  %v4887_v44 = vmul.f32 1.0614054, %v10482_v32  ;;  %7210 = vrcp.f32 %v4851_v8  ;;  %v4839_v59 = vmul.f32 0.3275911, %v4826_v20 }
0x1334   :  { %v10488_v48 = vmul.f32 0.70710677, %v10480_v33  ;;  %7212 = vpow2.f32 %v5031_v34  ;;  %v5008_v0 = vsub.f32 0.0, %v4826_v20  ;;  %v5037_v40 = vmul.f32 1.442695, %v5020_v18 }
0x1335   :  { %v4925_v23 = vadd.f32 1.4214138, %v4912_v35  ;;  %v4900_v55 = vadd.f32 -1.4531521, %v4887_v44  ;;  %v4852_v45 = vadd.f32 1.0, %v4839_v59  ;;  %v4801_v54 = vmul.f32 0.5, %v10480_v33 }
0x1336   :  { %v4827_v31 = vand.u32 2147483647, %v10488_v48  ;;  %v5021_v60 = vmul.f32 %v5008_v0, %v4826_v20  ;;  %vm5087_vm2 = vcmp.ge.f32.partialorder %v10488_v48, 0.0 }
0x1337   :  { %v4938_v49 = vmul.f32 %v10470_v15, %v4925_v23  ;;  %v4913_v17 = vmul.f32 %v10482_v32, %v4900_v55  ;;  %7214 = vrcp.f32 %v4852_v45 }
0x1338   :  { %v10493_v13 = vpop.eup %7204  ;;  %v4840_v27 = vmul.f32 0.3275911, %v4827_v31  ;;  %v5009_v35 = vsub.f32 0.0, %v4827_v31  ;;  %v5039_v16 = vmul.f32 1.442695, %v5021_v60 }
0x1339   :  { %v4951_v51 = vadd.f32 -0.28449672, %v4938_v49  ;;  %v4926_v7 = vadd.f32 1.4214138, %v4913_v17  ;;  %v4888_v37 = vmul.f32 1.0614054, %v10493_v13 }
0x133a   :  { %v4853_v61 = vadd.f32 1.0, %v4840_v27 }
0x133b   :  { %v4964_v26 = vmul.f32 %v10470_v15, %v4951_v51  ;;  %v4939_v2 = vmul.f32 %v10482_v32, %v4926_v7  ;;  %v4901_v28 = vadd.f32 -1.4531521, %v4888_v37  ;;  %v5022_v51 = vmul.f32 %v5009_v35, %v4827_v31 }
0x133c   :  { %v10501_v12 = vpop.eup %7206  ;;  %7216 = vrcp.f32 %v4853_v61 }
0x133d   :  { %v4977_v8 = vadd.f32 0.2548296, %v4964_v26  ;;  %v4952_v52 = vadd.f32 -0.28449672, %v4939_v2  ;;  %v4889_v29 = vmul.f32 1.0614054, %v10501_v12  ;;  %v4914_v19 = vmul.f32 %v10493_v13, %v4901_v28  ;;  %v7209_v34 = vpop.eup %7208 }
0x133e   :  { %7218 = vpow2.f32 %v5033_v4  ;;  %v4377_v44 = vpop.permute.xlu1 %4376 }
0x133f   :  { %v4990_v25 = vmul.f32 %v10470_v15, %v4977_v8  ;;  %v4965_v5 = vmul.f32 %v10482_v32, %v4952_v52  ;;  %v4902_v59 = vadd.f32 -1.4531521, %v4889_v29  ;;  %v4405_v20 = vsel %vm670_vm5, %v10149_v22, %v4377_v44 }
0x1340   :  { %v10513_v23 = vpop.eup %7210  ;;  %v4927_v55 = vadd.f32 1.4214138, %v4914_v19  ;;  %7220 = vpow2.f32 %v5035_v50  ;;  %v10516_v45 = vadd.f32 %v4405_v20, %v10790_v39  ;;  %v5041_v29 = vmul.f32 1.442695, %v5022_v51  ;;  %v10791_v19 = vld [vmem:[#allocation6_spill] sm:$0xff] }
0x1341   :  { %v5055_v49 = vmul.f32 %v7209_v34, %v4990_v25  ;;  %v4978_v17 = vadd.f32 0.2548296, %v4965_v5  ;;  %v4915_v30 = vmul.f32 %v10501_v12, %v4902_v59  ;;  %v4890_v15 = vmul.f32 1.0614054, %v10513_v23  ;;  %v7213_v26 = vpop.eup %7212 }
0x1342   :  { %v4940_v0 = vmul.f32 %v10493_v13, %v4927_v55  ;;  %7222 = vpow2.f32 %v5037_v40  ;;  %v4379_v7 = vpop.permute.xlu0 %4378  ;;  %v4451_v22 = vsel %vm252_vm3, %v10516_v45, 0.0 }
0x1343   :  { %v5068_v27 = vsub.f32 1.0, %v5055_v49  ;;  %v4991_v37 = vmul.f32 %v10482_v32, %v4978_v17  ;;  %v4928_v4 = vadd.f32 1.4214138, %v4915_v30  ;;  %v4903_v18 = vadd.f32 -1.4531521, %v4890_v15  ;;  %4452 = vadd.xlane.f32.xlu0 %v4451_v22  ;;  %v10792_v17 = vld [vmem:[#allocation7_spill] sm:$0xff] }
0x1344   :  { %v4953_v2 = vadd.f32 -0.28449672, %v4940_v0  ;;  %7224 = vpow2.f32 %v5039_v16  ;;  %v4406_v61 = vsel %vm670_vm5, %v10156_v11, %v4379_v7  ;;  %v10527_v28 = vpop.eup %7214 }
0x1345   :  { %v5094_v31 = vsub.f32 0.0, %v5068_v27  ;;  %v5056_v50 = vmul.f32 %v7213_v26, %v4991_v37  ;;  %v4941_v60 = vmul.f32 %v10501_v12, %v4928_v4  ;;  %v4916_v8 = vmul.f32 %v10513_v23, %v4903_v18 }
0x1346   :  { %v4966_v32 = vmul.f32 %v10493_v13, %v4953_v2  ;;  %v4891_v52 = vmul.f32 1.0614054, %v10527_v28  ;;  %v10534_v40 = vadd.f32 %v4406_v61, %v10791_v19  ;;  %v4381_v35 = vpop.permute.xlu1 %4380  ;;  %7226 = vpow2.f32 %v5041_v29 }
0x1347   :  { %v5107_v11 = vsel %vm5081_vm0, %v5068_v27, %v5094_v31  ;;  %v5069_v44 = vsub.f32 1.0, %v5056_v50  ;;  %v4954_v34 = vadd.f32 -0.28449672, %v4941_v60  ;;  %v4929_v25 = vadd.f32 1.4214138, %v4916_v8 }
0x1348   :  { %v5120_v5 = vadd.f32 1.0, %v5107_v11  ;;  %v4979_v59 = vadd.f32 0.2548296, %v4966_v32  ;;  %v4904_v20 = vadd.f32 -1.4531521, %v4891_v52  ;;  %v4407_v55 = vsel %vm670_vm5, %v10158_v62, %v4381_v35 }
0x1349   :  { %v5095_v16 = vsub.f32 0.0, %v5069_v44  ;;  %v4967_v39 = vmul.f32 %v10501_v12, %v4954_v34  ;;  %v4942_v49 = vmul.f32 %v10513_v23, %v4929_v25  ;;  %v10543_v30 = vadd.f32 %v4407_v55, %v10792_v17  ;;  %v10545_v15 = vpop.eup %7216 }
0x134a   :  { %v5133_v53 = vmul.f32 %v5120_v5, %v10497_v47  ;;  %v4992_v0 = vmul.f32 %v10493_v13, %v4979_v59  ;;  %v4917_v51 = vmul.f32 %v10527_v28, %v4904_v20  ;;  %v4454_v7 = vsel %vm252_vm3, %v10534_v40, 0.0 }
0x134b   :  { %v7219_v62 = vpop.eup %7218  ;;  %v5108_v22 = vsel %vm5082_vm6, %v5069_v44, %v5095_v16  ;;  %v4980_v27 = vadd.f32 0.2548296, %v4967_v39  ;;  %v4955_v37 = vadd.f32 -0.28449672, %v4942_v49  ;;  %v4892_v4 = vmul.f32 1.0614054, %v10545_v15  ;;  %4455 = vadd.xlane.f32.xlu0 %v4454_v7 }
0x134c   :  { %v5121_v18 = vadd.f32 1.0, %v5108_v22  ;;  %v5057_v26 = vmul.f32 %v7219_v62, %v4992_v0  ;;  %v4930_v2 = vadd.f32 1.4214138, %v4917_v51  ;;  %v4457_v13 = vsel %vm289_vm4, %v10543_v30, 0.0  ;;  %6793 = vmatmul.mubr.msk.f32.vlgmr.msra.gmra.mxu1 %vm2596_vm9, %v5133_v53 }
0x134d   :  { %v7221_v47 = vpop.eup %7220  ;;  %v4993_v61 = vmul.f32 %v10501_v12, %v4980_v27  ;;  %v4968_v31 = vmul.f32 %v10513_v23, %v4955_v37  ;;  %v4905_v58 = vadd.f32 -1.4531521, %v4892_v4  ;;  %4458 = vadd.xlane.f32.xlu1 %v4457_v13  ;;  %6795 = vmatprep.mubr.msk.f32.mxu1 %vm7306_vm1, %v10774_v1  ;;  %vm5083_vm5 = vcmp.ge.f32.partialorder %v10453_v38, 0.0 }
0x134e   :  { %v5134_v50 = vmul.f32 %v5121_v18, %v10504_v6  ;;  %v5070_v60 = vsub.f32 1.0, %v5057_v26  ;;  %v4943_v8 = vmul.f32 %v10527_v28, %v4930_v2  ;;  %v4797_v5 = vmul.f32 0.5, %v10450_v56 }
0x134f   :  { %v7223_v32 = vpop.eup %7222  ;;  %v5058_v52 = vmul.f32 %v7221_v47, %v4993_v61  ;;  %v4981_v19 = vadd.f32 0.2548296, %v4968_v31  ;;  %v4918_v35 = vmul.f32 %v10545_v15, %v4905_v58  ;;  %v4798_v0 = vmul.f32 0.5, %v10456_v41 }
0x1350   :  { %v5096_v11 = vsub.f32 0.0, %v5070_v60  ;;  %v4956_v12 = vadd.f32 -0.28449672, %v4943_v8  ;;  %6796 = vmatmul.mubr.msk.f32.gmra.mxu1 %vm2596_vm9, %v5134_v50  ;;  %v4799_v4 = vmul.f32 0.5, %v10464_v21  ;;  %v4800_v61 = vmul.f32 0.5, %v10473_v57 }
0x1351   :  { %v7225_v44 = vpop.eup %7224  ;;  %v5071_v34 = vsub.f32 1.0, %v5058_v52  ;;  %v4994_v25 = vmul.f32 %v10513_v23, %v4981_v19  ;;  %v4931_v6 = vadd.f32 1.4214138, %v4918_v35  ;;  %6798 = vmatprep.mubr.msk.f32.mxu1 %vm7306_vm1, %v10774_v1 }
0x1352   :  { %v5109_v59 = vsel %vm5083_vm5, %v5070_v60, %v5096_v11  ;;  %v4969_v20 = vmul.f32 %v10527_v28, %v4956_v12 }
0x1353   :  { %v5122_v29 = vadd.f32 1.0, %v5109_v59  ;;  %v5097_v55 = vsub.f32 0.0, %v5071_v34  ;;  %v5059_v16 = vmul.f32 %v7223_v32, %v4994_v25  ;;  %v4944_v39 = vmul.f32 %v10545_v15, %v4931_v6  ;;  %v7227_v26 = vpop.eup %7226 }
0x1354   :  { %v4982_v38 = vadd.f32 0.2548296, %v4969_v20 }
0x1355   :  { %v5135_v49 = vmul.f32 %v5122_v29, %v4797_v5  ;;  %v5110_v17 = vsel %vm5084_vm7, %v5071_v34, %v5097_v55  ;;  %v5072_v23 = vsub.f32 1.0, %v5059_v16  ;;  %v4957_v53 = vadd.f32 -0.28449672, %v4944_v39 }
0x1356   :  { %v5123_v51 = vadd.f32 1.0, %v5110_v17  ;;  %v4995_v56 = vmul.f32 %v10527_v28, %v4982_v38 }
0x1357   :  { %v5098_v7 = vsub.f32 0.0, %v5072_v23  ;;  %v4970_v62 = vmul.f32 %v10545_v15, %v4957_v53  ;;  %6799 = vmatmul.mubr.msk.f32.gmra.mxu1 %vm2596_vm9, %v5135_v49 }
0x1358   :  { %v5136_v22 = vmul.f32 %v5123_v51, %v4798_v0  ;;  %v5060_v27 = vmul.f32 %v7225_v44, %v4995_v56  ;;  %6801 = vmatprep.mubr.msk.f32.mxu1 %vm7306_vm1, %v10774_v1 }
0x1359   :  { %v5111_v42 = vsel %vm5085_vm14, %v5072_v23, %v5098_v7  ;;  %v4983_v37 = vadd.f32 0.2548296, %v4970_v62 }
0x135a   :  { %v5124_v41 = vadd.f32 1.0, %v5111_v42  ;;  %v5073_v18 = vsub.f32 1.0, %v5060_v27 }
0x135b   :  { %v4996_v28 = vmul.f32 %v10545_v15, %v4983_v37  ;;  %6802 = vmatmul.mubr.msk.f32.gmra.mxu1 %vm2596_vm9, %v5136_v22 }
0x135c   :  { %v5137_v2 = vmul.f32 %v5124_v41, %v4799_v4  ;;  %v5099_v13 = vsub.f32 0.0, %v5073_v18  ;;  %6804 = vmatprep.mubr.msk.f32.mxu1 %vm7306_vm1, %v10774_v1 }
0x135d   :  { %v5061_v43 = vmul.f32 %v7227_v26, %v4996_v28 }
0x135e   :  { %v5112_v47 = vsel %vm5086_vm15, %v5073_v18, %v5099_v13 }
0x135f   :  { %v5125_v31 = vadd.f32 1.0, %v5112_v47  ;;  %v5074_v21 = vsub.f32 1.0, %v5061_v43  ;;  %6805 = vmatmul.mubr.msk.f32.gmra.mxu1 %vm2596_vm9, %v5137_v2 }
0x1360   :  { %6807 = vmatprep.mubr.msk.f32.mxu1 %vm7306_vm1, %v10774_v1 }
0x1361   :  { %v5138_v15 = vmul.f32 %v5125_v31, %v4800_v61  ;;  %v5100_v58 = vsub.f32 0.0, %v5074_v21 }
0x1363   :  { %v5113_v50 = vsel %vm5087_vm2, %v5074_v21, %v5100_v58  ;;  %6808 = vmatmul.mubr.msk.f32.gmra.mxu1 %vm2596_vm9, %v5138_v15 }
0x1364   :  { %v5126_v60 = vadd.f32 1.0, %v5113_v50  ;;  %6810 = vmatprep.mubr.msk.f32.mxu1 %vm7306_vm1, %v10774_v1 }
0x1366   :  { %v5139_v57 = vmul.f32 %v5126_v60, %v4801_v54 }
0x1368   :  { %6811 = vmatmul.mubr.msk.f32.gmra.mxu1 %vm2596_vm9, %v5139_v57  ;;  %v5692_v57 = vld [vmem:[%s10753_s4 + $0xb] ss:$0 sm:$0xff] }
0x1369   :  { %6813 = vmatprep.mubr.msk.f32.mxu1 %vm7306_vm1, %v10774_v1 }
0x137e   :  { %v4444_v8 = vpop.xlane.xlu0 %4443 }
0x137f   :  { %v4467_v32 = vmul.f32 0.125, %v4444_v8 }
0x1381   :  { %v4480_v52 = vsub.f32 %v10412_v46, %v4467_v32 }
0x1383   :  { %v4493_v48 = vmul.f32 %v4480_v52, %v4480_v52 }
0x1385   :  { %v4520_v19 = vsel %vm252_vm3, %v4493_v48, 0.0 }
0x1386   :  { %4521 = vadd.xlane.f32.xlu0 %v4520_v19 }
0x1394   :  { %v4447_v35 = vpop.xlane.xlu1 %4446 }
0x1395   :  { %v4468_v33 = vmul.f32 0.125, %v4447_v35 }
0x1397   :  { %v10602_v11 = vsub.f32 %v10419_v36, %v4468_v33  ;;  %v5317_v36 = vld [vmem:[%s10755_s6] sm:$0xff] }
0x1398   :  { %v4450_v12 = vpop.xlane.xlu0 %4449  ;;  %6832 = vmatpush3.msra.mxu0 %v5317_v36 }
0x1399   :  { %v4469_v44 = vmul.f32 0.125, %v4450_v12  ;;  %v4494_v34 = vmul.f32 %v10602_v11, %v10602_v11 }
0x139b   :  { %v10607_v25 = vsub.f32 %v10426_v63, %v4469_v44  ;;  %v4523_v6 = vsel %vm252_vm3, %v4494_v34, 0.0 }
0x139c   :  { %4524 = vadd.xlane.f32.xlu1 %v4523_v6 }
0x139d   :  { %v4495_v46 = vmul.f32 %v10607_v25, %v10607_v25 }
0x139f   :  { %v4526_v5 = vsel %vm252_vm3, %v4495_v46, 0.0 }
0x13a0   :  { %4527 = vadd.xlane.f32.xlu0 %v4526_v5 }
0x13cc   :  { %v4453_v59 = vpop.xlane.xlu0 %4452 }
0x13cd   :  { %v4470_v20 = vmul.f32 0.125, %v4453_v59 }
0x13cf   :  { %v10617_v29 = vsub.f32 %v10516_v45, %v4470_v20 }
0x13d1   :  { %v4496_v63 = vmul.f32 %v10617_v29, %v10617_v29 }
0x13d3   :  { %v4529_v55 = vsel %vm252_vm3, %v4496_v63, 0.0 }
0x13d4   :  { %v4456_v16 = vpop.xlane.xlu0 %4455  ;;  %4530 = vadd.xlane.f32.xlu1 %v4529_v55 }
0x13d5   :  { %v4471_v39 = vmul.f32 0.125, %v4456_v16 }
0x13d6   :  { %v4459_v38 = vpop.xlane.xlu1 %4458 }
0x13d7   :  { %v10623_v49 = vsub.f32 %v10534_v40, %v4471_v39  ;;  %v4472_v17 = vmul.f32 0.125, %v4459_v38 }
0x13d9   :  { %v10626_v23 = vsub.f32 %v10543_v30, %v4472_v17  ;;  %v4497_v45 = vmul.f32 %v10623_v49, %v10623_v49 }
0x13db   :  { %v4532_v53 = vsel %vm252_vm3, %v4497_v45, 0.0  ;;  %v4498_v0 = vmul.f32 %v10626_v23, %v10626_v23 }
0x13dc   :  { %4533 = vadd.xlane.f32.xlu0 %v4532_v53 }
0x13dd   :  { %v4535_v51 = vsel %vm289_vm4, %v4498_v0, 0.0  ;;  %vm5315_vm4 = vcmask 1040384  }
0x13de   :  { %4536 = vadd.xlane.f32.xlu1 %v4535_v51 }
0x140c   :  { %v5251_v56 = vpop.f32.mrf.mxu1 }
0x140d   :  { %v5304_v50 = vadd.f32 %v5251_v56, %v10185_v10 }
0x140e   :  { %v6794_v7 = vpop.f32.mrf.mxu1 }
0x140f   :  { %v4522_v40 = vpop.xlane.xlu0 %4521  ;;  %v5310_v19 = vadd.f32 %v5692_v57, %v5304_v50 }
0x1410   :  { %v4545_v62 = vmul.f32 0.125, %v4522_v40  ;;  %v5256_v22 = vpop.f32.mrf.mxu1 }
0x1412   :  { %v4558_v27 = vadd.f32 1e-05, %v4545_v62  ;;  %v6797_v30 = vpop.f32.mrf.mxu1 }
0x1414   :  { %7228 = vrsqrt.f32 %v4558_v27 }
0x1417   :  { %v5260_v42 = vpop.f32.mrf.mxu1 }
0x1419   :  { %v6800_v37 = vpop.f32.mrf.mxu1 }
0x141b   :  { %v5264_v4 = vpop.f32.mrf.mxu1 }
0x141d   :  { %v6803_v41 = vpop.f32.mrf.mxu1 }
0x141f   :  { %v5268_v18 = vpop.f32.mrf.mxu1 }
0x1421   :  { %v7229_v28 = vpop.eup %7228  ;;  %v6806_v26 = vpop.f32.mrf.mxu1 }
0x1422   :  { %v4584_v2 = vmul.f32 %v7229_v28, %v4480_v52 }
0x1423   :  { %v5272_v13 = vpop.f32.mrf.mxu1 }
0x1424   :  { %v4600_v43 = vmul.f32 %v10342_v14, %v4584_v2 }
0x1425   :  { %v6809_v47 = vpop.f32.mrf.mxu1  ;;  %v4525_v61 = vpop.xlane.xlu1 %4524 }
0x1426   :  { %v4546_v31 = vmul.f32 0.125, %v4525_v61  ;;  %v4616_v21 = vadd.f32 %v10346_v9, %v4600_v43 }
0x1428   :  { %v4559_v15 = vadd.f32 1e-05, %v4546_v31  ;;  %v5276_v58 = vpop.f32.mrf.mxu1  ;;  %6767 = vmatmul.mubr.msk.f32.gmra.mxu0 %vm252_vm3, %v4616_v21 }
0x1429   :  { %v5305_v54 = vadd.f32 %v5276_v58, %v10238_v3  ;;  %v4528_v60 = vpop.xlane.xlu0 %4527  ;;  %6769 = vmatprep.mubr.msk.f32.mxu0 %vm7306_vm1, %v10774_v1 }
0x142a   :  { %7230 = vrsqrt.f32 %v4559_v15  ;;  %v6812_v8 = vpop.f32.mrf.mxu1  ;;  %v4547_v32 = vmul.f32 0.125, %v4528_v60 }
0x142b   :  { %v5311_v52 = vadd.f32 %v5692_v57, %v5305_v54 }
0x142c   :  { %v4560_v48 = vadd.f32 1e-05, %v4547_v32 }
0x142d   :  { %v5313_v35 = vrot.slane %v5311_v52, 1 }
0x142e   :  { %7232 = vrsqrt.f32 %v4560_v48 }
0x142f   :  { %v5316_v10 = vsel %vm5315_vm4, %v5310_v19, %v5313_v35 }
0x1437   :  { %v7231_v33 = vpop.eup %7230 }
0x1438   :  { %v4585_v3 = vmul.f32 %v7231_v33, %v10602_v11 }
0x143a   :  { %v4601_v12 = vmul.f32 %v10342_v14, %v4585_v3 }
0x143b   :  { %v7233_v44 = vpop.eup %7232 }
0x143c   :  { %v4586_v34 = vmul.f32 %v7233_v44, %v10607_v25  ;;  %v4617_v6 = vadd.f32 %v10346_v9, %v4601_v12 }
0x143e   :  { %6770 = vmatmul.mubr.msk.f32.gmra.mxu0 %vm252_vm3, %v4617_v6  ;;  %v4602_v46 = vmul.f32 %v10342_v14, %v4586_v34 }
0x143f   :  { %6772 = vmatprep.mubr.msk.f32.mxu0 %vm7306_vm1, %v10774_v1 }
0x1440   :  { %v4618_v5 = vadd.f32 %v10346_v9, %v4602_v46 }
0x1442   :  { %6773 = vmatmul.mubr.msk.f32.gmra.mxu0 %vm252_vm3, %v4618_v5 }
0x1443   :  { %6775 = vmatprep.mubr.msk.f32.mxu0 %vm7306_vm1, %v10774_v1 }
0x145d   :  { %v4531_v11 = vpop.xlane.xlu1 %4530 }
0x145e   :  { %v4548_v36 = vmul.f32 0.125, %v4531_v11 }
0x1460   :  { %v4561_v59 = vadd.f32 1e-05, %v4548_v36 }
0x1462   :  { %7234 = vrsqrt.f32 %v4561_v59 }
0x1465   :  { %v4534_v25 = vpop.xlane.xlu0 %4533 }
0x1466   :  { %v4549_v20 = vmul.f32 0.125, %v4534_v25 }
0x1467   :  { %v4537_v63 = vpop.xlane.xlu1 %4536 }
0x1468   :  { %v4562_v55 = vadd.f32 1e-05, %v4549_v20  ;;  %v4550_v16 = vmul.f32 0.125, %v4537_v63 }
0x146a   :  { %7236 = vrsqrt.f32 %v4562_v55  ;;  %v4563_v39 = vadd.f32 1e-05, %v4550_v16 }
0x146c   :  { %7238 = vrsqrt.f32 %v4563_v39 }
0x146f   :  { %v7235_v38 = vpop.eup %7234 }
0x1470   :  { %v4587_v17 = vmul.f32 %v7235_v38, %v10617_v29 }
0x1472   :  { %v4603_v45 = vmul.f32 %v10342_v14, %v4587_v17 }
0x1474   :  { %v4619_v53 = vadd.f32 %v10346_v9, %v4603_v45 }
0x1476   :  { %6776 = vmatmul.mubr.msk.f32.gmra.mxu0 %vm252_vm3, %v4619_v53 }
0x1477   :  { %v7237_v0 = vpop.eup %7236  ;;  %6778 = vmatprep.mubr.msk.f32.mxu0 %vm7306_vm1, %v10774_v1 }
0x1478   :  { %v4588_v51 = vmul.f32 %v7237_v0, %v10623_v49 }
0x1479   :  { %v7239_v56 = vpop.eup %7238 }
0x147a   :  { %v4589_v7 = vmul.f32 %v7239_v56, %v10626_v23  ;;  %v4604_v40 = vmul.f32 %v10342_v14, %v4588_v51 }
0x147c   :  { %v4620_v62 = vadd.f32 %v10346_v9, %v4604_v40  ;;  %v4605_v29 = vmul.f32 %v10342_v14, %v4589_v7 }
0x147e   :  { %6779 = vmatmul.mubr.msk.f32.gmra.mxu0 %vm252_vm3, %v4620_v62  ;;  %v4621_v22 = vadd.f32 %v10346_v9, %v4605_v29 }
0x147f   :  { %6781 = vmatprep.mubr.msk.f32.mxu0 %vm7306_vm1, %v10774_v1 }
0x1482   :  { %6782 = vmatmul.mubr.msk.f32.gmra.mxu0 %vm252_vm3, %v4621_v22 }
0x1483   :  { %6833 = vmatprep.mubr.msk.f32.mxu0 %vm7306_vm1, %v10774_v1 }
0x1486   :  { %6834 = vmatmul.mubr.msk.f32.vlgmr.msra.gmra.mxu0 %vm252_vm3, %v5316_v10 }
0x14e8   :  { %v4766_v49 = vpop.f32.mrf.mxu0 }
0x14e9   :  { %v4767_v23 = vadd.f32 %v10433_v24, %v4766_v49 }
0x14ea   :  { %v6768_v27 = vpop.f32.mrf.mxu0 }
0x14eb   :  { %v4815_v30 = vmul.f32 0.70710677, %v4767_v23  ;;  %v4802_v55 = vmul.f32 0.5, %v4767_v23 }
0x14ed   :  { %v4828_v14 = vand.u32 2147483647, %v4815_v30  ;;  %vm5088_vm3 = vcmp.ge.f32.partialorder %v4815_v30, 0.0 }
0x14ef   :  { %v4841_v42 = vmul.f32 0.3275911, %v4828_v14  ;;  %v5010_v9 = vsub.f32 0.0, %v4828_v14 }
0x14f1   :  { %v4854_v37 = vadd.f32 1.0, %v4841_v42  ;;  %v5023_v4 = vmul.f32 %v5010_v9, %v4828_v14 }
0x14f3   :  { %7240 = vrcp.f32 %v4854_v37  ;;  %v5043_v13 = vmul.f32 1.442695, %v5023_v4 }
0x14f5   :  { %7242 = vpow2.f32 %v5043_v13 }
0x14fe   :  { %v4771_v41 = vpop.f32.mrf.mxu0 }
0x14ff   :  { %v10677_v18 = vadd.f32 %v10433_v24, %v4771_v41 }
0x1500   :  { %v7241_v28 = vpop.eup %7240  ;;  %v6771_v26 = vpop.f32.mrf.mxu0 }
0x1501   :  { %v4893_v2 = vmul.f32 1.0614054, %v7241_v28  ;;  %v10680_v43 = vmul.f32 0.70710677, %v10677_v18  ;;  %v4803_v13 = vmul.f32 0.5, %v10677_v18 }
0x1502   :  { %v4776_v47 = vpop.f32.mrf.mxu0  ;;  %v7243_v12 = vpop.eup %7242 }
0x1503   :  { %v4906_v61 = vadd.f32 -1.4531521, %v4893_v2  ;;  %v4829_v31 = vand.u32 2147483647, %v10680_v43  ;;  %v10684_v21 = vadd.f32 %v10433_v24, %v4776_v47  ;;  %vm5089_vm8 = vcmp.ge.f32.partialorder %v10680_v43, 0.0 }
0x1504   :  { %v6774_v15 = vpop.f32.mrf.mxu0 }
0x1505   :  { %v4919_v58 = vmul.f32 %v7241_v28, %v4906_v61  ;;  %v4842_v50 = vmul.f32 0.3275911, %v4829_v31  ;;  %v10687_v54 = vmul.f32 0.70710677, %v10684_v21  ;;  %v5011_v33 = vsub.f32 0.0, %v4829_v31 }
0x1507   :  { %v4932_v60 = vadd.f32 1.4214138, %v4919_v58  ;;  %v4855_v57 = vadd.f32 1.0, %v4842_v50  ;;  %v4830_v8 = vand.u32 2147483647, %v10687_v54  ;;  %v5024_v34 = vmul.f32 %v5011_v33, %v4829_v31 }
0x1508   :  { %vm5090_vm10 = vcmp.ge.f32.partialorder %v10687_v54, 0.0  ;;  %v4804_v50 = vmul.f32 0.5, %v10684_v21 }
0x1509   :  { %v4945_v32 = vmul.f32 %v7241_v28, %v4932_v60  ;;  %7244 = vrcp.f32 %v4855_v57  ;;  %v4843_v52 = vmul.f32 0.3275911, %v4830_v8  ;;  %v5012_v6 = vsub.f32 0.0, %v4830_v8 }
0x150a   :  { %v5045_v59 = vmul.f32 1.442695, %v5024_v34 }
0x150b   :  { %v4958_v48 = vadd.f32 -0.28449672, %v4945_v32  ;;  %v4856_v19 = vadd.f32 1.0, %v4843_v52  ;;  %v5025_v25 = vmul.f32 %v5012_v6, %v4830_v8 }
0x150d   :  { %v4971_v35 = vmul.f32 %v7241_v28, %v4958_v48  ;;  %7246 = vrcp.f32 %v4856_v19  ;;  %v5047_v53 = vmul.f32 1.442695, %v5025_v25 }
0x150e   :  { %7248 = vpow2.f32 %v5045_v59 }
0x150f   :  { %v4984_v10 = vadd.f32 0.2548296, %v4971_v35  ;;  %7250 = vpow2.f32 %v5047_v53 }
0x1511   :  { %v4997_v3 = vmul.f32 %v7241_v28, %v4984_v10 }
0x1513   :  { %v5062_v44 = vmul.f32 %v7243_v12, %v4997_v3 }
0x1515   :  { %v5075_v46 = vsub.f32 1.0, %v5062_v44 }
0x1516   :  { %v7245_v5 = vpop.eup %7244 }
0x1517   :  { %v5101_v11 = vsub.f32 0.0, %v5075_v46  ;;  %v4894_v36 = vmul.f32 1.0614054, %v7245_v5 }
0x1519   :  { %v5114_v20 = vsel %vm5088_vm3, %v5075_v46, %v5101_v11  ;;  %v4907_v63 = vadd.f32 -1.4531521, %v4894_v36  ;;  %v5693_v46 = vld [vmem:[%s10755_s6 + $0x8] ss:$0 sm:$0xff]  ;;  %s7314_s6 = smov [#allocation2]  }
0x151a   :  { %v5127_v16 = vadd.f32 1.0, %v5114_v20  ;;  %v7247_v39 = vpop.eup %7246  ;;  %s5415_s20 = sshll.u32 %s7314_s6, 4  ;;  %s5416_s20 = int_to_ptr.vmem [resolvable:$true] %s5415_s20 }
0x151b   :  { %v4920_v38 = vmul.f32 %v7245_v5, %v4907_v63  ;;  %v4895_v45 = vmul.f32 1.0614054, %v7247_v39  ;;  %v7249_v30 = vpop.eup %7248  ;;  %s7283_s22 = scalar_lea.vmem %s5416_s20, 32  ;;  %p7288_p1 = scmp.lt.s32.totalorder %s5416_s20, %s5416_s20 }
0x151c   :  { %v5140_v17 = vmul.f32 %v5127_v16, %v4802_v55  ;;  %v7251_v41 = vpop.eup %7250  ;;  %p7284_p0 = scmp.ne.s32.totalorder %s5416_s20, %s7283_s22  ;;  %p7289_p2 = scmp.lt.s32.totalorder %s7283_s22, %s7283_s22 }
0x151d   :  { %v4933_v0 = vadd.f32 1.4214138, %v4920_v38  ;;  %v4908_v51 = vadd.f32 -1.4531521, %v4895_v45 }
0x151e   :  { %6814 = vmatmul.mubr.msk.f32.gmra.mxu1 %vm2596_vm9, %v5140_v17  ;;  %p7290_p3 = por %p7289_p2, %p7288_p1 }
0x151f   :  { %v4946_v56 = vmul.f32 %v7245_v5, %v4933_v0  ;;  %6816 = vmatprep.mubr.msk.f32.mxu1 %vm7306_vm1, %v10774_v1  ;;  %v4921_v7 = vmul.f32 %v7247_v39, %v4908_v51 }
0x1520   :  { %p7291_p4 = pnand %p7290_p3, %p7284_p0 }
0x1521   :  { %v4959_v40 = vadd.f32 -0.28449672, %v4946_v56  ;;  %v4934_v62 = vadd.f32 1.4214138, %v4921_v7 }
0x1523   :  { %v4972_v29 = vmul.f32 %v7245_v5, %v4959_v40  ;;  %v4947_v22 = vmul.f32 %v7247_v39, %v4934_v62 }
0x1525   :  { %v4985_v49 = vadd.f32 0.2548296, %v4972_v29  ;;  %v4960_v23 = vadd.f32 -0.28449672, %v4947_v22 }
0x1527   :  { %v4998_v27 = vmul.f32 %v7245_v5, %v4985_v49  ;;  %v4973_v14 = vmul.f32 %v7247_v39, %v4960_v23 }
0x1529   :  { %v5063_v42 = vmul.f32 %v7249_v30, %v4998_v27  ;;  %v4986_v37 = vadd.f32 0.2548296, %v4973_v14 }
0x152b   :  { %v5076_v9 = vsub.f32 1.0, %v5063_v42  ;;  %v4999_v4 = vmul.f32 %v7247_v39, %v4986_v37 }
0x152d   :  { %v5102_v28 = vsub.f32 0.0, %v5076_v9  ;;  %v5064_v26 = vmul.f32 %v7251_v41, %v4999_v4 }
0x152f   :  { %v5115_v2 = vsel %vm5089_vm8, %v5076_v9, %v5102_v28  ;;  %v5077_v61 = vsub.f32 1.0, %v5064_v26 }
0x1530   :  { %v5128_v47 = vadd.f32 1.0, %v5115_v2 }
0x1531   :  { %v5103_v15 = vsub.f32 0.0, %v5077_v61 }
0x1532   :  { %v5141_v31 = vmul.f32 %v5128_v47, %v4803_v13 }
0x1533   :  { %v5116_v58 = vsel %vm5090_vm10, %v5077_v61, %v5103_v15 }
0x1534   :  { %6817 = vmatmul.mubr.msk.f32.gmra.mxu1 %vm2596_vm9, %v5141_v31  ;;  %v5129_v60 = vadd.f32 1.0, %v5116_v58 }
0x1535   :  { %6819 = vmatprep.mubr.msk.f32.mxu1 %vm7306_vm1, %v10774_v1 }
0x1536   :  { %v4781_v43 = vpop.f32.mrf.mxu0  ;;  %v5142_v57 = vmul.f32 %v5129_v60, %v4804_v50 }
0x1537   :  { %v10701_v8 = vadd.f32 %v10433_v24, %v4781_v43 }
0x1538   :  { %v6777_v18 = vpop.f32.mrf.mxu0  ;;  %6820 = vmatmul.mubr.msk.f32.gmra.mxu1 %vm2596_vm9, %v5142_v57 }
0x1539   :  { %v10704_v32 = vmul.f32 0.70710677, %v10701_v8  ;;  %6822 = vmatprep.mubr.msk.f32.mxu1 %vm7306_vm1, %v10774_v1 }
0x153b   :  { %v4831_v21 = vand.u32 2147483647, %v10704_v32  ;;  %vm5091_vm12 = vcmp.ge.f32.partialorder %v10704_v32, 0.0 }
0x153d   :  { %v4844_v54 = vmul.f32 0.3275911, %v4831_v21  ;;  %v5013_v11 = vsub.f32 0.0, %v4831_v21 }
0x153e   :  { %v4786_v52 = vpop.f32.mrf.mxu0 }
0x153f   :  { %v4857_v48 = vadd.f32 1.0, %v4844_v54  ;;  %v10711_v19 = vadd.f32 %v10433_v24, %v4786_v52  ;;  %v5026_v55 = vmul.f32 %v5013_v11, %v4831_v21 }
0x1540   :  { %v6780_v35 = vpop.f32.mrf.mxu0 }
0x1541   :  { %7252 = vrcp.f32 %v4857_v48  ;;  %v10714_v10 = vmul.f32 0.70710677, %v10711_v19  ;;  %v5049_v45 = vmul.f32 1.442695, %v5026_v55  ;;  %v4805_v35 = vmul.f32 0.5, %v10701_v8 }
0x1542   :  { %v4791_v33 = vpop.f32.mrf.mxu0  ;;  %v4806_v8 = vmul.f32 0.5, %v10711_v19 }
0x1543   :  { %v4832_v3 = vand.u32 2147483647, %v10714_v10  ;;  %v10718_v12 = vadd.f32 %v10433_v24, %v4791_v33  ;;  %vm5092_vm13 = vcmp.ge.f32.partialorder %v10714_v10, 0.0 }
0x1544   :  { %v6783_v44 = vpop.f32.mrf.mxu0 }
0x1545   :  { %v4845_v34 = vmul.f32 0.3275911, %v4832_v3  ;;  %v10721_v6 = vmul.f32 0.70710677, %v10718_v12  ;;  %v5014_v38 = vsub.f32 0.0, %v4832_v3 }
0x1546   :  { %v5392_v5 = vpop.f32.mrf.mxu0 }
0x1547   :  { %v4858_v36 = vadd.f32 1.0, %v4845_v34  ;;  %v4833_v59 = vand.u32 2147483647, %v10721_v6  ;;  %v10727_v25 = vadd.f32 %v5693_v46, %v5392_v5  ;;  %v5027_v0 = vmul.f32 %v5014_v38, %v4832_v3 }
0x1548   :  { %v6835_v20 = vpop.f32.mrf.mxu0  ;;  %vm5093_vm0 = vcmp.ge.f32.partialorder %v10721_v6, 0.0 }
0x1549   :  { %7254 = vrcp.f32 %v4858_v36  ;;  %v4846_v24 = vmul.f32 0.3275911, %v4833_v59  ;;  %v5397_v63 = vsel %vm5396_vm11, %v10727_v25, -inf  ;;  %v5015_v56 = vsub.f32 0.0, %v4833_v59 }
0x154a   :  { %5398 = vmax.xlane.f32.xlu0 %v5397_v63  ;;  %v5051_v62 = vmul.f32 1.442695, %v5027_v0 }
0x154b   :  { %v4859_v16 = vadd.f32 1.0, %v4846_v24  ;;  %v5028_v49 = vmul.f32 %v5015_v56, %v4833_v59 }
0x154d   :  { %7256 = vrcp.f32 %v4859_v16  ;;  %v5053_v9 = vmul.f32 1.442695, %v5028_v49 }
0x154e   :  { %v7253_v39 = vpop.eup %7252  ;;  %7258 = vpow2.f32 %v5049_v45 }
0x154f   :  { %v4896_v17 = vmul.f32 1.0614054, %v7253_v39  ;;  %7260 = vpow2.f32 %v5051_v62 }
0x1550   :  { %7262 = vpow2.f32 %v5053_v9 }
0x1551   :  { %v4909_v53 = vadd.f32 -1.4531521, %v4896_v17 }
0x1553   :  { %v4922_v51 = vmul.f32 %v7253_v39, %v4909_v53 }
0x1555   :  { %v4935_v7 = vadd.f32 1.4214138, %v4922_v51 }
0x1556   :  { %v7255_v40 = vpop.eup %7254 }
0x1557   :  { %v4948_v29 = vmul.f32 %v7253_v39, %v4935_v7  ;;  %v4897_v22 = vmul.f32 1.0614054, %v7255_v40 }
0x1559   :  { %v4961_v23 = vadd.f32 -0.28449672, %v4948_v29  ;;  %v4910_v27 = vadd.f32 -1.4531521, %v4897_v22 }
0x155a   :  { %v7257_v30 = vpop.eup %7256 }
0x155b   :  { %v4974_v14 = vmul.f32 %v7253_v39, %v4961_v23  ;;  %v4923_v42 = vmul.f32 %v7255_v40, %v4910_v27  ;;  %v4898_v37 = vmul.f32 1.0614054, %v7257_v30  ;;  %v7259_v47 = vpop.eup %7258 }
0x155c   :  { %v7261_v21 = vpop.eup %7260 }
0x155d   :  { %v4987_v4 = vadd.f32 0.2548296, %v4974_v14  ;;  %v4936_v41 = vadd.f32 1.4214138, %v4923_v42  ;;  %v4911_v28 = vadd.f32 -1.4531521, %v4898_v37  ;;  %v7263_v11 = vpop.eup %7262 }
0x155f   :  { %v5000_v26 = vmul.f32 %v7253_v39, %v4987_v4  ;;  %v4949_v2 = vmul.f32 %v7255_v40, %v4936_v41  ;;  %v4924_v13 = vmul.f32 %v7257_v30, %v4911_v28  ;;  %v4807_v39 = vmul.f32 0.5, %v10718_v12 }
0x1561   :  { %v5065_v61 = vmul.f32 %v7259_v47, %v5000_v26  ;;  %v4962_v31 = vadd.f32 -0.28449672, %v4949_v2  ;;  %v4937_v15 = vadd.f32 1.4214138, %v4924_v13 }
0x1563   :  { %v5078_v58 = vsub.f32 1.0, %v5065_v61  ;;  %v4975_v50 = vmul.f32 %v7255_v40, %v4962_v31  ;;  %v4950_v60 = vmul.f32 %v7257_v30, %v4937_v15 }
0x1565   :  { %v5104_v43 = vsub.f32 0.0, %v5078_v58  ;;  %v4988_v57 = vadd.f32 0.2548296, %v4975_v50  ;;  %v4963_v18 = vadd.f32 -0.28449672, %v4950_v60 }
0x1567   :  { %v5117_v54 = vsel %vm5091_vm12, %v5078_v58, %v5104_v43  ;;  %v5001_v52 = vmul.f32 %v7255_v40, %v4988_v57  ;;  %v4976_v48 = vmul.f32 %v7257_v30, %v4963_v18 }
0x1568   :  { %v5130_v33 = vadd.f32 1.0, %v5117_v54 }
0x1569   :  { %v5066_v3 = vmul.f32 %v7261_v21, %v5001_v52  ;;  %v4989_v44 = vadd.f32 0.2548296, %v4976_v48 }
0x156a   :  { %v5143_v34 = vmul.f32 %v5130_v33, %v4805_v35 }
0x156b   :  { %v5079_v46 = vsub.f32 1.0, %v5066_v3  ;;  %v5002_v5 = vmul.f32 %v7257_v30, %v4989_v44 }
0x156c   :  { %6823 = vmatmul.mubr.msk.f32.gmra.mxu1 %vm2596_vm9, %v5143_v34 }
0x156d   :  { %v5105_v36 = vsub.f32 0.0, %v5079_v46  ;;  %v5067_v59 = vmul.f32 %v7263_v11, %v5002_v5  ;;  %6825 = vmatprep.mubr.msk.f32.mxu1 %vm7306_vm1, %v10774_v1 }
0x156f   :  { %v5118_v32 = vsel %vm5092_vm13, %v5079_v46, %v5105_v36  ;;  %v5080_v20 = vsub.f32 1.0, %v5067_v59 }
0x1570   :  { %v5131_v24 = vadd.f32 1.0, %v5118_v32 }
0x1571   :  { %v5106_v63 = vsub.f32 0.0, %v5080_v20 }
0x1572   :  { %v5144_v55 = vmul.f32 %v5131_v24, %v4806_v8 }
0x1573   :  { %v5119_v16 = vsel %vm5093_vm0, %v5080_v20, %v5106_v63 }
0x1574   :  { %v5132_v38 = vadd.f32 1.0, %v5119_v16  ;;  %6826 = vmatmul.mubr.msk.f32.gmra.mxu1 %vm2596_vm9, %v5144_v55 }
0x1575   :  { %6828 = vmatprep.mubr.msk.f32.mxu1 %vm7306_vm1, %v10774_v1 }
0x1576   :  { %v5145_v17 = vmul.f32 %v5132_v38, %v4807_v39 }
0x1578   :  { %6829 = vmatmul.mubr.msk.f32.gmra.mxu1 %vm2596_vm9, %v5145_v17 }
0x15d3   :  { %v5399_v10 = vpop.xlane.xlu0 %5398 }
0x15d4   :  { %v5400_v19 = vsub.f32 %v10727_v25, %v5399_v10 }
0x15d6   :  { %v5401_v45 = vmul.f32 1.442695, %v5400_v19 }
0x15d8   :  { %7264 = vpow2.f32 %v5401_v45 }
0x15de   :  { %v5281_v53 = vpop.f32.mrf.mxu1 }
0x15e0   :  { %v6815_v0 = vpop.f32.mrf.mxu1 }
0x15e5   :  { %v7265_v6 = vpop.eup %7264 }
0x15e6   :  { %v5403_v51 = vsel %vm5396_vm11, %v7265_v6, 0.0 }
0x15e7   :  { %5404 = vadd.xlane.f32.xlu1 %v5403_v51 }
0x15f4   :  { %v5285_v12 = vpop.f32.mrf.mxu1 }
0x15f6   :  { %v6818_v56 = vpop.f32.mrf.mxu1 }
0x15f8   :  { %v5289_v7 = vpop.f32.mrf.mxu1 }
0x15fa   :  { %v6821_v40 = vpop.f32.mrf.mxu1 }
0x162c   :  { %v5293_v62 = vpop.f32.mrf.mxu1 }
0x162e   :  { %v6824_v1 = vpop.f32.mrf.mxu1 }
0x1634   :  { %v5297_v29 = vpop.f32.mrf.mxu1 }
0x1636   :  { %v6827_v22 = vpop.f32.mrf.mxu1 }
0x1638   :  { %v5301_v49 = vpop.f32.mrf.mxu1 }
0x163a   :  { %v6830_v23 = vpop.f32.mrf.mxu1 }
0x1670   :  { %v5405_v27 = vpop.xlane.xlu1 %5404 }
0x1671   :  { %7266 = vrcp.f32 %v5405_v27 }
0x167e   :  { %v7267_v25 = vpop.eup %7266 }
0x167f   :  { %v5407_v30 = vmul.f32 %v7267_v25, %v7265_v6 }
0x1681   :  { %5408 = vst [vmem:[#allocation2] sm:$0x3] %v5407_v30 }
0x1682   :  { %7294 = shalt.err (!%p7291_p4)
}
0x1683   :  { %5418 = dma.vmem_to_hbm [thread:$0]  %s5416_s20, 32, %s10756_s7, [#allocation3]  }
0x1684   :  { %7303 = dma.done.wait [#allocation3], 32  }
0x1685   :  { %7304 = vsyncadd [#allocation3], 4294967264 }
0x1686   :  { %5422 = vsyncpa [#allocation3], 1 }

</bundles_post_ra>
